<compile_context>
chip_gen: v5e
topology: v5e:2x2
jax: 0.10.0
libtpu: 0.0.40
codegen_flags: <defaults>
</compile_context>

<pallas_src>
import jax
import jax.numpy as jnp
import numpy as np
from jax import lax
from jax.experimental import pallas as pl
from jax.experimental.pallas import tpu as pltpu

TCN_K = 9    # temporal kernel size
TCN_PAD = 4  # temporal padding


def stgcn_block_kernel(x_ref, m1_ref, b1_ref, w2_ref, b2_ref, o_ref, gpad_ref):
    # Block shapes (static):
    #   x_ref  : (NB, T, VC)      f32     m1_ref : (VC, VC)          bf16
    #   b1_ref : (1, VC)          f32     w2_ref : (TCN_K, VC, VC)   bf16
    #   b2_ref : (1, VC)          f32     o_ref  : (NB, T, VC)       f32
    #   gpad_ref (scratch): (NB, T + 2*TCN_PAD, VC) bf16
    NB, T, VC = x_ref.shape

    # Zero the temporal padding rows of the scratch.
    # NOTE: intentionally NOT hoisted behind @pl.when(program_id==0): under
    # megacore ("parallel") grid splitting each TensorCore gets its own scratch
    # and only one core would execute step 0.  The two (NB, 4, VC) bf16 stores
    # are ~16 KiB/step -- negligible.
    zero_pad = jnp.zeros((NB, TCN_PAD, VC), jnp.bfloat16)
    gpad_ref[:, 0:TCN_PAD, :] = zero_pad
    gpad_ref[:, TCN_PAD + T:2 * TCN_PAD + T, :] = zero_pad

    # ---------------- unit_gcn: one lane-dense batched matmul ----------------
    # (NB*T, VC) x (VC, VC) with BN1 scale folded into M; bias/shift after.
    x = x_ref[...].reshape(NB * T, VC)                       # f32
    g = jnp.dot(x.astype(jnp.bfloat16), m1_ref[...],
                preferred_element_type=jnp.float32)          # (NB*T, VC) f32
    g = jnp.maximum(g + b1_ref[...], 0.0)                    # bias+BN shift, ReLU

    # store g once into the zero-padded temporal window [PAD : PAD+T]
    gpad_ref[:, TCN_PAD:TCN_PAD + T, :] = (
        g.astype(jnp.bfloat16).reshape(NB, T, VC))

    # ---------------- unit_tcn: 9 shifted-window dots, f32 accumulate --------
    # y[t] = sum_dt gpad[t + dt] @ kron(I_V, W2_dt)   (BN2 scale folded in)
    acc = jnp.dot(gpad_ref[:, 0:T, :].reshape(NB * T, VC), w2_ref[0],
                  preferred_element_type=jnp.float32)        # (NB*T, VC) f32
    for dt in range(1, TCN_K):                               # static unroll (8)
        acc = acc + jnp.dot(
            gpad_ref[:, dt:dt + T, :].reshape(NB * T, VC), w2_ref[dt],
            preferred_element_type=jnp.float32)

    # bias + BN2 shift + identity residual; lane-dense full-width store.
    # (No outer ReLU: the provided forward() does not apply self.relu.)
    o_ref[...] = acc.reshape(NB, T, VC) + b2_ref[...] + x_ref[...]


def fold_stgcn_params(params, eps=1e-5):
    """Fold conv/adjacency/BN parameters into lane-dense matmul weights."""
    K, V, _ = params['A'].shape
    Cout = params['bn1_gamma'].shape[0]
    Cin = params['w1'].shape[1]
    assert Cin == Cout, "identity residual path requires in_channels == out_channels"
    C = Cout
    VC = V * C
    hp = lax.Precision.HIGHEST

    A_eff = params['A'] * params['PA']                                  # (K,V,V)
    s1 = params['bn1_gamma'] / jnp.sqrt(params['bn1_var'] + eps)
    sh1 = params['bn1_beta'] - params['bn1_mean'] * s1
    s2 = params['bn2_gamma'] / jnp.sqrt(params['bn2_var'] + eps)
    sh2 = params['bn2_beta'] - params['bn2_mean'] * s2

    # GCN kron weight: M[v*C+i, w*C+c] = sum_k A_k[v,w] * W1_k[c,i] * s1[c]
    W1k = params['w1'][:, :, 0, 0].reshape(K, C, C)                     # [k,c,i]
    M = jnp.einsum('kvw,kci->viwc', A_eff, W1k * s1[None, :, None],
                   precision=hp).reshape(VC, VC)
    # effective GCN bias (bias applied before the adjacency contraction)
    b1k = params['b1'].reshape(K, C)                                    # [k,c]
    colsum = A_eff.sum(axis=1)                                          # [k,w]
    Bg = (jnp.einsum('kw,kc->wc', colsum, b1k, precision=hp) * s1[None, :]
          + sh1[None, :]).reshape(1, VC)

    # TCN per-tap block-diagonal weights:
    #   W2[dt, v*C+i, w*C+c] = (v==w) * w2[c,i,dt] * s2[c]
    # TODO(synk): 9*(V*C)^2 scaling -- switch to (T*V, 9C)@(9C, C) or stream
    # taps over a grid axis for realistic channel counts (v7x VMEM = 64 MiB).
    w2_eff = jnp.transpose(params['w2'][:, :, :, 0], (2, 1, 0)) \
        * s2[None, None, :]                                             # (9,Ci,Co)
    eye_v = jnp.eye(V, dtype=jnp.float32)
    W2 = jnp.einsum('vw,dic->dviwc', eye_v, w2_eff,
                    precision=hp).reshape(TCN_K, VC, VC)
    b2_eff = params['b2'] * s2 + sh2                                    # (C,)
    B2 = jnp.tile(b2_eff, V).reshape(1, VC)                             # (1,VC)

    return (M.astype(jnp.bfloat16), Bg.astype(jnp.float32),
            W2.astype(jnp.bfloat16), B2.astype(jnp.float32))


def _samples_per_step(N, T, target_rows=256, max_rows=512):
    """Batch samples per grid step so matmuls see ~128-512 rows, while keeping
    at least 2 grid steps (feeds both TensorCores on dual-TC chips)."""
    nb = max(1, min(max_rows, target_rows) // max(T, 1))
    nb = min(nb, N)
    if N >= 2:
        nb = min(nb, max(1, -(-N // 2)))   # ensure >= 2 grid steps
    return max(nb, 1)


def stgcn_block_lane_dense(x_ntvc, folded, *, samples_per_step=None):
    """Lane-dense STGCN block: x_ntvc (N, T, V*C) f32 -> (N, T, V*C) f32.

    For stacked STGCN blocks keep activations in this (N, T, V*C) layout and
    chain calls to this function; only the model boundary needs NCTV
    transposes (avoids a per-block HBM transpose round trip).
    """
    M, Bg, W2, B2 = folded
    N, T, VC = x_ntvc.shape
    assert M.shape == (VC, VC)

    NB = samples_per_step or _samples_per_step(N, T)
    G = -(-N // NB)                     # number of grid steps
    Npad = G * NB
    x_in = x_ntvc.astype(jnp.float32)
    # NOTE: x could be passed bf16 to halve input DMA (residual then upcast);
    # at this size the DMA is negligible so we keep the exact f32 residual.
    if Npad != N:
        x_in = jnp.pad(x_in, ((0, Npad - N), (0, 0), (0, 0)))

    flops = 2 * Npad * T * VC * VC * (1 + TCN_K)
    bytes_accessed = (Npad * T * VC * 4 * 2          # x in + out
                      + VC * VC * 2                  # GCN kron weight (bf16)
                      + TCN_K * VC * VC * 2          # TCN tap weights (bf16)
                      + 2 * VC * 4)                  # bias rows

    out = pl.pallas_call(
        stgcn_block_kernel,
        out_shape=jax.ShapeDtypeStruct((Npad, T, VC), jnp.float32),
        grid_spec=pltpu.PrefetchScalarGridSpec(
            num_scalar_prefetch=0,
            grid=(G,),
            in_specs=[
                pl.BlockSpec((NB, T, VC), lambda n: (n, 0, 0)),          # x
                # Grid-invariant operands: constant index_map -> fetched once,
                # never re-DMA'd.  ~2.5 MiB double-buffered at this config; at
                # large VC single-buffer via pipeline_mode=pl.Buffered(1) and
                # raise vmem_limit_bytes.
                pl.BlockSpec((VC, VC), lambda n: (0, 0)),                # GCN W
                pl.BlockSpec((1, VC), lambda n: (0, 0)),                 # GCN bias
                pl.BlockSpec((TCN_K, VC, VC), lambda n: (0, 0, 0)),      # TCN W
                pl.BlockSpec((1, VC), lambda n: (0, 0)),                 # TCN bias
            ],
            out_specs=pl.BlockSpec((NB, T, VC), lambda n: (n, 0, 0)),
            scratch_shapes=[
                pltpu.VMEM((NB, T + 2 * TCN_PAD, VC), jnp.bfloat16),     # padded g
            ],
        ),
        compiler_params=pltpu.CompilerParams(
            dimension_semantics=("parallel",)),
        cost_estimate=pl.CostEstimate(
            flops=flops, transcendentals=0, bytes_accessed=bytes_accessed),
    )(x_in, M, Bg, W2, B2)

    return out[:N] if Npad != N else out


def stgcn_block_pallas(x_nctv, params, eps=1e-5):
    """x_nctv: (N, C, T, V) float32.  Returns (N, C, T, V)."""
    N, C, T, V = x_nctv.shape
    folded = fold_stgcn_params(params, eps)
    # Boundary transposes only; stacked blocks should stay lane-dense.
    x_flat = jnp.transpose(x_nctv, (0, 2, 3, 1)).reshape(N, T, V * C)
    out = stgcn_block_lane_dense(x_flat, folded)
    return jnp.transpose(out.reshape(N, T, V, C), (0, 3, 1, 2))         # (N,C,T,V)


def stgcn_block_reference(x_nctv, params, eps=1e-5):
    """Pure-JAX reference matching the PyTorch module semantics (eval mode)."""
    N, C, T, V = x_nctv.shape
    K = params['A'].shape[0]
    Cout = params['bn1_gamma'].shape[0]
    A_eff = params['A'] * params['PA']

    h = lax.conv_general_dilated(
        x_nctv, params['w1'], window_strides=(1, 1), padding='VALID',
        dimension_numbers=('NCHW', 'OIHW', 'NCHW'),
        precision=lax.Precision.HIGHEST) + params['b1'][None, :, None, None]
    h = h.reshape(N, K, Cout, T, V)
    g = jnp.einsum('nkctv,kvw->nctw', h, A_eff, precision=lax.Precision.HIGHEST)
    s1 = params['bn1_gamma'] / jnp.sqrt(params['bn1_var'] + eps)
    g = (g - params['bn1_mean'][None, :, None, None]) * s1[None, :, None, None] \
        + params['bn1_beta'][None, :, None, None]
    g = jax.nn.relu(g)

    y = lax.conv_general_dilated(
        g, params['w2'], window_strides=(1, 1),
        padding=((TCN_PAD, TCN_PAD), (0, 0)),
        dimension_numbers=('NCHW', 'OIHW', 'NCHW'),
        precision=lax.Precision.HIGHEST) + params['b2'][None, :, None, None]
    s2 = params['bn2_gamma'] / jnp.sqrt(params['bn2_var'] + eps)
    y = (y - params['bn2_mean'][None, :, None, None]) * s2[None, :, None, None] \
        + params['bn2_beta'][None, :, None, None]
    return y + x_nctv   # identity residual, no outer ReLU in the given forward


def make_params(key, C, K, V):
    ks = jax.random.split(key, 16)
    return {
        'A': jax.random.uniform(ks[0], (K, V, V), jnp.float32) / V,
        'PA': jnp.ones((K, V, V), jnp.float32),          # adaptive='importance' init
        'w1': 0.1 * jax.random.normal(ks[1], (K * C, C, 1, 1), jnp.float32),
        'b1': 0.1 * jax.random.normal(ks[2], (K * C,), jnp.float32),
        'bn1_gamma': jax.random.uniform(ks[3], (C,), jnp.float32, 0.8, 1.2),
        'bn1_beta': 0.1 * jax.random.normal(ks[4], (C,), jnp.float32),
        'bn1_mean': 0.1 * jax.random.normal(ks[5], (C,), jnp.float32),
        'bn1_var': jax.random.uniform(ks[6], (C,), jnp.float32, 0.5, 1.5),
        'w2': 0.05 * jax.random.normal(ks[7], (C, C, TCN_K, 1), jnp.float32),
        'b2': 0.1 * jax.random.normal(ks[8], (C,), jnp.float32),
        'bn2_gamma': jax.random.uniform(ks[9], (C,), jnp.float32, 0.8, 1.2),
        'bn2_beta': 0.1 * jax.random.normal(ks[10], (C,), jnp.float32),
        'bn2_mean': 0.1 * jax.random.normal(ks[11], (C,), jnp.float32),
        'bn2_var': jax.random.uniform(ks[12], (C,), jnp.float32, 0.5, 1.5),
    }


if __name__ == "__main__":
    # batch, channels, frames, joints, subsets.  V*C = 256 lanes (lane-dense);
    # 8 samples/grid-step -> 128-row matmuls, 2 grid steps (dual-TC friendly).
    N, C, T, V, K = 16, 16, 16, 16, 3

    key = jax.random.PRNGKey(0)
    kx, kp = jax.random.split(key)
    x = jax.random.normal(kx, (N, C, T, V), jnp.float32)
    params = make_params(kp, C, K, V)

    out = stgcn_block_pallas(x, params)
    out = jax.block_until_ready(out)

    ref = jax.block_until_ready(stgcn_block_reference(x, params))
    # bf16 MXU operands (f32 accumulation); observed error ~1e-3.
    np.testing.assert_allclose(np.asarray(out), np.asarray(ref),
                               rtol=1e-2, atol=1e-2)

    print("KERNEL_OK")
</pallas_src>

<mosaic_0001>
module attributes {stable_mosaic.version = 11 : i64} {
  func.func @stgcn_block_kernel(%arg0: i32, %arg1: memref<8x16x256xf32, #tpu.memory_space<vmem>>, %arg2: memref<256x256xbf16, #tpu.memory_space<vmem>>, %arg3: memref<1x256xf32, #tpu.memory_space<vmem>>, %arg4: memref<9x256x256xbf16, #tpu.memory_space<vmem>>, %arg5: memref<1x256xf32, #tpu.memory_space<vmem>>, %arg6: memref<8x16x256xf32, #tpu.memory_space<vmem>>, %arg7: memref<8x24x256xbf16, #tpu.memory_space<vmem>>) attributes {dimension_semantics = [#tpu.dimension_semantics<parallel>], iteration_bounds = array<i64: 2>, scalar_prefetch = 0 : i64, scratch_operands = 1 : i64, tpu.core_type = #tpu.core_type<tc>, window_params = [{transform_indices = @transform_0, window_bounds = array<i64: 8, 16, 256>}, {pipeline_mode = #tpu.pipeline_mode<synchronous>, transform_indices = @transform_1, window_bounds = array<i64: 256, 256>}, {pipeline_mode = #tpu.pipeline_mode<synchronous>, transform_indices = @transform_2, window_bounds = array<i64: 1, 256>}, {pipeline_mode = #tpu.pipeline_mode<synchronous>, transform_indices = @transform_3, window_bounds = array<i64: 9, 256, 256>}, {pipeline_mode = #tpu.pipeline_mode<synchronous>, transform_indices = @transform_4, window_bounds = array<i64: 1, 256>}, {transform_indices = @transform_5, window_bounds = array<i64: 8, 16, 256>}]} {
    %cst = arith.constant 0.000000e+00 : bf16
    %0 = vector.broadcast %cst : bf16 to vector<8x4x256xbf16>
    %c0 = arith.constant 0 : index
    %c0_0 = arith.constant 0 : index
    %c0_1 = arith.constant 0 : index
    %1 = vector.load %arg7[%c0, %c0_0, %c0_1] : memref<8x24x256xbf16, #tpu.memory_space<vmem>>, vector<8x4x256xbf16>
    tpu.vector_store %arg7[%c0, %c0_0, %c0_1], %0 {strides = array<i32>} : memref<8x24x256xbf16, #tpu.memory_space<vmem>>, vector<8x4x256xbf16>,
    %c0_2 = arith.constant 0 : index
    %c20 = arith.constant 20 : index
    %c0_3 = arith.constant 0 : index
    %2 = vector.load %arg7[%c0_2, %c20, %c0_3] : memref<8x24x256xbf16, #tpu.memory_space<vmem>>, vector<8x4x256xbf16>
    tpu.vector_store %arg7[%c0_2, %c20, %c0_3], %0 {strides = array<i32>} : memref<8x24x256xbf16, #tpu.memory_space<vmem>>, vector<8x4x256xbf16>,
    %c0_4 = arith.constant 0 : index
    %c0_5 = arith.constant 0 : index
    %c0_6 = arith.constant 0 : index
    %3 = vector.load %arg1[%c0_4, %c0_5, %c0_6] : memref<8x16x256xf32, #tpu.memory_space<vmem>>, vector<8x16x256xf32>
    %4 = vector.shape_cast %3 : vector<8x16x256xf32> to vector<128x256xf32>
    %5 = arith.truncf %4 : vector<128x256xf32> to vector<128x256xbf16>
    %c0_7 = arith.constant 0 : index
    %c0_8 = arith.constant 0 : index
    %6 = vector.load %arg2[%c0_7, %c0_8] : memref<256x256xbf16, #tpu.memory_space<vmem>>, vector<256x256xbf16>
    %cst_9 = arith.constant dense<0.000000e+00> : vector<128x256xf32>
    %7 = tpu.matmul %5, %6, %cst_9 {dimension_numbers = #tpu.dot_dimension_numbers<[1], [0], [0], [1], [0, 0, 1, 1], [], []>} : vector<128x256xbf16>, vector<256x256xbf16>, vector<128x256xf32> -> vector<128x256xf32>
    %c0_10 = arith.constant 0 : index
    %c0_11 = arith.constant 0 : index
    %8 = vector.load %arg3[%c0_10, %c0_11] : memref<1x256xf32, #tpu.memory_space<vmem>>, vector<1x256xf32>
    %9 = vector.broadcast %8 : vector<1x256xf32> to vector<128x256xf32>
    %10 = arith.addf %7, %9 : vector<128x256xf32>
    %cst_12 = arith.constant 0.000000e+00 : f32
    %11 = vector.broadcast %cst_12 : f32 to vector<128x256xf32>
    %12 = arith.maximumf %10, %11 : vector<128x256xf32>
    %13 = arith.truncf %12 : vector<128x256xf32> to vector<128x256xbf16>
    %14 = vector.shape_cast %13 : vector<128x256xbf16> to vector<8x16x256xbf16>
    %c0_13 = arith.constant 0 : index
    %c4 = arith.constant 4 : index
    %c0_14 = arith.constant 0 : index
    %15 = vector.load %arg7[%c0_13, %c4, %c0_14] : memref<8x24x256xbf16, #tpu.memory_space<vmem>>, vector<8x16x256xbf16>
    tpu.vector_store %arg7[%c0_13, %c4, %c0_14], %14 {strides = array<i32>} : memref<8x24x256xbf16, #tpu.memory_space<vmem>>, vector<8x16x256xbf16>,
    %c0_15 = arith.constant 0 : index
    %c0_16 = arith.constant 0 : index
    %c0_17 = arith.constant 0 : index
    %16 = vector.load %arg7[%c0_15, %c0_16, %c0_17] : memref<8x24x256xbf16, #tpu.memory_space<vmem>>, vector<8x16x256xbf16>
    %17 = vector.shape_cast %16 : vector<8x16x256xbf16> to vector<128x256xbf16>
    %c0_18 = arith.constant 0 : index
    %c0_19 = arith.constant 0 : index
    %c0_20 = arith.constant 0 : index
    %18 = vector.load %arg4[%c0_18, %c0_19, %c0_20] : memref<9x256x256xbf16, #tpu.memory_space<vmem>>, vector<1x256x256xbf16>
    %19 = vector.shape_cast %18 : vector<1x256x256xbf16> to vector<256x256xbf16>
    %cst_21 = arith.constant dense<0.000000e+00> : vector<128x256xf32>
    %20 = tpu.matmul %17, %19, %cst_21 {dimension_numbers = #tpu.dot_dimension_numbers<[1], [0], [0], [1], [0, 0, 1, 1], [], []>} : vector<128x256xbf16>, vector<256x256xbf16>, vector<128x256xf32> -> vector<128x256xf32>
    %c0_22 = arith.constant 0 : index
    %c1 = arith.constant 1 : index
    %c0_23 = arith.constant 0 : index
    %21 = vector.load %arg7[%c0_22, %c1, %c0_23] : memref<8x24x256xbf16, #tpu.memory_space<vmem>>, vector<8x16x256xbf16>
    %22 = vector.shape_cast %21 : vector<8x16x256xbf16> to vector<128x256xbf16>
    %c1_24 = arith.constant 1 : index
    %c0_25 = arith.constant 0 : index
    %c0_26 = arith.constant 0 : index
    %23 = vector.load %arg4[%c1_24, %c0_25, %c0_26] : memref<9x256x256xbf16, #tpu.memory_space<vmem>>, vector<1x256x256xbf16>
    %24 = vector.shape_cast %23 : vector<1x256x256xbf16> to vector<256x256xbf16>
    %cst_27 = arith.constant dense<0.000000e+00> : vector<128x256xf32>
    %25 = tpu.matmul %22, %24, %cst_27 {dimension_numbers = #tpu.dot_dimension_numbers<[1], [0], [0], [1], [0, 0, 1, 1], [], []>} : vector<128x256xbf16>, vector<256x256xbf16>, vector<128x256xf32> -> vector<128x256xf32>
    %26 = arith.addf %20, %25 : vector<128x256xf32>
    %c0_28 = arith.constant 0 : index
    %c2 = arith.constant 2 : index
    %c0_29 = arith.constant 0 : index
    %27 = vector.load %arg7[%c0_28, %c2, %c0_29] : memref<8x24x256xbf16, #tpu.memory_space<vmem>>, vector<8x16x256xbf16>
    %28 = vector.shape_cast %27 : vector<8x16x256xbf16> to vector<128x256xbf16>
    %c2_30 = arith.constant 2 : index
    %c0_31 = arith.constant 0 : index
    %c0_32 = arith.constant 0 : index
    %29 = vector.load %arg4[%c2_30, %c0_31, %c0_32] : memref<9x256x256xbf16, #tpu.memory_space<vmem>>, vector<1x256x256xbf16>
    %30 = vector.shape_cast %29 : vector<1x256x256xbf16> to vector<256x256xbf16>
    %cst_33 = arith.constant dense<0.000000e+00> : vector<128x256xf32>
    %31 = tpu.matmul %28, %30, %cst_33 {dimension_numbers = #tpu.dot_dimension_numbers<[1], [0], [0], [1], [0, 0, 1, 1], [], []>} : vector<128x256xbf16>, vector<256x256xbf16>, vector<128x256xf32> -> vector<128x256xf32>
    %32 = arith.addf %26, %31 : vector<128x256xf32>
    %c0_34 = arith.constant 0 : index
    %c3 = arith.constant 3 : index
    %c0_35 = arith.constant 0 : index
    %33 = vector.load %arg7[%c0_34, %c3, %c0_35] : memref<8x24x256xbf16, #tpu.memory_space<vmem>>, vector<8x16x256xbf16>
    %34 = vector.shape_cast %33 : vector<8x16x256xbf16> to vector<128x256xbf16>
    %c3_36 = arith.constant 3 : index
    %c0_37 = arith.constant 0 : index
    %c0_38 = arith.constant 0 : index
    %35 = vector.load %arg4[%c3_36, %c0_37, %c0_38] : memref<9x256x256xbf16, #tpu.memory_space<vmem>>, vector<1x256x256xbf16>
    %36 = vector.shape_cast %35 : vector<1x256x256xbf16> to vector<256x256xbf16>
    %cst_39 = arith.constant dense<0.000000e+00> : vector<128x256xf32>
    %37 = tpu.matmul %34, %36, %cst_39 {dimension_numbers = #tpu.dot_dimension_numbers<[1], [0], [0], [1], [0, 0, 1, 1], [], []>} : vector<128x256xbf16>, vector<256x256xbf16>, vector<128x256xf32> -> vector<128x256xf32>
    %38 = arith.addf %32, %37 : vector<128x256xf32>
    %c0_40 = arith.constant 0 : index
    %c4_41 = arith.constant 4 : index
    %c0_42 = arith.constant 0 : index
    %39 = vector.load %arg7[%c0_40, %c4_41, %c0_42] : memref<8x24x256xbf16, #tpu.memory_space<vmem>>, vector<8x16x256xbf16>
    %40 = vector.shape_cast %39 : vector<8x16x256xbf16> to vector<128x256xbf16>
    %c4_43 = arith.constant 4 : index
    %c0_44 = arith.constant 0 : index
    %c0_45 = arith.constant 0 : index
    %41 = vector.load %arg4[%c4_43, %c0_44, %c0_45] : memref<9x256x256xbf16, #tpu.memory_space<vmem>>, vector<1x256x256xbf16>
    %42 = vector.shape_cast %41 : vector<1x256x256xbf16> to vector<256x256xbf16>
    %cst_46 = arith.constant dense<0.000000e+00> : vector<128x256xf32>
    %43 = tpu.matmul %40, %42, %cst_46 {dimension_numbers = #tpu.dot_dimension_numbers<[1], [0], [0], [1], [0, 0, 1, 1], [], []>} : vector<128x256xbf16>, vector<256x256xbf16>, vector<128x256xf32> -> vector<128x256xf32>
    %44 = arith.addf %38, %43 : vector<128x256xf32>
    %c0_47 = arith.constant 0 : index
    %c5 = arith.constant 5 : index
    %c0_48 = arith.constant 0 : index
    %45 = vector.load %arg7[%c0_47, %c5, %c0_48] : memref<8x24x256xbf16, #tpu.memory_space<vmem>>, vector<8x16x256xbf16>
    %46 = vector.shape_cast %45 : vector<8x16x256xbf16> to vector<128x256xbf16>
    %c5_49 = arith.constant 5 : index
    %c0_50 = arith.constant 0 : index
    %c0_51 = arith.constant 0 : index
    %47 = vector.load %arg4[%c5_49, %c0_50, %c0_51] : memref<9x256x256xbf16, #tpu.memory_space<vmem>>, vector<1x256x256xbf16>
    %48 = vector.shape_cast %47 : vector<1x256x256xbf16> to vector<256x256xbf16>
    %cst_52 = arith.constant dense<0.000000e+00> : vector<128x256xf32>
    %49 = tpu.matmul %46, %48, %cst_52 {dimension_numbers = #tpu.dot_dimension_numbers<[1], [0], [0], [1], [0, 0, 1, 1], [], []>} : vector<128x256xbf16>, vector<256x256xbf16>, vector<128x256xf32> -> vector<128x256xf32>
    %50 = arith.addf %44, %49 : vector<128x256xf32>
    %c0_53 = arith.constant 0 : index
    %c6 = arith.constant 6 : index
    %c0_54 = arith.constant 0 : index
    %51 = vector.load %arg7[%c0_53, %c6, %c0_54] : memref<8x24x256xbf16, #tpu.memory_space<vmem>>, vector<8x16x256xbf16>
    %52 = vector.shape_cast %51 : vector<8x16x256xbf16> to vector<128x256xbf16>
    %c6_55 = arith.constant 6 : index
    %c0_56 = arith.constant 0 : index
    %c0_57 = arith.constant 0 : index
    %53 = vector.load %arg4[%c6_55, %c0_56, %c0_57] : memref<9x256x256xbf16, #tpu.memory_space<vmem>>, vector<1x256x256xbf16>
    %54 = vector.shape_cast %53 : vector<1x256x256xbf16> to vector<256x256xbf16>
    %cst_58 = arith.constant dense<0.000000e+00> : vector<128x256xf32>
    %55 = tpu.matmul %52, %54, %cst_58 {dimension_numbers = #tpu.dot_dimension_numbers<[1], [0], [0], [1], [0, 0, 1, 1], [], []>} : vector<128x256xbf16>, vector<256x256xbf16>, vector<128x256xf32> -> vector<128x256xf32>
    %56 = arith.addf %50, %55 : vector<128x256xf32>
    %c0_59 = arith.constant 0 : index
    %c7 = arith.constant 7 : index
    %c0_60 = arith.constant 0 : index
    %57 = vector.load %arg7[%c0_59, %c7, %c0_60] : memref<8x24x256xbf16, #tpu.memory_space<vmem>>, vector<8x16x256xbf16>
    %58 = vector.shape_cast %57 : vector<8x16x256xbf16> to vector<128x256xbf16>
    %c7_61 = arith.constant 7 : index
    %c0_62 = arith.constant 0 : index
    %c0_63 = arith.constant 0 : index
    %59 = vector.load %arg4[%c7_61, %c0_62, %c0_63] : memref<9x256x256xbf16, #tpu.memory_space<vmem>>, vector<1x256x256xbf16>
    %60 = vector.shape_cast %59 : vector<1x256x256xbf16> to vector<256x256xbf16>
    %cst_64 = arith.constant dense<0.000000e+00> : vector<128x256xf32>
    %61 = tpu.matmul %58, %60, %cst_64 {dimension_numbers = #tpu.dot_dimension_numbers<[1], [0], [0], [1], [0, 0, 1, 1], [], []>} : vector<128x256xbf16>, vector<256x256xbf16>, vector<128x256xf32> -> vector<128x256xf32>
    %62 = arith.addf %56, %61 : vector<128x256xf32>
    %c0_65 = arith.constant 0 : index
    %c8 = arith.constant 8 : index
    %c0_66 = arith.constant 0 : index
    %63 = vector.load %arg7[%c0_65, %c8, %c0_66] : memref<8x24x256xbf16, #tpu.memory_space<vmem>>, vector<8x16x256xbf16>
    %64 = vector.shape_cast %63 : vector<8x16x256xbf16> to vector<128x256xbf16>
    %c8_67 = arith.constant 8 : index
    %c0_68 = arith.constant 0 : index
    %c0_69 = arith.constant 0 : index
    %65 = vector.load %arg4[%c8_67, %c0_68, %c0_69] : memref<9x256x256xbf16, #tpu.memory_space<vmem>>, vector<1x256x256xbf16>
    %66 = vector.shape_cast %65 : vector<1x256x256xbf16> to vector<256x256xbf16>
    %cst_70 = arith.constant dense<0.000000e+00> : vector<128x256xf32>
    %67 = tpu.matmul %64, %66, %cst_70 {dimension_numbers = #tpu.dot_dimension_numbers<[1], [0], [0], [1], [0, 0, 1, 1], [], []>} : vector<128x256xbf16>, vector<256x256xbf16>, vector<128x256xf32> -> vector<128x256xf32>
    %68 = arith.addf %62, %67 : vector<128x256xf32>
    %69 = vector.shape_cast %68 : vector<128x256xf32> to vector<8x16x256xf32>
    %c0_71 = arith.constant 0 : index
    %c0_72 = arith.constant 0 : index
    %70 = vector.load %arg5[%c0_71, %c0_72] : memref<1x256xf32, #tpu.memory_space<vmem>>, vector<1x256xf32>
    %71 = vector.shape_cast %70 : vector<1x256xf32> to vector<1x1x256xf32>
    %72 = vector.broadcast %71 : vector<1x1x256xf32> to vector<8x16x256xf32>
    %73 = arith.addf %69, %72 : vector<8x16x256xf32>
    %c0_73 = arith.constant 0 : index
    %c0_74 = arith.constant 0 : index
    %c0_75 = arith.constant 0 : index
    %74 = vector.load %arg1[%c0_73, %c0_74, %c0_75] : memref<8x16x256xf32, #tpu.memory_space<vmem>>, vector<8x16x256xf32>
    %75 = arith.addf %73, %74 : vector<8x16x256xf32>
    %c0_76 = arith.constant 0 : index
    %c0_77 = arith.constant 0 : index
    %c0_78 = arith.constant 0 : index
    %76 = vector.load %arg6[%c0_76, %c0_77, %c0_78] : memref<8x16x256xf32, #tpu.memory_space<vmem>>, vector<8x16x256xf32>
    tpu.vector_store %arg6[%c0_76, %c0_77, %c0_78], %75 {strides = array<i32>} : memref<8x16x256xf32, #tpu.memory_space<vmem>>, vector<8x16x256xf32>,
    return
  }
  func.func @transform_0(%arg0: i32) -> (i32, i32, i32) {
    %c0_i32 = arith.constant 0 : i32
    %c0_i32_0 = arith.constant 0 : i32
    %c0_i32_1 = arith.constant 0 : i32
    return %arg0, %c0_i32, %c0_i32_0 : i32, i32, i32
  }
  func.func @transform_1(%arg0: i32) -> (i32, i32) {
    %c0_i32 = arith.constant 0 : i32
    %c0_i32_0 = arith.constant 0 : i32
    %c0_i32_1 = arith.constant 0 : i32
    return %c0_i32, %c0_i32_0 : i32, i32
  }
  func.func @transform_2(%arg0: i32) -> (i32, i32) {
    %c0_i32 = arith.constant 0 : i32
    %c0_i32_0 = arith.constant 0 : i32
    %c0_i32_1 = arith.constant 0 : i32
    return %c0_i32, %c0_i32_0 : i32, i32
  }
  func.func @transform_3(%arg0: i32) -> (i32, i32, i32) {
    %c0_i32 = arith.constant 0 : i32
    %c0_i32_0 = arith.constant 0 : i32
    %c0_i32_1 = arith.constant 0 : i32
    %c0_i32_2 = arith.constant 0 : i32
    return %c0_i32, %c0_i32_0, %c0_i32_1 : i32, i32, i32
  }
  func.func @transform_4(%arg0: i32) -> (i32, i32) {
    %c0_i32 = arith.constant 0 : i32
    %c0_i32_0 = arith.constant 0 : i32
    %c0_i32_1 = arith.constant 0 : i32
    return %c0_i32, %c0_i32_0 : i32, i32
  }
  func.func @transform_5(%arg0: i32) -> (i32, i32, i32) {
    %c0_i32 = arith.constant 0 : i32
    %c0_i32_0 = arith.constant 0 : i32
    %c0_i32_1 = arith.constant 0 : i32
    return %arg0, %c0_i32, %c0_i32_0 : i32, i32, i32
  }
}

</mosaic_0001>

<bundles_post_ra>
// kernel: tpu_custom_call.1
= control target key start
LH: loop header
LB: loop body
LE: loop exit
PB: predicated region body
PF: predicated region fallthrough
CT: control target
= control target key end

     0   :  { %10 = vsyncpa [#allocation4], 0  ;;  %s10409_s0 = inlined_call_operand.hbm [shape: f32[16,16,256], index: 0, kind: input, shape index: {}]   ;;  %s10410_s1 = inlined_call_operand.hbm [shape: bf16[256,256], index: 1, kind: input, shape index: {}]   ;;  %s10411_s2 = inlined_call_operand.hbm [shape: f32[1,256], index: 2, kind: input, shape index: {}]   ;;  %s10412_s3 = inlined_call_operand.hbm [shape: bf16[9,256,256], index: 3, kind: input, shape index: {}]   ;;  %s10413_s4 = inlined_call_operand.hbm [shape: f32[1,256], index: 4, kind: input, shape index: {}]   ;;  %s10414_s5 = inlined_call_operand.hbm [shape: f32[16,16,256], index: 5, kind: output, shape index: {}]  }
   0x1   :  { %12 = vsyncpa [#allocation4 + $0x1], 0 }
   0x2   :  { %13 = vsyncpa [#allocation7], 0 }
   0x3   :  { %14 = vsyncpa [#allocation10], 0 }
   0x4   :  { %15 = vsyncpa [#allocation5], 0 }
   0x5   :  { %17 = vsyncpa [#allocation5 + $0x1], 0  ;;  %s8751_s18 = smov 0   ;;  %s8753_s19 = smov 0  }
   0x6   :  { %s8755_s20 = smov 0   ;;  %s8757_s21 = smov 0  }
   0x7 LB: > { %s8772_s22 = sadd.s32 4294967295, %s8708_s21   ;;  %s6536_s23 = sadd.s32 4294967294, %s8708_s21   ;;  %s8708_s21 = sphi %s8757_s21, %s10559_s21   ;;  %s8704_s20 = sphi %s8755_s20, %s10558_s20   ;;  %s8700_s19 = sphi %s8753_s19, %s10557_s19   ;;  %s8696_s18 = sphi %s8751_s18, %s10556_s18  }
   0x8   : > { %p43_p0 = scmp.ne.s32.totalorder %s8700_s19, %s8696_s18  ;;  %p44_p1 = scmp.eq.s32.totalorder %s8772_s22, 0 }
   0x9   : > { %p151_p2 = scmp.eq.s32.totalorder %s8772_s22, 1  ;;  %p157_p3 = scmp.eq.s32.totalorder %s6536_s23, 1 }
   0xa   : > { %p8781_p4 = por %p44_p1, %p43_p0  ;;  %p6537_p5 = scmp.ge.s32.totalorder %s8708_s21, 1 }
   0xb   : > { %p8786_p6 = por %p157_p3, %p43_p0  ;;  %p164_p7 = scmp.lt.s32.totalorder %s8708_s21, 3 }
   0xc   : > { %s175_s28 = sshll.u32 %s10410_s1, 4  ;;  %s8710_s30 = smov [#allocation6]   ;;  %s176_s28 = int_to_ptr.hbm [resolvable:$true] %s175_s28 }
   0xd   : > { %p8794_p8 = pnand %p6537_p5, %p164_p7  ;;  %s177_s6 = sshll.u32 %s8710_s30, 4  ;;  %s178_s6 = int_to_ptr.vmem [resolvable:$true] %s177_s6 }
   0xe   : > { %s201_s10 = sshll.u32 %s10412_s3, 4  ;;  %s8711_s11 = smov 128   ;;  %s202_s10 = int_to_ptr.hbm [resolvable:$true] %s201_s10 }
   0xf   : > { %p8376_p9 = pneg %p8794_p8  ;;  %s8712_s12 = smov 8  }
  0x10   : > { %s8713_s13 = smov [#allocation9]   ;;  %s190_s17 = sshll.u32 %s10411_s2, 4  ;;  %s191_s17 = int_to_ptr.hbm [resolvable:$true] %s190_s17 }
  0x11   : > { %p8802_p10 = pnand %p8376_p9, %p44_p1  ;;  %s203_s14 = sshll.u32 %s8713_s13, 4  ;;  %s204_s14 = int_to_ptr.vmem [resolvable:$true] %s203_s14 }
  0x12   : > { %s216_s27 = sshll.u32 %s10413_s4, 4  ;;  %s8825_s9 = sadd.s32 1, %s8708_s21   ;;  %s217_s27 = int_to_ptr.hbm [resolvable:$true] %s216_s27 }
  0x13   : > { %8379 = dma.hbm_to_vmem [thread:$0]  (!%p8802_p10), %s176_s28, 4096, %s178_s6, [#allocation7], %s8711_s11, %s8711_s11, %s8712_s12  }
  0x14   : > { %8385 = dma.hbm_to_vmem [thread:$0]  (!%p8802_p10), %s202_s10, 36864, %s204_s14, [#allocation10], %s8711_s11, %s8711_s11, %s8712_s12  }
  0x15   : > { %s8714_s28 = smov [#allocation8]   ;;  %s8715_s6 = smov [#allocation11]  }
  0x16   : > { %s192_s30 = sshll.u32 %s8714_s28, 4  ;;  %s218_s8 = sshll.u32 %s8715_s6, 4  ;;  %s193_s30 = int_to_ptr.vmem [resolvable:$true] %s192_s30  ;;  %s219_s8 = int_to_ptr.vmem [resolvable:$true] %s218_s8 }
  0x17   : > { %8382 = dma.hbm_to_vmem [thread:$0]  (!%p8802_p10), %s191_s17, 32, %s193_s30, [#allocation7]  }
  0x18   : > { %8388 = dma.hbm_to_vmem [thread:$0]  (!%p8802_p10), %s217_s27, 32, %s219_s8, [#allocation10]  }
  0x19   : > { %s30_s10 = sadd.s32 1, %s8704_s20  ;;  %s27_s11 = ssub.s32 %s8708_s21, %s8825_s9 }
  0x1a   : > { %p37_p12 = scmp.ne.s32.totalorder %s8704_s20, %s8700_s19  ;;  %p28_p13 = scmp.eq.s32.totalorder %s27_s11, 0 }
  0x1b   : > { %p38_p0 = scmp.eq.s32.totalorder %s8708_s21, 0  ;;  %p8401_p5 = scmp.lt.s32.totalorder %s8708_s21, 2 }
  0x1c   : > { %p8835_p3 = por %p151_p2, %p37_p12  ;;  %s229_s14 = sand.u32 1, %s8704_s20  }
  0x1d   : > { %s8841_s13 = scalar_select %p28_p13, %s8704_s20, %s30_s10  }
  0x1e   : > { %p39_p7 = por %p38_p0, %p37_p12  ;;  %s6543_s7 = sshll.u32 %s229_s14, 8 }
  0x1f   : > { %s8001_s15 = sshll.u32 %s8708_s21, 8  ;;  %s233_s26 = scalar_lea.vmem [#allocation3], %s6543_s7 }
  0x20   : > { %s239_s23 = scalar_lea.hbm %s10409_s0, %s8001_s15  ;;  %s242_s27 = sshll.u32 %s233_s26, 4  ;;  %s243_s27 = int_to_ptr.vmem [resolvable:$true] %s242_s27 }
  0x21   : > { %s240_s28 = sshll.u32 %s239_s23, 4  ;;  %p8848_p2 = pnand %p8401_p5, %p39_p7  ;;  %s241_s28 = int_to_ptr.hbm [resolvable:$true] %s240_s28 }
  0x22   : > { %s230_s6 = scalar_lea.sflag [#allocation4], %s229_s14  ;;  %s8604_s8 = sshra.s32 %s241_s28, 4  ;;  %s8605_s8 = int_to_ptr.hbm [resolvable:$true] %s8604_s8 }
  0x23   : > { %s8606_s10 = scalar_lea.hbm %s8605_s8, 256  ;;  %p8608_p10 = pneg %p8848_p2 }
  0x24   : > { %p8607_p9 = scmp.ne.s32.totalorder %s8605_s8, %s8606_s10  ;;  %s8611_s15 = scalar_lea.hbm %s10409_s0, 512 }
  0x25   : > { %p8612_p0 = scmp.lt.s32.totalorder %s8605_s8, %s10409_s0  ;;  %p8613_p5 = scmp.lt.s32.totalorder %s8611_s15, %s8606_s10 }
  0x26   : > { %p8609_p12 = pnand %p8608_p10, %p8607_p9 }
  0x27   : > { %p8614_p7 = por %p8613_p5, %p8612_p0 }
  0x28   : > { %p8610_p13 = pneg %p8609_p12 }
  0x2a   : > { %p8615_p11 = pnand %p8614_p7, %p8610_p13 }
  0x2c   : > { %8618 = shalt.err (!%p8615_p11)
}
  0x2d   : > { %s8716_s14 = smov 256   ;;  %s8717_s23 = smov 16  }
  0x2e   : > { %8392 = dma.hbm_to_vmem [thread:$0]  (!%p8848_p2), %s241_s28, 4096, %s243_s27, %s230_s6, %s8716_s14, %s8716_s14, %s8717_s23  }
  0x2f   : > { %254 = sbr.rel (%p8794_p8) target bundleno = 1554 (0x612), region = 40 }
  0x34   : > { %s8865_s26 = sand.u32 1, %s8700_s19  }
  0x35   : > { %s6548_s8 = sshll.u32 %s8865_s26, 8  ;;  %s257_s10 = scalar_lea.sflag [#allocation4], %s8865_s26 }
  0x36   : > { %s8871_s11 = scalar_lea.vmem [#allocation3], %s6548_s8 }
  0x37   : > { %8679 = dma.done.wait (%p8781_p4), %s257_s10, 4096  }
  0x38   : > { %8681 = vsyncadd (%p8781_p4), %s257_s10, 4294963200 }
  0x39   : > { %8683 = dma.done.wait (%p44_p1), [#allocation7], 4128  }
  0x3a   : > { %8685 = vsyncadd (%p44_p1), [#allocation7], 4294963168 }
  0x3b   : > { %8687 = dma.done.wait (%p44_p1), [#allocation10], 36896  }
  0x3c   : > { %8689 = vsyncadd (%p44_p1), [#allocation10], 4294930400  ;;  %v6612_v0 = vld [vmem:[#allocation6 + $0x70] sm:$0xf]  ;;  %v8017_v1 = vld [vmem:[#allocation6 + $0x74] sm:$0xf0] }
  0x3d   : > { %v6676_v2 = vld [vmem:[#allocation6 + $0xf0] sm:$0xf]  ;;  %v6613_v3 = vor.u32 %v8017_v1, %v6612_v0  ;;  %v8033_v4 = vld [vmem:[#allocation6 + $0xf4] sm:$0xf0]  ;;  %v8016_v5 = vld [vmem:[#allocation6 + $0x74] sm:$0xf] }
  0x3e   : > { %v6614_v6 = vld [vmem:[#allocation6 + $0x78] sm:$0xf0]  ;;  %v6677_v7 = vor.u32 %v8033_v4, %v6676_v2  ;;  %v8032_v9 = vld [vmem:[#allocation6 + $0xf4] sm:$0xf]  ;;  %v6604_v11 = vld [vmem:[#allocation6 + $0x60] sm:$0xf] }
  0x3f   : > { %v6617_v8 = vor.u32 %v8016_v5, %v6614_v6  ;;  %v6678_v10 = vld [vmem:[#allocation6 + $0xf8] sm:$0xf0]  ;;  %573 = vmatpush.bf16.msra.mxu0 %v6613_v3  ;;  %v8015_v13 = vld [vmem:[#allocation6 + $0x64] sm:$0xf0]  ;;  %v6668_v14 = vld [vmem:[#allocation6 + $0xe0] sm:$0xf] }
  0x40   : > { %v6681_v12 = vor.u32 %v8032_v9, %v6678_v10  ;;  %v8031_v15 = vld [vmem:[#allocation6 + $0xe4] sm:$0xf0]  ;;  %622 = vmatpush.bf16.msra.mxu1 %v6677_v7  ;;  %v6605_v16 = vor.u32 %v8015_v13, %v6604_v11  ;;  %v8014_v18 = vld [vmem:[#allocation6 + $0x64] sm:$0xf]  ;;  %v6606_v19 = vld [vmem:[#allocation6 + $0x68] sm:$0xf0] }
  0x41   : > { %671 = vmatpush.bf16.msra.mxu2 %v6617_v8  ;;  %v6669_v17 = vor.u32 %v8031_v15, %v6668_v14  ;;  %v8030_v20 = vld [vmem:[#allocation6 + $0xe4] sm:$0xf]  ;;  %v6609_v21 = vor.u32 %v8014_v18, %v6606_v19  ;;  %v6670_v22 = vld [vmem:[#allocation6 + $0xe8] sm:$0xf0]  ;;  %v6596_v23 = vld [vmem:[#allocation6 + $0x50] sm:$0xf] }
  0x42   : > { %720 = vmatpush.bf16.msra.mxu3 %v6681_v12  ;;  %v8013_v24 = vld [vmem:[#allocation6 + $0x54] sm:$0xf0]  ;;  %v6673_v25 = vor.u32 %v8030_v20, %v6670_v22  ;;  %v6660_v26 = vld [vmem:[#allocation6 + $0xd0] sm:$0xf]  ;;  %v8012_v28 = vld [vmem:[#allocation6 + $0x54] sm:$0xf] }
  0x43   : > { %v8029_v27 = vld [vmem:[#allocation6 + $0xd4] sm:$0xf0]  ;;  %574 = vmatpush.bf16.msra.mxu0 %v6605_v16  ;;  %v6597_v29 = vor.u32 %v8013_v24, %v6596_v23  ;;  %v6598_v30 = vld [vmem:[#allocation6 + $0x58] sm:$0xf0]  ;;  %v8028_v31 = vld [vmem:[#allocation6 + $0xd4] sm:$0xf] }
  0x44   : > { %v6662_v32 = vld [vmem:[#allocation6 + $0xd8] sm:$0xf0]  ;;  %623 = vmatpush.bf16.msra.mxu1 %v6669_v17  ;;  %v6661_v33 = vor.u32 %v8029_v27, %v6660_v26  ;;  %v6601_v34 = vor.u32 %v8012_v28, %v6598_v30  ;;  %v6588_v35 = vld [vmem:[#allocation6 + $0x40] sm:$0xf]  ;;  %v8011_v36 = vld [vmem:[#allocation6 + $0x44] sm:$0xf0] }
  0x45   : > { %672 = vmatpush.bf16.msra.mxu2 %v6609_v21  ;;  %v6652_v37 = vld [vmem:[#allocation6 + $0xc0] sm:$0xf]  ;;  %v6665_v38 = vor.u32 %v8028_v31, %v6662_v32  ;;  %v8027_v39 = vld [vmem:[#allocation6 + $0xc4] sm:$0xf0]  ;;  %v8010_v40 = vld [vmem:[#allocation6 + $0x44] sm:$0xf]  ;;  %v6589_v44 = vor.u32 %v8011_v36, %v6588_v35 }
  0x46   : > { %721 = vmatpush.bf16.msra.mxu3 %v6673_v25  ;;  %v6590_v41 = vld [vmem:[#allocation6 + $0x48] sm:$0xf0]  ;;  %v8026_v42 = vld [vmem:[#allocation6 + $0xc4] sm:$0xf]  ;;  %v6653_v45 = vor.u32 %v8027_v39, %v6652_v37  ;;  %v6580_v47 = vld [vmem:[#allocation6 + $0x30] sm:$0xf] }
  0x47   : > { %v6654_v43 = vld [vmem:[#allocation6 + $0xc8] sm:$0xf0]  ;;  %575 = vmatpush.bf16.msra.mxu0 %v6597_v29  ;;  %v6593_v46 = vor.u32 %v8010_v40, %v6590_v41  ;;  %v8009_v48 = vld [vmem:[#allocation6 + $0x34] sm:$0xf0]  ;;  %v6644_v49 = vld [vmem:[#allocation6 + $0xb0] sm:$0xf] }
  0x48   : > { %624 = vmatpush.bf16.msra.mxu1 %v6661_v33  ;;  %v6657_v50 = vor.u32 %v8026_v42, %v6654_v43  ;;  %v8025_v51 = vld [vmem:[#allocation6 + $0xb4] sm:$0xf0]  ;;  %v8008_v52 = vld [vmem:[#allocation6 + $0x34] sm:$0xf]  ;;  %v6582_v53 = vld [vmem:[#allocation6 + $0x38] sm:$0xf0]  ;;  %v6581_v56 = vor.u32 %v8009_v48, %v6580_v47 }
  0x49   : > { %673 = vmatpush.bf16.msra.mxu2 %v6601_v34  ;;  %v8024_v54 = vld [vmem:[#allocation6 + $0xb4] sm:$0xf]  ;;  %v6646_v55 = vld [vmem:[#allocation6 + $0xb8] sm:$0xf0]  ;;  %v6645_v57 = vor.u32 %v8025_v51, %v6644_v49  ;;  %v6585_v58 = vor.u32 %v8008_v52, %v6582_v53  ;;  %v6572_v59 = vld [vmem:[#allocation6 + $0x20] sm:$0xf] }
  0x4a   : > { %722 = vmatpush.bf16.msra.mxu3 %v6665_v38  ;;  %v8007_v60 = vld [vmem:[#allocation6 + $0x24] sm:$0xf0]  ;;  %v6636_v61 = vld [vmem:[#allocation6 + $0xa0] sm:$0xf]  ;;  %v6649_v62 = vor.u32 %v8024_v54, %v6646_v55  ;;  %v8006_v0 = vld [vmem:[#allocation6 + $0x24] sm:$0xf] }
  0x4b   : > { %576 = vmatpush.bf16.msra.mxu0 %v6589_v44  ;;  %v8023_v63 = vld [vmem:[#allocation6 + $0xa4] sm:$0xf0]  ;;  %v6574_v1 = vld [vmem:[#allocation6 + $0x28] sm:$0xf0]  ;;  %v8022_v2 = vld [vmem:[#allocation6 + $0xa4] sm:$0xf]  ;;  %v6573_v4 = vor.u32 %v8007_v60, %v6572_v59 }
  0x4c   : > { %625 = vmatpush.bf16.msra.mxu1 %v6653_v45  ;;  %v6638_v3 = vld [vmem:[#allocation6 + $0xa8] sm:$0xf0]  ;;  %v6637_v5 = vor.u32 %v8023_v63, %v6636_v61  ;;  %v6577_v6 = vor.u32 %v8006_v0, %v6574_v1  ;;  %v6564_v7 = vld [vmem:[#allocation6 + $0x10] sm:$0xf]  ;;  %v8005_v8 = vld [vmem:[#allocation6 + $0x14] sm:$0xf0] }
  0x4d   : > { %674 = vmatpush.bf16.msra.mxu2 %v6593_v46  ;;  %v6628_v9 = vld [vmem:[#allocation6 + $0x90] sm:$0xf]  ;;  %v6641_v10 = vor.u32 %v8022_v2, %v6638_v3  ;;  %v8021_v11 = vld [vmem:[#allocation6 + $0x94] sm:$0xf0]  ;;  %v8004_v12 = vld [vmem:[#allocation6 + $0x14] sm:$0xf]  ;;  %v6565_v16 = vor.u32 %v8005_v8, %v6564_v7 }
  0x4e   : > { %723 = vmatpush.bf16.msra.mxu3 %v6657_v50  ;;  %v6566_v13 = vld [vmem:[#allocation6 + $0x18] sm:$0xf0]  ;;  %v8020_v14 = vld [vmem:[#allocation6 + $0x94] sm:$0xf]  ;;  %v6629_v17 = vor.u32 %v8021_v11, %v6628_v9  ;;  %v6556_v19 = vld [vmem:[#allocation6] sm:$0xf] }
  0x4f   : > { %577 = vmatpush.bf16.msra.mxu0 %v6581_v56  ;;  %v6630_v15 = vld [vmem:[#allocation6 + $0x98] sm:$0xf0]  ;;  %v6569_v18 = vor.u32 %v8004_v12, %v6566_v13  ;;  %v8003_v20 = vld [vmem:[#allocation6 + $0x4] sm:$0xf0]  ;;  %v6620_v21 = vld [vmem:[#allocation6 + $0x80] sm:$0xf] }
  0x50   : > { %626 = vmatpush.bf16.msra.mxu1 %v6645_v57  ;;  %v6633_v22 = vor.u32 %v8020_v14, %v6630_v15  ;;  %v8019_v23 = vld [vmem:[#allocation6 + $0x84] sm:$0xf0]  ;;  %v8002_v24 = vld [vmem:[#allocation6 + $0x4] sm:$0xf]  ;;  %v6558_v25 = vld [vmem:[#allocation6 + $0x8] sm:$0xf0]  ;;  %v6557_v28 = vor.u32 %v8003_v20, %v6556_v19 }
  0x51   : > { %675 = vmatpush.bf16.msra.mxu2 %v6585_v58  ;;  %v8018_v26 = vld [vmem:[#allocation6 + $0x84] sm:$0xf]  ;;  %v6622_v27 = vld [vmem:[#allocation6 + $0x88] sm:$0xf0]  ;;  %v329_v30 = vld [vmem:[%s8871_s11 + $0x10] sm:$0xff]  ;;  %v6621_v31 = vor.u32 %v8019_v23, %v6620_v21  ;;  %v6561_v32 = vor.u32 %v8002_v24, %v6558_v25  ;;  %vm833_vm0 = vcmask 1041408  }
  0x52   : > { %724 = vmatpush.bf16.msra.mxu3 %v6649_v62  ;;  %v327_v29 = vld [vmem:[%s8871_s11] sm:$0xff]  ;;  %v328_v33 = vld [vmem:[%s8871_s11 + $0x8] sm:$0xff]  ;;  %v330_v34 = vld [vmem:[%s8871_s11 + $0x18] sm:$0xff]  ;;  %v6625_v35 = vor.u32 %v8018_v26, %v6622_v27  ;;  %vm834_vm1 = vcmask 1045508   ;;  %vm996_vm3 = vsmask.f32 3328 }
  0x53   : > { %578 = vmatpush.bf16.msra.mxu0 %v6573_v4  ;;  %v359_v36 = vpack.c.bf16 %v329_v30, %v327_v29  ;;  %v360_v37 = vpack.c.bf16 %v330_v34, %v328_v33  ;;  %v8104_v38 = vld [vmem:[#allocation9 + $0x174] sm:$0xf]  ;;  %v6742_v39 = vld [vmem:[#allocation9 + $0x178] sm:$0xf0]  ;;  %v332_v46 = vld [vmem:[%s8871_s11 + $0x28] sm:$0xff]  ;;  %vm2112_vm6 = vcmask 1042432  }
  0x54   : > { %627 = vmatpush.bf16.msra.mxu1 %v6637_v5  ;;  %v8120_v40 = vld [vmem:[#allocation9 + $0x1f4] sm:$0xf]  ;;  %v6745_v41 = vor.u32 %v8104_v38, %v6742_v39  ;;  %v6806_v42 = vld [vmem:[#allocation9 + $0x1f8] sm:$0xf0]  ;;  %v6740_v50 = vld [vmem:[#allocation9 + $0x170] sm:$0xf] }
  0x55   : > { %676 = vmatpush.bf16.msra.mxu2 %v6577_v6  ;;  %v6809_v43 = vor.u32 %v8120_v40, %v6806_v42  ;;  %v331_v44 = vld [vmem:[%s8871_s11 + $0x20] sm:$0xff]  ;;  %v333_v45 = vld [vmem:[%s8871_s11 + $0x30] sm:$0xff]  ;;  %v334_v47 = vld [vmem:[%s8871_s11 + $0x38] sm:$0xff]  ;;  %vm997_vm4 = vsmask.f32 7440  ;;  %vm2113_vm7 = vcmask 1046532  }
  0x56   : > { %725 = vmatpush.bf16.msra.mxu3 %v6641_v10  ;;  %v361_v48 = vpack.c.bf16 %v333_v45, %v331_v44  ;;  %v362_v49 = vpack.c.bf16 %v334_v47, %v332_v46  ;;  %v8105_v51 = vld [vmem:[#allocation9 + $0x174] sm:$0xf0]  ;;  %v6804_v52 = vld [vmem:[#allocation9 + $0x1f0] sm:$0xf]  ;;  %v8102_v55 = vld [vmem:[#allocation9 + $0x164] sm:$0xf] }
  0x57   : > { %579 = vmatpush.bf16.msra.mxu0 %v6565_v16  ;;  %v6741_v53 = vor.u32 %v8105_v51, %v6740_v50  ;;  %v8121_v54 = vld [vmem:[#allocation9 + $0x1f4] sm:$0xf0]  ;;  %v6734_v56 = vld [vmem:[#allocation9 + $0x168] sm:$0xf0]  ;;  %v8118_v59 = vld [vmem:[#allocation9 + $0x1e4] sm:$0xf] }
  0x58   : > { %628 = vmatpush.bf16.msra.mxu1 %v6629_v17  ;;  %v6805_v57 = vor.u32 %v8121_v54, %v6804_v52  ;;  %v6737_v58 = vor.u32 %v8102_v55, %v6734_v56  ;;  %v6798_v60 = vld [vmem:[#allocation9 + $0x1e8] sm:$0xf0]  ;;  %v335_v62 = vld [vmem:[%s8871_s11 + $0x40] sm:$0xff]  ;;  %v338_v1 = vld [vmem:[%s8871_s11 + $0x58] sm:$0xff]  ;;  %vm2664_vm9 = vsmask.f32 2304 }
  0x59   : > { %677 = vmatpush.bf16.msra.mxu2 %v6569_v18  ;;  %v6801_v61 = vor.u32 %v8118_v59, %v6798_v60  ;;  %v337_v63 = vld [vmem:[%s8871_s11 + $0x50] sm:$0xff]  ;;  %v336_v0 = vld [vmem:[%s8871_s11 + $0x48] sm:$0xff]  ;;  %v6732_v4 = vld [vmem:[#allocation9 + $0x160] sm:$0xf]  ;;  %vm2665_vm10 = vsmask.f32 6416 }
  0x5a   : > { %726 = vmatpush.bf16.msra.mxu3 %v6633_v22  ;;  %v363_v2 = vpack.c.bf16 %v337_v63, %v335_v62  ;;  %v364_v3 = vpack.c.bf16 %v338_v1, %v336_v0  ;;  %v8103_v5 = vld [vmem:[#allocation9 + $0x164] sm:$0xf0]  ;;  %v6796_v6 = vld [vmem:[#allocation9 + $0x1e0] sm:$0xf]  ;;  %v8100_v9 = vld [vmem:[#allocation9 + $0x154] sm:$0xf] }
  0x5b   : > { %580 = vmatpush.bf16.msra.mxu0 %v6557_v28  ;;  %v6733_v7 = vor.u32 %v8103_v5, %v6732_v4  ;;  %v8119_v8 = vld [vmem:[#allocation9 + $0x1e4] sm:$0xf0]  ;;  %v6726_v10 = vld [vmem:[#allocation9 + $0x158] sm:$0xf0]  ;;  %v8116_v13 = vld [vmem:[#allocation9 + $0x1d4] sm:$0xf] }
  0x5c   : > { %629 = vmatpush.bf16.msra.mxu1 %v6621_v31  ;;  %v6797_v11 = vor.u32 %v8119_v8, %v6796_v6  ;;  %v6729_v12 = vor.u32 %v8100_v9, %v6726_v10  ;;  %v6790_v14 = vld [vmem:[#allocation9 + $0x1d8] sm:$0xf0]  ;;  %v341_v17 = vld [vmem:[%s8871_s11 + $0x70] sm:$0xff]  ;;  %v340_v18 = vld [vmem:[%s8871_s11 + $0x68] sm:$0xff]  ;;  %vm3909_vm12 = vsmask.f32 1280 }
  0x5d   : > { %678 = vmatpush.bf16.msra.mxu2 %v6561_v32  ;;  %v6793_v15 = vor.u32 %v8116_v13, %v6790_v14  ;;  %v339_v16 = vld [vmem:[%s8871_s11 + $0x60] sm:$0xff]  ;;  %v342_v19 = vld [vmem:[%s8871_s11 + $0x78] sm:$0xff]  ;;  %v6724_v22 = vld [vmem:[#allocation9 + $0x150] sm:$0xf]  ;;  %vm3910_vm13 = vsmask.f32 5392 }
  0x5e   : > { %727 = vmatpush.bf16.msra.mxu3 %v6625_v35  ;;  %581 = vmatmul.bf16.vlgmr.msra.gmra.mxu0 %v359_v36  ;;  %v365_v20 = vpack.c.bf16 %v341_v17, %v339_v16  ;;  %v366_v21 = vpack.c.bf16 %v342_v19, %v340_v18  ;;  %v8101_v23 = vld [vmem:[#allocation9 + $0x154] sm:$0xf0]  ;;  %v6788_v24 = vld [vmem:[#allocation9 + $0x1d0] sm:$0xf]  ;;  %v8098_v27 = vld [vmem:[#allocation9 + $0x144] sm:$0xf] }
  0x5f   : > { %630 = vmatmul.bf16.vlgmr.msra.gmra.mxu1 %v360_v37  ;;  %1448 = vmatpush.bf16.msrb.mxu0 %v6741_v53  ;;  %v6725_v25 = vor.u32 %v8101_v23, %v6724_v22  ;;  %v8117_v26 = vld [vmem:[#allocation9 + $0x1d4] sm:$0xf0]  ;;  %v6718_v28 = vld [vmem:[#allocation9 + $0x148] sm:$0xf0]  ;;  %v8114_v31 = vld [vmem:[#allocation9 + $0x1c4] sm:$0xf] }
  0x60   : > { %679 = vmatmul.bf16.vlgmr.msra.gmra.mxu2 %v359_v36  ;;  %1497 = vmatpush.bf16.msrb.mxu1 %v6805_v57  ;;  %v6789_v29 = vor.u32 %v8117_v26, %v6788_v24  ;;  %v6721_v30 = vor.u32 %v8098_v27, %v6718_v28  ;;  %v6782_v32 = vld [vmem:[#allocation9 + $0x1c8] sm:$0xf0]  ;;  %v343_v34 = vld [vmem:[%s8871_s11 + $0x80] sm:$0xff]  ;;  %v8115_v44 = vld [vmem:[#allocation9 + $0x1c4] sm:$0xf0]  ;;  %v8718_v24 = vmov 0  }
  0x61   : > { %728 = vmatmul.bf16.vlgmr.msra.gmra.mxu3 %v360_v37  ;;  %1546 = vmatpush.bf16.msrb.mxu2 %v6745_v41  ;;  %v6785_v33 = vor.u32 %v8114_v31, %v6782_v32  ;;  %v345_v35 = vld [vmem:[%s8871_s11 + $0x90] sm:$0xff]  ;;  %v344_v36 = vld [vmem:[%s8871_s11 + $0x88] sm:$0xff]  ;;  %v346_v37 = vld [vmem:[%s8871_s11 + $0x98] sm:$0xff]  ;;  %311 = vst [vmem:[#allocation2] sm:$0x33] %v8718_v24  ;;  %vm4605_vm15 = vcmask 1040384  }
  0x62   : > { %1595 = vmatpush.bf16.msrb.mxu3 %v6809_v43  ;;  %v367_v38 = vpack.c.bf16 %v345_v35, %v343_v34  ;;  %v368_v39 = vpack.c.bf16 %v346_v37, %v344_v36  ;;  %v6716_v40 = vld [vmem:[#allocation9 + $0x140] sm:$0xf]  ;;  %v8099_v41 = vld [vmem:[#allocation9 + $0x144] sm:$0xf0]  ;;  %v8096_v45 = vld [vmem:[#allocation9 + $0x134] sm:$0xf] }
  0x63   : > { %1449 = vmatpush.bf16.msrb.mxu0 %v6733_v7  ;;  %v6780_v42 = vld [vmem:[#allocation9 + $0x1c0] sm:$0xf]  ;;  %v6717_v43 = vor.u32 %v8099_v41, %v6716_v40  ;;  %v6710_v46 = vld [vmem:[#allocation9 + $0x138] sm:$0xf0]  ;;  %v349_v53 = vld [vmem:[%s8871_s11 + $0xb0] sm:$0xff]  ;;  %s10248_s24 = scalar_lea.vmem [#allocation12], %s6548_s8 }
  0x64   : > { %1498 = vmatpush.bf16.msrb.mxu1 %v6797_v11  ;;  %v6781_v47 = vor.u32 %v8115_v44, %v6780_v42  ;;  %v6774_v50 = vld [vmem:[#allocation9 + $0x1b8] sm:$0xf0]  ;;  %v348_v54 = vld [vmem:[%s8871_s11 + $0xa8] sm:$0xff]  ;;  %v8097_v59 = vld [vmem:[#allocation9 + $0x134] sm:$0xf0]  ;;  %s8355_s29 = sshll.u32 %s8772_s22, 8 }
  0x65   : > { %1547 = vmatpush.bf16.msrb.mxu2 %v6737_v58  ;;  %v347_v52 = vld [vmem:[%s8871_s11 + $0xa0] sm:$0xff]  ;;  %v350_v55 = vld [vmem:[%s8871_s11 + $0xb8] sm:$0xff]  ;;  %v6708_v58 = vld [vmem:[#allocation9 + $0x130] sm:$0xf]  ;;  %312 = vst [vmem:[#allocation2 + $0x18] sm:$0x33] %v8718_v24  ;;  %s6421_s30 = scalar_lea.hbm %s10414_s5, %s8355_s29 }
  0x66   : > { %1596 = vmatpush.bf16.msrb.mxu3 %v6801_v61  ;;  %v369_v56 = vpack.c.bf16 %v349_v53, %v347_v52  ;;  %v370_v57 = vpack.c.bf16 %v350_v55, %v348_v54  ;;  %v6772_v60 = vld [vmem:[#allocation9 + $0x1b0] sm:$0xf]  ;;  %v6709_v61 = vor.u32 %v8097_v59, %v6708_v58  ;;  %v8113_v62 = vld [vmem:[#allocation9 + $0x1b4] sm:$0xf0]  ;;  %v8094_v63 = vld [vmem:[#allocation9 + $0x124] sm:$0xf] }
  0x67   : > { %1450 = vmatpush.bf16.msrb.mxu0 %v6725_v25  ;;  %v6702_v0 = vld [vmem:[#allocation9 + $0x128] sm:$0xf0]  ;;  %v6773_v1 = vor.u32 %v8113_v62, %v6772_v60  ;;  %v351_v6 = vld [vmem:[%s8871_s11 + $0xc0] sm:$0xff]  ;;  %v354_v9 = vld [vmem:[%s8871_s11 + $0xd8] sm:$0xff]  ;;  %313 = vst [vmem:[#allocation2 + $0x30] sm:$0x33] %v8718_v24 }
  0x68   : > { %1499 = vmatpush.bf16.msrb.mxu1 %v6789_v29  ;;  %v6766_v4 = vld [vmem:[#allocation9 + $0x1a8] sm:$0xf0]  ;;  %v8095_v13 = vld [vmem:[#allocation9 + $0x124] sm:$0xf0]  ;;  %v6764_v14 = vld [vmem:[#allocation9 + $0x1a0] sm:$0xf] }
  0x69   : > { %1548 = vmatpush.bf16.msrb.mxu2 %v6729_v12  ;;  %v353_v7 = vld [vmem:[%s8871_s11 + $0xd0] sm:$0xff]  ;;  %v352_v8 = vld [vmem:[%s8871_s11 + $0xc8] sm:$0xff]  ;;  %v6700_v12 = vld [vmem:[#allocation9 + $0x120] sm:$0xf]  ;;  %314 = vst [vmem:[#allocation2 + $0x48] sm:$0x33] %v8718_v24 }
  0x6a   : > { %1597 = vmatpush.bf16.msrb.mxu3 %v6793_v15  ;;  %v371_v10 = vpack.c.bf16 %v353_v7, %v351_v6  ;;  %v372_v11 = vpack.c.bf16 %v354_v9, %v352_v8  ;;  %v6701_v15 = vor.u32 %v8095_v13, %v6700_v12  ;;  %v8111_v16 = vld [vmem:[#allocation9 + $0x1a4] sm:$0xf0]  ;;  %v355_v18 = vld [vmem:[%s8871_s11 + $0xe0] sm:$0xff]  ;;  %v357_v19 = vld [vmem:[%s8871_s11 + $0xf0] sm:$0xff]  ;;  %315 = vst [vmem:[#allocation2 + $0x60] sm:$0x33] %v8718_v24 }
  0x6b   : > { %1451 = vmatpush.bf16.msrb.mxu0 %v6717_v43  ;;  %v6765_v17 = vor.u32 %v8111_v16, %v6764_v14  ;;  %v373_v22 = vpack.c.bf16 %v357_v19, %v355_v18  ;;  %v407_v25 = vld [vmem:[#allocation8] sm:$0x3]  ;;  %316 = vst [vmem:[#allocation2 + $0x78] sm:$0x33] %v8718_v24  ;;  %v8092_v27 = vld [vmem:[#allocation9 + $0x114] sm:$0xf]  ;;  %vm8926_vm2 = vmor %vm833_vm0, %vm834_vm1 }
  0x6c   : > { %1500 = vmatpush.bf16.msrb.mxu1 %v6781_v47  ;;  %317 = vst [vmem:[#allocation2 + $0x90] sm:$0x33] %v8718_v24  ;;  %v8917_v26 = vperm.slane %v407_v25, 0  ;;  %v6694_v28 = vld [vmem:[#allocation9 + $0x118] sm:$0xf0]  ;;  %v8920_v42 = vperm.slane %v407_v25, 1  ;;  %vm8944_vm5 = vmor %vm996_vm3, %vm997_vm4 }
  0x6d   : > { %1549 = vmatpush.bf16.msrb.mxu2 %v6721_v30  ;;  %318 = vst [vmem:[#allocation2 + $0xa8] sm:$0x33] %v8718_v24  ;;  %v8108_v29 = vld [vmem:[#allocation9 + $0x194] sm:$0xf]  ;;  %v6697_v30 = vor.u32 %v8092_v27, %v6694_v28  ;;  %v6758_v31 = vld [vmem:[#allocation9 + $0x198] sm:$0xf0]  ;;  %vm9124_vm8 = vmor %vm2112_vm6, %vm2113_vm7 }
  0x6e   : > { %586 = vmatmul.bf16.gmra.mxu0 %v361_v48  ;;  %1598 = vmatpush.bf16.msrb.mxu3 %v6785_v33  ;;  %319 = vst [vmem:[#allocation2 + $0x10] sm:$0xcc] %v8718_v24  ;;  %v6692_v32 = vld [vmem:[#allocation9 + $0x110] sm:$0xf]  ;;  %v8093_v33 = vld [vmem:[#allocation9 + $0x114] sm:$0xf0]  ;;  %v6761_v34 = vor.u32 %v8108_v29, %v6758_v31  ;;  %vm9276_vm11 = vmor %vm2664_vm9, %vm2665_vm10 }
  0x6f   : > { %635 = vmatmul.bf16.gmra.mxu1 %v362_v49  ;;  %1452 = vmatpush.bf16.msrb.mxu0 %v6709_v61  ;;  %v6693_v35 = vor.u32 %v8093_v33, %v6692_v32  ;;  %v6756_v36 = vld [vmem:[#allocation9 + $0x190] sm:$0xf]  ;;  %v8109_v37 = vld [vmem:[#allocation9 + $0x194] sm:$0xf0]  ;;  %320 = vst [vmem:[#allocation2 + $0x28] sm:$0xcc] %v8718_v24  ;;  %vm9625_vm14 = vmor %vm3909_vm12, %vm3910_vm13 }
  0x70   : > { %684 = vmatmul.bf16.gmra.mxu2 %v361_v48  ;;  %v6713_v48 = vor.u32 %v8096_v45, %v6710_v46  ;;  %1501 = vmatpush.bf16.msrb.mxu1 %v6773_v1  ;;  %321 = vst [vmem:[#allocation2 + $0x40] sm:$0xcc] %v8718_v24  ;;  %v6750_v53 = vld [vmem:[#allocation9 + $0x188] sm:$0xf0]  ;;  %v6684_v54 = vld [vmem:[#allocation9 + $0x100] sm:$0xf] }
  0x71   : > { %733 = vmatmul.bf16.gmra.mxu3 %v362_v49  ;;  %v8112_v49 = vld [vmem:[#allocation9 + $0x1b4] sm:$0xf]  ;;  %322 = vst [vmem:[#allocation2 + $0x58] sm:$0xcc] %v8718_v24  ;;  %v8091_v55 = vld [vmem:[#allocation9 + $0x104] sm:$0xf0] }
  0x72   : > { %v6777_v51 = vor.u32 %v8112_v49, %v6774_v50  ;;  %1550 = vmatpush.bf16.msrb.mxu2 %v6713_v48  ;;  %323 = vst [vmem:[#allocation2 + $0x70] sm:$0xcc] %v8718_v24  ;;  %v8090_v48 = vld [vmem:[#allocation9 + $0x104] sm:$0xf]  ;;  %v6686_v49 = vld [vmem:[#allocation9 + $0x108] sm:$0xf0]  ;;  %v6685_v59 = vor.u32 %v8091_v55, %v6684_v54 }
  0x73   : > { %1453 = vmatpush.bf16.msrb.mxu0 %v6701_v15  ;;  %324 = vst [vmem:[#allocation2 + $0x88] sm:$0xcc] %v8718_v24  ;;  %v8106_v50 = vld [vmem:[#allocation9 + $0x184] sm:$0xf]  ;;  %v6689_v52 = vor.u32 %v8090_v48, %v6686_v49  ;;  %v6748_v60 = vld [vmem:[#allocation9 + $0x180] sm:$0xf] }
  0x74   : > { %1599 = vmatpush.bf16.msrb.mxu3 %v6777_v51  ;;  %1502 = vmatpush.bf16.msrb.mxu1 %v6765_v17  ;;  %325 = vst [vmem:[#allocation2 + $0xa0] sm:$0xcc] %v8718_v24  ;;  %v6753_v58 = vor.u32 %v8106_v50, %v6750_v53  ;;  %v8107_v61 = vld [vmem:[#allocation9 + $0x184] sm:$0xf0]  ;;  %v10458_v15 = vmov 0  ;;  %vm4606_vm0 = vcmask 1044484  }
  0x75   : > { %326 = vst [vmem:[#allocation2 + $0xb8] sm:$0xcc] %v8718_v24  ;;  %v6749_v62 = vor.u32 %v8107_v61, %v6748_v60  ;;  %v10459_v15 = vsel %vm8926_vm2, 4294967295, %v10458_v15  ;;  %v8081_v53 = vld [vmem:[#allocation9 + $0xf4] sm:$0xf0]  ;;  %vm9817_vm1 = vmor %vm4605_vm15, %vm4606_vm0  ;;  %s6422_s6 = sshll.u32 %s10248_s24, 4  ;;  %s6423_s6 = int_to_ptr.vmem [resolvable:$true] %s6422_s6 }
  0x76   : > { %10460 = vst [vmem:[#allocation17_spill] sm:$0xff] %v10459_v15  ;;  %vm5158_vm3 = vsmask.f32 4368  ;;  %s6424_s22 = sshll.u32 %s6421_s30, 4  ;;  %s6409_s7 = scalar_lea.sflag [#allocation5], %s8865_s26  ;;  %s6425_s22 = int_to_ptr.hbm [resolvable:$true] %s6424_s22 }
  0x77   : > { %1454 = vmatpush.bf16.msrb.mxu0 %v6693_v35  ;;  %s8648_s15 = sshra.s32 %s6425_s22, 4  ;;  %s8654_s23 = scalar_lea.hbm %s10414_s5, 512  ;;  %s8649_s15 = int_to_ptr.hbm [resolvable:$true] %s8648_s15 }
  0x78   : > { %s8650_s16 = scalar_lea.hbm %s8649_s15, 256  ;;  %p8655_p11 = scmp.lt.s32.totalorder %s8649_s15, %s10414_s5 }
  0x79   : > { %p8651_p1 = scmp.ne.s32.totalorder %s8649_s15, %s8650_s16  ;;  %p8656_p2 = scmp.lt.s32.totalorder %s8654_s23, %s8650_s16 }
  0x7b   : > { %1455 = vmatpush.bf16.msrb.mxu0 %v6685_v59  ;;  %p8652_p4 = pnand %p8651_p1, %p8835_p3  ;;  %p8657_p9 = por %p8656_p2, %p8655_p11 }
  0x7d   : > { %p8653_p8 = pneg %p8652_p4 }
  0x7e   : > { %591 = vmatmul.bf16.gmra.mxu0 %v363_v2 }
  0x7f   : > { %640 = vmatmul.bf16.gmra.mxu1 %v364_v3  ;;  %p8658_p10 = pnand %p8657_p9, %p8653_p8 }
  0x80   : > { %689 = vmatmul.bf16.gmra.mxu2 %v363_v2  ;;  %v6705_v2 = vor.u32 %v8094_v63, %v6702_v0 }
  0x81   : > { %738 = vmatmul.bf16.gmra.mxu3 %v364_v3  ;;  %v8110_v3 = vld [vmem:[#allocation9 + $0x1a4] sm:$0xf] }
  0x82   : > { %v6769_v5 = vor.u32 %v8110_v3, %v6766_v4  ;;  %1551 = vmatpush.bf16.msrb.mxu2 %v6705_v2 }
  0x84   : > { %1600 = vmatpush.bf16.msrb.mxu3 %v6769_v5 }
  0x86   : > { %1552 = vmatpush.bf16.msrb.mxu2 %v6697_v30 }
  0x88   : > { %1601 = vmatpush.bf16.msrb.mxu3 %v6761_v34 }
  0x8a   : > { %1553 = vmatpush.bf16.msrb.mxu2 %v6689_v52  ;;  %v6996_v52 = vld [vmem:[#allocation9 + $0xf0] sm:$0xf] }
  0x8b   : > { %v6997_v59 = vor.u32 %v8081_v53, %v6996_v52 }
  0x8c   : > { %1602 = vmatpush.bf16.msrb.mxu3 %v6753_v58 }
  0x8e   : > { %596 = vmatmul.bf16.gmra.mxu0 %v365_v20 }
  0x8f   : > { %645 = vmatmul.bf16.gmra.mxu1 %v366_v21 }
  0x90   : > { %694 = vmatmul.bf16.gmra.mxu2 %v365_v20  ;;  %v356_v20 = vld [vmem:[%s8871_s11 + $0xe8] sm:$0xff] }
  0x91   : > { %743 = vmatmul.bf16.gmra.mxu3 %v366_v21  ;;  %v358_v21 = vld [vmem:[%s8871_s11 + $0xf8] sm:$0xff] }
  0x92   : > { %v374_v23 = vpack.c.bf16 %v358_v21, %v356_v20 }
  0x9e   : > { %601 = vmatmul.bf16.gmra.mxu0 %v367_v38 }
  0x9f   : > { %650 = vmatmul.bf16.gmra.mxu1 %v368_v39 }
  0xa0   : > { %699 = vmatmul.bf16.gmra.mxu2 %v367_v38  ;;  %v6757_v38 = vor.u32 %v8109_v37, %v6756_v36  ;;  %v8064_v36 = vld [vmem:[#allocation9 + $0x74] sm:$0xf] }
  0xa1   : > { %748 = vmatmul.bf16.gmra.mxu3 %v368_v39 }
  0xa2   : > { %1503 = vmatpush.bf16.msrb.mxu1 %v6757_v38 }
  0xa6   : > { %1504 = vmatpush.bf16.msrb.mxu1 %v6749_v62 }
  0xaa   : > { %1933 = vmatpush.bf16.msra.mxu1 %v6997_v59 }
  0xae   : > { %606 = vmatmul.bf16.gmra.mxu0 %v369_v56 }
  0xaf   : > { %655 = vmatmul.bf16.gmra.mxu1 %v370_v57 }
  0xb0   : > { %704 = vmatmul.bf16.gmra.mxu2 %v369_v56 }
  0xb1   : > { %753 = vmatmul.bf16.gmra.mxu3 %v370_v57 }
  0xbe   : > { %611 = vmatmul.bf16.gmra.mxu0 %v371_v10 }
  0xbf   : > { %660 = vmatmul.bf16.gmra.mxu1 %v372_v11 }
  0xc0   : > { %709 = vmatmul.bf16.gmra.mxu2 %v371_v10 }
  0xc1   : > { %758 = vmatmul.bf16.gmra.mxu3 %v372_v11 }
  0xce   : > { %616 = vmatmul.bf16.gmra.mxu0 %v373_v22 }
  0xcf   : > { %665 = vmatmul.bf16.gmra.mxu1 %v374_v23 }
  0xd0   : > { %714 = vmatmul.bf16.gmra.mxu2 %v373_v22 }
  0xd1   : > { %763 = vmatmul.bf16.gmra.mxu3 %v374_v23 }
  0xdb   : > { %v582_v39 = vpop.f32.mrf.mxu0 }
  0xdc   : > { %v631_v40 = vpop.f32.mrf.mxu1  ;;  %v583_v41 = vadd.f32 %v582_v39, %v8917_v26 }
  0xde   : > { %v632_v43 = vadd.f32 %v631_v40, %v583_v41  ;;  %v6934_v40 = vld [vmem:[#allocation9 + $0x78] sm:$0xf0] }
  0xe0   : > { %v769_v56 = vmax.f32 %v632_v43, 0.0  ;;  %v6937_v43 = vor.u32 %v8064_v36, %v6934_v40 }
  0xe2   : > { %1982 = vmatpush.bf16.msra.mxu2 %v6937_v43  ;;  %v8062_v43 = vld [vmem:[#allocation9 + $0x64] sm:$0xf] }
  0xe3   : > { %v680_v44 = vpop.f32.mrf.mxu2  ;;  %v584_v47 = vpop.f32.mrf.mxu0 }
  0xe4   : > { %v681_v45 = vadd.f32 %v680_v44, %v8920_v42  ;;  %v729_v46 = vpop.f32.mrf.mxu3  ;;  %v633_v51 = vpop.f32.mrf.mxu1  ;;  %v585_v0 = vadd.f32 %v584_v47, %v8917_v26  ;;  %v8080_v44 = vld [vmem:[#allocation9 + $0xf4] sm:$0xf] }
  0xe6   : > { %v730_v57 = vadd.f32 %v729_v46, %v681_v45  ;;  %v634_v4 = vadd.f32 %v633_v51, %v585_v0  ;;  %v6998_v45 = vld [vmem:[#allocation9 + $0xf8] sm:$0xf0]  ;;  %v6932_v46 = vld [vmem:[#allocation9 + $0x70] sm:$0xf]  ;;  %v8065_v51 = vld [vmem:[#allocation9 + $0x74] sm:$0xf0] }
  0xe7   : > { %v7001_v50 = vor.u32 %v8080_v44, %v6998_v45  ;;  %v6933_v58 = vor.u32 %v8065_v51, %v6932_v46  ;;  %v6926_v44 = vld [vmem:[#allocation9 + $0x68] sm:$0xf0]  ;;  %v7060_v0 = vld [vmem:[#allocation9 + $0x260] sm:$0xf] }
  0xe8   : > { %v770_v63 = vmax.f32 %v730_v57, 0.0  ;;  %v771_v11 = vmax.f32 %v634_v4, 0.0 }
  0xe9   : > { %2031 = vmatpush.bf16.msra.mxu3 %v7001_v50  ;;  %1884 = vmatpush.bf16.msra.mxu0 %v6933_v58  ;;  %v6990_v50 = vld [vmem:[#allocation9 + $0xe8] sm:$0xf0] }
  0xea   : > { %v801_v1 = vpack.c.bf16 %v770_v63, %v769_v56 }
  0xeb   : > { %v682_v2 = vpop.f32.mrf.mxu2  ;;  %v587_v7 = vpop.f32.mrf.mxu0 }
  0xec   : > { %v836_v3 = vrot.slane %v801_v1, 6  ;;  %v683_v5 = vadd.f32 %v682_v2, %v8920_v42  ;;  %v731_v6 = vpop.f32.mrf.mxu3  ;;  %v588_v8 = vadd.f32 %v587_v7, %v8917_v26  ;;  %v636_v9 = vpop.f32.mrf.mxu1 }
  0xee   : > { %900 = vst [vmem:[#allocation2] sm:$0xcc] %v836_v3  ;;  %v732_v10 = vadd.f32 %v731_v6, %v683_v5  ;;  %v637_v13 = vadd.f32 %v636_v9, %v588_v8  ;;  %v837_v17 = vrot.slane %v836_v3, 4 }
  0xf0   : > { %v772_v12 = vmax.f32 %v732_v10, 0.0  ;;  %v773_v22 = vmax.f32 %v637_v13, 0.0 }
  0xf2   : > { %v802_v14 = vpack.c.bf16 %v772_v12, %v771_v11 }
  0xf3   : > { %v685_v16 = vpop.f32.mrf.mxu2  ;;  %v589_v21 = vpop.f32.mrf.mxu0 }
  0xf4   : > { %v838_v18 = vrot.slane %v802_v14, 6  ;;  %v686_v19 = vadd.f32 %v685_v16, %v8920_v42  ;;  %v734_v20 = vpop.f32.mrf.mxu3  ;;  %v638_v23 = vpop.f32.mrf.mxu1  ;;  %v590_v30 = vadd.f32 %v589_v21, %v8917_v26 }
  0xf5   : > { %v972_v24 = vld [vmem:[#allocation2] sm:$0xff] }
  0xf6   : > { %v839_v25 = vsel %vm8926_vm2, %v837_v17, %v838_v18  ;;  %v840_v27 = vrot.slane %v838_v18, 4  ;;  %v735_v28 = vadd.f32 %v734_v20, %v686_v19  ;;  %v1000_v29 = vshrl.u32 %v972_v24, 16 }
  0xf7   : > { %901 = vst [vmem:[#allocation2 + $0x8] sm:$0xff] %v839_v25  ;;  %v1003_v31 = vshll.u32 %v972_v24, 16  ;;  %v8934_v32 = vshll.u32 %v839_v25, 16  ;;  %v8936_v33 = vshrl.u32 %v839_v25, 16  ;;  %v639_v47 = vadd.f32 %v638_v23, %v590_v30 }
  0xf8   : > { %902 = vst [vmem:[#allocation2 + $0x10] sm:$0x33] %v840_v27  ;;  %v774_v34 = vmax.f32 %v735_v28, 0.0  ;;  %v1002_v35 = vrot.slane %v1000_v29, 4 }
  0xf9   : > { %10461 = vst [vmem:[#allocation18_spill] sm:$0xff] %v8934_v32  ;;  %v1005_v37 = vrot.slane %v1003_v31, 5  ;;  %v1011_v38 = vrot.slane %v8934_v32, 5  ;;  %v1015_v39 = vrot.slane %v8936_v33, 4  ;;  %v775_v3 = vmax.f32 %v639_v47, 0.0 }
  0xfa   : > { %10462 = vst [vmem:[#allocation19_spill] sm:$0xff] %v8936_v33  ;;  %v803_v41 = vpack.c.bf16 %v774_v34, %v773_v22 }
  0xfb   : > { %v687_v48 = vpop.f32.mrf.mxu2  ;;  %v1006_v49 = vor.u32 %v1005_v37, %v1002_v35  ;;  %v592_v57 = vpop.f32.mrf.mxu0  ;;  %v1016_v1 = vor.u32 %v1015_v39, %v1011_v38 }
  0xfc   : > { %v841_v54 = vrot.slane %v803_v41, 6  ;;  %v688_v55 = vadd.f32 %v687_v48, %v8920_v42  ;;  %v736_v56 = vpop.f32.mrf.mxu3  ;;  %v593_v60 = vadd.f32 %v592_v57, %v8917_v26  ;;  %v641_v61 = vpop.f32.mrf.mxu1  ;;  %v6929_v48 = vor.u32 %v8062_v43, %v6926_v44 }
  0xfd   : > { %v1007_v62 = vrot.slane %v1006_v49, 4  ;;  %v1017_v9 = vrot.slane %v1016_v1, 4  ;;  %v8078_v49 = vld [vmem:[#allocation9 + $0xe4] sm:$0xf] }
  0xfe   : > { %903 = vst [vmem:[#allocation2 + $0x18] sm:$0xcc] %v841_v54  ;;  %v737_v63 = vadd.f32 %v736_v56, %v688_v55  ;;  %v642_v6 = vadd.f32 %v641_v61, %v593_v60  ;;  %v842_v11 = vrot.slane %v841_v54, 4  ;;  %v6993_v53 = vor.u32 %v8078_v49, %v6990_v50  ;;  %v6924_v54 = vld [vmem:[#allocation9 + $0x60] sm:$0xf]  ;;  %1983 = vmatpush.bf16.msra.mxu2 %v6929_v48 }
  0xff   : > { %v974_v2 = vld [vmem:[#allocation2 + $0x10] sm:$0x11]  ;;  %v1012_v7 = vsel %vm8944_vm5, %v1007_v62, %v1011_v38  ;;  %v8063_v55 = vld [vmem:[#allocation9 + $0x64] sm:$0xf0]  ;;  %v6988_v56 = vld [vmem:[#allocation9 + $0xe0] sm:$0xf] }
 0x100   : > { %v776_v4 = vmax.f32 %v737_v63, 0.0  ;;  %v1019_v5 = vshll.u32 %v974_v2, 16  ;;  %v1224_v19 = vunpack.c.l.b16 %v1012_v7  ;;  %v777_v20 = vmax.f32 %v642_v6, 0.0  ;;  %v8079_v63 = vld [vmem:[#allocation9 + $0xe4] sm:$0xf0]  ;;  %2032 = vmatpush.bf16.msra.mxu3 %v6993_v53 }
 0x101   : > { %v1225_v23 = vunpack.c.h.b16 %v1012_v7  ;;  %v6925_v62 = vor.u32 %v8063_v55, %v6924_v54  ;;  %v8060_v50 = vld [vmem:[#allocation9 + $0x54] sm:$0xf] }
 0x102   : > { %v804_v8 = vpack.c.bf16 %v776_v4, %v775_v3  ;;  %v1021_v10 = vrot.slane %v1019_v5, 5  ;;  %v6989_v4 = vor.u32 %v8079_v63, %v6988_v56  ;;  %v8076_v56 = vld [vmem:[#allocation9 + $0xd4] sm:$0xf]  ;;  %v6980_v63 = vld [vmem:[#allocation9 + $0xd0] sm:$0xf] }
 0x103   : > { %v690_v12 = vpop.f32.mrf.mxu2  ;;  %v594_v17 = vpop.f32.mrf.mxu0  ;;  %1885 = vmatpush.bf16.msra.mxu0 %v6925_v62  ;;  %v8061_v62 = vld [vmem:[#allocation9 + $0x54] sm:$0xf0] }
 0x104   : > { %v843_v13 = vrot.slane %v804_v8, 6  ;;  %v691_v14 = vadd.f32 %v690_v12, %v8920_v42  ;;  %v739_v16 = vpop.f32.mrf.mxu3  ;;  %v1022_v18 = vsel %vm8944_vm5, %v1017_v9, %v1021_v10  ;;  %v643_v21 = vpop.f32.mrf.mxu1  ;;  %v595_v31 = vadd.f32 %v594_v17, %v8917_v26  ;;  %1934 = vmatpush.bf16.msra.mxu1 %v6989_v4 }
 0x105   : > { %v1226_v22 = vunpack.c.l.b16 %v1022_v18  ;;  %v1227_v24 = vunpack.c.h.b16 %v1022_v18  ;;  %v975_v25 = vld [vmem:[#allocation2 + $0x18] sm:$0xff] }
 0x106   : > { %v844_v27 = vsel %vm8926_vm2, %v842_v11, %v843_v13  ;;  %v845_v28 = vrot.slane %v843_v13, 4  ;;  %v740_v29 = vadd.f32 %v739_v16, %v691_v14  ;;  %v1024_v30 = vshrl.u32 %v975_v25, 16 }
 0x107   : > { %904 = vst [vmem:[#allocation2 + $0x20] sm:$0xff] %v844_v27  ;;  %v1256_v34 = vpack.c.b16 %v1226_v22, %v1224_v19  ;;  %v1257_v35 = vpack.c.b16 %v1227_v24, %v1225_v23  ;;  %v1027_v36 = vshll.u32 %v975_v25, 16  ;;  %v8956_v39 = vshll.u32 %v844_v27, 16 }
 0x108   : > { %905 = vst [vmem:[#allocation2 + $0x28] sm:$0x33] %v845_v28  ;;  %v778_v37 = vmax.f32 %v740_v29, 0.0  ;;  %v1026_v38 = vrot.slane %v1024_v30, 4  ;;  %v8958_v40 = vshrl.u32 %v844_v27, 16  ;;  %v644_v58 = vadd.f32 %v643_v21, %v595_v31 }
 0x109   : > { %10465 = vst [vmem:[#allocation20_spill] sm:$0xff] %v8956_v39  ;;  %1456 = vmatmul.bf16.vlgmr.msrb.gmra.mxu0 %v1256_v34  ;;  %1505 = vmatmul.bf16.vlgmr.msrb.gmra.mxu1 %v1257_v35  ;;  %v1029_v41 = vrot.slane %v1027_v36, 5  ;;  %v1035_v46 = vrot.slane %v8956_v39, 5 }
 0x10a   : > { %10466 = vst [vmem:[#allocation21_spill] sm:$0xff] %v8958_v40  ;;  %v805_v45 = vpack.c.bf16 %v778_v37, %v777_v20  ;;  %1554 = vmatmul.bf16.vlgmr.msrb.gmra.mxu2 %v1256_v34  ;;  %1603 = vmatmul.bf16.vlgmr.msrb.gmra.mxu3 %v1257_v35  ;;  %v1039_v47 = vrot.slane %v8958_v40, 4  ;;  %v779_v8 = vmax.f32 %v644_v58, 0.0 }
 0x10b   : > { %v692_v51 = vpop.f32.mrf.mxu2  ;;  %v1030_v52 = vor.u32 %v1029_v41, %v1026_v38  ;;  %v597_v61 = vpop.f32.mrf.mxu0 }
 0x10c   : > { %v846_v57 = vrot.slane %v805_v45, 6  ;;  %v693_v59 = vadd.f32 %v692_v51, %v8920_v42  ;;  %v741_v60 = vpop.f32.mrf.mxu3  ;;  %v598_v1 = vadd.f32 %v597_v61, %v8917_v26  ;;  %v646_v2 = vpop.f32.mrf.mxu1  ;;  %v1040_v6 = vor.u32 %v1039_v47, %v1035_v46  ;;  %v6918_v51 = vld [vmem:[#allocation9 + $0x58] sm:$0xf0]  ;;  %v6916_v61 = vld [vmem:[#allocation9 + $0x50] sm:$0xf] }
 0x10d   : > { %v1031_v3 = vrot.slane %v1030_v52, 4  ;;  %v6921_v55 = vor.u32 %v8060_v50, %v6918_v51 }
 0x10e   : > { %906 = vst [vmem:[#allocation2 + $0x30] sm:$0xcc] %v846_v57  ;;  %v742_v5 = vadd.f32 %v741_v60, %v693_v59  ;;  %v647_v11 = vadd.f32 %v646_v2, %v598_v1  ;;  %v1041_v14 = vrot.slane %v1040_v6, 4  ;;  %v847_v17 = vrot.slane %v846_v57, 4  ;;  %v6982_v57 = vld [vmem:[#allocation9 + $0xd8] sm:$0xf0] }
 0x10f   : > { %v977_v7 = vld [vmem:[#allocation2 + $0x28] sm:$0x11]  ;;  %v1036_v12 = vsel %vm8944_vm5, %v1031_v3, %v1035_v46  ;;  %v6985_v60 = vor.u32 %v8076_v56, %v6982_v57  ;;  %1984 = vmatpush.bf16.msra.mxu2 %v6921_v55  ;;  %v6917_v6 = vor.u32 %v8061_v62, %v6916_v61 }
 0x110   : > { %v780_v9 = vmax.f32 %v742_v5, 0.0  ;;  %v1043_v10 = vshll.u32 %v977_v7, 16  ;;  %v1228_v24 = vunpack.c.l.b16 %v1036_v12  ;;  %v781_v25 = vmax.f32 %v647_v11, 0.0  ;;  %v8077_v7 = vld [vmem:[#allocation9 + $0xd4] sm:$0xf0] }
 0x111   : > { %v1229_v29 = vunpack.c.h.b16 %v1036_v12  ;;  %2033 = vmatpush.bf16.msra.mxu3 %v6985_v60  ;;  %v6981_v11 = vor.u32 %v8077_v7, %v6980_v63  ;;  %1886 = vmatpush.bf16.msra.mxu0 %v6917_v6  ;;  %v6910_v60 = vld [vmem:[#allocation9 + $0x48] sm:$0xf0]  ;;  %v6908_v7 = vld [vmem:[#allocation9 + $0x40] sm:$0xf] }
 0x112   : > { %v806_v13 = vpack.c.bf16 %v780_v9, %v779_v8  ;;  %v1045_v16 = vrot.slane %v1043_v10, 5 }
 0x113   : > { %v695_v18 = vpop.f32.mrf.mxu2  ;;  %v599_v22 = vpop.f32.mrf.mxu0  ;;  %1935 = vmatpush.bf16.msra.mxu1 %v6981_v11 }
 0x114   : > { %v848_v19 = vrot.slane %v806_v13, 6  ;;  %v696_v20 = vadd.f32 %v695_v18, %v8920_v42  ;;  %v744_v21 = vpop.f32.mrf.mxu3  ;;  %v1046_v23 = vsel %vm8944_vm5, %v1041_v14, %v1045_v16  ;;  %v648_v27 = vpop.f32.mrf.mxu1  ;;  %v600_v38 = vadd.f32 %v599_v22, %v8917_v26 }
 0x115   : > { %v1230_v28 = vunpack.c.l.b16 %v1046_v23  ;;  %v1231_v30 = vunpack.c.h.b16 %v1046_v23  ;;  %v978_v31 = vld [vmem:[#allocation2 + $0x30] sm:$0xff] }
 0x116   : > { %v849_v34 = vsel %vm8926_vm2, %v847_v17, %v848_v19  ;;  %v850_v35 = vrot.slane %v848_v19, 4  ;;  %v745_v36 = vadd.f32 %v744_v21, %v696_v20  ;;  %v1048_v37 = vshrl.u32 %v978_v31, 16 }
 0x117   : > { %907 = vst [vmem:[#allocation2 + $0x38] sm:$0xff] %v849_v34  ;;  %v1258_v41 = vpack.c.b16 %v1230_v28, %v1228_v24  ;;  %v1259_v43 = vpack.c.b16 %v1231_v30, %v1229_v29  ;;  %v1051_v44 = vshll.u32 %v978_v31, 16  ;;  %v8972_v47 = vshll.u32 %v849_v34, 16 }
 0x118   : > { %908 = vst [vmem:[#allocation2 + $0x40] sm:$0x33] %v850_v35  ;;  %v782_v45 = vmax.f32 %v745_v36, 0.0  ;;  %v1050_v46 = vrot.slane %v1048_v37, 4  ;;  %v8974_v48 = vshrl.u32 %v849_v34, 16  ;;  %v649_v2 = vadd.f32 %v648_v27, %v600_v38 }
 0x119   : > { %10467 = vst [vmem:[#allocation22_spill] sm:$0xff] %v8972_v47  ;;  %1461 = vmatmul.bf16.gmra.mxu0 %v1258_v41  ;;  %1510 = vmatmul.bf16.gmra.mxu1 %v1259_v43  ;;  %v1053_v49 = vrot.slane %v1051_v44, 5  ;;  %v1059_v53 = vrot.slane %v8972_v47, 5 }
 0x11a   : > { %10468 = vst [vmem:[#allocation23_spill] sm:$0xff] %v8974_v48  ;;  %v807_v52 = vpack.c.bf16 %v782_v45, %v781_v25  ;;  %1559 = vmatmul.bf16.gmra.mxu2 %v1258_v41  ;;  %1608 = vmatmul.bf16.gmra.mxu3 %v1259_v43  ;;  %v1063_v54 = vrot.slane %v8974_v48, 4  ;;  %v783_v16 = vmax.f32 %v649_v2, 0.0  ;;  %v8074_v2 = vld [vmem:[#allocation9 + $0xc4] sm:$0xf] }
 0x11b   : > { %v697_v58 = vpop.f32.mrf.mxu2  ;;  %v1054_v59 = vor.u32 %v1053_v49, %v1050_v46  ;;  %v602_v5 = vpop.f32.mrf.mxu0 }
 0x11c   : > { %v851_v1 = vrot.slane %v807_v52, 6  ;;  %v698_v3 = vadd.f32 %v697_v58, %v8920_v42  ;;  %v746_v4 = vpop.f32.mrf.mxu3  ;;  %v603_v8 = vadd.f32 %v602_v5, %v8917_v26  ;;  %v651_v9 = vpop.f32.mrf.mxu1  ;;  %v1064_v13 = vor.u32 %v1063_v54, %v1059_v53 }
 0x11d   : > { %v1055_v10 = vrot.slane %v1054_v59, 4  ;;  %v8058_v59 = vld [vmem:[#allocation9 + $0x44] sm:$0xf] }
 0x11e   : > { %909 = vst [vmem:[#allocation2 + $0x48] sm:$0xcc] %v851_v1  ;;  %v747_v12 = vadd.f32 %v746_v4, %v698_v3  ;;  %v652_v19 = vadd.f32 %v651_v9, %v603_v8  ;;  %v1065_v22 = vrot.slane %v1064_v13, 4  ;;  %v852_v24 = vrot.slane %v851_v1, 4  ;;  %v6974_v3 = vld [vmem:[#allocation9 + $0xc8] sm:$0xf0] }
 0x11f   : > { %v980_v14 = vld [vmem:[#allocation2 + $0x40] sm:$0x11]  ;;  %v1060_v20 = vsel %vm8944_vm5, %v1055_v10, %v1059_v53  ;;  %v6913_v1 = vor.u32 %v8058_v59, %v6910_v60  ;;  %v6977_v6 = vor.u32 %v8074_v2, %v6974_v3  ;;  %v8059_v8 = vld [vmem:[#allocation9 + $0x44] sm:$0xf0] }
 0x120   : > { %v784_v17 = vmax.f32 %v747_v12, 0.0  ;;  %v1067_v18 = vshll.u32 %v980_v14, 16  ;;  %v1232_v34 = vunpack.c.l.b16 %v1060_v20  ;;  %v785_v35 = vmax.f32 %v652_v19, 0.0  ;;  %v6972_v9 = vld [vmem:[#allocation9 + $0xc0] sm:$0xf] }
 0x121   : > { %v1233_v38 = vunpack.c.h.b16 %v1060_v20  ;;  %1985 = vmatpush.bf16.msra.mxu2 %v6913_v1  ;;  %2034 = vmatpush.bf16.msra.mxu3 %v6977_v6 }
 0x122   : > { %v808_v21 = vpack.c.bf16 %v784_v17, %v783_v16  ;;  %v1069_v23 = vrot.slane %v1067_v18, 5  ;;  %v6909_v16 = vor.u32 %v8059_v8, %v6908_v7  ;;  %v8075_v17 = vld [vmem:[#allocation9 + $0xc4] sm:$0xf0]  ;;  %v8056_v7 = vld [vmem:[#allocation9 + $0x34] sm:$0xf] }
 0x123   : > { %v700_v25 = vpop.f32.mrf.mxu2  ;;  %v604_v30 = vpop.f32.mrf.mxu0  ;;  %v6902_v8 = vld [vmem:[#allocation9 + $0x38] sm:$0xf0] }
 0x124   : > { %v853_v27 = vrot.slane %v808_v21, 6  ;;  %v701_v28 = vadd.f32 %v700_v25, %v8920_v42  ;;  %v749_v29 = vpop.f32.mrf.mxu3  ;;  %v1070_v31 = vsel %vm8944_vm5, %v1065_v22, %v1069_v23  ;;  %v653_v36 = vpop.f32.mrf.mxu1  ;;  %v605_v50 = vadd.f32 %v604_v30, %v8917_v26  ;;  %1887 = vmatpush.bf16.msra.mxu0 %v6909_v16 }
 0x125   : > { %v1234_v37 = vunpack.c.l.b16 %v1070_v31  ;;  %v1235_v41 = vunpack.c.h.b16 %v1070_v31  ;;  %v981_v43 = vld [vmem:[#allocation2 + $0x48] sm:$0xff]  ;;  %v6973_v21 = vor.u32 %v8075_v17, %v6972_v9 }
 0x126   : > { %v854_v44 = vsel %vm8926_vm2, %v852_v24, %v853_v27  ;;  %v855_v45 = vrot.slane %v853_v27, 4  ;;  %v750_v46 = vadd.f32 %v749_v29, %v701_v28  ;;  %v1072_v49 = vshrl.u32 %v981_v43, 16 }
 0x127   : > { %910 = vst [vmem:[#allocation2 + $0x50] sm:$0xff] %v854_v44  ;;  %v1260_v51 = vpack.c.b16 %v1234_v37, %v1232_v34  ;;  %v1261_v52 = vpack.c.b16 %v1235_v41, %v1233_v38  ;;  %v1075_v53 = vshll.u32 %v981_v43, 16  ;;  %v8988_v56 = vshll.u32 %v854_v44, 16  ;;  %1936 = vmatpush.bf16.msra.mxu1 %v6973_v21  ;;  %v6964_v21 = vld [vmem:[#allocation9 + $0xb0] sm:$0xf] }
 0x128   : > { %911 = vst [vmem:[#allocation2 + $0x58] sm:$0x33] %v855_v45  ;;  %v786_v54 = vmax.f32 %v750_v46, 0.0  ;;  %v1074_v55 = vrot.slane %v1072_v49, 4  ;;  %v8990_v57 = vshrl.u32 %v854_v44, 16  ;;  %v654_v11 = vadd.f32 %v653_v36, %v605_v50 }
 0x129   : > { %10469 = vst [vmem:[#allocation24_spill] sm:$0xff] %v8988_v56  ;;  %1466 = vmatmul.bf16.gmra.mxu0 %v1260_v51  ;;  %1515 = vmatmul.bf16.gmra.mxu1 %v1261_v52  ;;  %v1077_v58 = vrot.slane %v1075_v53, 5  ;;  %v1083_v62 = vrot.slane %v8988_v56, 5 }
 0x12a   : > { %10470 = vst [vmem:[#allocation25_spill] sm:$0xff] %v8990_v57  ;;  %v809_v61 = vpack.c.bf16 %v786_v54, %v785_v35  ;;  %1564 = vmatmul.bf16.gmra.mxu2 %v1260_v51  ;;  %1613 = vmatmul.bf16.gmra.mxu3 %v1261_v52  ;;  %v1087_v63 = vrot.slane %v8990_v57, 4  ;;  %v787_v25 = vmax.f32 %v654_v11, 0.0 }
 0x12b   : > { %v702_v4 = vpop.f32.mrf.mxu2  ;;  %v1078_v5 = vor.u32 %v1077_v58, %v1074_v55  ;;  %v607_v14 = vpop.f32.mrf.mxu0 }
 0x12c   : > { %v856_v10 = vrot.slane %v809_v61, 6  ;;  %v703_v12 = vadd.f32 %v702_v4, %v8920_v42  ;;  %v751_v13 = vpop.f32.mrf.mxu3  ;;  %v608_v18 = vadd.f32 %v607_v14, %v8917_v26  ;;  %v656_v19 = vpop.f32.mrf.mxu1  ;;  %v1088_v23 = vor.u32 %v1087_v63, %v1083_v62  ;;  %v6966_v14 = vld [vmem:[#allocation9 + $0xb8] sm:$0xf0] }
 0x12d   : > { %v1079_v20 = vrot.slane %v1078_v5, 4 }
 0x12e   : > { %912 = vst [vmem:[#allocation2 + $0x60] sm:$0xcc] %v856_v10  ;;  %v752_v22 = vadd.f32 %v751_v13, %v703_v12  ;;  %v657_v29 = vadd.f32 %v656_v19, %v608_v18  ;;  %v1089_v34 = vrot.slane %v1088_v23, 4  ;;  %v857_v36 = vrot.slane %v856_v10, 4  ;;  %v8072_v13 = vld [vmem:[#allocation9 + $0xb4] sm:$0xf] }
 0x12f   : > { %v983_v24 = vld [vmem:[#allocation2 + $0x58] sm:$0x11]  ;;  %v1084_v30 = vsel %vm8944_vm5, %v1079_v20, %v1083_v62  ;;  %v6905_v12 = vor.u32 %v8056_v7, %v6902_v8  ;;  %v6969_v18 = vor.u32 %v8072_v13, %v6966_v14  ;;  %v6900_v19 = vld [vmem:[#allocation9 + $0x30] sm:$0xf] }
 0x130   : > { %v788_v27 = vmax.f32 %v752_v22, 0.0  ;;  %v1091_v28 = vshll.u32 %v983_v24, 16  ;;  %v1236_v46 = vunpack.c.l.b16 %v1084_v30  ;;  %v789_v49 = vmax.f32 %v657_v29, 0.0  ;;  %v8057_v20 = vld [vmem:[#allocation9 + $0x34] sm:$0xf0] }
 0x131   : > { %v1237_v52 = vunpack.c.h.b16 %v1084_v30  ;;  %1986 = vmatpush.bf16.msra.mxu2 %v6905_v12  ;;  %v8073_v29 = vld [vmem:[#allocation9 + $0xb4] sm:$0xf0]  ;;  %2035 = vmatpush.bf16.msra.mxu3 %v6969_v18 }
 0x132   : > { %v810_v31 = vpack.c.bf16 %v788_v27, %v787_v25  ;;  %v1093_v35 = vrot.slane %v1091_v28, 5  ;;  %v6901_v28 = vor.u32 %v8057_v20, %v6900_v19 }
 0x133   : > { %v705_v37 = vpop.f32.mrf.mxu2  ;;  %v609_v44 = vpop.f32.mrf.mxu0 }
 0x134   : > { %v858_v38 = vrot.slane %v810_v31, 6  ;;  %v706_v41 = vadd.f32 %v705_v37, %v8920_v42  ;;  %v754_v43 = vpop.f32.mrf.mxu3  ;;  %v1094_v45 = vsel %vm8944_vm5, %v1089_v34, %v1093_v35  ;;  %v658_v50 = vpop.f32.mrf.mxu1  ;;  %v610_v61 = vadd.f32 %v609_v44, %v8917_v26  ;;  %1888 = vmatpush.bf16.msra.mxu0 %v6901_v28 }
 0x135   : > { %v1238_v51 = vunpack.c.l.b16 %v1094_v45  ;;  %v1239_v53 = vunpack.c.h.b16 %v1094_v45  ;;  %v984_v54 = vld [vmem:[#allocation2 + $0x60] sm:$0xff]  ;;  %v6965_v35 = vor.u32 %v8073_v29, %v6964_v21 }
 0x136   : > { %v859_v55 = vsel %vm8926_vm2, %v857_v36, %v858_v38  ;;  %v860_v58 = vrot.slane %v858_v38, 4  ;;  %v755_v59 = vadd.f32 %v754_v43, %v706_v41  ;;  %v1096_v60 = vshrl.u32 %v984_v54, 16  ;;  %v8070_v29 = vld [vmem:[#allocation9 + $0xa4] sm:$0xf] }
 0x137   : > { %913 = vst [vmem:[#allocation2 + $0x68] sm:$0xff] %v859_v55  ;;  %v1262_v62 = vpack.c.b16 %v1238_v51, %v1236_v46  ;;  %v1263_v63 = vpack.c.b16 %v1239_v53, %v1237_v52  ;;  %v1099_v1 = vshll.u32 %v984_v54, 16  ;;  %v9004_v4 = vshll.u32 %v859_v55, 16  ;;  %1937 = vmatpush.bf16.msra.mxu1 %v6965_v35 }
 0x138   : > { %914 = vst [vmem:[#allocation2 + $0x70] sm:$0x33] %v860_v58  ;;  %v790_v2 = vmax.f32 %v755_v59, 0.0  ;;  %v1098_v3 = vrot.slane %v1096_v60, 4  ;;  %v9006_v5 = vshrl.u32 %v859_v55, 16  ;;  %v659_v23 = vadd.f32 %v658_v50, %v610_v61 }
 0x139   : > { %10471 = vst [vmem:[#allocation26_spill] sm:$0xff] %v9004_v4  ;;  %1471 = vmatmul.bf16.gmra.mxu0 %v1262_v62  ;;  %1520 = vmatmul.bf16.gmra.mxu1 %v1263_v63  ;;  %v1101_v6 = vrot.slane %v1099_v1, 5  ;;  %v1107_v10 = vrot.slane %v9004_v4, 5 }
 0x13a   : > { %10472 = vst [vmem:[#allocation27_spill] sm:$0xff] %v9006_v5  ;;  %v811_v9 = vpack.c.bf16 %v790_v2, %v789_v49  ;;  %1569 = vmatmul.bf16.gmra.mxu2 %v1262_v62  ;;  %1618 = vmatmul.bf16.gmra.mxu3 %v1263_v63  ;;  %v1111_v11 = vrot.slane %v9006_v5, 4  ;;  %v791_v41 = vmax.f32 %v659_v23, 0.0  ;;  %v6894_v23 = vld [vmem:[#allocation9 + $0x28] sm:$0xf0] }
 0x13b   : > { %v707_v16 = vpop.f32.mrf.mxu2  ;;  %v1102_v17 = vor.u32 %v1101_v6, %v1098_v3  ;;  %v612_v27 = vpop.f32.mrf.mxu0 }
 0x13c   : > { %v861_v22 = vrot.slane %v811_v9, 6  ;;  %v708_v24 = vadd.f32 %v707_v16, %v8920_v42  ;;  %v756_v25 = vpop.f32.mrf.mxu3  ;;  %v613_v30 = vadd.f32 %v612_v27, %v8917_v26  ;;  %v661_v31 = vpop.f32.mrf.mxu1  ;;  %v1112_v37 = vor.u32 %v1111_v11, %v1107_v10 }
 0x13d   : > { %v1103_v34 = vrot.slane %v1102_v17, 4 }
 0x13e   : > { %915 = vst [vmem:[#allocation2 + $0x78] sm:$0xcc] %v861_v22  ;;  %v757_v36 = vadd.f32 %v756_v25, %v708_v24  ;;  %v662_v46 = vadd.f32 %v661_v31, %v613_v30  ;;  %v1113_v50 = vrot.slane %v1112_v37, 4  ;;  %v862_v52 = vrot.slane %v861_v22, 4  ;;  %v8054_v22 = vld [vmem:[#allocation9 + $0x24] sm:$0xf] }
 0x13f   : > { %v986_v38 = vld [vmem:[#allocation2 + $0x70] sm:$0x11]  ;;  %v1108_v44 = vsel %vm8944_vm5, %v1103_v34, %v1107_v10  ;;  %v6897_v28 = vor.u32 %v8054_v22, %v6894_v23  ;;  %v8055_v37 = vld [vmem:[#allocation9 + $0x24] sm:$0xf0] }
 0x140   : > { %v792_v43 = vmax.f32 %v757_v36, 0.0  ;;  %v1115_v45 = vshll.u32 %v986_v38, 16  ;;  %v1240_v54 = vunpack.c.l.b16 %v1108_v44  ;;  %v1241_v62 = vunpack.c.h.b16 %v1108_v44  ;;  %v6958_v30 = vld [vmem:[#allocation9 + $0xa8] sm:$0xf0]  ;;  %v6892_v36 = vld [vmem:[#allocation9 + $0x20] sm:$0xf] }
 0x141   : > { %v793_v63 = vmax.f32 %v662_v46, 0.0  ;;  %v6961_v35 = vor.u32 %v8070_v29, %v6958_v30  ;;  %v6956_v38 = vld [vmem:[#allocation9 + $0xa0] sm:$0xf]  ;;  %1987 = vmatpush.bf16.msra.mxu2 %v6897_v28  ;;  %v6893_v46 = vor.u32 %v8055_v37, %v6892_v36 }
 0x142   : > { %v812_v49 = vpack.c.bf16 %v792_v43, %v791_v41  ;;  %v1117_v51 = vrot.slane %v1115_v45, 5 }
 0x143   : > { %v710_v53 = vpop.f32.mrf.mxu2  ;;  %v614_v60 = vpop.f32.mrf.mxu0  ;;  %2036 = vmatpush.bf16.msra.mxu3 %v6961_v35  ;;  %1889 = vmatpush.bf16.msra.mxu0 %v6893_v46 }
 0x144   : > { %v863_v55 = vrot.slane %v812_v49, 6  ;;  %v711_v58 = vadd.f32 %v710_v53, %v8920_v42  ;;  %v759_v59 = vpop.f32.mrf.mxu3  ;;  %v1118_v61 = vsel %vm8944_vm5, %v1113_v50, %v1117_v51  ;;  %v615_v1 = vadd.f32 %v614_v60, %v8917_v26  ;;  %v663_v10 = vpop.f32.mrf.mxu1  ;;  %v8071_v49 = vld [vmem:[#allocation9 + $0xa4] sm:$0xf0]  ;;  %v8052_v50 = vld [vmem:[#allocation9 + $0x14] sm:$0xf] }
 0x145   : > { %v1242_v2 = vunpack.c.l.b16 %v1118_v61  ;;  %v1243_v3 = vunpack.c.h.b16 %v1118_v61  ;;  %v987_v6 = vld [vmem:[#allocation2 + $0x78] sm:$0xff]  ;;  %v6957_v53 = vor.u32 %v8071_v49, %v6956_v38 }
 0x146   : > { %v864_v7 = vsel %vm8926_vm2, %v862_v52, %v863_v55  ;;  %v865_v8 = vrot.slane %v863_v55, 4  ;;  %v760_v9 = vadd.f32 %v759_v59, %v711_v58  ;;  %v1120_v11 = vshrl.u32 %v987_v6, 16  ;;  %v8068_v55 = vld [vmem:[#allocation9 + $0x94] sm:$0xf] }
 0x147   : > { %916 = vst [vmem:[#allocation2 + $0x80] sm:$0xff] %v864_v7  ;;  %v1264_v12 = vpack.c.b16 %v1242_v2, %v1240_v54  ;;  %v1265_v13 = vpack.c.b16 %v1243_v3, %v1241_v62  ;;  %v1123_v14 = vshll.u32 %v987_v6, 16  ;;  %v9020_v18 = vshll.u32 %v864_v7, 16  ;;  %v6886_v54 = vld [vmem:[#allocation9 + $0x18] sm:$0xf0]  ;;  %1938 = vmatpush.bf16.msra.mxu1 %v6957_v53 }
 0x148   : > { %917 = vst [vmem:[#allocation2 + $0x88] sm:$0x33] %v865_v8  ;;  %v794_v16 = vmax.f32 %v760_v9, 0.0  ;;  %v1122_v17 = vrot.slane %v1120_v11, 4  ;;  %v9022_v19 = vshrl.u32 %v864_v7, 16  ;;  %v664_v20 = vadd.f32 %v663_v10, %v615_v1 }
 0x149   : > { %10473 = vst [vmem:[#allocation28_spill] sm:$0xff] %v9020_v18  ;;  %1476 = vmatmul.bf16.gmra.mxu0 %v1264_v12  ;;  %1525 = vmatmul.bf16.gmra.mxu1 %v1265_v13  ;;  %v1125_v21 = vrot.slane %v1123_v14, 5  ;;  %v1131_v25 = vrot.slane %v9020_v18, 5  ;;  %v6889_v61 = vor.u32 %v8052_v50, %v6886_v54  ;;  %v6950_v62 = vld [vmem:[#allocation9 + $0x98] sm:$0xf0] }
 0x14a   : > { %10474 = vst [vmem:[#allocation29_spill] sm:$0xff] %v9022_v19  ;;  %v813_v24 = vpack.c.bf16 %v794_v16, %v793_v63  ;;  %1574 = vmatmul.bf16.gmra.mxu2 %v1264_v12  ;;  %1623 = vmatmul.bf16.gmra.mxu3 %v1265_v13  ;;  %v1135_v27 = vrot.slane %v9022_v19, 4  ;;  %v795_v58 = vmax.f32 %v664_v20, 0.0  ;;  %v6953_v1 = vor.u32 %v8068_v55, %v6950_v62  ;;  %v6884_v2 = vld [vmem:[#allocation9 + $0x10] sm:$0xf] }
 0x14b   : > { %v712_v31 = vpop.f32.mrf.mxu2  ;;  %v1126_v34 = vor.u32 %v1125_v21, %v1122_v17  ;;  %v617_v45 = vpop.f32.mrf.mxu0  ;;  %v8053_v3 = vld [vmem:[#allocation9 + $0x14] sm:$0xf0]  ;;  %1988 = vmatpush.bf16.msra.mxu2 %v6889_v61  ;;  %v6948_v9 = vld [vmem:[#allocation9 + $0x90] sm:$0xf] }
 0x14c   : > { %v866_v41 = vrot.slane %v813_v24, 6  ;;  %v713_v43 = vadd.f32 %v712_v31, %v8920_v42  ;;  %v761_v44 = vpop.f32.mrf.mxu3  ;;  %v618_v51 = vadd.f32 %v617_v45, %v8917_v26  ;;  %v1136_v60 = vor.u32 %v1135_v27, %v1131_v25  ;;  %v666_v7 = vpop.f32.mrf.mxu1  ;;  %v8069_v10 = vld [vmem:[#allocation9 + $0x94] sm:$0xf0]  ;;  %2037 = vmatpush.bf16.msra.mxu3 %v6953_v1 }
 0x14d   : > { %v1127_v52 = vrot.slane %v1126_v34, 4  ;;  %v6885_v13 = vor.u32 %v8053_v3, %v6884_v2  ;;  %v6949_v14 = vor.u32 %v8069_v10, %v6948_v9  ;;  %v8066_v2 = vld [vmem:[#allocation9 + $0x84] sm:$0xf]  ;;  %v6942_v3 = vld [vmem:[#allocation9 + $0x88] sm:$0xf0] }
 0x14e   : > { %918 = vst [vmem:[#allocation2 + $0x90] sm:$0xcc] %v866_v41  ;;  %v762_v59 = vadd.f32 %v761_v44, %v713_v43  ;;  %v667_v11 = vadd.f32 %v666_v7, %v618_v51  ;;  %v1137_v17 = vrot.slane %v1136_v60, 4  ;;  %v867_v21 = vrot.slane %v866_v41, 4  ;;  %v6878_v60 = vld [vmem:[#allocation9 + $0x8] sm:$0xf0] }
 0x14f   : > { %v989_v63 = vld [vmem:[#allocation2 + $0x88] sm:$0x11]  ;;  %v1132_v12 = vsel %vm8944_vm5, %v1127_v52, %v1131_v25  ;;  %1890 = vmatpush.bf16.msra.mxu0 %v6885_v13  ;;  %1939 = vmatpush.bf16.msra.mxu1 %v6949_v14  ;;  %v6945_v10 = vor.u32 %v8066_v2, %v6942_v3  ;;  %v7134_v3 = vld [vmem:[#allocation9 + $0x2f8] sm:$0xf0] }
 0x150   : > { %v796_v6 = vmax.f32 %v762_v59, 0.0  ;;  %v1139_v8 = vshll.u32 %v989_v63, 16  ;;  %v1244_v30 = vunpack.c.l.b16 %v1132_v12  ;;  %v797_v25 = vmax.f32 %v667_v11, 0.0  ;;  %v8050_v59 = vld [vmem:[#allocation9 + $0x4] sm:$0xf] }
 0x151   : > { %v1245_v34 = vunpack.c.h.b16 %v1132_v12  ;;  %v6881_v1 = vor.u32 %v8050_v59, %v6878_v60  ;;  %v8051_v11 = vld [vmem:[#allocation9 + $0x4] sm:$0xf0]  ;;  %v6940_v12 = vld [vmem:[#allocation9 + $0x80] sm:$0xf]  ;;  %2038 = vmatpush.bf16.msra.mxu3 %v6945_v10  ;;  %v7068_v10 = vld [vmem:[#allocation9 + $0x270] sm:$0xf] }
 0x152   : > { %v814_v16 = vpack.c.bf16 %v796_v6, %v795_v58  ;;  %v1141_v20 = vrot.slane %v1139_v8, 5  ;;  %v6876_v6 = vld [vmem:[#allocation9] sm:$0xf] }
 0x153   : > { %v715_v22 = vpop.f32.mrf.mxu2  ;;  %v619_v28 = vpop.f32.mrf.mxu0  ;;  %1989 = vmatpush.bf16.msra.mxu2 %v6881_v1  ;;  %v6877_v14 = vor.u32 %v8051_v11, %v6876_v6  ;;  %v8152_v1 = vld [vmem:[#allocation9 + $0x2f4] sm:$0xf]  ;;  %v8137_v11 = vld [vmem:[#allocation9 + $0x274] sm:$0xf0] }
 0x154   : > { %v868_v23 = vrot.slane %v814_v16, 6  ;;  %v716_v24 = vadd.f32 %v715_v22, %v8920_v42  ;;  %v764_v27 = vpop.f32.mrf.mxu3  ;;  %v1142_v29 = vsel %vm8944_vm5, %v1137_v17, %v1141_v20  ;;  %v620_v44 = vadd.f32 %v619_v28, %v8917_v26  ;;  %v668_v61 = vpop.f32.mrf.mxu1  ;;  %v8067_v16 = vld [vmem:[#allocation9 + $0x84] sm:$0xf0] }
 0x155   : > { %v1246_v31 = vunpack.c.l.b16 %v1142_v29  ;;  %v1247_v35 = vunpack.c.h.b16 %v1142_v29  ;;  %v990_v36 = vld [vmem:[#allocation2 + $0x90] sm:$0xff]  ;;  %v6941_v22 = vor.u32 %v8067_v16, %v6940_v12  ;;  %1891 = vmatpush.bf16.msra.mxu0 %v6877_v14  ;;  %v7137_v6 = vor.u32 %v8152_v1, %v7134_v3  ;;  %v8153_v16 = vld [vmem:[#allocation9 + $0x2f4] sm:$0xf0]  ;;  %v7118_v3 = vld [vmem:[#allocation9 + $0x2d8] sm:$0xf0] }
 0x156   : > { %v869_v37 = vsel %vm8926_vm2, %v867_v21, %v868_v23  ;;  %v870_v38 = vrot.slane %v868_v23, 4  ;;  %v765_v41 = vadd.f32 %v764_v27, %v716_v24  ;;  %v1144_v43 = vshrl.u32 %v990_v36, 16  ;;  %v7132_v14 = vld [vmem:[#allocation9 + $0x2f0] sm:$0xf]  ;;  %v8148_v1 = vld [vmem:[#allocation9 + $0x2d4] sm:$0xf] }
 0x157   : > { %919 = vst [vmem:[#allocation2 + $0x98] sm:$0xff] %v869_v37  ;;  %v1266_v45 = vpack.c.b16 %v1246_v31, %v1244_v30  ;;  %v1267_v46 = vpack.c.b16 %v1247_v35, %v1245_v34  ;;  %v1147_v49 = vshll.u32 %v990_v36, 16  ;;  %v9036_v52 = vshll.u32 %v869_v37, 16  ;;  %1940 = vmatpush.bf16.msra.mxu1 %v6941_v22  ;;  %2575 = vmatpush.bf16.msrb.mxu3 %v7137_v6 }
 0x158   : > { %920 = vst [vmem:[#allocation2 + $0xa0] sm:$0x33] %v870_v38  ;;  %v798_v50 = vmax.f32 %v765_v41, 0.0  ;;  %v1146_v51 = vrot.slane %v1144_v43, 4  ;;  %v9038_v53 = vshrl.u32 %v869_v37, 16  ;;  %v669_v8 = vadd.f32 %v668_v61, %v620_v44 }
 0x159   : > { %10475 = vst [vmem:[#allocation30_spill] sm:$0xff] %v9036_v52  ;;  %1481 = vmatmul.bf16.gmra.mxu0 %v1266_v45  ;;  %1530 = vmatmul.bf16.gmra.mxu1 %v1267_v46  ;;  %v1149_v54 = vrot.slane %v1147_v49, 5  ;;  %v1155_v58 = vrot.slane %v9036_v52, 5  ;;  %v7121_v6 = vor.u32 %v8148_v1, %v7118_v3  ;;  %v8039_v1 = vld [vmem:[#allocation2 + $0x34] sm:$0xf0] }
 0x15a   : > { %10476 = vst [vmem:[#allocation31_spill] sm:$0xff] %v9038_v53  ;;  %v815_v55 = vpack.c.bf16 %v798_v50, %v797_v25  ;;  %1579 = vmatmul.bf16.gmra.mxu2 %v1266_v45  ;;  %1628 = vmatmul.bf16.gmra.mxu3 %v1267_v46  ;;  %v1159_v26 = vrot.slane %v9038_v53, 4  ;;  %v799_v24 = vmax.f32 %v669_v8, 0.0 }
 0x15b   : > { %v717_v62 = vpop.f32.mrf.mxu2  ;;  %v1150_v63 = vor.u32 %v1149_v54, %v1146_v51 }
 0x15c   : > { %v871_v7 = vrot.slane %v815_v55, 6  ;;  %v718_v9 = vadd.f32 %v717_v62, %v8920_v42  ;;  %v766_v13 = vpop.f32.mrf.mxu3  ;;  %v1160_v21 = vor.u32 %v1159_v26, %v1155_v58  ;;  %v8136_v62 = vld [vmem:[#allocation9 + $0x274] sm:$0xf] }
 0x15d   : > { %v1151_v20 = vrot.slane %v1150_v63, 4  ;;  %v7070_v63 = vld [vmem:[#allocation9 + $0x278] sm:$0xf0] }
 0x15e   : > { %921 = vst [vmem:[#allocation2 + $0xa8] sm:$0xcc] %v871_v7  ;;  %v767_v17 = vadd.f32 %v766_v13, %v718_v9  ;;  %v1161_v30 = vrot.slane %v1160_v21, 4  ;;  %v872_v31 = vrot.slane %v871_v7, 4  ;;  %v7073_v2 = vor.u32 %v8136_v62, %v7070_v63  ;;  %v8132_v62 = vld [vmem:[#allocation9 + $0x254] sm:$0xf] }
 0x15f   : > { %v992_v23 = vld [vmem:[#allocation2 + $0xa0] sm:$0x11]  ;;  %v1156_v29 = vsel %vm8944_vm5, %v1151_v20, %v1155_v58  ;;  %v7069_v13 = vor.u32 %v8137_v11, %v7068_v10 }
 0x160   : > { %v800_v27 = vmax.f32 %v767_v17, 0.0  ;;  %v1163_v28 = vshll.u32 %v992_v23, 16  ;;  %v1248_v36 = vunpack.c.l.b16 %v1156_v29  ;;  %v1249_v38 = vunpack.c.h.b16 %v1156_v29  ;;  %2526 = vmatpush.bf16.msrb.mxu2 %v7073_v2  ;;  %v7054_v63 = vld [vmem:[#allocation9 + $0x258] sm:$0xf0] }
 0x161   : > { %v7133_v17 = vor.u32 %v8153_v16, %v7132_v14  ;;  %2428 = vmatpush.bf16.msrb.mxu0 %v7069_v13  ;;  %v7057_v2 = vor.u32 %v8132_v62, %v7054_v63  ;;  %v7052_v13 = vld [vmem:[#allocation9 + $0x250] sm:$0xf]  ;;  %v8133_v14 = vld [vmem:[#allocation9 + $0x254] sm:$0xf0]  ;;  %v8147_v62 = vld [vmem:[#allocation9 + $0x2c4] sm:$0xf0] }
 0x162   : > { %v816_v42 = vpack.c.bf16 %v800_v27, %v799_v24  ;;  %v1165_v25 = vrot.slane %v1163_v28, 5  ;;  %v7116_v16 = vld [vmem:[#allocation9 + $0x2d0] sm:$0xf] }
 0x163   : > { %2477 = vmatpush.bf16.msrb.mxu1 %v7133_v17  ;;  %v7053_v17 = vor.u32 %v8133_v14, %v7052_v13  ;;  %v8038_v13 = vld [vmem:[#allocation2 + $0x34] sm:$0xf] }
 0x164   : > { %v873_v34 = vrot.slane %v816_v42, 6  ;;  %v1166_v35 = vsel %vm8944_vm5, %v1161_v30, %v1165_v25  ;;  %v8134_v25 = vld [vmem:[#allocation9 + $0x264] sm:$0xf] }
 0x165   : > { %v1250_v37 = vunpack.c.l.b16 %v1166_v35  ;;  %v1251_v41 = vunpack.c.h.b16 %v1166_v35  ;;  %v993_v43 = vld [vmem:[#allocation2 + $0xa8] sm:$0xff] }
 0x166   : > { %v874_v44 = vsel %vm8926_vm2, %v872_v31, %v873_v34  ;;  %v875_v45 = vrot.slane %v873_v34, 4  ;;  %v1168_v46 = vshrl.u32 %v993_v43, 16  ;;  %v1171_v49 = vshll.u32 %v993_v43, 16  ;;  %v7062_v31 = vld [vmem:[#allocation9 + $0x268] sm:$0xf0] }
 0x167   : > { %922 = vst [vmem:[#allocation2 + $0xb0] sm:$0xff] %v874_v44  ;;  %v1268_v50 = vpack.c.b16 %v1250_v37, %v1248_v36  ;;  %v1269_v51 = vpack.c.b16 %v1251_v41, %v1249_v38  ;;  %v9049_v54 = vshll.u32 %v874_v44, 16  ;;  %v9051_v55 = vshrl.u32 %v874_v44, 16  ;;  %v8150_v34 = vld [vmem:[#allocation9 + $0x2e4] sm:$0xf] }
 0x168   : > { %923 = vst [vmem:[#allocation2 + $0xb8] sm:$0x33] %v875_v45  ;;  %v1170_v58 = vrot.slane %v1168_v46, 4  ;;  %v1173_v26 = vrot.slane %v1171_v49, 5  ;;  %v7065_v35 = vor.u32 %v8134_v25, %v7062_v31  ;;  %v7126_v36 = vld [vmem:[#allocation9 + $0x2e8] sm:$0xf0] }
 0x169   : > { %10477 = vst [vmem:[#allocation32_spill] sm:$0xff] %v9049_v54  ;;  %1486 = vmatmul.bf16.gmra.mxu0 %v1268_v50  ;;  %1535 = vmatmul.bf16.gmra.mxu1 %v1269_v51  ;;  %v1179_v59 = vrot.slane %v9049_v54, 5  ;;  %v1183_v60 = vrot.slane %v9051_v55, 4  ;;  %v7129_v37 = vor.u32 %v8150_v34, %v7126_v36  ;;  %v8135_v38 = vld [vmem:[#allocation9 + $0x264] sm:$0xf0] }
 0x16a   : > { %10478 = vst [vmem:[#allocation33_spill] sm:$0xff] %v9051_v55  ;;  %1584 = vmatmul.bf16.gmra.mxu2 %v1268_v50  ;;  %1633 = vmatmul.bf16.gmra.mxu3 %v1269_v51  ;;  %v1174_v61 = vor.u32 %v1173_v26, %v1170_v58  ;;  %v7124_v41 = vld [vmem:[#allocation9 + $0x2e0] sm:$0xf]  ;;  %v7061_v43 = vor.u32 %v8135_v38, %v7060_v0  ;;  %v8151_v44 = vld [vmem:[#allocation9 + $0x2e4] sm:$0xf0] }
 0x16b   : > { %v1184_v8 = vor.u32 %v1183_v60, %v1179_v59  ;;  %2527 = vmatpush.bf16.msrb.mxu2 %v7065_v35  ;;  %2576 = vmatpush.bf16.msrb.mxu3 %v7129_v37  ;;  %v7125_v45 = vor.u32 %v8151_v44, %v7124_v41  ;;  %v8035_v46 = vld [vmem:[#allocation2 + $0x4] sm:$0xf0]  ;;  %v6814_v49 = vld [vmem:[#allocation2 + $0x8] sm:$0xf0]  ;;  %v6812_v58 = vld [vmem:[#allocation2] sm:$0xf] }
 0x16c   : > { %v1175_v7 = vrot.slane %v1174_v61, 4  ;;  %2429 = vmatpush.bf16.msrb.mxu0 %v7061_v43  ;;  %v8034_v26 = vld [vmem:[#allocation2 + $0x4] sm:$0xf]  ;;  %v6813_v60 = vor.u32 %v8035_v46, %v6812_v58  ;;  %v8036_v25 = vld [vmem:[#allocation2 + $0x1c] sm:$0xf] }
 0x16d   : > { %v1185_v21 = vrot.slane %v1184_v8, 4  ;;  %2478 = vmatpush.bf16.msrb.mxu1 %v7125_v45  ;;  %v6817_v61 = vor.u32 %v8034_v26, %v6814_v49  ;;  %v8130_v36 = vld [vmem:[#allocation9 + $0x244] sm:$0xf]  ;;  %v7046_v37 = vld [vmem:[#allocation9 + $0x248] sm:$0xf0] }
 0x16e   : > { %v1180_v20 = vsel %vm8944_vm5, %v1175_v7, %v1179_v59  ;;  %v8146_v0 = vld [vmem:[#allocation9 + $0x2c4] sm:$0xf]  ;;  %v7049_v38 = vor.u32 %v8130_v36, %v7046_v37  ;;  %v7110_v41 = vld [vmem:[#allocation9 + $0x2c8] sm:$0xf0]  ;;  %v7044_v58 = vld [vmem:[#allocation9 + $0x240] sm:$0xf] }
 0x16f   : > { %v995_v9 = vld [vmem:[#allocation2 + $0xb8] sm:$0x11]  ;;  %v1252_v24 = vunpack.c.l.b16 %v1180_v20  ;;  %v1253_v28 = vunpack.c.h.b16 %v1180_v20  ;;  %2528 = vmatpush.bf16.msrb.mxu2 %v7057_v2  ;;  %2577 = vmatpush.bf16.msrb.mxu3 %v7121_v6  ;;  %v7113_v43 = vor.u32 %v8146_v0, %v7110_v41  ;;  %v8131_v26 = vld [vmem:[#allocation9 + $0x244] sm:$0xf0]  ;;  %v7036_v36 = vld [vmem:[#allocation9 + $0x230] sm:$0xf] }
 0x170   : > { %v1187_v12 = vshll.u32 %v995_v9, 16  ;;  %v8149_v20 = vld [vmem:[#allocation9 + $0x2d4] sm:$0xf0]  ;;  %2430 = vmatpush.bf16.msrb.mxu0 %v7053_v17  ;;  %v7100_v0 = vld [vmem:[#allocation9 + $0x2b0] sm:$0xf] }
 0x171   : > { %v6830_v2 = vld [vmem:[#allocation2 + $0x38] sm:$0xf0] }
 0x172   : > { %v1189_v22 = vrot.slane %v1187_v12, 5  ;;  %v6833_v17 = vor.u32 %v8038_v13, %v6830_v2  ;;  %v8129_v37 = vld [vmem:[#allocation9 + $0x234] sm:$0xf0] }
 0x173   : > { %2529 = vmatpush.bf16.msrb.mxu2 %v7049_v38  ;;  %2578 = vmatpush.bf16.msrb.mxu3 %v7113_v43  ;;  %v7037_v38 = vor.u32 %v8129_v37, %v7036_v36  ;;  %v8145_v41 = vld [vmem:[#allocation9 + $0x2b4] sm:$0xf0]  ;;  %v8043_v36 = vld [vmem:[#allocation2 + $0x64] sm:$0xf0]  ;;  %v6846_v37 = vld [vmem:[#allocation2 + $0x68] sm:$0xf0] }
 0x174   : > { %v1190_v23 = vsel %vm8944_vm5, %v1185_v21, %v1189_v22  ;;  %v7117_v21 = vor.u32 %v8149_v20, %v7116_v16  ;;  %v8037_v22 = vld [vmem:[#allocation2 + $0x1c] sm:$0xf0]  ;;  %v8128_v20 = vld [vmem:[#allocation9 + $0x234] sm:$0xf]  ;;  %v7101_v43 = vor.u32 %v8145_v41, %v7100_v0 }
 0x175   : > { %v1254_v27 = vunpack.c.l.b16 %v1190_v23  ;;  %v1255_v42 = vunpack.c.h.b16 %v1190_v23  ;;  %v6822_v23 = vld [vmem:[#allocation2 + $0x20] sm:$0xf0] }
 0x176   : > { %2479 = vmatpush.bf16.msrb.mxu1 %v7117_v21  ;;  %v6825_v35 = vor.u32 %v8036_v25, %v6822_v23  ;;  %v7038_v21 = vld [vmem:[#allocation9 + $0x238] sm:$0xf0] }
 0x177   : > { %v1270_v29 = vpack.c.b16 %v1254_v27, %v1252_v24  ;;  %v1271_v30 = vpack.c.b16 %v1255_v42, %v1253_v28  ;;  %v7041_v23 = vor.u32 %v8128_v20, %v7038_v21 }
 0x179   : > { %1491 = vmatmul.bf16.gmra.mxu0 %v1270_v29  ;;  %1540 = vmatmul.bf16.gmra.mxu1 %v1271_v30 }
 0x17a   : > { %1589 = vmatmul.bf16.gmra.mxu2 %v1270_v29  ;;  %1638 = vmatmul.bf16.gmra.mxu3 %v1271_v30  ;;  %v6820_v30 = vld [vmem:[#allocation2 + $0x18] sm:$0xf] }
 0x17b   : > { %v6821_v34 = vor.u32 %v8037_v22, %v6820_v30  ;;  %v8144_v22 = vld [vmem:[#allocation9 + $0x2b4] sm:$0xf]  ;;  %2530 = vmatpush.bf16.msrb.mxu2 %v7041_v23 }
 0x186   : > { %v1457_v50 = vpop.f32.mrf.mxu0  ;;  %v1506_v51 = vpop.f32.mrf.mxu1 }
 0x187   : > { %v9059_v59 = vadd.f32 %v1506_v51, %v1457_v50 }
 0x189   : > { %1892 = vmatmul.bf16.vlgmr.msra.gmra.mxu0 %v6813_v60  ;;  %1941 = vmatmul.bf16.vlgmr.msra.gmra.mxu1 %v6817_v61 }
 0x18a   : > { %1990 = vmatmul.bf16.vlgmr.msra.gmra.mxu2 %v6813_v60  ;;  %2039 = vmatmul.bf16.vlgmr.msra.gmra.mxu3 %v6817_v61  ;;  %v7108_v60 = vld [vmem:[#allocation9 + $0x2c0] sm:$0xf]  ;;  %v7045_v61 = vor.u32 %v8131_v26, %v7044_v58 }
 0x18b   : > { %v7109_v63 = vor.u32 %v8147_v62, %v7108_v60  ;;  %v8040_v62 = vld [vmem:[#allocation2 + $0x4c] sm:$0xf] }
 0x18c   : > { %2431 = vmatpush.bf16.msrb.mxu0 %v7045_v61  ;;  %v6836_v61 = vld [vmem:[#allocation2 + $0x48] sm:$0xf] }
 0x18d   : > { %v1555_v7 = vpop.f32.mrf.mxu2  ;;  %v1604_v8 = vpop.f32.mrf.mxu3  ;;  %2480 = vmatpush.bf16.msrb.mxu1 %v7109_v63 }
 0x18e   : > { %v9061_v9 = vadd.f32 %v1604_v8, %v1555_v7  ;;  %v1459_v10 = vpop.f32.mrf.mxu0  ;;  %v1508_v11 = vpop.f32.mrf.mxu1 }
 0x18f   : > { %v9063_v12 = vadd.f32 %v1508_v11, %v1459_v10  ;;  %v6828_v11 = vld [vmem:[#allocation2 + $0x30] sm:$0xf] }
 0x190   : > { %v6829_v16 = vor.u32 %v8039_v1, %v6828_v11  ;;  %2432 = vmatpush.bf16.msrb.mxu0 %v7037_v38  ;;  %v7094_v11 = vld [vmem:[#allocation9 + $0x2a8] sm:$0xf0] }
 0x191   : > { %2481 = vmatpush.bf16.msrb.mxu1 %v7101_v43 }
 0x195   : > { %v1557_v24 = vpop.f32.mrf.mxu2  ;;  %v1606_v27 = vpop.f32.mrf.mxu3 }
 0x196   : > { %v9065_v28 = vadd.f32 %v1606_v27, %v1557_v24  ;;  %v1462_v42 = vpop.f32.mrf.mxu0  ;;  %v1511_v29 = vpop.f32.mrf.mxu1  ;;  %v7102_v24 = vld [vmem:[#allocation9 + $0x2b8] sm:$0xf0] }
 0x197   : > { %v9067_v31 = vadd.f32 %v1511_v29, %v1462_v42  ;;  %v7105_v27 = vor.u32 %v8144_v22, %v7102_v24  ;;  %v7028_v24 = vld [vmem:[#allocation9 + $0x220] sm:$0xf] }
 0x199   : > { %1897 = vmatmul.bf16.gmra.mxu0 %v6821_v34  ;;  %1946 = vmatmul.bf16.gmra.mxu1 %v6825_v35 }
 0x19a   : > { %1995 = vmatmul.bf16.gmra.mxu2 %v6821_v34  ;;  %2044 = vmatmul.bf16.gmra.mxu3 %v6825_v35 }
 0x19b   : > { %2579 = vmatpush.bf16.msrb.mxu3 %v7105_v27  ;;  %v8127_v27 = vld [vmem:[#allocation9 + $0x224] sm:$0xf0] }
 0x19d   : > { %v1560_v44 = vpop.f32.mrf.mxu2  ;;  %v1609_v45 = vpop.f32.mrf.mxu3 }
 0x19e   : > { %v9069_v46 = vadd.f32 %v1609_v45, %v1560_v44  ;;  %v1464_v49 = vpop.f32.mrf.mxu0  ;;  %v1513_v50 = vpop.f32.mrf.mxu1  ;;  %v8041_v44 = vld [vmem:[#allocation2 + $0x4c] sm:$0xf0]  ;;  %v6838_v45 = vld [vmem:[#allocation2 + $0x50] sm:$0xf0] }
 0x19f   : > { %v9071_v51 = vadd.f32 %v1513_v50, %v1464_v49  ;;  %v6837_v1 = vor.u32 %v8041_v44, %v6836_v61  ;;  %v6841_v2 = vor.u32 %v8040_v62, %v6838_v45  ;;  %v6844_v45 = vld [vmem:[#allocation2 + $0x60] sm:$0xf]  ;;  %v8124_v61 = vld [vmem:[#allocation9 + $0x214] sm:$0xf] }
 0x1a0   : > { %v7022_v62 = vld [vmem:[#allocation9 + $0x218] sm:$0xf0] }
 0x1a5   : > { %v1562_v3 = vpop.f32.mrf.mxu2  ;;  %v1611_v6 = vpop.f32.mrf.mxu3 }
 0x1a6   : > { %v9073_v7 = vadd.f32 %v1611_v6, %v1562_v3  ;;  %v1467_v8 = vpop.f32.mrf.mxu0  ;;  %v1516_v10 = vpop.f32.mrf.mxu1  ;;  %v8126_v3 = vld [vmem:[#allocation9 + $0x224] sm:$0xf]  ;;  %v7030_v6 = vld [vmem:[#allocation9 + $0x228] sm:$0xf0] }
 0x1a7   : > { %v9075_v14 = vadd.f32 %v1516_v10, %v1467_v8  ;;  %v8142_v8 = vld [vmem:[#allocation9 + $0x2a4] sm:$0xf]  ;;  %v7033_v10 = vor.u32 %v8126_v3, %v7030_v6  ;;  %v7086_v3 = vld [vmem:[#allocation9 + $0x298] sm:$0xf0] }
 0x1a8   : > { %v7097_v13 = vor.u32 %v8142_v8, %v7094_v11 }
 0x1a9   : > { %1902 = vmatmul.bf16.gmra.mxu0 %v6829_v16  ;;  %1951 = vmatmul.bf16.gmra.mxu1 %v6833_v17 }
 0x1aa   : > { %2000 = vmatmul.bf16.gmra.mxu2 %v6829_v16  ;;  %2049 = vmatmul.bf16.gmra.mxu3 %v6833_v17 }
 0x1ab   : > { %2531 = vmatpush.bf16.msrb.mxu2 %v7033_v10  ;;  %2580 = vmatpush.bf16.msrb.mxu3 %v7097_v13 }
 0x1ad   : > { %v1565_v42 = vpop.f32.mrf.mxu2  ;;  %v1614_v29 = vpop.f32.mrf.mxu3 }
 0x1ae   : > { %v9077_v30 = vadd.f32 %v1614_v29, %v1565_v42  ;;  %v1469_v25 = vpop.f32.mrf.mxu0  ;;  %v1518_v34 = vpop.f32.mrf.mxu1  ;;  %v7092_v42 = vld [vmem:[#allocation9 + $0x2a0] sm:$0xf]  ;;  %v7029_v29 = vor.u32 %v8127_v27, %v7028_v24  ;;  %v7084_v24 = vld [vmem:[#allocation9 + $0x290] sm:$0xf] }
 0x1af   : > { %v9079_v35 = vadd.f32 %v1518_v34, %v1469_v25  ;;  %v8143_v25 = vld [vmem:[#allocation9 + $0x2a4] sm:$0xf0] }
 0x1b0   : > { %v7093_v34 = vor.u32 %v8143_v25, %v7092_v42  ;;  %2433 = vmatpush.bf16.msrb.mxu0 %v7029_v29  ;;  %v8141_v42 = vld [vmem:[#allocation9 + $0x294] sm:$0xf0]  ;;  %v8045_v25 = vld [vmem:[#allocation2 + $0x7c] sm:$0xf0] }
 0x1b1   : > { %v7085_v29 = vor.u32 %v8141_v42, %v7084_v24  ;;  %v7012_v24 = vld [vmem:[#allocation9 + $0x200] sm:$0xf] }
 0x1b2   : > { %2482 = vmatpush.bf16.msrb.mxu1 %v7093_v34  ;;  %v6854_v34 = vld [vmem:[#allocation2 + $0x80] sm:$0xf0] }
 0x1b3   : > { %v7076_v42 = vld [vmem:[#allocation9 + $0x280] sm:$0xf] }
 0x1b5   : > { %v1567_v49 = vpop.f32.mrf.mxu2  ;;  %v1616_v50 = vpop.f32.mrf.mxu3 }
 0x1b6   : > { %v9081_v58 = vadd.f32 %v1616_v50, %v1567_v49  ;;  %v1472_v26 = vpop.f32.mrf.mxu0  ;;  %v1521_v60 = vpop.f32.mrf.mxu1  ;;  %v8042_v49 = vld [vmem:[#allocation2 + $0x64] sm:$0xf]  ;;  %2483 = vmatpush.bf16.msrb.mxu1 %v7085_v29 }
 0x1b7   : > { %v9083_v63 = vadd.f32 %v1521_v60, %v1472_v26  ;;  %v6845_v26 = vor.u32 %v8043_v36, %v6844_v45  ;;  %v6849_v60 = vor.u32 %v8042_v49, %v6846_v37  ;;  %v8044_v45 = vld [vmem:[#allocation2 + $0x7c] sm:$0xf] }
 0x1b9   : > { %1907 = vmatmul.bf16.gmra.mxu0 %v6837_v1  ;;  %1956 = vmatmul.bf16.gmra.mxu1 %v6841_v2 }
 0x1ba   : > { %2005 = vmatmul.bf16.gmra.mxu2 %v6837_v1  ;;  %2054 = vmatmul.bf16.gmra.mxu3 %v6841_v2  ;;  %v8140_v1 = vld [vmem:[#allocation9 + $0x294] sm:$0xf]  ;;  %v7025_v2 = vor.u32 %v8124_v61, %v7022_v62  ;;  %v8122_v61 = vld [vmem:[#allocation9 + $0x204] sm:$0xf]  ;;  %v7014_v62 = vld [vmem:[#allocation9 + $0x208] sm:$0xf0] }
 0x1bb   : > { %v7089_v6 = vor.u32 %v8140_v1, %v7086_v3  ;;  %v8138_v1 = vld [vmem:[#allocation9 + $0x284] sm:$0xf]  ;;  %v7078_v3 = vld [vmem:[#allocation9 + $0x288] sm:$0xf0] }
 0x1bc   : > { %2532 = vmatpush.bf16.msrb.mxu2 %v7025_v2  ;;  %v7017_v2 = vor.u32 %v8122_v61, %v7014_v62  ;;  %v8046_v61 = vld [vmem:[#allocation2 + $0x94] sm:$0xf] }
 0x1bd   : > { %v1570_v16 = vpop.f32.mrf.mxu2  ;;  %v1619_v17 = vpop.f32.mrf.mxu3  ;;  %2581 = vmatpush.bf16.msrb.mxu3 %v7089_v6  ;;  %v7081_v6 = vor.u32 %v8138_v1, %v7078_v3  ;;  %v8168_v3 = vld [vmem:[#allocation9 + $0x374] sm:$0xf] }
 0x1be   : > { %v9085_v20 = vadd.f32 %v1619_v17, %v1570_v16  ;;  %v1474_v21 = vpop.f32.mrf.mxu0  ;;  %v1523_v22 = vpop.f32.mrf.mxu1 }
 0x1bf   : > { %v9087_v23 = vadd.f32 %v1523_v22, %v1474_v21  ;;  %v7020_v21 = vld [vmem:[#allocation9 + $0x210] sm:$0xf]  ;;  %v8125_v22 = vld [vmem:[#allocation9 + $0x214] sm:$0xf0] }
 0x1c0   : > { %v7021_v27 = vor.u32 %v8125_v22, %v7020_v21  ;;  %2533 = vmatpush.bf16.msrb.mxu2 %v7017_v2 }
 0x1c1   : > { %2582 = vmatpush.bf16.msrb.mxu3 %v7081_v6  ;;  %v7198_v6 = vld [vmem:[#allocation9 + $0x378] sm:$0xf0] }
 0x1c2   : > { %2434 = vmatpush.bf16.msrb.mxu0 %v7021_v27  ;;  %v8123_v27 = vld [vmem:[#allocation9 + $0x204] sm:$0xf0] }
 0x1c3   : > { %v7013_v29 = vor.u32 %v8123_v27, %v7012_v24 }
 0x1c5   : > { %v1572_v0 = vpop.f32.mrf.mxu2  ;;  %v1621_v38 = vpop.f32.mrf.mxu3 }
 0x1c6   : > { %v9089_v41 = vadd.f32 %v1621_v38, %v1572_v0  ;;  %v1477_v43 = vpop.f32.mrf.mxu0  ;;  %v1526_v44 = vpop.f32.mrf.mxu1  ;;  %2435 = vmatpush.bf16.msrb.mxu0 %v7013_v29 }
 0x1c7   : > { %v9091_v50 = vadd.f32 %v1526_v44, %v1477_v43  ;;  %v6852_v44 = vld [vmem:[#allocation2 + $0x78] sm:$0xf] }
 0x1c9   : > { %1912 = vmatmul.bf16.gmra.mxu0 %v6845_v26  ;;  %1961 = vmatmul.bf16.gmra.mxu1 %v6849_v60 }
 0x1ca   : > { %2010 = vmatmul.bf16.gmra.mxu2 %v6845_v26  ;;  %2059 = vmatmul.bf16.gmra.mxu3 %v6849_v60  ;;  %v6853_v26 = vor.u32 %v8045_v25, %v6852_v44  ;;  %v6857_v60 = vor.u32 %v8044_v45, %v6854_v34  ;;  %v8139_v25 = vld [vmem:[#allocation9 + $0x284] sm:$0xf0] }
 0x1cb   : > { %v7077_v34 = vor.u32 %v8139_v25, %v7076_v42 }
 0x1cd   : > { %v1575_v8 = vpop.f32.mrf.mxu2  ;;  %v1624_v10 = vpop.f32.mrf.mxu3  ;;  %2484 = vmatpush.bf16.msrb.mxu1 %v7077_v34 }
 0x1ce   : > { %v9093_v11 = vadd.f32 %v1624_v10, %v1575_v8  ;;  %v1479_v13 = vpop.f32.mrf.mxu0  ;;  %v1528_v16 = vpop.f32.mrf.mxu1 }
 0x1cf   : > { %v9095_v17 = vadd.f32 %v1528_v16, %v1479_v13 }
 0x1d5   : > { %v1577_v36 = vpop.f32.mrf.mxu2  ;;  %v1626_v37 = vpop.f32.mrf.mxu3 }
 0x1d6   : > { %v9097_v0 = vadd.f32 %v1626_v37, %v1577_v36  ;;  %v1482_v38 = vpop.f32.mrf.mxu0  ;;  %v1531_v43 = vpop.f32.mrf.mxu1  ;;  %v8047_v36 = vld [vmem:[#allocation2 + $0x94] sm:$0xf0]  ;;  %v6862_v37 = vld [vmem:[#allocation2 + $0x98] sm:$0xf0] }
 0x1d7   : > { %v9099_v49 = vadd.f32 %v1531_v43, %v1482_v38  ;;  %v6865_v2 = vor.u32 %v8046_v61, %v6862_v37  ;;  %v8169_v37 = vld [vmem:[#allocation9 + $0x374] sm:$0xf0]  ;;  %v6870_v61 = vld [vmem:[#allocation2 + $0xb0] sm:$0xf0] }
 0x1d9   : > { %1917 = vmatmul.bf16.gmra.mxu0 %v6853_v26  ;;  %1966 = vmatmul.bf16.gmra.mxu1 %v6857_v60 }
 0x1da   : > { %2015 = vmatmul.bf16.gmra.mxu2 %v6853_v26  ;;  %2064 = vmatmul.bf16.gmra.mxu3 %v6857_v60  ;;  %v6860_v60 = vld [vmem:[#allocation2 + $0x90] sm:$0xf] }
 0x1db   : > { %v6861_v1 = vor.u32 %v8047_v36, %v6860_v60  ;;  %v7196_v36 = vld [vmem:[#allocation9 + $0x370] sm:$0xf] }
 0x1dc   : > { %v8049_v60 = vld [vmem:[#allocation2 + $0xac] sm:$0xf0] }
 0x1dd   : > { %v1580_v8 = vpop.f32.mrf.mxu2  ;;  %v1629_v10 = vpop.f32.mrf.mxu3 }
 0x1de   : > { %v9101_v13 = vadd.f32 %v1629_v10, %v1580_v8  ;;  %v1484_v16 = vpop.f32.mrf.mxu0  ;;  %v1533_v21 = vpop.f32.mrf.mxu1  ;;  %v8184_v8 = vld [vmem:[#allocation9 + $0x3f4] sm:$0xf]  ;;  %v7201_v10 = vor.u32 %v8168_v3, %v7198_v6 }
 0x1df   : > { %v9103_v22 = vadd.f32 %v1533_v21, %v1484_v16  ;;  %v7262_v16 = vld [vmem:[#allocation9 + $0x3f8] sm:$0xf0] }
 0x1e0   : > { %v7265_v21 = vor.u32 %v8184_v8, %v7262_v16  ;;  %3206 = vmatpush.bf16.msra.mxu2 %v7201_v10  ;;  %v6868_v10 = vld [vmem:[#allocation2 + $0xa8] sm:$0xf]  ;;  %v8048_v16 = vld [vmem:[#allocation2 + $0xac] sm:$0xf] }
 0x1e2   : > { %3255 = vmatpush.bf16.msra.mxu3 %v7265_v21 }
 0x1e5   : > { %v1582_v38 = vpop.f32.mrf.mxu2  ;;  %v1631_v43 = vpop.f32.mrf.mxu3 }
 0x1e6   : > { %v9105_v44 = vadd.f32 %v1631_v43, %v1582_v38  ;;  %v1487_v45 = vpop.f32.mrf.mxu0  ;;  %v1536_v26 = vpop.f32.mrf.mxu1  ;;  %v7260_v38 = vld [vmem:[#allocation9 + $0x3f0] sm:$0xf]  ;;  %v7197_v43 = vor.u32 %v8169_v37, %v7196_v36  ;;  %v8166_v36 = vld [vmem:[#allocation9 + $0x364] sm:$0xf]  ;;  %v7190_v37 = vld [vmem:[#allocation9 + $0x368] sm:$0xf0] }
 0x1e7   : > { %v9107_v62 = vadd.f32 %v1536_v26, %v1487_v45  ;;  %v8185_v45 = vld [vmem:[#allocation9 + $0x3f4] sm:$0xf0] }
 0x1e8   : > { %v7261_v26 = vor.u32 %v8185_v45, %v7260_v38  ;;  %3108 = vmatpush.bf16.msra.mxu0 %v7197_v43  ;;  %v8182_v38 = vld [vmem:[#allocation9 + $0x3e4] sm:$0xf]  ;;  %v7193_v45 = vor.u32 %v8166_v36, %v7190_v37 }
 0x1e9   : > { %1922 = vmatmul.bf16.gmra.mxu0 %v6861_v1  ;;  %1971 = vmatmul.bf16.gmra.mxu1 %v6865_v2  ;;  %v9117_v43 = vld [vmem:[#allocation2] sm:$0xee] }
 0x1ea   : > { %2020 = vmatmul.bf16.gmra.mxu2 %v6861_v1  ;;  %2069 = vmatmul.bf16.gmra.mxu3 %v6865_v2 }
 0x1eb   : > { %3157 = vmatpush.bf16.msra.mxu1 %v7261_v26  ;;  %v7254_v26 = vld [vmem:[#allocation9 + $0x3e8] sm:$0xf0]  ;;  %3207 = vmatpush.bf16.msra.mxu2 %v7193_v45  ;;  %v7252_v45 = vld [vmem:[#allocation9 + $0x3e0] sm:$0xf] }
 0x1ed   : > { %v1585_v24 = vpop.f32.mrf.mxu2  ;;  %v1634_v27 = vpop.f32.mrf.mxu3 }
 0x1ee   : > { %v9109_v42 = vadd.f32 %v1634_v27, %v1585_v24  ;;  %v1489_v29 = vpop.f32.mrf.mxu0  ;;  %v1538_v25 = vpop.f32.mrf.mxu1  ;;  %v6869_v24 = vor.u32 %v8049_v60, %v6868_v10  ;;  %v6873_v27 = vor.u32 %v8048_v16, %v6870_v61 }
 0x1ef   : > { %v9111_v34 = vadd.f32 %v1538_v25, %v1489_v29  ;;  %v8450_v29 = vld [vmem:[#allocation2 + $0x8] sm:$0xff] }
 0x1f0   : > { %v2117_v25 = vrot.slane %v8450_v29, 5 }
 0x1f5   : > { %v1587_v1 = vpop.f32.mrf.mxu2  ;;  %v1636_v2 = vpop.f32.mrf.mxu3 }
 0x1f6   : > { %v9113_v3 = vadd.f32 %v1636_v2, %v1587_v1  ;;  %v1492_v6 = vpop.f32.mrf.mxu0  ;;  %v1541_v8 = vpop.f32.mrf.mxu1  ;;  %v8451_v1 = vld [vmem:[#allocation2 + $0x10] sm:$0x11] }
 0x1f7   : > { %v9115_v21 = vadd.f32 %v1541_v8, %v1492_v6  ;;  %v2120_v2 = vrot.slane %v8451_v1, 5  ;;  %v7257_v6 = vor.u32 %v8182_v38, %v7254_v26  ;;  %v7188_v38 = vld [vmem:[#allocation9 + $0x360] sm:$0xf]  ;;  %v8167_v26 = vld [vmem:[#allocation9 + $0x364] sm:$0xf0] }
 0x1f9   : > { %1927 = vmatmul.bf16.gmra.mxu0 %v6869_v24  ;;  %1976 = vmatmul.bf16.gmra.mxu1 %v6873_v27 }
 0x1fa   : > { %2025 = vmatmul.bf16.gmra.mxu2 %v6869_v24  ;;  %2074 = vmatmul.bf16.gmra.mxu3 %v6873_v27  ;;  %v7002_v24 = vrot.slane %v9117_v43, 9  ;;  %v2119_v27 = vrot.slane %v2117_v25, 4 }
 0x1fb   : > { %3256 = vmatpush.bf16.msra.mxu3 %v7257_v6 }
 0x1fc   : > { %v2121_v37 = vsel %vm9124_vm8, %v2119_v27, %v2120_v2  ;;  %v2118_v1 = vsel %vm9124_vm8, %v7002_v24, %v2117_v25  ;;  %v8452_v24 = vld [vmem:[#allocation2 + $0x20] sm:$0xff] }
 0x1fd   : > { %v1590_v60 = vpop.f32.mrf.mxu2  ;;  %v1639_v61 = vpop.f32.mrf.mxu3  ;;  %v2206_v15 = vunpack.c.l.b16 %v2121_v37  ;;  %v2207_v54 = vunpack.c.h.b16 %v2121_v37  ;;  %v2204_v55 = vunpack.c.l.b16 %v2118_v1  ;;  %v2205_v52 = vunpack.c.h.b16 %v2118_v1  ;;  %v9137_v1 = vld [vmem:[#allocation2 + $0x18] sm:$0xee] }
 0x1fe   : > { %v9119_v8 = vadd.f32 %v1639_v61, %v1590_v60  ;;  %v1494_v10 = vpop.f32.mrf.mxu0  ;;  %v1543_v16 = vpop.f32.mrf.mxu1  ;;  %v7189_v60 = vor.u32 %v8167_v26, %v7188_v38  ;;  %v8183_v61 = vld [vmem:[#allocation9 + $0x3e4] sm:$0xf0]  ;;  %v2124_v37 = vrot.slane %v8452_v24, 5  ;;  %v8164_v38 = vld [vmem:[#allocation9 + $0x354] sm:$0xf] }
 0x1ff   : > { %v9122_v29 = vadd.f32 %v1543_v16, %v1494_v10  ;;  %v7253_v6 = vor.u32 %v8183_v61, %v7252_v45  ;;  %v2236_v19 = vpack.c.b16 %v2206_v15, %v2204_v55  ;;  %v2237_v4 = vpack.c.b16 %v2207_v54, %v2205_v52  ;;  %v7182_v26 = vld [vmem:[#allocation9 + $0x358] sm:$0xf0]  ;;  %v8180_v45 = vld [vmem:[#allocation9 + $0x3d4] sm:$0xf] }
 0x200   : > { %3109 = vmatpush.bf16.msra.mxu0 %v7189_v60  ;;  %v7185_v60 = vor.u32 %v8164_v38, %v7182_v26  ;;  %v7246_v61 = vld [vmem:[#allocation9 + $0x3d8] sm:$0xf0]  ;;  %v7180_v38 = vld [vmem:[#allocation9 + $0x350] sm:$0xf]  ;;  %v8165_v26 = vld [vmem:[#allocation9 + $0x354] sm:$0xf0] }
 0x201   : > { %3158 = vmatpush.bf16.msra.mxu1 %v7253_v6  ;;  %v8453_v6 = vld [vmem:[#allocation2 + $0x28] sm:$0x11] }
 0x202   : > { %3208 = vmatpush.bf16.msra.mxu2 %v7185_v60  ;;  %v7181_v60 = vor.u32 %v8165_v26, %v7180_v38  ;;  %v8162_v26 = vld [vmem:[#allocation9 + $0x344] sm:$0xf] }
 0x204   : > { %3110 = vmatpush.bf16.msra.mxu0 %v7181_v60 }
 0x205   : > { %v1592_v10 = vpop.f32.mrf.mxu2  ;;  %v1641_v16 = vpop.f32.mrf.mxu3 }
 0x206   : > { %v9132_v53 = vadd.f32 %v1641_v16, %v1592_v10  ;;  %v1893_v2 = vpop.f32.mrf.mxu0  ;;  %v1942_v27 = vpop.f32.mrf.mxu1  ;;  %v2127_v10 = vrot.slane %v8453_v6, 5 }
 0x207   : > { %v1894_v18 = vadd.f32 %v1893_v2, %v9059_v59  ;;  %v7249_v59 = vor.u32 %v8180_v45, %v7246_v61  ;;  %v7244_v45 = vld [vmem:[#allocation9 + $0x3d0] sm:$0xf]  ;;  %v8181_v61 = vld [vmem:[#allocation9 + $0x3d4] sm:$0xf0] }
 0x209   : > { %v9135_v25 = vadd.f32 %v1942_v27, %v1894_v18  ;;  %2436 = vmatmul.bf16.vlgmr.msrb.gmra.mxu0 %v2236_v19  ;;  %2485 = vmatmul.bf16.vlgmr.msrb.gmra.mxu1 %v2237_v4 }
 0x20a   : > { %2534 = vmatmul.bf16.vlgmr.msrb.gmra.mxu2 %v2236_v19  ;;  %2583 = vmatmul.bf16.vlgmr.msrb.gmra.mxu3 %v2237_v4  ;;  %v7003_v19 = vrot.slane %v9137_v1, 9  ;;  %v2126_v4 = vrot.slane %v2124_v37, 4 }
 0x20b   : > { %3257 = vmatpush.bf16.msra.mxu3 %v7249_v59  ;;  %v7245_v59 = vor.u32 %v8181_v61, %v7244_v45  ;;  %v7174_v45 = vld [vmem:[#allocation9 + $0x348] sm:$0xf0] }
 0x20c   : > { %v2128_v27 = vsel %vm9124_vm8, %v2126_v4, %v2127_v10  ;;  %v7177_v60 = vor.u32 %v8162_v26, %v7174_v45  ;;  %v7238_v61 = vld [vmem:[#allocation9 + $0x3c8] sm:$0xf0]  ;;  %v8163_v26 = vld [vmem:[#allocation9 + $0x344] sm:$0xf0]  ;;  %v7236_v45 = vld [vmem:[#allocation9 + $0x3c0] sm:$0xf] }
 0x20d   : > { %v1991_v15 = vpop.f32.mrf.mxu2  ;;  %v2040_v52 = vpop.f32.mrf.mxu3  ;;  %v2210_v6 = vunpack.c.l.b16 %v2128_v27  ;;  %3159 = vmatpush.bf16.msra.mxu1 %v7245_v59 }
 0x20e   : > { %v1992_v18 = vadd.f32 %v1991_v15, %v9061_v9  ;;  %v1895_v54 = vpop.f32.mrf.mxu0  ;;  %v1944_v55 = vpop.f32.mrf.mxu1  ;;  %v2125_v9 = vsel %vm9124_vm8, %v7003_v19, %v2124_v37  ;;  %v2211_v15 = vunpack.c.h.b16 %v2128_v27  ;;  %v8454_v27 = vld [vmem:[#allocation2 + $0x38] sm:$0xff]  ;;  %3209 = vmatpush.bf16.msra.mxu2 %v7177_v60  ;;  %v8179_v60 = vld [vmem:[#allocation9 + $0x3c4] sm:$0xf0] }
 0x20f   : > { %v1896_v16 = vadd.f32 %v1895_v54, %v9063_v12  ;;  %v2209_v54 = vunpack.c.h.b16 %v2125_v9  ;;  %v2131_v38 = vrot.slane %v8454_v27, 5  ;;  %v7172_v27 = vld [vmem:[#allocation9 + $0x340] sm:$0xf] }
 0x210   : > { %v9142_v2 = vadd.f32 %v2040_v52, %v1992_v18  ;;  %v2208_v18 = vunpack.c.l.b16 %v2125_v9  ;;  %v8178_v9 = vld [vmem:[#allocation9 + $0x3c4] sm:$0xf] }
 0x211   : > { %v9146_v24 = vadd.f32 %v1944_v55, %v1896_v16  ;;  %v2239_v56 = vpack.c.b16 %v2211_v15, %v2209_v54  ;;  %v7241_v15 = vor.u32 %v8178_v9, %v7238_v61  ;;  %v7173_v9 = vor.u32 %v8163_v26, %v7172_v27  ;;  %v8160_v26 = vld [vmem:[#allocation9 + $0x334] sm:$0xf] }
 0x212   : > { %v2238_v5 = vpack.c.b16 %v2210_v6, %v2208_v18 }
 0x213   : > { %3258 = vmatpush.bf16.msra.mxu3 %v7241_v15  ;;  %v7237_v15 = vor.u32 %v8179_v60, %v7236_v45  ;;  %3111 = vmatpush.bf16.msra.mxu0 %v7173_v9  ;;  %v7166_v45 = vld [vmem:[#allocation9 + $0x338] sm:$0xf0] }
 0x214   : > { %v7169_v9 = vor.u32 %v8160_v26, %v7166_v45  ;;  %v7230_v60 = vld [vmem:[#allocation9 + $0x3b8] sm:$0xf0]  ;;  %v8161_v26 = vld [vmem:[#allocation9 + $0x334] sm:$0xf0]  ;;  %v7228_v45 = vld [vmem:[#allocation9 + $0x3b0] sm:$0xf] }
 0x215   : > { %v1993_v12 = vpop.f32.mrf.mxu2  ;;  %v2042_v52 = vpop.f32.mrf.mxu3  ;;  %3160 = vmatpush.bf16.msra.mxu1 %v7237_v15 }
 0x216   : > { %v1994_v10 = vadd.f32 %v1993_v12, %v9065_v28  ;;  %v1898_v55 = vpop.f32.mrf.mxu0  ;;  %v1947_v4 = vpop.f32.mrf.mxu1  ;;  %v9156_v28 = vld [vmem:[#allocation2 + $0x30] sm:$0xee]  ;;  %3210 = vmatpush.bf16.msra.mxu2 %v7169_v9  ;;  %v8177_v9 = vld [vmem:[#allocation9 + $0x3b4] sm:$0xf0] }
 0x217   : > { %v1899_v16 = vadd.f32 %v1898_v55, %v9067_v31  ;;  %v8455_v31 = vld [vmem:[#allocation2 + $0x40] sm:$0x11] }
 0x218   : > { %v9152_v37 = vadd.f32 %v2042_v52, %v1994_v10  ;;  %v2134_v6 = vrot.slane %v8455_v31, 5 }
 0x219   : > { %v9154_v19 = vadd.f32 %v1947_v4, %v1899_v16  ;;  %2441 = vmatmul.bf16.gmra.mxu0 %v2238_v5  ;;  %2490 = vmatmul.bf16.gmra.mxu1 %v2239_v56 }
 0x21a   : > { %2539 = vmatmul.bf16.gmra.mxu2 %v2238_v5  ;;  %2588 = vmatmul.bf16.gmra.mxu3 %v2239_v56  ;;  %v7004_v5 = vrot.slane %v9156_v28, 9  ;;  %v2133_v56 = vrot.slane %v2131_v38, 4 }
 0x21c   : > { %v2135_v4 = vsel %vm9124_vm8, %v2133_v56, %v2134_v6 }
 0x21d   : > { %v1996_v59 = vpop.f32.mrf.mxu2  ;;  %v2045_v12 = vpop.f32.mrf.mxu3  ;;  %v2214_v61 = vunpack.c.l.b16 %v2135_v4  ;;  %v2215_v31 = vunpack.c.h.b16 %v2135_v4  ;;  %v8456_v4 = vld [vmem:[#allocation2 + $0x50] sm:$0xff] }
 0x21e   : > { %v1997_v52 = vadd.f32 %v1996_v59, %v9069_v46  ;;  %v1900_v18 = vpop.f32.mrf.mxu0  ;;  %v1949_v54 = vpop.f32.mrf.mxu1  ;;  %v2132_v46 = vsel %vm9124_vm8, %v7004_v5, %v2131_v38  ;;  %v2138_v27 = vrot.slane %v8456_v4, 5  ;;  %v7164_v4 = vld [vmem:[#allocation9 + $0x330] sm:$0xf] }
 0x21f   : > { %v1901_v10 = vadd.f32 %v1900_v18, %v9071_v51 }
 0x220   : > { %v9161_v55 = vadd.f32 %v2045_v12, %v1997_v52  ;;  %v2212_v12 = vunpack.c.l.b16 %v2132_v46  ;;  %v2213_v52 = vunpack.c.h.b16 %v2132_v46  ;;  %v8176_v46 = vld [vmem:[#allocation9 + $0x3b4] sm:$0xf] }
 0x221   : > { %v9165_v16 = vadd.f32 %v1949_v54, %v1901_v10 }
 0x222   : > { %v2240_v10 = vpack.c.b16 %v2214_v61, %v2212_v12  ;;  %v2241_v57 = vpack.c.b16 %v2215_v31, %v2213_v52  ;;  %v7233_v31 = vor.u32 %v8176_v46, %v7230_v60  ;;  %v7165_v46 = vor.u32 %v8161_v26, %v7164_v4  ;;  %v8158_v26 = vld [vmem:[#allocation9 + $0x324] sm:$0xf] }
 0x224   : > { %3259 = vmatpush.bf16.msra.mxu3 %v7233_v31  ;;  %v7229_v31 = vor.u32 %v8177_v9, %v7228_v45  ;;  %3112 = vmatpush.bf16.msra.mxu0 %v7165_v46  ;;  %v7158_v45 = vld [vmem:[#allocation9 + $0x328] sm:$0xf0] }
 0x225   : > { %v1998_v51 = vpop.f32.mrf.mxu2  ;;  %v2047_v59 = vpop.f32.mrf.mxu3  ;;  %v7161_v46 = vor.u32 %v8158_v26, %v7158_v45  ;;  %v7222_v9 = vld [vmem:[#allocation9 + $0x3a8] sm:$0xf0]  ;;  %v8159_v26 = vld [vmem:[#allocation9 + $0x324] sm:$0xf0]  ;;  %v7220_v45 = vld [vmem:[#allocation9 + $0x3a0] sm:$0xf] }
 0x226   : > { %v1999_v6 = vadd.f32 %v1998_v51, %v9073_v7  ;;  %v1903_v18 = vpop.f32.mrf.mxu0  ;;  %v1952_v54 = vpop.f32.mrf.mxu1  ;;  %v9175_v7 = vld [vmem:[#allocation2 + $0x48] sm:$0xee]  ;;  %3161 = vmatpush.bf16.msra.mxu1 %v7229_v31 }
 0x227   : > { %v1904_v56 = vadd.f32 %v1903_v18, %v9075_v14  ;;  %v8457_v14 = vld [vmem:[#allocation2 + $0x58] sm:$0x11]  ;;  %3211 = vmatpush.bf16.msra.mxu2 %v7161_v46  ;;  %v8175_v46 = vld [vmem:[#allocation9 + $0x3a4] sm:$0xf0] }
 0x228   : > { %v9171_v38 = vadd.f32 %v2047_v59, %v1999_v6  ;;  %v2141_v61 = vrot.slane %v8457_v14, 5  ;;  %v7005_v6 = vrot.slane %v9175_v7, 9 }
 0x229   : > { %v9173_v5 = vadd.f32 %v1952_v54, %v1904_v56  ;;  %2446 = vmatmul.bf16.gmra.mxu0 %v2240_v10  ;;  %2495 = vmatmul.bf16.gmra.mxu1 %v2241_v57 }
 0x22a   : > { %2544 = vmatmul.bf16.gmra.mxu2 %v2240_v10  ;;  %2593 = vmatmul.bf16.gmra.mxu3 %v2241_v57  ;;  %v2140_v57 = vrot.slane %v2138_v27, 4 }
 0x22c   : > { %v2142_v56 = vsel %vm9124_vm8, %v2140_v57, %v2141_v61 }
 0x22d   : > { %v2001_v15 = vpop.f32.mrf.mxu2  ;;  %v2050_v51 = vpop.f32.mrf.mxu3  ;;  %v2218_v60 = vunpack.c.l.b16 %v2142_v56  ;;  %v2219_v14 = vunpack.c.h.b16 %v2142_v56  ;;  %v8458_v56 = vld [vmem:[#allocation2 + $0x68] sm:$0xff] }
 0x22e   : > { %v2002_v59 = vadd.f32 %v2001_v15, %v9077_v30  ;;  %v1905_v12 = vpop.f32.mrf.mxu0  ;;  %v1954_v52 = vpop.f32.mrf.mxu1  ;;  %v2139_v30 = vsel %vm9124_vm8, %v7005_v6, %v2138_v27  ;;  %v2145_v4 = vrot.slane %v8458_v56, 5  ;;  %v7156_v56 = vld [vmem:[#allocation9 + $0x320] sm:$0xf] }
 0x22f   : > { %v1906_v18 = vadd.f32 %v1905_v12, %v9079_v35 }
 0x230   : > { %v9180_v54 = vadd.f32 %v2050_v51, %v2002_v59  ;;  %v2216_v51 = vunpack.c.l.b16 %v2139_v30  ;;  %v2217_v59 = vunpack.c.h.b16 %v2139_v30  ;;  %v8174_v30 = vld [vmem:[#allocation9 + $0x3a4] sm:$0xf] }
 0x231   : > { %v9184_v10 = vadd.f32 %v1954_v52, %v1906_v18 }
 0x232   : > { %v2242_v18 = vpack.c.b16 %v2218_v60, %v2216_v51 }
 0x233   : > { %10481 = vst [vmem:[#allocation34_spill] sm:$0xff] %v9184_v10  ;;  %v2243_v10 = vpack.c.b16 %v2219_v14, %v2217_v59  ;;  %v7225_v14 = vor.u32 %v8174_v30, %v7222_v9  ;;  %v7157_v30 = vor.u32 %v8159_v26, %v7156_v56  ;;  %v8156_v26 = vld [vmem:[#allocation9 + $0x314] sm:$0xf] }
 0x235   : > { %v2003_v35 = vpop.f32.mrf.mxu2  ;;  %v2052_v15 = vpop.f32.mrf.mxu3  ;;  %3260 = vmatpush.bf16.msra.mxu3 %v7225_v14  ;;  %v7221_v14 = vor.u32 %v8175_v46, %v7220_v45  ;;  %3113 = vmatpush.bf16.msra.mxu0 %v7157_v30  ;;  %v7150_v45 = vld [vmem:[#allocation9 + $0x318] sm:$0xf0] }
 0x236   : > { %v2004_v61 = vadd.f32 %v2003_v35, %v9081_v58  ;;  %v1908_v12 = vpop.f32.mrf.mxu0  ;;  %v1957_v52 = vpop.f32.mrf.mxu1  ;;  %v9194_v58 = vld [vmem:[#allocation2 + $0x60] sm:$0xee]  ;;  %v7153_v30 = vor.u32 %v8156_v26, %v7150_v45  ;;  %v8157_v26 = vld [vmem:[#allocation9 + $0x314] sm:$0xf0]  ;;  %v7212_v45 = vld [vmem:[#allocation9 + $0x390] sm:$0xf] }
 0x237   : > { %v1909_v57 = vadd.f32 %v1908_v12, %v9083_v63  ;;  %v8459_v63 = vld [vmem:[#allocation2 + $0x70] sm:$0x11]  ;;  %3162 = vmatpush.bf16.msra.mxu1 %v7221_v14  ;;  %v7214_v46 = vld [vmem:[#allocation9 + $0x398] sm:$0xf0] }
 0x238   : > { %v9190_v27 = vadd.f32 %v2052_v15, %v2004_v61  ;;  %v2148_v60 = vrot.slane %v8459_v63, 5  ;;  %v7006_v61 = vrot.slane %v9194_v58, 9  ;;  %3212 = vmatpush.bf16.msra.mxu2 %v7153_v30  ;;  %v8173_v30 = vld [vmem:[#allocation9 + $0x394] sm:$0xf0] }
 0x239   : > { %v9192_v6 = vadd.f32 %v1957_v52, %v1909_v57  ;;  %2451 = vmatmul.bf16.gmra.mxu0 %v2242_v18  ;;  %2500 = vmatmul.bf16.gmra.mxu1 %v2243_v10 }
 0x23a   : > { %2549 = vmatmul.bf16.gmra.mxu2 %v2242_v18  ;;  %2598 = vmatmul.bf16.gmra.mxu3 %v2243_v10  ;;  %v2147_v10 = vrot.slane %v2145_v4, 4 }
 0x23c   : > { %v2149_v57 = vsel %vm9124_vm8, %v2147_v10, %v2148_v60 }
 0x23d   : > { %v2006_v31 = vpop.f32.mrf.mxu2  ;;  %v2055_v35 = vpop.f32.mrf.mxu3  ;;  %v2222_v9 = vunpack.c.l.b16 %v2149_v57  ;;  %v2223_v63 = vunpack.c.h.b16 %v2149_v57  ;;  %v8460_v57 = vld [vmem:[#allocation2 + $0x80] sm:$0xff] }
 0x23e   : > { %v2007_v15 = vadd.f32 %v2006_v31, %v9085_v20  ;;  %v1910_v51 = vpop.f32.mrf.mxu0  ;;  %v1959_v59 = vpop.f32.mrf.mxu1  ;;  %v2146_v20 = vsel %vm9124_vm8, %v7006_v61, %v2145_v4  ;;  %v2152_v56 = vrot.slane %v8460_v57, 5  ;;  %v7148_v57 = vld [vmem:[#allocation9 + $0x310] sm:$0xf] }
 0x23f   : > { %v1911_v12 = vadd.f32 %v1910_v51, %v9087_v23 }
 0x240   : > { %v9199_v52 = vadd.f32 %v2055_v35, %v2007_v15  ;;  %v2220_v35 = vunpack.c.l.b16 %v2146_v20  ;;  %v2221_v15 = vunpack.c.h.b16 %v2146_v20  ;;  %v8172_v20 = vld [vmem:[#allocation9 + $0x394] sm:$0xf] }
 0x241   : > { %v9203_v18 = vadd.f32 %v1959_v59, %v1911_v12 }
 0x242   : > { %v2244_v12 = vpack.c.b16 %v2222_v9, %v2220_v35 }
 0x243   : > { %10482 = vst [vmem:[#allocation35_spill] sm:$0xff] %v9203_v18  ;;  %v2245_v18 = vpack.c.b16 %v2223_v63, %v2221_v15  ;;  %v7217_v63 = vor.u32 %v8172_v20, %v7214_v46  ;;  %v7149_v20 = vor.u32 %v8157_v26, %v7148_v57  ;;  %v8154_v26 = vld [vmem:[#allocation9 + $0x304] sm:$0xf] }
 0x245   : > { %v2008_v23 = vpop.f32.mrf.mxu2  ;;  %v2057_v31 = vpop.f32.mrf.mxu3  ;;  %3261 = vmatpush.bf16.msra.mxu3 %v7217_v63  ;;  %v7213_v63 = vor.u32 %v8173_v30, %v7212_v45  ;;  %3114 = vmatpush.bf16.msra.mxu0 %v7149_v20  ;;  %v7142_v45 = vld [vmem:[#allocation9 + $0x308] sm:$0xf0] }
 0x246   : > { %v2009_v60 = vadd.f32 %v2008_v23, %v9089_v41  ;;  %v1913_v51 = vpop.f32.mrf.mxu0  ;;  %v1962_v59 = vpop.f32.mrf.mxu1  ;;  %v9213_v41 = vld [vmem:[#allocation2 + $0x78] sm:$0xee]  ;;  %v7145_v20 = vor.u32 %v8154_v26, %v7142_v45  ;;  %v7206_v30 = vld [vmem:[#allocation9 + $0x388] sm:$0xf0]  ;;  %v8155_v26 = vld [vmem:[#allocation9 + $0x304] sm:$0xf0] }
 0x247   : > { %v1914_v10 = vadd.f32 %v1913_v51, %v9091_v50  ;;  %v8461_v50 = vld [vmem:[#allocation2 + $0x88] sm:$0x11]  ;;  %3163 = vmatpush.bf16.msra.mxu1 %v7213_v63  ;;  %v7204_v45 = vld [vmem:[#allocation9 + $0x380] sm:$0xf] }
 0x248   : > { %v9209_v4 = vadd.f32 %v2057_v31, %v2009_v60  ;;  %v2155_v9 = vrot.slane %v8461_v50, 5  ;;  %v7007_v60 = vrot.slane %v9213_v41, 9  ;;  %3213 = vmatpush.bf16.msra.mxu2 %v7145_v20  ;;  %v8171_v20 = vld [vmem:[#allocation9 + $0x384] sm:$0xf0] }
 0x249   : > { %v9211_v61 = vadd.f32 %v1962_v59, %v1914_v10  ;;  %2456 = vmatmul.bf16.gmra.mxu0 %v2244_v12  ;;  %2505 = vmatmul.bf16.gmra.mxu1 %v2245_v18 }
 0x24a   : > { %2554 = vmatmul.bf16.gmra.mxu2 %v2244_v12  ;;  %2603 = vmatmul.bf16.gmra.mxu3 %v2245_v18  ;;  %v2154_v18 = vrot.slane %v2152_v56, 4 }
 0x24c   : > { %v2156_v10 = vsel %vm9124_vm8, %v2154_v18, %v2155_v9 }
 0x24d   : > { %v2011_v14 = vpop.f32.mrf.mxu2  ;;  %v2060_v23 = vpop.f32.mrf.mxu3  ;;  %v2226_v46 = vunpack.c.l.b16 %v2156_v10  ;;  %v2227_v50 = vunpack.c.h.b16 %v2156_v10  ;;  %v8462_v10 = vld [vmem:[#allocation2 + $0x98] sm:$0xff] }
 0x24e   : > { %v2012_v31 = vadd.f32 %v2011_v14, %v9093_v11  ;;  %v1915_v35 = vpop.f32.mrf.mxu0  ;;  %v1964_v15 = vpop.f32.mrf.mxu1  ;;  %v2153_v11 = vsel %vm9124_vm8, %v7007_v60, %v2152_v56  ;;  %v2159_v57 = vrot.slane %v8462_v10, 5  ;;  %v7140_v10 = vld [vmem:[#allocation9 + $0x300] sm:$0xf] }
 0x24f   : > { %v1916_v51 = vadd.f32 %v1915_v35, %v9095_v17 }
 0x250   : > { %v9218_v59 = vadd.f32 %v2060_v23, %v2012_v31  ;;  %v2224_v23 = vunpack.c.l.b16 %v2153_v11  ;;  %v2225_v31 = vunpack.c.h.b16 %v2153_v11  ;;  %v8170_v11 = vld [vmem:[#allocation9 + $0x384] sm:$0xf] }
 0x251   : > { %v9222_v12 = vadd.f32 %v1964_v15, %v1916_v51 }
 0x252   : > { %v2246_v51 = vpack.c.b16 %v2226_v46, %v2224_v23 }
 0x253   : > { %10483 = vst [vmem:[#allocation36_spill] sm:$0xff] %v9222_v12  ;;  %v2247_v12 = vpack.c.b16 %v2227_v50, %v2225_v31  ;;  %v7209_v50 = vor.u32 %v8170_v11, %v7206_v30  ;;  %v7141_v11 = vor.u32 %v8155_v26, %v7140_v10  ;;  %v8200_v26 = vld [vmem:[#allocation9 + $0x474] sm:$0xf] }
 0x255   : > { %v2013_v17 = vpop.f32.mrf.mxu2  ;;  %v2062_v14 = vpop.f32.mrf.mxu3  ;;  %3262 = vmatpush.bf16.msra.mxu3 %v7209_v50  ;;  %v7205_v50 = vor.u32 %v8171_v20, %v7204_v45  ;;  %3115 = vmatpush.bf16.msra.mxu0 %v7141_v11  ;;  %v7334_v45 = vld [vmem:[#allocation9 + $0x478] sm:$0xf0] }
 0x256   : > { %v2014_v9 = vadd.f32 %v2013_v17, %v9097_v0  ;;  %v1918_v35 = vpop.f32.mrf.mxu0  ;;  %v1967_v15 = vpop.f32.mrf.mxu1  ;;  %v9232_v0 = vld [vmem:[#allocation2 + $0x90] sm:$0xee]  ;;  %v7337_v11 = vor.u32 %v8200_v26, %v7334_v45  ;;  %v7398_v20 = vld [vmem:[#allocation9 + $0x4f8] sm:$0xf0]  ;;  %v8201_v45 = vld [vmem:[#allocation9 + $0x474] sm:$0xf0] }
 0x257   : > { %v1919_v18 = vadd.f32 %v1918_v35, %v9099_v49  ;;  %v8463_v49 = vld [vmem:[#allocation2 + $0xa0] sm:$0x11]  ;;  %3164 = vmatpush.bf16.msra.mxu1 %v7205_v50  ;;  %v7332_v26 = vld [vmem:[#allocation9 + $0x470] sm:$0xf] }
 0x258   : > { %v9228_v56 = vadd.f32 %v2062_v14, %v2014_v9  ;;  %v2162_v46 = vrot.slane %v8463_v49, 5  ;;  %v7008_v9 = vrot.slane %v9232_v0, 9  ;;  %3771 = vmatpush.bf16.msrb.mxu2 %v7337_v11  ;;  %v2668_v11 = vshrl.u32 %v9117_v43, 16 }
 0x259   : > { %v9230_v60 = vadd.f32 %v1967_v15, %v1919_v18  ;;  %2461 = vmatmul.bf16.gmra.mxu0 %v2246_v51  ;;  %2510 = vmatmul.bf16.gmra.mxu1 %v2247_v12 }
 0x25a   : > { %2559 = vmatmul.bf16.gmra.mxu2 %v2246_v51  ;;  %2608 = vmatmul.bf16.gmra.mxu3 %v2247_v12  ;;  %v2161_v12 = vrot.slane %v2159_v57, 4 }
 0x25c   : > { %v2163_v18 = vsel %vm9124_vm8, %v2161_v12, %v2162_v46 }
 0x25d   : > { %v2016_v63 = vpop.f32.mrf.mxu2  ;;  %v2065_v17 = vpop.f32.mrf.mxu3  ;;  %v2230_v30 = vunpack.c.l.b16 %v2163_v18  ;;  %v2231_v49 = vunpack.c.h.b16 %v2163_v18  ;;  %v8464_v18 = vld [vmem:[#allocation2 + $0xb0] sm:$0xff] }
 0x25e   : > { %v2017_v14 = vadd.f32 %v2016_v63, %v9101_v13  ;;  %v1920_v23 = vpop.f32.mrf.mxu0  ;;  %v1969_v31 = vpop.f32.mrf.mxu1  ;;  %v2160_v13 = vsel %vm9124_vm8, %v7008_v9, %v2159_v57  ;;  %v2166_v10 = vrot.slane %v8464_v18, 5 }
 0x25f   : > { %v1921_v35 = vadd.f32 %v1920_v23, %v9103_v22 }
 0x260   : > { %v9237_v15 = vadd.f32 %v2065_v17, %v2017_v14  ;;  %v2228_v17 = vunpack.c.l.b16 %v2160_v13  ;;  %v2229_v14 = vunpack.c.h.b16 %v2160_v13  ;;  %v8216_v13 = vld [vmem:[#allocation9 + $0x4f4] sm:$0xf] }
 0x261   : > { %v9241_v51 = vadd.f32 %v1969_v31, %v1921_v35 }
 0x262   : > { %v2248_v35 = vpack.c.b16 %v2230_v30, %v2228_v17 }
 0x263   : > { %10484 = vst [vmem:[#allocation37_spill] sm:$0xff] %v9241_v51  ;;  %v2249_v51 = vpack.c.b16 %v2231_v49, %v2229_v14  ;;  %v7401_v49 = vor.u32 %v8216_v13, %v7398_v20  ;;  %v7396_v13 = vld [vmem:[#allocation9 + $0x4f0] sm:$0xf]  ;;  %v2671_v20 = vshll.u32 %v9117_v43, 16  ;;  %v2670_v43 = vrot.slane %v2668_v11, 5 }
 0x264   : > { %v8198_v11 = vld [vmem:[#allocation9 + $0x464] sm:$0xf] }
 0x265   : > { %v2018_v22 = vpop.f32.mrf.mxu2  ;;  %v2067_v63 = vpop.f32.mrf.mxu3  ;;  %3820 = vmatpush.bf16.msrb.mxu3 %v7401_v49 }
 0x266   : > { %v2019_v46 = vadd.f32 %v2018_v22, %v9105_v44  ;;  %v1923_v23 = vpop.f32.mrf.mxu0  ;;  %v1972_v31 = vpop.f32.mrf.mxu1  ;;  %v9251_v44 = vld [vmem:[#allocation2 + $0xa8] sm:$0xee] }
 0x267   : > { %v1924_v12 = vadd.f32 %v1923_v23, %v9107_v62  ;;  %v8465_v62 = vld [vmem:[#allocation2 + $0xb8] sm:$0x11] }
 0x268   : > { %v9247_v57 = vadd.f32 %v2067_v63, %v2019_v46  ;;  %v2169_v30 = vrot.slane %v8465_v62, 5  ;;  %v7009_v46 = vrot.slane %v9251_v44, 9  ;;  %v7333_v62 = vor.u32 %v8201_v45, %v7332_v26 }
 0x269   : > { %v9249_v9 = vadd.f32 %v1972_v31, %v1924_v12  ;;  %2466 = vmatmul.bf16.gmra.mxu0 %v2248_v35  ;;  %2515 = vmatmul.bf16.gmra.mxu1 %v2249_v51  ;;  %v2673_v26 = vrot.slane %v2671_v20, 6  ;;  %v2677_v45 = vrot.slane %v8934_v32, 6  ;;  %v7326_v20 = vld [vmem:[#allocation9 + $0x468] sm:$0xf0] }
 0x26a   : > { %2564 = vmatmul.bf16.gmra.mxu2 %v2248_v35  ;;  %2613 = vmatmul.bf16.gmra.mxu3 %v2249_v51  ;;  %v2168_v51 = vrot.slane %v2166_v10, 4  ;;  %v2656_v35 = vld [vmem:[#allocation2 + $0x10] sm:$0x33]  ;;  %v7329_v32 = vor.u32 %v8198_v11, %v7326_v20 }
 0x26b   : > { %3673 = vmatpush.bf16.msrb.mxu0 %v7333_v62 }
 0x26c   : > { %v2170_v12 = vsel %vm9124_vm8, %v2168_v51, %v2169_v30  ;;  %v2685_v30 = vshll.u32 %v2656_v35, 16  ;;  %3772 = vmatpush.bf16.msrb.mxu2 %v7329_v32  ;;  %v2691_v32 = vshrl.u32 %v9137_v1, 16 }
 0x26d   : > { %v2021_v50 = vpop.f32.mrf.mxu2  ;;  %v2070_v22 = vpop.f32.mrf.mxu3  ;;  %v2234_v49 = vunpack.c.l.b16 %v2170_v12 }
 0x26e   : > { %v2022_v63 = vadd.f32 %v2021_v50, %v9109_v42  ;;  %v1925_v17 = vpop.f32.mrf.mxu0  ;;  %v1974_v14 = vpop.f32.mrf.mxu1  ;;  %v2167_v42 = vsel %vm9124_vm8, %v7009_v46, %v2166_v10  ;;  %v2235_v50 = vunpack.c.h.b16 %v2170_v12 }
 0x26f   : > { %v1926_v23 = vadd.f32 %v1925_v17, %v9111_v34  ;;  %v8217_v34 = vld [vmem:[#allocation9 + $0x4f4] sm:$0xf0]  ;;  %v2232_v51 = vunpack.c.l.b16 %v2167_v42 }
 0x270   : > { %v9256_v31 = vadd.f32 %v2070_v22, %v2022_v63  ;;  %v7397_v22 = vor.u32 %v8217_v34, %v7396_v13  ;;  %v2682_v63 = vshrl.u32 %v2656_v35, 16 }
 0x271   : > { %v9260_v18 = vadd.f32 %v1974_v14, %v1926_v23  ;;  %v2233_v23 = vunpack.c.h.b16 %v2167_v42  ;;  %v2250_v13 = vpack.c.b16 %v2234_v49, %v2232_v51 }
 0x272   : > { %10485 = vst [vmem:[#allocation38_spill] sm:$0xff] %v9256_v31  ;;  %3722 = vmatpush.bf16.msrb.mxu1 %v7397_v22  ;;  %v2684_v34 = vrot.slane %v2682_v63, 5  ;;  %v2687_v31 = vrot.slane %v2685_v30, 6 }
 0x273   : > { %10486 = vst [vmem:[#allocation39_spill] sm:$0xff] %v9260_v18  ;;  %v2676_v18 = vrot.slane %v8936_v33, 5  ;;  %v2251_v35 = vpack.c.b16 %v2235_v50, %v2233_v23  ;;  %v7390_v33 = vld [vmem:[#allocation9 + $0x4e8] sm:$0xf0] }
 0x275   : > { %v2023_v17 = vpop.f32.mrf.mxu2  ;;  %v2072_v14 = vpop.f32.mrf.mxu3  ;;  %v2678_v22 = vor.u32 %v2677_v45, %v2676_v18  ;;  %v7388_v45 = vld [vmem:[#allocation9 + $0x4e0] sm:$0xf] }
 0x276   : > { %v2024_v36 = vadd.f32 %v2023_v17, %v9113_v3  ;;  %v1928_v10 = vpop.f32.mrf.mxu0  ;;  %v1977_v46 = vpop.f32.mrf.mxu1  ;;  %v2674_v3 = vor.u32 %v2673_v26, %v2670_v43  ;;  %v8214_v17 = vld [vmem:[#allocation9 + $0x4e4] sm:$0xf]  ;;  %v7324_v43 = vld [vmem:[#allocation9 + $0x460] sm:$0xf]  ;;  %v8199_v26 = vld [vmem:[#allocation9 + $0x464] sm:$0xf0] }
 0x277   : > { %v1929_v12 = vadd.f32 %v1928_v10, %v9115_v21  ;;  %v2688_v21 = vor.u32 %v2687_v31, %v2684_v34  ;;  %v7393_v49 = vor.u32 %v8214_v17, %v7390_v33  ;;  %v9284_v31 = vld [vmem:[#allocation2 + $0x28] sm:$0x33] }
 0x278   : > { %v9270_v62 = vadd.f32 %v2072_v14, %v2024_v36  ;;  %v2675_v23 = vrot.slane %v2674_v3, 4  ;;  %v2680_v36 = vrot.slane %v2678_v22, 4  ;;  %v2705_v20 = vshrl.u32 %v9284_v31, 16 }
 0x279   : > { %v9272_v42 = vadd.f32 %v1977_v46, %v1929_v12  ;;  %2471 = vmatmul.bf16.gmra.mxu0 %v2250_v13  ;;  %2520 = vmatmul.bf16.gmra.mxu1 %v2251_v35  ;;  %v2694_v12 = vshll.u32 %v9137_v1, 16  ;;  %v2708_v17 = vshll.u32 %v9284_v31, 16 }
 0x27a   : > { %2569 = vmatmul.bf16.gmra.mxu2 %v2250_v13  ;;  %2618 = vmatmul.bf16.gmra.mxu3 %v2251_v35  ;;  %v2689_v33 = vsel %vm9276_vm11, %v2680_v36, %v2688_v21  ;;  %v7325_v13 = vor.u32 %v8199_v26, %v7324_v43  ;;  %v8215_v35 = vld [vmem:[#allocation9 + $0x4e4] sm:$0xf0]  ;;  %v2700_v36 = vrot.slane %v8956_v39, 6 }
 0x27b   : > { %3821 = vmatpush.bf16.msrb.mxu3 %v7393_v49  ;;  %v2886_v34 = vunpack.c.l.b16 %v2689_v33  ;;  %v2887_v3 = vunpack.c.h.b16 %v2689_v33  ;;  %v7389_v11 = vor.u32 %v8215_v35, %v7388_v45  ;;  %v2707_v45 = vrot.slane %v2705_v20, 5  ;;  %v7318_v35 = vld [vmem:[#allocation9 + $0x458] sm:$0xf0] }
 0x27c   : > { %3674 = vmatpush.bf16.msrb.mxu0 %v7325_v13  ;;  %v2710_v13 = vrot.slane %v2708_v17, 6 }
 0x27d   : > { %v2026_v50 = vpop.f32.mrf.mxu2  ;;  %v2075_v63 = vpop.f32.mrf.mxu3  ;;  %3723 = vmatpush.bf16.msrb.mxu1 %v7389_v11  ;;  %v8212_v11 = vld [vmem:[#allocation9 + $0x4d4] sm:$0xf] }
 0x27e   : > { %v2027_v30 = vadd.f32 %v2026_v50, %v9119_v8  ;;  %v1930_v14 = vpop.f32.mrf.mxu0  ;;  %v1979_v51 = vpop.f32.mrf.mxu1 }
 0x27f   : > { %v1931_v18 = vadd.f32 %v1930_v14, %v9122_v29  ;;  %v2679_v29 = vsel %vm9276_vm11, %v2675_v23, %v2678_v22  ;;  %v2699_v23 = vrot.slane %v8958_v40, 5 }
 0x280   : > { %v9280_v46 = vadd.f32 %v2075_v63, %v2027_v30  ;;  %v2884_v50 = vunpack.c.l.b16 %v2679_v29  ;;  %v2885_v63 = vunpack.c.h.b16 %v2679_v29  ;;  %v2693_v30 = vrot.slane %v2691_v32, 5 }
 0x281   : > { %v9287_v8 = vadd.f32 %v1979_v51, %v1931_v18  ;;  %v2696_v51 = vrot.slane %v2694_v12, 6  ;;  %v2701_v32 = vor.u32 %v2700_v36, %v2699_v23  ;;  %v8196_v12 = vld [vmem:[#allocation9 + $0x454] sm:$0xf]  ;;  %v9307_v23 = vld [vmem:[#allocation2 + $0x40] sm:$0x33]  ;;  %v2714_v36 = vshrl.u32 %v9156_v28, 16 }
 0x282   : > { %v2916_v33 = vpack.c.b16 %v2886_v34, %v2884_v50  ;;  %v2917_v43 = vpack.c.b16 %v2887_v3, %v2885_v63  ;;  %v2711_v34 = vor.u32 %v2710_v13, %v2707_v45  ;;  %v7380_v45 = vld [vmem:[#allocation9 + $0x4d0] sm:$0xf] }
 0x285   : > { %v2028_v21 = vpop.f32.mrf.mxu2  ;;  %v2077_v49 = vpop.f32.mrf.mxu3 }
 0x286   : > { %v2029_v22 = vadd.f32 %v2028_v21, %v9132_v53  ;;  %v2437_v14 = vpop.f32.mrf.mxu0  ;;  %v2486_v1 = vpop.f32.mrf.mxu1  ;;  %v2697_v53 = vor.u32 %v2696_v51, %v2693_v30  ;;  %v7321_v21 = vor.u32 %v8196_v12, %v7318_v35  ;;  %v8213_v12 = vld [vmem:[#allocation9 + $0x4d4] sm:$0xf0] }
 0x287   : > { %v2487_v18 = vadd.f32 %v2486_v1, %v2437_v14  ;;  %v7382_v14 = vld [vmem:[#allocation9 + $0x4d8] sm:$0xf0] }
 0x288   : > { %v9297_v26 = vadd.f32 %v2077_v49, %v2029_v22  ;;  %v7385_v3 = vor.u32 %v8212_v11, %v7382_v14  ;;  %3773 = vmatpush.bf16.msrb.mxu2 %v7321_v21  ;;  %v2698_v63 = vrot.slane %v2697_v53, 4  ;;  %v2703_v22 = vrot.slane %v2701_v32, 4 }
 0x289   : > { %v9300_v29 = vadd.f32 %v2487_v18, %v9135_v25  ;;  %3116 = vmatmul.bf16.vlgmr.msra.gmra.mxu0 %v2916_v33  ;;  %3165 = vmatmul.bf16.vlgmr.msra.gmra.mxu1 %v2917_v43  ;;  %v2717_v53 = vshll.u32 %v9156_v28, 16  ;;  %v7381_v21 = vor.u32 %v8213_v12, %v7380_v45  ;;  %v2728_v14 = vshrl.u32 %v9307_v23, 16  ;;  %v8194_v12 = vld [vmem:[#allocation9 + $0x444] sm:$0xf] }
 0x28a   : > { %3214 = vmatmul.bf16.vlgmr.msra.gmra.mxu2 %v2916_v33  ;;  %3263 = vmatmul.bf16.vlgmr.msra.gmra.mxu3 %v2917_v43  ;;  %v2712_v51 = vsel %vm9276_vm11, %v2703_v22, %v2711_v34  ;;  %v7316_v33 = vld [vmem:[#allocation9 + $0x450] sm:$0xf]  ;;  %v8197_v43 = vld [vmem:[#allocation9 + $0x454] sm:$0xf0]  ;;  %v2702_v13 = vsel %vm9276_vm11, %v2698_v63, %v2701_v32  ;;  %v2731_v34 = vshll.u32 %v9307_v23, 16  ;;  %v2722_v63 = vrot.slane %v8974_v48, 5 }
 0x28b   : > { %3822 = vmatpush.bf16.msrb.mxu3 %v7385_v3  ;;  %v2890_v35 = vunpack.c.l.b16 %v2712_v51  ;;  %v2891_v11 = vunpack.c.h.b16 %v2712_v51  ;;  %3724 = vmatpush.bf16.msrb.mxu1 %v7381_v21  ;;  %v2719_v28 = vrot.slane %v2717_v53, 6  ;;  %v2723_v22 = vrot.slane %v8972_v47, 6  ;;  %v7310_v21 = vld [vmem:[#allocation9 + $0x448] sm:$0xf0] }
 0x28c   : > { %v2730_v45 = vrot.slane %v2728_v14, 5 }
 0x28d   : > { %v2535_v49 = vpop.f32.mrf.mxu2  ;;  %v2584_v50 = vpop.f32.mrf.mxu3  ;;  %v2724_v53 = vor.u32 %v2723_v22, %v2722_v63  ;;  %v9331_v63 = vld [vmem:[#allocation2 + $0x58] sm:$0x33]  ;;  %v2737_v22 = vshrl.u32 %v9175_v7, 16 }
 0x28e   : > { %v2585_v20 = vadd.f32 %v2584_v50, %v2535_v49  ;;  %v2439_v17 = vpop.f32.mrf.mxu0  ;;  %v2488_v25 = vpop.f32.mrf.mxu1  ;;  %v2888_v49 = vunpack.c.l.b16 %v2702_v13  ;;  %v2889_v50 = vunpack.c.h.b16 %v2702_v13 }
 0x28f   : > { %v2489_v1 = vadd.f32 %v2488_v25, %v2439_v17 }
 0x290   : > { %v9303_v30 = vadd.f32 %v2585_v20, %v9142_v2  ;;  %v7317_v2 = vor.u32 %v8197_v43, %v7316_v33  ;;  %v2716_v20 = vrot.slane %v2714_v36, 5  ;;  %v2918_v51 = vpack.c.b16 %v2890_v35, %v2888_v49  ;;  %v7374_v35 = vld [vmem:[#allocation9 + $0x4c8] sm:$0xf0] }
 0x291   : > { %v9311_v18 = vadd.f32 %v2489_v1, %v9146_v24  ;;  %v2919_v33 = vpack.c.b16 %v2891_v11, %v2889_v50 }
 0x292   : > { %3675 = vmatpush.bf16.msrb.mxu0 %v7317_v2  ;;  %v2733_v2 = vrot.slane %v2731_v34, 6  ;;  %v2720_v36 = vor.u32 %v2719_v28, %v2716_v20 }
 0x294   : > { %v2734_v11 = vor.u32 %v2733_v2, %v2730_v45  ;;  %v7372_v45 = vld [vmem:[#allocation9 + $0x4c0] sm:$0xf] }
 0x295   : > { %v2537_v24 = vpop.f32.mrf.mxu2  ;;  %v2586_v3 = vpop.f32.mrf.mxu3 }
 0x296   : > { %v2587_v17 = vadd.f32 %v2586_v3, %v2537_v24  ;;  %v2442_v32 = vpop.f32.mrf.mxu0  ;;  %v2491_v25 = vpop.f32.mrf.mxu1  ;;  %v8210_v24 = vld [vmem:[#allocation9 + $0x4c4] sm:$0xf]  ;;  %v7313_v3 = vor.u32 %v8194_v12, %v7310_v21  ;;  %v8211_v12 = vld [vmem:[#allocation9 + $0x4c4] sm:$0xf0] }
 0x297   : > { %v2492_v1 = vadd.f32 %v2491_v25, %v2442_v32  ;;  %v7377_v49 = vor.u32 %v8210_v24, %v7374_v35  ;;  %v2726_v32 = vrot.slane %v2724_v53, 4  ;;  %v2751_v35 = vshrl.u32 %v9331_v63, 16 }
 0x298   : > { %v9321_v43 = vadd.f32 %v2587_v17, %v9152_v37  ;;  %3774 = vmatpush.bf16.msrb.mxu2 %v7313_v3  ;;  %v2721_v17 = vrot.slane %v2720_v36, 4  ;;  %v2740_v36 = vshll.u32 %v9175_v7, 16  ;;  %v7373_v3 = vor.u32 %v8211_v12, %v7372_v45 }
 0x299   : > { %v9324_v13 = vadd.f32 %v2492_v1, %v9154_v19  ;;  %3121 = vmatmul.bf16.gmra.mxu0 %v2918_v51  ;;  %3170 = vmatmul.bf16.gmra.mxu1 %v2919_v33  ;;  %v2735_v28 = vsel %vm9276_vm11, %v2726_v32, %v2734_v11  ;;  %v2754_v11 = vshll.u32 %v9331_v63, 16 }
 0x29a   : > { %3219 = vmatmul.bf16.gmra.mxu2 %v2918_v51  ;;  %3268 = vmatmul.bf16.gmra.mxu3 %v2919_v33  ;;  %v7308_v51 = vld [vmem:[#allocation9 + $0x440] sm:$0xf]  ;;  %v8195_v33 = vld [vmem:[#allocation9 + $0x444] sm:$0xf0]  ;;  %v2725_v2 = vsel %vm9276_vm11, %v2721_v17, %v2724_v53  ;;  %v2894_v21 = vunpack.c.l.b16 %v2735_v28  ;;  %v2895_v24 = vunpack.c.h.b16 %v2735_v28  ;;  %v2742_v7 = vrot.slane %v2740_v36, 6 }
 0x29b   : > { %3823 = vmatpush.bf16.msrb.mxu3 %v7377_v49  ;;  %3725 = vmatpush.bf16.msrb.mxu1 %v7373_v3  ;;  %v10489_v17 = vld [vmem:[#allocation25_spill] sm:$0xff]  ;;  %v2756_v47 = vrot.slane %v2754_v11, 6  ;;  %v8192_v3 = vld [vmem:[#allocation9 + $0x434] sm:$0xf] }
 0x29c   : > { %v2745_v32 = vrot.slane %v10489_v17, 5 }
 0x29d   : > { %v2540_v37 = vpop.f32.mrf.mxu2  ;;  %v2589_v50 = vpop.f32.mrf.mxu3 }
 0x29e   : > { %v2590_v14 = vadd.f32 %v2589_v50, %v2540_v37  ;;  %v2444_v34 = vpop.f32.mrf.mxu0  ;;  %v2493_v19 = vpop.f32.mrf.mxu1  ;;  %v2892_v37 = vunpack.c.l.b16 %v2725_v2  ;;  %v2893_v50 = vunpack.c.h.b16 %v2725_v2 }
 0x29f   : > { %v2494_v25 = vadd.f32 %v2493_v19, %v2444_v34 }
 0x2a0   : > { %v9327_v20 = vadd.f32 %v2590_v14, %v9161_v55  ;;  %v7309_v55 = vor.u32 %v8195_v33, %v7308_v51  ;;  %v2739_v14 = vrot.slane %v2737_v22, 5  ;;  %v2920_v33 = vpack.c.b16 %v2894_v21, %v2892_v37  ;;  %v7366_v21 = vld [vmem:[#allocation9 + $0x4b8] sm:$0xf0] }
 0x2a1   : > { %v9335_v1 = vadd.f32 %v2494_v25, %v9165_v16  ;;  %v10490_v25 = vld [vmem:[#allocation24_spill] sm:$0xff]  ;;  %v2921_v45 = vpack.c.b16 %v2895_v24, %v2893_v50 }
 0x2a2   : > { %3676 = vmatpush.bf16.msrb.mxu0 %v7309_v55  ;;  %v2746_v28 = vrot.slane %v10490_v25, 6  ;;  %v2753_v55 = vrot.slane %v2751_v35, 5  ;;  %v2743_v22 = vor.u32 %v2742_v7, %v2739_v14 }
 0x2a4   : > { %v2747_v36 = vor.u32 %v2746_v28, %v2745_v32  ;;  %v2757_v24 = vor.u32 %v2756_v47, %v2753_v55  ;;  %v9355_v32 = vld [vmem:[#allocation2 + $0x70] sm:$0x33]  ;;  %v2760_v47 = vshrl.u32 %v9194_v58, 16  ;;  %v8193_v55 = vld [vmem:[#allocation9 + $0x434] sm:$0xf0] }
 0x2a5   : > { %v2542_v16 = vpop.f32.mrf.mxu2  ;;  %v2591_v49 = vpop.f32.mrf.mxu3  ;;  %v10491_v28 = vld [vmem:[#allocation34_spill] sm:$0xff] }
 0x2a6   : > { %v2592_v34 = vadd.f32 %v2591_v49, %v2542_v16  ;;  %v2447_v53 = vpop.f32.mrf.mxu0  ;;  %v2496_v19 = vpop.f32.mrf.mxu1  ;;  %v7302_v16 = vld [vmem:[#allocation9 + $0x438] sm:$0xf0]  ;;  %v8208_v49 = vld [vmem:[#allocation9 + $0x4b4] sm:$0xf] }
 0x2a7   : > { %v2497_v51 = vadd.f32 %v2496_v19, %v2447_v53  ;;  %v7305_v53 = vor.u32 %v8192_v3, %v7302_v16  ;;  %v7369_v37 = vor.u32 %v8208_v49, %v7366_v21  ;;  %v2749_v19 = vrot.slane %v2747_v36, 4  ;;  %v7364_v3 = vld [vmem:[#allocation9 + $0x4b0] sm:$0xf]  ;;  %v8209_v49 = vld [vmem:[#allocation9 + $0x4b4] sm:$0xf0] }
 0x2a8   : > { %v9345_v12 = vadd.f32 %v2592_v34, %v9171_v38  ;;  %v2744_v34 = vrot.slane %v2743_v22, 4  ;;  %v2763_v16 = vshll.u32 %v9194_v58, 16 }
 0x2a9   : > { %v9348_v2 = vadd.f32 %v2497_v51, %v9173_v5  ;;  %3126 = vmatmul.bf16.gmra.mxu0 %v2920_v33  ;;  %3175 = vmatmul.bf16.gmra.mxu1 %v2921_v45  ;;  %v2758_v7 = vsel %vm9276_vm11, %v2749_v19, %v2757_v24  ;;  %v7365_v24 = vor.u32 %v8209_v49, %v7364_v3  ;;  %v2762_v19 = vrot.slane %v2760_v47, 5 }
 0x2aa   : > { %3224 = vmatmul.bf16.gmra.mxu2 %v2920_v33  ;;  %3273 = vmatmul.bf16.gmra.mxu3 %v2921_v45  ;;  %v7300_v45 = vld [vmem:[#allocation9 + $0x430] sm:$0xf]  ;;  %v2748_v22 = vsel %vm9276_vm11, %v2744_v34, %v2747_v36  ;;  %v2899_v21 = vunpack.c.h.b16 %v2758_v7  ;;  %v2765_v58 = vrot.slane %v2763_v16, 6 }
 0x2ab   : > { %3775 = vmatpush.bf16.msrb.mxu2 %v7305_v53  ;;  %3824 = vmatpush.bf16.msrb.mxu3 %v7369_v37  ;;  %v2898_v53 = vunpack.c.l.b16 %v2758_v7  ;;  %v2774_v37 = vshrl.u32 %v9355_v32, 16 }
 0x2ac   : > { %3726 = vmatpush.bf16.msrb.mxu1 %v7365_v24  ;;  %v2766_v47 = vor.u32 %v2765_v58, %v2762_v19  ;;  %v8190_v24 = vld [vmem:[#allocation9 + $0x424] sm:$0xf] }
 0x2ad   : > { %v2545_v38 = vpop.f32.mrf.mxu2  ;;  %v2594_v50 = vpop.f32.mrf.mxu3  ;;  %v9379_v58 = vld [vmem:[#allocation2 + $0x88] sm:$0x33] }
 0x2ae   : > { %v2595_v35 = vadd.f32 %v2594_v50, %v2545_v38  ;;  %v2449_v11 = vpop.f32.mrf.mxu0  ;;  %v2498_v5 = vpop.f32.mrf.mxu1  ;;  %v2777_v38 = vshll.u32 %v9355_v32, 16 }
 0x2af   : > { %v2499_v51 = vadd.f32 %v2498_v5, %v2449_v11  ;;  %v2896_v11 = vunpack.c.l.b16 %v2748_v22  ;;  %v2897_v5 = vunpack.c.h.b16 %v2748_v22 }
 0x2b0   : > { %v9351_v14 = vadd.f32 %v2595_v35, %v9180_v54  ;;  %v7301_v54 = vor.u32 %v8193_v55, %v7300_v45  ;;  %v10493_v55 = vld [vmem:[#allocation26_spill] sm:$0xff]  ;;  %v2779_v48 = vrot.slane %v2777_v38, 6 }
 0x2b1   : > { %v9359_v33 = vadd.f32 %v2499_v51, %v10491_v28  ;;  %v10492_v28 = vld [vmem:[#allocation27_spill] sm:$0xff]  ;;  %v2769_v7 = vrot.slane %v10493_v55, 6  ;;  %v2922_v49 = vpack.c.b16 %v2898_v53, %v2896_v11  ;;  %v2923_v25 = vpack.c.b16 %v2899_v21, %v2897_v5  ;;  %v7358_v53 = vld [vmem:[#allocation9 + $0x4a8] sm:$0xf0] }
 0x2b2   : > { %3677 = vmatpush.bf16.msrb.mxu0 %v7301_v54  ;;  %v2768_v45 = vrot.slane %v10492_v28, 5  ;;  %v2776_v54 = vrot.slane %v2774_v37, 5 }
 0x2b4   : > { %v2770_v16 = vor.u32 %v2769_v7, %v2768_v45  ;;  %v2780_v21 = vor.u32 %v2779_v48, %v2776_v54  ;;  %v2783_v48 = vshrl.u32 %v9213_v41, 16  ;;  %v10494_v45 = vld [vmem:[#allocation35_spill] sm:$0xff]  ;;  %v8191_v54 = vld [vmem:[#allocation9 + $0x424] sm:$0xf0] }
 0x2b5   : > { %v2547_v50 = vpop.f32.mrf.mxu2  ;;  %v2596_v35 = vpop.f32.mrf.mxu3 }
 0x2b6   : > { %v2597_v51 = vadd.f32 %v2596_v35, %v2547_v50  ;;  %v2452_v36 = vpop.f32.mrf.mxu0  ;;  %v2501_v34 = vpop.f32.mrf.mxu1  ;;  %v7294_v50 = vld [vmem:[#allocation9 + $0x428] sm:$0xf0]  ;;  %v8206_v35 = vld [vmem:[#allocation9 + $0x4a4] sm:$0xf] }
 0x2b7   : > { %v2502_v3 = vadd.f32 %v2501_v34, %v2452_v36  ;;  %v7297_v36 = vor.u32 %v8190_v24, %v7294_v50  ;;  %v7361_v11 = vor.u32 %v8206_v35, %v7358_v53  ;;  %v2772_v34 = vrot.slane %v2770_v16, 4  ;;  %v7356_v24 = vld [vmem:[#allocation9 + $0x4a0] sm:$0xf]  ;;  %v8207_v35 = vld [vmem:[#allocation9 + $0x4a4] sm:$0xf0] }
 0x2b8   : > { %v9369_v17 = vadd.f32 %v2597_v51, %v9190_v27  ;;  %v2767_v51 = vrot.slane %v2766_v47, 4  ;;  %v2786_v50 = vshll.u32 %v9213_v41, 16 }
 0x2b9   : > { %v9372_v22 = vadd.f32 %v2502_v3, %v9192_v6  ;;  %3131 = vmatmul.bf16.gmra.mxu0 %v2922_v49  ;;  %3180 = vmatmul.bf16.gmra.mxu1 %v2923_v25  ;;  %v2781_v19 = vsel %vm9276_vm11, %v2772_v34, %v2780_v21  ;;  %v7357_v21 = vor.u32 %v8207_v35, %v7356_v24  ;;  %v2785_v34 = vrot.slane %v2783_v48, 5 }
 0x2ba   : > { %3229 = vmatmul.bf16.gmra.mxu2 %v2922_v49  ;;  %3278 = vmatmul.bf16.gmra.mxu3 %v2923_v25  ;;  %v7292_v49 = vld [vmem:[#allocation9 + $0x420] sm:$0xf]  ;;  %v2771_v47 = vsel %vm9276_vm11, %v2767_v51, %v2770_v16  ;;  %v2903_v53 = vunpack.c.h.b16 %v2781_v19  ;;  %v2788_v41 = vrot.slane %v2786_v50, 6 }
 0x2bb   : > { %3776 = vmatpush.bf16.msrb.mxu2 %v7297_v36  ;;  %3825 = vmatpush.bf16.msrb.mxu3 %v7361_v11  ;;  %v2902_v36 = vunpack.c.l.b16 %v2781_v19  ;;  %v2797_v11 = vshrl.u32 %v9379_v58, 16 }
 0x2bc   : > { %3727 = vmatpush.bf16.msrb.mxu1 %v7357_v21  ;;  %v2789_v48 = vor.u32 %v2788_v41, %v2785_v34  ;;  %v8188_v21 = vld [vmem:[#allocation9 + $0x414] sm:$0xf]  ;;  %v9403_v41 = vld [vmem:[#allocation2 + $0xa0] sm:$0x33] }
 0x2bd   : > { %v2550_v27 = vpop.f32.mrf.mxu2  ;;  %v2599_v5 = vpop.f32.mrf.mxu3 }
 0x2be   : > { %v2600_v37 = vadd.f32 %v2599_v5, %v2550_v27  ;;  %v2454_v38 = vpop.f32.mrf.mxu0  ;;  %v2503_v6 = vpop.f32.mrf.mxu1  ;;  %v2800_v27 = vshll.u32 %v9379_v58, 16 }
 0x2bf   : > { %v2504_v3 = vadd.f32 %v2503_v6, %v2454_v38  ;;  %v2900_v38 = vunpack.c.l.b16 %v2771_v47  ;;  %v2901_v6 = vunpack.c.h.b16 %v2771_v47 }
 0x2c0   : > { %v9375_v25 = vadd.f32 %v2600_v37, %v9199_v52  ;;  %v7293_v52 = vor.u32 %v8191_v54, %v7292_v49  ;;  %v10496_v54 = vld [vmem:[#allocation28_spill] sm:$0xff]  ;;  %v2802_v39 = vrot.slane %v2800_v27, 6 }
 0x2c1   : > { %v9383_v7 = vadd.f32 %v2504_v3, %v10494_v45  ;;  %v10495_v45 = vld [vmem:[#allocation29_spill] sm:$0xff]  ;;  %v2792_v19 = vrot.slane %v10496_v54, 6  ;;  %v2924_v35 = vpack.c.b16 %v2902_v36, %v2900_v38  ;;  %v2925_v55 = vpack.c.b16 %v2903_v53, %v2901_v6  ;;  %v7350_v36 = vld [vmem:[#allocation9 + $0x498] sm:$0xf0] }
 0x2c2   : > { %3678 = vmatpush.bf16.msrb.mxu0 %v7293_v52  ;;  %v2791_v49 = vrot.slane %v10495_v45, 5  ;;  %v2799_v52 = vrot.slane %v2797_v11, 5 }
 0x2c4   : > { %v2793_v50 = vor.u32 %v2792_v19, %v2791_v49  ;;  %v2803_v53 = vor.u32 %v2802_v39, %v2799_v52  ;;  %v2806_v39 = vshrl.u32 %v9232_v0, 16  ;;  %v10497_v49 = vld [vmem:[#allocation36_spill] sm:$0xff] }
 0x2c5   : > { %v2552_v5 = vpop.f32.mrf.mxu2  ;;  %v2601_v37 = vpop.f32.mrf.mxu3  ;;  %v8189_v52 = vld [vmem:[#allocation9 + $0x414] sm:$0xf0] }
 0x2c6   : > { %v2602_v3 = vadd.f32 %v2601_v37, %v2552_v5  ;;  %v2457_v16 = vpop.f32.mrf.mxu0  ;;  %v2506_v51 = vpop.f32.mrf.mxu1  ;;  %v7286_v5 = vld [vmem:[#allocation9 + $0x418] sm:$0xf0]  ;;  %v8204_v37 = vld [vmem:[#allocation9 + $0x494] sm:$0xf] }
 0x2c7   : > { %v2507_v24 = vadd.f32 %v2506_v51, %v2457_v16  ;;  %v7289_v16 = vor.u32 %v8188_v21, %v7286_v5  ;;  %v7353_v38 = vor.u32 %v8204_v37, %v7350_v36  ;;  %v2795_v51 = vrot.slane %v2793_v50, 4  ;;  %v7348_v21 = vld [vmem:[#allocation9 + $0x490] sm:$0xf]  ;;  %v8205_v37 = vld [vmem:[#allocation9 + $0x494] sm:$0xf0] }
 0x2c8   : > { %v9393_v28 = vadd.f32 %v2602_v3, %v9209_v4  ;;  %v2790_v3 = vrot.slane %v2789_v48, 4  ;;  %v2809_v5 = vshll.u32 %v9232_v0, 16 }
 0x2c9   : > { %v9396_v47 = vadd.f32 %v2507_v24, %v9211_v61  ;;  %3136 = vmatmul.bf16.gmra.mxu0 %v2924_v35  ;;  %3185 = vmatmul.bf16.gmra.mxu1 %v2925_v55  ;;  %v2804_v34 = vsel %vm9276_vm11, %v2795_v51, %v2803_v53  ;;  %v7349_v53 = vor.u32 %v8205_v37, %v7348_v21  ;;  %v2808_v51 = vrot.slane %v2806_v39, 5 }
 0x2ca   : > { %3234 = vmatmul.bf16.gmra.mxu2 %v2924_v35  ;;  %3283 = vmatmul.bf16.gmra.mxu3 %v2925_v55  ;;  %v7284_v35 = vld [vmem:[#allocation9 + $0x410] sm:$0xf]  ;;  %v2794_v48 = vsel %vm9276_vm11, %v2790_v3, %v2793_v50  ;;  %v2907_v36 = vunpack.c.h.b16 %v2804_v34  ;;  %v2811_v0 = vrot.slane %v2809_v5, 6 }
 0x2cb   : > { %3777 = vmatpush.bf16.msrb.mxu2 %v7289_v16  ;;  %3826 = vmatpush.bf16.msrb.mxu3 %v7353_v38  ;;  %v2906_v16 = vunpack.c.l.b16 %v2804_v34  ;;  %v2820_v38 = vshrl.u32 %v9403_v41, 16 }
 0x2cc   : > { %3728 = vmatpush.bf16.msrb.mxu1 %v7349_v53  ;;  %v2812_v39 = vor.u32 %v2811_v0, %v2808_v51  ;;  %v8186_v53 = vld [vmem:[#allocation9 + $0x404] sm:$0xf]  ;;  %v9427_v0 = vld [vmem:[#allocation2 + $0xb8] sm:$0x33] }
 0x2cd   : > { %v2555_v4 = vpop.f32.mrf.mxu2  ;;  %v2604_v6 = vpop.f32.mrf.mxu3  ;;  %10500 = vst [vmem:[#allocation34_spill] sm:$0xff] %v9427_v0 }
 0x2ce   : > { %v2605_v11 = vadd.f32 %v2604_v6, %v2555_v4  ;;  %v2459_v27 = vpop.f32.mrf.mxu0  ;;  %v2508_v61 = vpop.f32.mrf.mxu1  ;;  %v2823_v4 = vshll.u32 %v9403_v41, 16 }
 0x2cf   : > { %v2509_v24 = vadd.f32 %v2508_v61, %v2459_v27  ;;  %v2904_v27 = vunpack.c.l.b16 %v2794_v48  ;;  %v2905_v61 = vunpack.c.h.b16 %v2794_v48 }
 0x2d0   : > { %v9399_v55 = vadd.f32 %v2605_v11, %v9218_v59  ;;  %v7285_v59 = vor.u32 %v8189_v52, %v7284_v35  ;;  %v10499_v52 = vld [vmem:[#allocation30_spill] sm:$0xff]  ;;  %v2825_v40 = vrot.slane %v2823_v4, 6 }
 0x2d1   : > { %v9407_v19 = vadd.f32 %v2509_v24, %v10497_v49  ;;  %v10498_v49 = vld [vmem:[#allocation31_spill] sm:$0xff]  ;;  %v2815_v34 = vrot.slane %v10499_v52, 6  ;;  %v2926_v37 = vpack.c.b16 %v2906_v16, %v2904_v27  ;;  %v2927_v54 = vpack.c.b16 %v2907_v36, %v2905_v61  ;;  %v7342_v16 = vld [vmem:[#allocation9 + $0x488] sm:$0xf0] }
 0x2d2   : > { %3679 = vmatpush.bf16.msrb.mxu0 %v7285_v59  ;;  %v2814_v35 = vrot.slane %v10498_v49, 5  ;;  %v2822_v59 = vrot.slane %v2820_v38, 5 }
 0x2d4   : > { %v2816_v5 = vor.u32 %v2815_v34, %v2814_v35  ;;  %v2826_v36 = vor.u32 %v2825_v40, %v2822_v59  ;;  %v2829_v40 = vshrl.u32 %v9251_v44, 16  ;;  %v10501_v35 = vld [vmem:[#allocation37_spill] sm:$0xff] }
 0x2d5   : > { %v2557_v6 = vpop.f32.mrf.mxu2  ;;  %v2606_v11 = vpop.f32.mrf.mxu3  ;;  %v8187_v59 = vld [vmem:[#allocation9 + $0x404] sm:$0xf0] }
 0x2d6   : > { %v2607_v24 = vadd.f32 %v2606_v11, %v2557_v6  ;;  %v2462_v50 = vpop.f32.mrf.mxu0  ;;  %v2511_v3 = vpop.f32.mrf.mxu1  ;;  %v7278_v6 = vld [vmem:[#allocation9 + $0x408] sm:$0xf0]  ;;  %v8202_v11 = vld [vmem:[#allocation9 + $0x484] sm:$0xf] }
 0x2d7   : > { %v2512_v21 = vadd.f32 %v2511_v3, %v2462_v50  ;;  %v7281_v50 = vor.u32 %v8186_v53, %v7278_v6  ;;  %v7345_v27 = vor.u32 %v8202_v11, %v7342_v16  ;;  %v2818_v3 = vrot.slane %v2816_v5, 4  ;;  %v7340_v53 = vld [vmem:[#allocation9 + $0x480] sm:$0xf]  ;;  %v8203_v11 = vld [vmem:[#allocation9 + $0x484] sm:$0xf0] }
 0x2d8   : > { %v9417_v45 = vadd.f32 %v2607_v24, %v9228_v56  ;;  %v2813_v24 = vrot.slane %v2812_v39, 4  ;;  %v2832_v6 = vshll.u32 %v9251_v44, 16 }
 0x2d9   : > { %v9420_v48 = vadd.f32 %v2512_v21, %v9230_v60  ;;  %3141 = vmatmul.bf16.gmra.mxu0 %v2926_v37  ;;  %3190 = vmatmul.bf16.gmra.mxu1 %v2927_v54  ;;  %v2827_v51 = vsel %vm9276_vm11, %v2818_v3, %v2826_v36  ;;  %v7341_v36 = vor.u32 %v8203_v11, %v7340_v53  ;;  %v2831_v3 = vrot.slane %v2829_v40, 5 }
 0x2da   : > { %3239 = vmatmul.bf16.gmra.mxu2 %v2926_v37  ;;  %3288 = vmatmul.bf16.gmra.mxu3 %v2927_v54  ;;  %v7276_v37 = vld [vmem:[#allocation9 + $0x400] sm:$0xf]  ;;  %v2817_v39 = vsel %vm9276_vm11, %v2813_v24, %v2816_v5  ;;  %v2911_v16 = vunpack.c.h.b16 %v2827_v51  ;;  %v2834_v44 = vrot.slane %v2832_v6, 6 }
 0x2db   : > { %3778 = vmatpush.bf16.msrb.mxu2 %v7281_v50  ;;  %3827 = vmatpush.bf16.msrb.mxu3 %v7345_v27  ;;  %v2910_v50 = vunpack.c.l.b16 %v2827_v51  ;;  %v2843_v27 = vshrl.u32 %v9427_v0, 16 }
 0x2dc   : > { %3729 = vmatpush.bf16.msrb.mxu1 %v7341_v36  ;;  %v2835_v40 = vor.u32 %v2834_v44, %v2831_v3  ;;  %v8232_v36 = vld [vmem:[#allocation9 + $0x574] sm:$0xf] }
 0x2dd   : > { %v2560_v56 = vpop.f32.mrf.mxu2  ;;  %v2609_v61 = vpop.f32.mrf.mxu3 }
 0x2de   : > { %v2610_v38 = vadd.f32 %v2609_v61, %v2560_v56  ;;  %v2464_v4 = vpop.f32.mrf.mxu0  ;;  %v2513_v60 = vpop.f32.mrf.mxu1  ;;  %v2846_v56 = vshll.u32 %v9427_v0, 16 }
 0x2df   : > { %v2514_v21 = vadd.f32 %v2513_v60, %v2464_v4  ;;  %v2908_v4 = vunpack.c.l.b16 %v2817_v39  ;;  %v2909_v60 = vunpack.c.h.b16 %v2817_v39 }
 0x2e0   : > { %v9423_v54 = vadd.f32 %v2610_v38, %v9237_v15  ;;  %v7277_v15 = vor.u32 %v8187_v59, %v7276_v37  ;;  %v10503_v59 = vld [vmem:[#allocation32_spill] sm:$0xff]  ;;  %v2848_v0 = vrot.slane %v2846_v56, 6 }
 0x2e1   : > { %v9431_v34 = vadd.f32 %v2514_v21, %v10501_v35  ;;  %v10502_v35 = vld [vmem:[#allocation33_spill] sm:$0xff]  ;;  %v2838_v51 = vrot.slane %v10503_v59, 6  ;;  %v2928_v11 = vpack.c.b16 %v2910_v50, %v2908_v4  ;;  %v2929_v52 = vpack.c.b16 %v2911_v16, %v2909_v60  ;;  %v7526_v50 = vld [vmem:[#allocation9 + $0x5f8] sm:$0xf0] }
 0x2e2   : > { %3680 = vmatpush.bf16.msrb.mxu0 %v7277_v15  ;;  %v2837_v37 = vrot.slane %v10502_v35, 5  ;;  %v2845_v15 = vrot.slane %v2843_v27, 5 }
 0x2e4   : > { %v2839_v6 = vor.u32 %v2838_v51, %v2837_v37  ;;  %v2849_v16 = vor.u32 %v2848_v0, %v2845_v15  ;;  %v10505_v37 = vld [vmem:[#allocation39_spill] sm:$0xff] }
 0x2e5   : > { %v2562_v61 = vpop.f32.mrf.mxu2  ;;  %v2611_v38 = vpop.f32.mrf.mxu3  ;;  %v7460_v0 = vld [vmem:[#allocation9 + $0x570] sm:$0xf] }
 0x2e6   : > { %v2612_v21 = vadd.f32 %v2611_v38, %v2562_v61  ;;  %v2467_v5 = vpop.f32.mrf.mxu0  ;;  %v2516_v24 = vpop.f32.mrf.mxu1  ;;  %v7462_v61 = vld [vmem:[#allocation9 + $0x578] sm:$0xf0]  ;;  %v8248_v38 = vld [vmem:[#allocation9 + $0x5f4] sm:$0xf]  ;;  %v7524_v15 = vld [vmem:[#allocation9 + $0x5f0] sm:$0xf] }
 0x2e7   : > { %v2517_v53 = vadd.f32 %v2516_v24, %v2467_v5  ;;  %v7465_v5 = vor.u32 %v8232_v36, %v7462_v61  ;;  %v7529_v4 = vor.u32 %v8248_v38, %v7526_v50  ;;  %v2841_v24 = vrot.slane %v2839_v6, 4 }
 0x2e8   : > { %v9441_v49 = vadd.f32 %v2612_v21, %v9247_v57  ;;  %v2836_v21 = vrot.slane %v2835_v40, 4  ;;  %v8249_v40 = vld [vmem:[#allocation9 + $0x5f4] sm:$0xf0] }
 0x2e9   : > { %v9444_v39 = vadd.f32 %v2517_v53, %v9249_v9  ;;  %3146 = vmatmul.bf16.gmra.mxu0 %v2928_v11  ;;  %3195 = vmatmul.bf16.gmra.mxu1 %v2929_v52  ;;  %v2850_v44 = vsel %vm9276_vm11, %v2841_v24, %v2849_v16  ;;  %v7525_v50 = vor.u32 %v8249_v40, %v7524_v15  ;;  %v9462_v15 = vld [vmem:[#allocation2] sm:$0xcc]  ;;  %v8467_v40 = vld [vmem:[#allocation2 + $0x10] sm:$0x33] }
 0x2ea   : > { %3244 = vmatmul.bf16.gmra.mxu2 %v2928_v11  ;;  %3293 = vmatmul.bf16.gmra.mxu3 %v2929_v52  ;;  %v10504_v52 = vld [vmem:[#allocation38_spill] sm:$0xff]  ;;  %v8233_v11 = vld [vmem:[#allocation9 + $0x574] sm:$0xf0]  ;;  %v2840_v36 = vsel %vm9276_vm11, %v2836_v21, %v2839_v6  ;;  %v2914_v38 = vunpack.c.l.b16 %v2850_v44 }
 0x2eb   : > { %4451 = vmatpush.bf16.msra.mxu2 %v7465_v5  ;;  %4500 = vmatpush.bf16.msra.mxu3 %v7529_v4  ;;  %v7461_v61 = vor.u32 %v8233_v11, %v7460_v0  ;;  %v2915_v5 = vunpack.c.h.b16 %v2850_v44  ;;  %v8466_v21 = vld [vmem:[#allocation2 + $0x8] sm:$0xff] }
 0x2ec   : > { %4402 = vmatpush.bf16.msra.mxu1 %v7525_v50  ;;  %v3362_v44 = vrot.slane %v8466_v21, 6  ;;  %v7454_v0 = vld [vmem:[#allocation9 + $0x568] sm:$0xf0]  ;;  %v8246_v11 = vld [vmem:[#allocation9 + $0x5e4] sm:$0xf] }
 0x2ed   : > { %v2565_v57 = vpop.f32.mrf.mxu2  ;;  %v2614_v60 = vpop.f32.mrf.mxu3  ;;  %4353 = vmatpush.bf16.msra.mxu0 %v7461_v61  ;;  %v7518_v61 = vld [vmem:[#allocation9 + $0x5e8] sm:$0xf0]  ;;  %v8231_v21 = vld [vmem:[#allocation9 + $0x564] sm:$0xf0] }
 0x2ee   : > { %v2615_v27 = vadd.f32 %v2614_v60, %v2565_v57  ;;  %v2469_v56 = vpop.f32.mrf.mxu0  ;;  %v2518_v9 = vpop.f32.mrf.mxu1  ;;  %v2912_v60 = vunpack.c.l.b16 %v2840_v36 }
 0x2ef   : > { %v2519_v53 = vadd.f32 %v2518_v9, %v2469_v56 }
 0x2f0   : > { %v9447_v3 = vadd.f32 %v2615_v27, %v10504_v52  ;;  %v2913_v27 = vunpack.c.h.b16 %v2840_v36 }
 0x2f1   : > { %v9452_v51 = vadd.f32 %v2519_v53, %v10505_v37  ;;  %v2930_v53 = vpack.c.b16 %v2914_v38, %v2912_v60  ;;  %v8230_v37 = vld [vmem:[#allocation9 + $0x564] sm:$0xf]  ;;  %v3365_v38 = vrot.slane %v8467_v40, 6  ;;  %v7266_v60 = vrot.slane %v9462_v15, 10 }
 0x2f2   : > { %v2931_v52 = vpack.c.b16 %v2915_v5, %v2913_v27  ;;  %v7457_v36 = vor.u32 %v8230_v37, %v7454_v0  ;;  %v3364_v27 = vrot.slane %v3362_v44, 4  ;;  %v7516_v37 = vld [vmem:[#allocation9 + $0x5e0] sm:$0xf] }
 0x2f3   : > { %v3363_v0 = vsel %vm8926_vm2, %v7266_v60, %v3362_v44  ;;  %v8468_v60 = vld [vmem:[#allocation2 + $0x20] sm:$0xff] }
 0x2f4   : > { %4452 = vmatpush.bf16.msra.mxu2 %v7457_v36  ;;  %v8247_v36 = vld [vmem:[#allocation9 + $0x5e4] sm:$0xf0] }
 0x2f5   : > { %v2567_v4 = vpop.f32.mrf.mxu2  ;;  %v2616_v57 = vpop.f32.mrf.mxu3 }
 0x2f6   : > { %v2617_v16 = vadd.f32 %v2616_v57, %v2567_v4  ;;  %v2472_v56 = vpop.f32.mrf.mxu0  ;;  %v2521_v9 = vpop.f32.mrf.mxu1 }
 0x2f7   : > { %v2522_v24 = vadd.f32 %v2521_v9, %v2472_v56 }
 0x2f8   : > { %v9457_v10 = vadd.f32 %v2617_v16, %v9270_v62  ;;  %v7521_v62 = vor.u32 %v8246_v11, %v7518_v61 }
 0x2f9   : > { %v9460_v6 = vadd.f32 %v2522_v24, %v9272_v42  ;;  %3151 = vmatmul.bf16.gmra.mxu0 %v2930_v53  ;;  %3200 = vmatmul.bf16.gmra.mxu1 %v2931_v52  ;;  %v3366_v24 = vsel %vm8926_vm2, %v3364_v27, %v3365_v38 }
 0x2fa   : > { %3249 = vmatmul.bf16.gmra.mxu2 %v2930_v53  ;;  %3298 = vmatmul.bf16.gmra.mxu3 %v2931_v52  ;;  %v7452_v52 = vld [vmem:[#allocation9 + $0x560] sm:$0xf]  ;;  %v3451_v61 = vunpack.c.l.b16 %v3366_v24  ;;  %v3452_v40 = vunpack.c.h.b16 %v3366_v24  ;;  %v3369_v24 = vrot.slane %v8468_v60, 6 }
 0x2fb   : > { %4501 = vmatpush.bf16.msra.mxu3 %v7521_v62  ;;  %v7453_v11 = vor.u32 %v8231_v21, %v7452_v52  ;;  %v7517_v62 = vor.u32 %v8247_v36, %v7516_v37  ;;  %v8228_v52 = vld [vmem:[#allocation9 + $0x554] sm:$0xf]  ;;  %v7446_v21 = vld [vmem:[#allocation9 + $0x558] sm:$0xf0] }
 0x2fc   : > { %v8244_v37 = vld [vmem:[#allocation9 + $0x5d4] sm:$0xf]  ;;  %v7510_v36 = vld [vmem:[#allocation9 + $0x5d8] sm:$0xf0] }
 0x2fd   : > { %v2570_v5 = vpop.f32.mrf.mxu2  ;;  %v2619_v50 = vpop.f32.mrf.mxu3  ;;  %4354 = vmatpush.bf16.msra.mxu0 %v7453_v11  ;;  %4403 = vmatpush.bf16.msra.mxu1 %v7517_v62  ;;  %v7449_v11 = vor.u32 %v8228_v52, %v7446_v21  ;;  %v8245_v21 = vld [vmem:[#allocation9 + $0x5d4] sm:$0xf0] }
 0x2fe   : > { %v2620_v42 = vadd.f32 %v2619_v50, %v2570_v5  ;;  %v2474_v4 = vpop.f32.mrf.mxu0  ;;  %v2523_v57 = vpop.f32.mrf.mxu1  ;;  %v3449_v50 = vunpack.c.l.b16 %v3363_v0 }
 0x2ff   : > { %v2524_v16 = vadd.f32 %v2523_v57, %v2474_v4  ;;  %4453 = vmatpush.bf16.msra.mxu2 %v7449_v11 }
 0x300   : > { %v9466_v56 = vadd.f32 %v2620_v42, %v9280_v46  ;;  %v3450_v42 = vunpack.c.h.b16 %v3363_v0  ;;  %v3481_v27 = vpack.c.b16 %v3451_v61, %v3449_v50  ;;  %v9481_v0 = vld [vmem:[#allocation2 + $0x18] sm:$0xcc]  ;;  %v3372_v61 = vrot.slane %v9284_v31, 6 }
 0x301   : > { %v9471_v53 = vadd.f32 %v2524_v16, %v9287_v8  ;;  %v7267_v50 = vrot.slane %v9481_v0, 10 }
 0x302   : > { %v3482_v16 = vpack.c.b16 %v3452_v40, %v3450_v42  ;;  %v3371_v42 = vrot.slane %v3369_v24, 4 }
 0x303   : > { %v3370_v60 = vsel %vm8926_vm2, %v7267_v50, %v3369_v24  ;;  %v8469_v50 = vld [vmem:[#allocation2 + $0x38] sm:$0xff] }
 0x305   : > { %v2572_v46 = vpop.f32.mrf.mxu2  ;;  %v2621_v5 = vpop.f32.mrf.mxu3 }
 0x306   : > { %v2622_v38 = vadd.f32 %v2621_v5, %v2572_v46  ;;  %v3117_v8 = vpop.f32.mrf.mxu0  ;;  %v3166_v4 = vpop.f32.mrf.mxu1 }
 0x307   : > { %v3167_v57 = vadd.f32 %v3166_v4, %v3117_v8  ;;  %v3373_v4 = vsel %vm8926_vm2, %v3371_v42, %v3372_v61 }
 0x308   : > { %v9476_v59 = vadd.f32 %v2622_v38, %v9297_v26  ;;  %v7513_v26 = vor.u32 %v8244_v37, %v7510_v36  ;;  %v3455_v37 = vunpack.c.l.b16 %v3373_v4  ;;  %v3456_v11 = vunpack.c.h.b16 %v3373_v4 }
 0x309   : > { %v9479_v44 = vadd.f32 %v3167_v57, %v9300_v29  ;;  %3681 = vmatmul.bf16.vlgmr.msrb.gmra.mxu0 %v3481_v27  ;;  %3730 = vmatmul.bf16.vlgmr.msrb.gmra.mxu1 %v3482_v16  ;;  %v7444_v57 = vld [vmem:[#allocation9 + $0x550] sm:$0xf]  ;;  %v3376_v4 = vrot.slane %v8469_v50, 6 }
 0x30a   : > { %3779 = vmatmul.bf16.vlgmr.msrb.gmra.mxu2 %v3481_v27  ;;  %3828 = vmatmul.bf16.vlgmr.msrb.gmra.mxu3 %v3482_v16  ;;  %v8229_v27 = vld [vmem:[#allocation9 + $0x554] sm:$0xf0]  ;;  %v7508_v16 = vld [vmem:[#allocation9 + $0x5d0] sm:$0xf] }
 0x30b   : > { %4502 = vmatpush.bf16.msra.mxu3 %v7513_v26  ;;  %v7445_v52 = vor.u32 %v8229_v27, %v7444_v57  ;;  %v7509_v36 = vor.u32 %v8245_v21, %v7508_v16  ;;  %v8226_v57 = vld [vmem:[#allocation9 + $0x544] sm:$0xf]  ;;  %v7438_v27 = vld [vmem:[#allocation9 + $0x548] sm:$0xf0] }
 0x30c   : > { %v8242_v16 = vld [vmem:[#allocation9 + $0x5c4] sm:$0xf]  ;;  %v7502_v21 = vld [vmem:[#allocation9 + $0x5c8] sm:$0xf0] }
 0x30d   : > { %v3215_v40 = vpop.f32.mrf.mxu2  ;;  %v3264_v62 = vpop.f32.mrf.mxu3  ;;  %4355 = vmatpush.bf16.msra.mxu0 %v7445_v52  ;;  %4404 = vmatpush.bf16.msra.mxu1 %v7509_v36  ;;  %v7441_v52 = vor.u32 %v8226_v57, %v7438_v27  ;;  %v8243_v27 = vld [vmem:[#allocation9 + $0x5c4] sm:$0xf0] }
 0x30e   : > { %v3265_v29 = vadd.f32 %v3264_v62, %v3215_v40  ;;  %v3119_v46 = vpop.f32.mrf.mxu0  ;;  %v3168_v5 = vpop.f32.mrf.mxu1  ;;  %v3453_v40 = vunpack.c.l.b16 %v3370_v60  ;;  %v3454_v62 = vunpack.c.h.b16 %v3370_v60  ;;  %v9501_v60 = vld [vmem:[#allocation2 + $0x30] sm:$0xcc] }
 0x30f   : > { %v3169_v38 = vadd.f32 %v3168_v5, %v3119_v46  ;;  %4454 = vmatpush.bf16.msra.mxu2 %v7441_v52 }
 0x310   : > { %v9486_v8 = vadd.f32 %v3265_v29, %v9303_v30  ;;  %v3483_v5 = vpack.c.b16 %v3455_v37, %v3453_v40  ;;  %v3484_v42 = vpack.c.b16 %v3456_v11, %v3454_v62  ;;  %v3379_v37 = vrot.slane %v9307_v23, 6 }
 0x311   : > { %v9491_v31 = vadd.f32 %v3169_v38, %v9311_v18  ;;  %v7268_v40 = vrot.slane %v9501_v60, 10  ;;  %v3378_v62 = vrot.slane %v3376_v4, 4 }
 0x313   : > { %v3377_v50 = vsel %vm8926_vm2, %v7268_v40, %v3376_v4  ;;  %v8470_v40 = vld [vmem:[#allocation2 + $0x50] sm:$0xff] }
 0x315   : > { %v3217_v30 = vpop.f32.mrf.mxu2  ;;  %v3266_v26 = vpop.f32.mrf.mxu3 }
 0x316   : > { %v3267_v61 = vadd.f32 %v3266_v26, %v3217_v30  ;;  %v3122_v18 = vpop.f32.mrf.mxu0  ;;  %v3171_v29 = vpop.f32.mrf.mxu1 }
 0x317   : > { %v3172_v46 = vadd.f32 %v3171_v29, %v3122_v18  ;;  %v3380_v29 = vsel %vm8926_vm2, %v3378_v62, %v3379_v37 }
 0x318   : > { %v9496_v38 = vadd.f32 %v3267_v61, %v9321_v43  ;;  %v7505_v43 = vor.u32 %v8242_v16, %v7502_v21  ;;  %v3459_v16 = vunpack.c.l.b16 %v3380_v29  ;;  %v3460_v52 = vunpack.c.h.b16 %v3380_v29 }
 0x319   : > { %v9499_v24 = vadd.f32 %v3172_v46, %v9324_v13  ;;  %3686 = vmatmul.bf16.gmra.mxu0 %v3483_v5  ;;  %3735 = vmatmul.bf16.gmra.mxu1 %v3484_v42  ;;  %v7436_v46 = vld [vmem:[#allocation9 + $0x540] sm:$0xf]  ;;  %v3383_v29 = vrot.slane %v8470_v40, 6 }
 0x31a   : > { %3784 = vmatmul.bf16.gmra.mxu2 %v3483_v5  ;;  %3833 = vmatmul.bf16.gmra.mxu3 %v3484_v42  ;;  %v8227_v5 = vld [vmem:[#allocation9 + $0x544] sm:$0xf0]  ;;  %v7500_v42 = vld [vmem:[#allocation9 + $0x5c0] sm:$0xf] }
 0x31b   : > { %4503 = vmatpush.bf16.msra.mxu3 %v7505_v43  ;;  %v7437_v57 = vor.u32 %v8227_v5, %v7436_v46  ;;  %v7501_v21 = vor.u32 %v8243_v27, %v7500_v42  ;;  %v8224_v46 = vld [vmem:[#allocation9 + $0x534] sm:$0xf]  ;;  %v7430_v5 = vld [vmem:[#allocation9 + $0x538] sm:$0xf0] }
 0x31c   : > { %v8240_v42 = vld [vmem:[#allocation9 + $0x5b4] sm:$0xf]  ;;  %v7494_v27 = vld [vmem:[#allocation9 + $0x5b8] sm:$0xf0] }
 0x31d   : > { %v3220_v11 = vpop.f32.mrf.mxu2  ;;  %v3269_v36 = vpop.f32.mrf.mxu3  ;;  %4356 = vmatpush.bf16.msra.mxu0 %v7437_v57  ;;  %4405 = vmatpush.bf16.msra.mxu1 %v7501_v21  ;;  %v7433_v57 = vor.u32 %v8224_v46, %v7430_v5  ;;  %v8241_v5 = vld [vmem:[#allocation9 + $0x5b4] sm:$0xf0] }
 0x31e   : > { %v3270_v13 = vadd.f32 %v3269_v36, %v3220_v11  ;;  %v3124_v30 = vpop.f32.mrf.mxu0  ;;  %v3173_v26 = vpop.f32.mrf.mxu1  ;;  %v3457_v11 = vunpack.c.l.b16 %v3377_v50  ;;  %v3458_v36 = vunpack.c.h.b16 %v3377_v50  ;;  %v9521_v50 = vld [vmem:[#allocation2 + $0x48] sm:$0xcc] }
 0x31f   : > { %v3174_v61 = vadd.f32 %v3173_v26, %v3124_v30  ;;  %4455 = vmatpush.bf16.msra.mxu2 %v7433_v57 }
 0x320   : > { %v9506_v18 = vadd.f32 %v3270_v13, %v9327_v20  ;;  %v3485_v26 = vpack.c.b16 %v3459_v16, %v3457_v11  ;;  %v3486_v62 = vpack.c.b16 %v3460_v52, %v3458_v36  ;;  %v3386_v16 = vrot.slane %v9331_v63, 6 }
 0x321   : > { %v9511_v23 = vadd.f32 %v3174_v61, %v9335_v1  ;;  %v7269_v11 = vrot.slane %v9521_v50, 10  ;;  %v3385_v36 = vrot.slane %v3383_v29, 4 }
 0x323   : > { %v3384_v40 = vsel %vm8926_vm2, %v7269_v11, %v3383_v29  ;;  %v8471_v11 = vld [vmem:[#allocation2 + $0x68] sm:$0xff] }
 0x325   : > { %v3222_v20 = vpop.f32.mrf.mxu2  ;;  %v3271_v43 = vpop.f32.mrf.mxu3 }
 0x326   : > { %v3272_v37 = vadd.f32 %v3271_v43, %v3222_v20  ;;  %v3127_v1 = vpop.f32.mrf.mxu0  ;;  %v3176_v13 = vpop.f32.mrf.mxu1 }
 0x327   : > { %v3177_v30 = vadd.f32 %v3176_v13, %v3127_v1  ;;  %v3387_v13 = vsel %vm8926_vm2, %v3385_v36, %v3386_v16 }
 0x328   : > { %v9516_v61 = vadd.f32 %v3272_v37, %v9345_v12  ;;  %v7497_v12 = vor.u32 %v8240_v42, %v7494_v27  ;;  %v3463_v42 = vunpack.c.l.b16 %v3387_v13  ;;  %v3464_v57 = vunpack.c.h.b16 %v3387_v13 }
 0x329   : > { %v9519_v4 = vadd.f32 %v3177_v30, %v9348_v2  ;;  %3691 = vmatmul.bf16.gmra.mxu0 %v3485_v26  ;;  %3740 = vmatmul.bf16.gmra.mxu1 %v3486_v62  ;;  %v7428_v30 = vld [vmem:[#allocation9 + $0x530] sm:$0xf]  ;;  %v3390_v13 = vrot.slane %v8471_v11, 6 }
 0x32a   : > { %3789 = vmatmul.bf16.gmra.mxu2 %v3485_v26  ;;  %3838 = vmatmul.bf16.gmra.mxu3 %v3486_v62  ;;  %v8225_v26 = vld [vmem:[#allocation9 + $0x534] sm:$0xf0]  ;;  %v7492_v62 = vld [vmem:[#allocation9 + $0x5b0] sm:$0xf] }
 0x32b   : > { %4504 = vmatpush.bf16.msra.mxu3 %v7497_v12  ;;  %v7429_v46 = vor.u32 %v8225_v26, %v7428_v30  ;;  %v7493_v27 = vor.u32 %v8241_v5, %v7492_v62  ;;  %v8222_v30 = vld [vmem:[#allocation9 + $0x524] sm:$0xf]  ;;  %v7422_v26 = vld [vmem:[#allocation9 + $0x528] sm:$0xf0] }
 0x32c   : > { %v8238_v62 = vld [vmem:[#allocation9 + $0x5a4] sm:$0xf]  ;;  %v7486_v5 = vld [vmem:[#allocation9 + $0x5a8] sm:$0xf0] }
 0x32d   : > { %v3225_v52 = vpop.f32.mrf.mxu2  ;;  %v3274_v21 = vpop.f32.mrf.mxu3  ;;  %4357 = vmatpush.bf16.msra.mxu0 %v7429_v46  ;;  %4406 = vmatpush.bf16.msra.mxu1 %v7493_v27  ;;  %v7425_v46 = vor.u32 %v8222_v30, %v7422_v26  ;;  %v8239_v26 = vld [vmem:[#allocation9 + $0x5a4] sm:$0xf0] }
 0x32e   : > { %v3275_v2 = vadd.f32 %v3274_v21, %v3225_v52  ;;  %v3129_v20 = vpop.f32.mrf.mxu0  ;;  %v3178_v43 = vpop.f32.mrf.mxu1  ;;  %v3461_v52 = vunpack.c.l.b16 %v3384_v40  ;;  %v3462_v21 = vunpack.c.h.b16 %v3384_v40  ;;  %v9541_v40 = vld [vmem:[#allocation2 + $0x60] sm:$0xcc] }
 0x32f   : > { %v3179_v37 = vadd.f32 %v3178_v43, %v3129_v20  ;;  %4456 = vmatpush.bf16.msra.mxu2 %v7425_v46 }
 0x330   : > { %v9526_v1 = vadd.f32 %v3275_v2, %v9351_v14  ;;  %v3487_v43 = vpack.c.b16 %v3463_v42, %v3461_v52  ;;  %v3488_v36 = vpack.c.b16 %v3464_v57, %v3462_v21  ;;  %v3393_v42 = vrot.slane %v9355_v32, 6 }
 0x331   : > { %v9531_v63 = vadd.f32 %v3179_v37, %v9359_v33  ;;  %v7270_v52 = vrot.slane %v9541_v40, 10  ;;  %v3392_v21 = vrot.slane %v3390_v13, 4 }
 0x333   : > { %v3391_v11 = vsel %vm8926_vm2, %v7270_v52, %v3390_v13  ;;  %v8472_v52 = vld [vmem:[#allocation2 + $0x80] sm:$0xff] }
 0x335   : > { %v3227_v14 = vpop.f32.mrf.mxu2  ;;  %v3276_v12 = vpop.f32.mrf.mxu3 }
 0x336   : > { %v3277_v16 = vadd.f32 %v3276_v12, %v3227_v14  ;;  %v3132_v33 = vpop.f32.mrf.mxu0  ;;  %v3181_v2 = vpop.f32.mrf.mxu1 }
 0x337   : > { %v3182_v20 = vadd.f32 %v3181_v2, %v3132_v33  ;;  %v3394_v2 = vsel %vm8926_vm2, %v3392_v21, %v3393_v42 }
 0x338   : > { %v9536_v37 = vadd.f32 %v3277_v16, %v9369_v17  ;;  %v7489_v17 = vor.u32 %v8238_v62, %v7486_v5  ;;  %v3467_v62 = vunpack.c.l.b16 %v3394_v2  ;;  %v3468_v46 = vunpack.c.h.b16 %v3394_v2 }
 0x339   : > { %v9539_v29 = vadd.f32 %v3182_v20, %v9372_v22  ;;  %3696 = vmatmul.bf16.gmra.mxu0 %v3487_v43  ;;  %3745 = vmatmul.bf16.gmra.mxu1 %v3488_v36  ;;  %v7420_v20 = vld [vmem:[#allocation9 + $0x520] sm:$0xf]  ;;  %v3397_v2 = vrot.slane %v8472_v52, 6 }
 0x33a   : > { %3794 = vmatmul.bf16.gmra.mxu2 %v3487_v43  ;;  %3843 = vmatmul.bf16.gmra.mxu3 %v3488_v36  ;;  %v8223_v43 = vld [vmem:[#allocation9 + $0x524] sm:$0xf0]  ;;  %v7484_v36 = vld [vmem:[#allocation9 + $0x5a0] sm:$0xf] }
 0x33b   : > { %4505 = vmatpush.bf16.msra.mxu3 %v7489_v17  ;;  %v7421_v30 = vor.u32 %v8223_v43, %v7420_v20  ;;  %v7485_v5 = vor.u32 %v8239_v26, %v7484_v36  ;;  %v8220_v20 = vld [vmem:[#allocation9 + $0x514] sm:$0xf]  ;;  %v7414_v43 = vld [vmem:[#allocation9 + $0x518] sm:$0xf0] }
 0x33c   : > { %v8236_v36 = vld [vmem:[#allocation9 + $0x594] sm:$0xf]  ;;  %v7478_v26 = vld [vmem:[#allocation9 + $0x598] sm:$0xf0] }
 0x33d   : > { %v3230_v57 = vpop.f32.mrf.mxu2  ;;  %v3279_v27 = vpop.f32.mrf.mxu3  ;;  %4358 = vmatpush.bf16.msra.mxu0 %v7421_v30  ;;  %4407 = vmatpush.bf16.msra.mxu1 %v7485_v5  ;;  %v7417_v30 = vor.u32 %v8220_v20, %v7414_v43  ;;  %v8237_v43 = vld [vmem:[#allocation9 + $0x594] sm:$0xf0] }
 0x33e   : > { %v3280_v22 = vadd.f32 %v3279_v27, %v3230_v57  ;;  %v3134_v14 = vpop.f32.mrf.mxu0  ;;  %v3183_v12 = vpop.f32.mrf.mxu1  ;;  %v3465_v57 = vunpack.c.l.b16 %v3391_v11  ;;  %v3466_v27 = vunpack.c.h.b16 %v3391_v11  ;;  %v9561_v11 = vld [vmem:[#allocation2 + $0x78] sm:$0xcc] }
 0x33f   : > { %v3184_v16 = vadd.f32 %v3183_v12, %v3134_v14  ;;  %4457 = vmatpush.bf16.msra.mxu2 %v7417_v30 }
 0x340   : > { %v9546_v33 = vadd.f32 %v3280_v22, %v9375_v25  ;;  %v3489_v12 = vpack.c.b16 %v3467_v62, %v3465_v57  ;;  %v3490_v21 = vpack.c.b16 %v3468_v46, %v3466_v27  ;;  %v3400_v62 = vrot.slane %v9379_v58, 6 }
 0x341   : > { %v9551_v32 = vadd.f32 %v3184_v16, %v9383_v7  ;;  %v7271_v57 = vrot.slane %v9561_v11, 10  ;;  %v3399_v27 = vrot.slane %v3397_v2, 4 }
 0x343   : > { %v3398_v52 = vsel %vm8926_vm2, %v7271_v57, %v3397_v2  ;;  %v8473_v57 = vld [vmem:[#allocation2 + $0x98] sm:$0xff] }
 0x345   : > { %v3232_v25 = vpop.f32.mrf.mxu2  ;;  %v3281_v17 = vpop.f32.mrf.mxu3 }
 0x346   : > { %v3282_v42 = vadd.f32 %v3281_v17, %v3232_v25  ;;  %v3137_v7 = vpop.f32.mrf.mxu0  ;;  %v3186_v22 = vpop.f32.mrf.mxu1 }
 0x347   : > { %v3187_v14 = vadd.f32 %v3186_v22, %v3137_v7  ;;  %v3401_v22 = vsel %vm8926_vm2, %v3399_v27, %v3400_v62 }
 0x348   : > { %v9556_v16 = vadd.f32 %v3282_v42, %v9393_v28  ;;  %v7481_v28 = vor.u32 %v8236_v36, %v7478_v26  ;;  %v3471_v36 = vunpack.c.l.b16 %v3401_v22  ;;  %v3472_v30 = vunpack.c.h.b16 %v3401_v22 }
 0x349   : > { %v9559_v13 = vadd.f32 %v3187_v14, %v9396_v47  ;;  %3701 = vmatmul.bf16.gmra.mxu0 %v3489_v12  ;;  %3750 = vmatmul.bf16.gmra.mxu1 %v3490_v21  ;;  %v7412_v14 = vld [vmem:[#allocation9 + $0x510] sm:$0xf]  ;;  %v3404_v22 = vrot.slane %v8473_v57, 6 }
 0x34a   : > { %3799 = vmatmul.bf16.gmra.mxu2 %v3489_v12  ;;  %3848 = vmatmul.bf16.gmra.mxu3 %v3490_v21  ;;  %v8221_v12 = vld [vmem:[#allocation9 + $0x514] sm:$0xf0]  ;;  %v7476_v21 = vld [vmem:[#allocation9 + $0x590] sm:$0xf] }
 0x34b   : > { %4506 = vmatpush.bf16.msra.mxu3 %v7481_v28  ;;  %v7413_v20 = vor.u32 %v8221_v12, %v7412_v14  ;;  %v7477_v26 = vor.u32 %v8237_v43, %v7476_v21  ;;  %v8218_v14 = vld [vmem:[#allocation9 + $0x504] sm:$0xf]  ;;  %v7406_v12 = vld [vmem:[#allocation9 + $0x508] sm:$0xf0] }
 0x34c   : > { %v8234_v21 = vld [vmem:[#allocation9 + $0x584] sm:$0xf]  ;;  %v7470_v43 = vld [vmem:[#allocation9 + $0x588] sm:$0xf0] }
 0x34d   : > { %v3235_v46 = vpop.f32.mrf.mxu2  ;;  %v3284_v5 = vpop.f32.mrf.mxu3  ;;  %4359 = vmatpush.bf16.msra.mxu0 %v7413_v20  ;;  %4408 = vmatpush.bf16.msra.mxu1 %v7477_v26  ;;  %v7409_v20 = vor.u32 %v8218_v14, %v7406_v12  ;;  %v8235_v12 = vld [vmem:[#allocation9 + $0x584] sm:$0xf0] }
 0x34e   : > { %v3285_v47 = vadd.f32 %v3284_v5, %v3235_v46  ;;  %v3139_v25 = vpop.f32.mrf.mxu0  ;;  %v3188_v17 = vpop.f32.mrf.mxu1  ;;  %v3469_v46 = vunpack.c.l.b16 %v3398_v52  ;;  %v3470_v5 = vunpack.c.h.b16 %v3398_v52  ;;  %v9581_v52 = vld [vmem:[#allocation2 + $0x90] sm:$0xcc] }
 0x34f   : > { %v3189_v42 = vadd.f32 %v3188_v17, %v3139_v25  ;;  %4458 = vmatpush.bf16.msra.mxu2 %v7409_v20 }
 0x350   : > { %v9566_v7 = vadd.f32 %v3285_v47, %v9399_v55  ;;  %v3491_v17 = vpack.c.b16 %v3471_v36, %v3469_v46  ;;  %v3492_v27 = vpack.c.b16 %v3472_v30, %v3470_v5  ;;  %v3407_v36 = vrot.slane %v9403_v41, 6 }
 0x351   : > { %v9571_v58 = vadd.f32 %v3189_v42, %v9407_v19  ;;  %v7272_v46 = vrot.slane %v9581_v52, 10  ;;  %v3406_v5 = vrot.slane %v3404_v22, 4 }
 0x353   : > { %v3405_v57 = vsel %vm8926_vm2, %v7272_v46, %v3404_v22  ;;  %v8474_v46 = vld [vmem:[#allocation2 + $0xb0] sm:$0xff] }
 0x355   : > { %v3237_v55 = vpop.f32.mrf.mxu2  ;;  %v3286_v28 = vpop.f32.mrf.mxu3 }
 0x356   : > { %v3287_v62 = vadd.f32 %v3286_v28, %v3237_v55  ;;  %v3142_v19 = vpop.f32.mrf.mxu0  ;;  %v3191_v47 = vpop.f32.mrf.mxu1 }
 0x357   : > { %v3192_v25 = vadd.f32 %v3191_v47, %v3142_v19  ;;  %v3408_v47 = vsel %vm8926_vm2, %v3406_v5, %v3407_v36 }
 0x358   : > { %v9576_v42 = vadd.f32 %v3287_v62, %v9417_v45  ;;  %v7473_v45 = vor.u32 %v8234_v21, %v7470_v43  ;;  %v3475_v21 = vunpack.c.l.b16 %v3408_v47  ;;  %v3476_v20 = vunpack.c.h.b16 %v3408_v47 }
 0x359   : > { %v9579_v2 = vadd.f32 %v3192_v25, %v9420_v48  ;;  %3706 = vmatmul.bf16.gmra.mxu0 %v3491_v17  ;;  %3755 = vmatmul.bf16.gmra.mxu1 %v3492_v27  ;;  %v7404_v25 = vld [vmem:[#allocation9 + $0x500] sm:$0xf]  ;;  %v3411_v47 = vrot.slane %v8474_v46, 6  ;;  %v7596_v46 = vld [vmem:[#allocation9 + $0x670] sm:$0xf] }
 0x35a   : > { %3804 = vmatmul.bf16.gmra.mxu2 %v3491_v17  ;;  %3853 = vmatmul.bf16.gmra.mxu3 %v3492_v27  ;;  %v8219_v17 = vld [vmem:[#allocation9 + $0x504] sm:$0xf0]  ;;  %v7468_v27 = vld [vmem:[#allocation9 + $0x580] sm:$0xf] }
 0x35b   : > { %4507 = vmatpush.bf16.msra.mxu3 %v7473_v45  ;;  %v7405_v14 = vor.u32 %v8219_v17, %v7404_v25  ;;  %v7469_v43 = vor.u32 %v8235_v12, %v7468_v27  ;;  %v8264_v25 = vld [vmem:[#allocation9 + $0x674] sm:$0xf]  ;;  %v7598_v17 = vld [vmem:[#allocation9 + $0x678] sm:$0xf0] }
 0x35c   : > { %v8280_v27 = vld [vmem:[#allocation9 + $0x6f4] sm:$0xf]  ;;  %v7662_v12 = vld [vmem:[#allocation9 + $0x6f8] sm:$0xf0] }
 0x35d   : > { %v3240_v30 = vpop.f32.mrf.mxu2  ;;  %v3289_v26 = vpop.f32.mrf.mxu3  ;;  %4360 = vmatpush.bf16.msra.mxu0 %v7405_v14  ;;  %4409 = vmatpush.bf16.msra.mxu1 %v7469_v43  ;;  %v7601_v14 = vor.u32 %v8264_v25, %v7598_v17  ;;  %v8265_v25 = vld [vmem:[#allocation9 + $0x674] sm:$0xf0]  ;;  %v7660_v17 = vld [vmem:[#allocation9 + $0x6f0] sm:$0xf] }
 0x35e   : > { %v3290_v48 = vadd.f32 %v3289_v26, %v3240_v30  ;;  %v3144_v55 = vpop.f32.mrf.mxu0  ;;  %v3193_v28 = vpop.f32.mrf.mxu1  ;;  %v3473_v30 = vunpack.c.l.b16 %v3405_v57  ;;  %v3474_v26 = vunpack.c.h.b16 %v3405_v57  ;;  %v9601_v57 = vld [vmem:[#allocation2 + $0xa8] sm:$0xcc] }
 0x35f   : > { %v3194_v62 = vadd.f32 %v3193_v28, %v3144_v55  ;;  %5019 = vmatpush.bf16.msrb.mxu2 %v7601_v14  ;;  %v3913_v14 = vshrl.u32 %v9462_v15, 16 }
 0x360   : > { %v9586_v19 = vadd.f32 %v3290_v48, %v9423_v54  ;;  %v3493_v28 = vpack.c.b16 %v3475_v21, %v3473_v30  ;;  %v3494_v5 = vpack.c.b16 %v3476_v20, %v3474_v26  ;;  %v10508_v21 = vld [vmem:[#allocation34_spill] sm:$0xff]  ;;  %v7273_v26 = vrot.slane %v9601_v57, 10 }
 0x361   : > { %v9591_v41 = vadd.f32 %v3194_v62, %v9431_v34  ;;  %v3414_v20 = vrot.slane %v10508_v21, 6  ;;  %v7597_v21 = vor.u32 %v8265_v25, %v7596_v46  ;;  %v10512_v46 = vld [vmem:[#allocation18_spill] sm:$0xff] }
 0x362   : > { %v3922_v25 = vrot.slane %v10512_v46, 7 }
 0x363   : > { %4921 = vmatpush.bf16.msrb.mxu0 %v7597_v21 }
 0x365   : > { %v3242_v54 = vpop.f32.mrf.mxu2  ;;  %v3291_v45 = vpop.f32.mrf.mxu3 }
 0x366   : > { %v3292_v36 = vadd.f32 %v3291_v45, %v3242_v54  ;;  %v3147_v34 = vpop.f32.mrf.mxu0  ;;  %v3196_v48 = vpop.f32.mrf.mxu1 }
 0x367   : > { %v3197_v55 = vadd.f32 %v3196_v48, %v3147_v34 }
 0x368   : > { %v9596_v62 = vadd.f32 %v3292_v36, %v9441_v49  ;;  %v7665_v49 = vor.u32 %v8280_v27, %v7662_v12  ;;  %v3413_v36 = vrot.slane %v3411_v47, 4  ;;  %v3412_v27 = vsel %vm8926_vm2, %v7273_v26, %v3411_v47 }
 0x369   : > { %v9599_v22 = vadd.f32 %v3197_v55, %v9444_v39  ;;  %3711 = vmatmul.bf16.gmra.mxu0 %v3493_v28  ;;  %3760 = vmatmul.bf16.gmra.mxu1 %v3494_v5  ;;  %v3916_v12 = vshll.u32 %v9462_v15, 16 }
 0x36a   : > { %3809 = vmatmul.bf16.gmra.mxu2 %v3493_v28  ;;  %3858 = vmatmul.bf16.gmra.mxu3 %v3494_v5  ;;  %v3415_v55 = vsel %vm8926_vm2, %v3413_v36, %v3414_v20  ;;  %v3901_v28 = vld [vmem:[#allocation2 + $0x10] sm:$0x77]  ;;  %v3478_v36 = vunpack.c.h.b16 %v3412_v27  ;;  %vm5157_vm2 = vsmask.f32 256 }
 0x36b   : > { %10507 = vst [vmem:[#allocation35_spill] sm:$0xff] %v9599_v22  ;;  %5068 = vmatpush.bf16.msrb.mxu3 %v7665_v49  ;;  %v3479_v49 = vunpack.c.l.b16 %v3415_v55  ;;  %v3927_v20 = vshrl.u32 %v3901_v28, 16  ;;  %v3918_v15 = vrot.slane %v3916_v12, 7  ;;  %v8262_v12 = vld [vmem:[#allocation9 + $0x664] sm:$0xf]  ;;  %vm9981_vm4 = vmor %vm5157_vm2, %vm5158_vm3 }
 0x36d   : > { %v3245_v43 = vpop.f32.mrf.mxu2  ;;  %v3294_v54 = vpop.f32.mrf.mxu3  ;;  %v3929_v21 = vrot.slane %v3927_v20, 6 }
 0x36e   : > { %v3295_v39 = vadd.f32 %v3294_v54, %v3245_v43  ;;  %v3149_v45 = vpop.f32.mrf.mxu0  ;;  %v3198_v30 = vpop.f32.mrf.mxu1  ;;  %v3480_v43 = vunpack.c.h.b16 %v3415_v55 }
 0x36f   : > { %v3199_v34 = vadd.f32 %v3198_v30, %v3149_v45  ;;  %v3477_v30 = vunpack.c.l.b16 %v3412_v27 }
 0x370   : > { %v9606_v48 = vadd.f32 %v3295_v39, %v9447_v3  ;;  %v8281_v3 = vld [vmem:[#allocation9 + $0x6f4] sm:$0xf0]  ;;  %v3930_v39 = vshll.u32 %v3901_v28, 16 }
 0x371   : > { %v9611_v5 = vadd.f32 %v3199_v34, %v9452_v51  ;;  %v7661_v54 = vor.u32 %v8281_v3, %v7660_v17  ;;  %v10511_v34 = vld [vmem:[#allocation19_spill] sm:$0xff]  ;;  %v3495_v55 = vpack.c.b16 %v3479_v49, %v3477_v30  ;;  %v3496_v17 = vpack.c.b16 %v3480_v43, %v3478_v36  ;;  %v7654_v49 = vld [vmem:[#allocation9 + $0x6e8] sm:$0xf0] }
 0x372   : > { %10509 = vst [vmem:[#allocation36_spill] sm:$0xff] %v9606_v48  ;;  %v3915_v48 = vrot.slane %v3913_v14, 6  ;;  %v3932_v3 = vrot.slane %v3930_v39, 7 }
 0x373   : > { %10510 = vst [vmem:[#allocation37_spill] sm:$0xff] %v9611_v5  ;;  %v3921_v5 = vrot.slane %v10511_v34, 6  ;;  %4970 = vmatpush.bf16.msrb.mxu1 %v7661_v54 }
 0x374   : > { %v3919_v54 = vor.u32 %v3918_v15, %v3915_v48 }
 0x375   : > { %v3247_v51 = vpop.f32.mrf.mxu2  ;;  %v3296_v45 = vpop.f32.mrf.mxu3  ;;  %v3923_v14 = vor.u32 %v3922_v25, %v3921_v5  ;;  %v9634_v25 = vld [vmem:[#allocation2 + $0x28] sm:$0x77] }
 0x376   : > { %v3297_v9 = vadd.f32 %v3296_v45, %v3247_v51  ;;  %v3152_v47 = vpop.f32.mrf.mxu0  ;;  %v3201_v26 = vpop.f32.mrf.mxu1  ;;  %v7590_v51 = vld [vmem:[#allocation9 + $0x668] sm:$0xf0]  ;;  %v8278_v45 = vld [vmem:[#allocation9 + $0x6e4] sm:$0xf]  ;;  %v3920_v36 = vrot.slane %v3919_v54, 4  ;;  %10515 = vst [vmem:[#allocation38_spill] sm:$0xff] %v9634_v25 }
 0x377   : > { %v3202_v22 = vadd.f32 %v3201_v26, %v3152_v47  ;;  %v7593_v47 = vor.u32 %v8262_v12, %v7590_v51  ;;  %v7657_v43 = vor.u32 %v8278_v45, %v7654_v49  ;;  %v3936_v12 = vshrl.u32 %v9481_v0, 16  ;;  %v8279_v45 = vld [vmem:[#allocation9 + $0x6e4] sm:$0xf0] }
 0x378   : > { %v9620_v28 = vadd.f32 %v3297_v9, %v9457_v10  ;;  %v3933_v10 = vor.u32 %v3932_v3, %v3929_v21  ;;  %v3925_v9 = vrot.slane %v3923_v14, 4  ;;  %v8263_v21 = vld [vmem:[#allocation9 + $0x664] sm:$0xf0]  ;;  %v7652_v3 = vld [vmem:[#allocation9 + $0x6e0] sm:$0xf]  ;;  %v3924_v54 = vsel %vm9625_vm14, %v3920_v36, %v3923_v14 }
 0x379   : > { %v9623_v27 = vadd.f32 %v3202_v22, %v9460_v6  ;;  %3716 = vmatmul.bf16.gmra.mxu0 %v3495_v55  ;;  %3765 = vmatmul.bf16.gmra.mxu1 %v3496_v17  ;;  %v3939_v51 = vshll.u32 %v9481_v0, 16 }
 0x37a   : > { %3814 = vmatmul.bf16.gmra.mxu2 %v3495_v55  ;;  %3863 = vmatmul.bf16.gmra.mxu3 %v3496_v17  ;;  %v3934_v15 = vsel %vm9625_vm14, %v3925_v9, %v3933_v10  ;;  %v7588_v17 = vld [vmem:[#allocation9 + $0x660] sm:$0xf]  ;;  %v7653_v10 = vor.u32 %v8279_v45, %v7652_v3 }
 0x37b   : > { %5020 = vmatpush.bf16.msrb.mxu2 %v7593_v47  ;;  %5069 = vmatpush.bf16.msrb.mxu3 %v7657_v43  ;;  %v4131_v47 = vunpack.c.l.b16 %v3934_v15  ;;  %v4132_v49 = vunpack.c.h.b16 %v3934_v15  ;;  %v3950_v43 = vshrl.u32 %v9634_v25, 16 }
 0x37c   : > { %4971 = vmatpush.bf16.msrb.mxu1 %v7653_v10 }
 0x37d   : > { %v3250_v20 = vpop.f32.mrf.mxu2  ;;  %v3299_v39 = vpop.f32.mrf.mxu3 }
 0x37e   : > { %v3300_v6 = vadd.f32 %v3299_v39, %v3250_v20  ;;  %v3154_v22 = vpop.f32.mrf.mxu0  ;;  %v3203_v30 = vpop.f32.mrf.mxu1 }
 0x37f   : > { %v3204_v48 = vadd.f32 %v3203_v30, %v3154_v22  ;;  %v4130_v22 = vunpack.c.h.b16 %v3924_v54  ;;  %v10516_v30 = vld [vmem:[#allocation21_spill] sm:$0xff] }
 0x380   : > { %v9630_v26 = vadd.f32 %v3300_v6, %v9466_v56  ;;  %v7589_v56 = vor.u32 %v8263_v21, %v7588_v17  ;;  %v4129_v6 = vunpack.c.l.b16 %v3924_v54  ;;  %v3944_v14 = vrot.slane %v10516_v30, 6  ;;  %v10517_v21 = vld [vmem:[#allocation20_spill] sm:$0xff] }
 0x381   : > { %v9637_v55 = vadd.f32 %v3204_v48, %v9471_v53  ;;  %v3953_v53 = vshll.u32 %v9634_v25, 16  ;;  %v3938_v48 = vrot.slane %v3936_v12, 6  ;;  %v3941_v17 = vrot.slane %v3939_v51, 7  ;;  %v8260_v51 = vld [vmem:[#allocation9 + $0x654] sm:$0xf] }
 0x382   : > { %4922 = vmatpush.bf16.msrb.mxu0 %v7589_v56  ;;  %v3945_v15 = vrot.slane %v10517_v21, 7  ;;  %v4161_v45 = vpack.c.b16 %v4131_v47, %v4129_v6  ;;  %v4162_v46 = vpack.c.b16 %v4132_v49, %v4130_v22  ;;  %v3952_v56 = vrot.slane %v3950_v43, 6  ;;  %v7646_v47 = vld [vmem:[#allocation9 + $0x6d8] sm:$0xf0] }
 0x383   : > { %v3955_v25 = vrot.slane %v3953_v53, 7  ;;  %v3942_v10 = vor.u32 %v3941_v17, %v3938_v48  ;;  %v9658_v48 = vld [vmem:[#allocation2 + $0x40] sm:$0x77] }
 0x384   : > { %v3946_v12 = vor.u32 %v3945_v15, %v3944_v14  ;;  %v7580_v15 = vld [vmem:[#allocation9 + $0x650] sm:$0xf] }
 0x385   : > { %v3252_v20 = vpop.f32.mrf.mxu2  ;;  %v3301_v39 = vpop.f32.mrf.mxu3  ;;  %v3956_v49 = vor.u32 %v3955_v25, %v3952_v56  ;;  %v3959_v25 = vshrl.u32 %v9501_v60, 16  ;;  %v7644_v56 = vld [vmem:[#allocation9 + $0x6d0] sm:$0xf] }
 0x386   : > { %v3302_v36 = vadd.f32 %v3301_v39, %v3252_v20  ;;  %v3682_v9 = vpop.f32.mrf.mxu0  ;;  %v3731_v0 = vpop.f32.mrf.mxu1  ;;  %v7582_v20 = vld [vmem:[#allocation9 + $0x658] sm:$0xf0]  ;;  %v8276_v39 = vld [vmem:[#allocation9 + $0x6d4] sm:$0xf] }
 0x387   : > { %v3732_v3 = vadd.f32 %v3731_v0, %v3682_v9  ;;  %v7585_v9 = vor.u32 %v8260_v51, %v7582_v20  ;;  %v7649_v6 = vor.u32 %v8276_v39, %v7646_v47  ;;  %v3948_v0 = vrot.slane %v3946_v12, 4  ;;  %v8277_v20 = vld [vmem:[#allocation9 + $0x6d4] sm:$0xf0] }
 0x388   : > { %v9648_v34 = vadd.f32 %v3302_v36, %v9476_v59  ;;  %v3943_v36 = vrot.slane %v3942_v10, 4  ;;  %v3962_v51 = vshll.u32 %v9501_v60, 16  ;;  %v7645_v47 = vor.u32 %v8277_v20, %v7644_v56 }
 0x389   : > { %v9651_v54 = vadd.f32 %v3732_v3, %v9479_v44  ;;  %4361 = vmatmul.bf16.vlgmr.msra.gmra.mxu0 %v4161_v45  ;;  %4410 = vmatmul.bf16.vlgmr.msra.gmra.mxu1 %v4162_v46  ;;  %v3957_v14 = vsel %vm9625_vm14, %v3948_v0, %v3956_v49  ;;  %v3973_v49 = vshrl.u32 %v9658_v48, 16  ;;  %v10518_v0 = vld [vmem:[#allocation23_spill] sm:$0xff] }
 0x38a   : > { %4459 = vmatmul.bf16.vlgmr.msra.gmra.mxu2 %v4161_v45  ;;  %4508 = vmatmul.bf16.vlgmr.msra.gmra.mxu3 %v4162_v46  ;;  %v8261_v45 = vld [vmem:[#allocation9 + $0x654] sm:$0xf0]  ;;  %v3947_v10 = vsel %vm9625_vm14, %v3943_v36, %v3946_v12  ;;  %v4135_v39 = vunpack.c.l.b16 %v3957_v14  ;;  %v3964_v60 = vrot.slane %v3962_v51, 7 }
 0x38b   : > { %5021 = vmatpush.bf16.msrb.mxu2 %v7585_v9  ;;  %5070 = vmatpush.bf16.msrb.mxu3 %v7649_v6  ;;  %v4136_v9 = vunpack.c.h.b16 %v3957_v14  ;;  %v3976_v6 = vshll.u32 %v9658_v48, 16 }
 0x38c   : > { %4972 = vmatpush.bf16.msrb.mxu1 %v7645_v47  ;;  %v8258_v47 = vld [vmem:[#allocation9 + $0x644] sm:$0xf] }
 0x38d   : > { %v3780_v59 = vpop.f32.mrf.mxu2  ;;  %v3829_v22 = vpop.f32.mrf.mxu3  ;;  %v3978_v30 = vrot.slane %v3976_v6, 7 }
 0x38e   : > { %v3830_v43 = vadd.f32 %v3829_v22, %v3780_v59  ;;  %v3684_v53 = vpop.f32.mrf.mxu0  ;;  %v3733_v44 = vpop.f32.mrf.mxu1  ;;  %v4133_v22 = vunpack.c.l.b16 %v3947_v10 }
 0x38f   : > { %v3734_v3 = vadd.f32 %v3733_v44, %v3684_v53  ;;  %v3961_v53 = vrot.slane %v3959_v25, 6 }
 0x390   : > { %v9654_v46 = vadd.f32 %v3830_v43, %v9486_v8  ;;  %v7581_v8 = vor.u32 %v8261_v45, %v7580_v15  ;;  %v4134_v43 = vunpack.c.h.b16 %v3947_v10  ;;  %v10519_v15 = vld [vmem:[#allocation22_spill] sm:$0xff]  ;;  %v4163_v56 = vpack.c.b16 %v4135_v39, %v4133_v22 }
 0x391   : > { %v9662_v17 = vadd.f32 %v3734_v3, %v9491_v31  ;;  %v3967_v3 = vrot.slane %v10518_v0, 6  ;;  %v3968_v14 = vrot.slane %v10519_v15, 7  ;;  %v3965_v25 = vor.u32 %v3964_v60, %v3961_v53  ;;  %v7638_v39 = vld [vmem:[#allocation9 + $0x6c8] sm:$0xf0] }
 0x392   : > { %4923 = vmatpush.bf16.msrb.mxu0 %v7581_v8  ;;  %v4164_v20 = vpack.c.b16 %v4136_v9, %v4134_v43  ;;  %v3975_v8 = vrot.slane %v3973_v49, 6 }
 0x393   : > { %v3969_v51 = vor.u32 %v3968_v14, %v3967_v3  ;;  %v9682_v3 = vld [vmem:[#allocation2 + $0x58] sm:$0x77] }
 0x394   : > { %v3979_v9 = vor.u32 %v3978_v30, %v3975_v8  ;;  %v3982_v30 = vshrl.u32 %v9521_v50, 16  ;;  %v7636_v8 = vld [vmem:[#allocation9 + $0x6c0] sm:$0xf] }
 0x395   : > { %v3782_v31 = vpop.f32.mrf.mxu2  ;;  %v3831_v59 = vpop.f32.mrf.mxu3 }
 0x396   : > { %v3832_v44 = vadd.f32 %v3831_v59, %v3782_v31  ;;  %v3687_v12 = vpop.f32.mrf.mxu0  ;;  %v3736_v36 = vpop.f32.mrf.mxu1  ;;  %v7574_v31 = vld [vmem:[#allocation9 + $0x648] sm:$0xf0]  ;;  %v8274_v59 = vld [vmem:[#allocation9 + $0x6c4] sm:$0xf] }
 0x397   : > { %v3737_v45 = vadd.f32 %v3736_v36, %v3687_v12  ;;  %v7577_v12 = vor.u32 %v8258_v47, %v7574_v31  ;;  %v7641_v22 = vor.u32 %v8274_v59, %v7638_v39  ;;  %v3971_v36 = vrot.slane %v3969_v51, 4  ;;  %v8275_v31 = vld [vmem:[#allocation9 + $0x6c4] sm:$0xf0] }
 0x398   : > { %v9672_v21 = vadd.f32 %v3832_v44, %v9496_v38  ;;  %v3966_v44 = vrot.slane %v3965_v25, 4  ;;  %v3985_v47 = vshll.u32 %v9521_v50, 16  ;;  %v7637_v39 = vor.u32 %v8275_v31, %v7636_v8 }
 0x399   : > { %v9675_v10 = vadd.f32 %v3737_v45, %v9499_v24  ;;  %4366 = vmatmul.bf16.gmra.mxu0 %v4163_v56  ;;  %4415 = vmatmul.bf16.gmra.mxu1 %v4164_v20  ;;  %v3980_v60 = vsel %vm9625_vm14, %v3971_v36, %v3979_v9  ;;  %v3996_v9 = vshrl.u32 %v9682_v3, 16  ;;  %v10520_v36 = vld [vmem:[#allocation25_spill] sm:$0xff] }
 0x39a   : > { %4464 = vmatmul.bf16.gmra.mxu2 %v4163_v56  ;;  %4513 = vmatmul.bf16.gmra.mxu3 %v4164_v20  ;;  %v7572_v56 = vld [vmem:[#allocation9 + $0x640] sm:$0xf]  ;;  %v8259_v20 = vld [vmem:[#allocation9 + $0x644] sm:$0xf0]  ;;  %v3970_v25 = vsel %vm9625_vm14, %v3966_v44, %v3969_v51  ;;  %v4139_v59 = vunpack.c.l.b16 %v3980_v60  ;;  %v3987_v50 = vrot.slane %v3985_v47, 7 }
 0x39b   : > { %5022 = vmatpush.bf16.msrb.mxu2 %v7577_v12  ;;  %5071 = vmatpush.bf16.msrb.mxu3 %v7641_v22  ;;  %v4140_v12 = vunpack.c.h.b16 %v3980_v60  ;;  %v3999_v22 = vshll.u32 %v9682_v3, 16 }
 0x39c   : > { %4973 = vmatpush.bf16.msrb.mxu1 %v7637_v39  ;;  %v8256_v39 = vld [vmem:[#allocation9 + $0x634] sm:$0xf] }
 0x39d   : > { %v3785_v38 = vpop.f32.mrf.mxu2  ;;  %v3834_v43 = vpop.f32.mrf.mxu3  ;;  %v4001_v0 = vrot.slane %v3999_v22, 7 }
 0x39e   : > { %v3835_v49 = vadd.f32 %v3834_v43, %v3785_v38  ;;  %v3689_v6 = vpop.f32.mrf.mxu0  ;;  %v3738_v24 = vpop.f32.mrf.mxu1  ;;  %v4137_v43 = vunpack.c.l.b16 %v3970_v25 }
 0x39f   : > { %v3739_v45 = vadd.f32 %v3738_v24, %v3689_v6  ;;  %v3984_v6 = vrot.slane %v3982_v30, 6 }
 0x3a0   : > { %v9678_v53 = vadd.f32 %v3835_v49, %v9506_v18  ;;  %v7573_v18 = vor.u32 %v8259_v20, %v7572_v56  ;;  %v4138_v49 = vunpack.c.h.b16 %v3970_v25  ;;  %v10521_v56 = vld [vmem:[#allocation24_spill] sm:$0xff]  ;;  %v4165_v8 = vpack.c.b16 %v4139_v59, %v4137_v43 }
 0x3a1   : > { %v9686_v14 = vadd.f32 %v3739_v45, %v9511_v23  ;;  %v3990_v45 = vrot.slane %v10520_v36, 6  ;;  %v3991_v60 = vrot.slane %v10521_v56, 7  ;;  %v3988_v30 = vor.u32 %v3987_v50, %v3984_v6  ;;  %v7630_v59 = vld [vmem:[#allocation9 + $0x6b8] sm:$0xf0] }
 0x3a2   : > { %4924 = vmatpush.bf16.msrb.mxu0 %v7573_v18  ;;  %v4166_v31 = vpack.c.b16 %v4140_v12, %v4138_v49  ;;  %v3998_v18 = vrot.slane %v3996_v9, 6 }
 0x3a3   : > { %v3992_v47 = vor.u32 %v3991_v60, %v3990_v45  ;;  %v9706_v45 = vld [vmem:[#allocation2 + $0x70] sm:$0x77] }
 0x3a4   : > { %v4002_v12 = vor.u32 %v4001_v0, %v3998_v18  ;;  %v4005_v0 = vshrl.u32 %v9541_v40, 16  ;;  %v7628_v18 = vld [vmem:[#allocation9 + $0x6b0] sm:$0xf] }
 0x3a5   : > { %v3787_v23 = vpop.f32.mrf.mxu2  ;;  %v3836_v38 = vpop.f32.mrf.mxu3 }
 0x3a6   : > { %v3837_v24 = vadd.f32 %v3836_v38, %v3787_v23  ;;  %v3692_v51 = vpop.f32.mrf.mxu0  ;;  %v3741_v44 = vpop.f32.mrf.mxu1  ;;  %v7566_v23 = vld [vmem:[#allocation9 + $0x638] sm:$0xf0]  ;;  %v8272_v38 = vld [vmem:[#allocation9 + $0x6b4] sm:$0xf] }
 0x3a7   : > { %v3742_v20 = vadd.f32 %v3741_v44, %v3692_v51  ;;  %v7569_v51 = vor.u32 %v8256_v39, %v7566_v23  ;;  %v7633_v43 = vor.u32 %v8272_v38, %v7630_v59  ;;  %v3994_v44 = vrot.slane %v3992_v47, 4  ;;  %v8273_v23 = vld [vmem:[#allocation9 + $0x6b4] sm:$0xf0] }
 0x3a8   : > { %v9696_v15 = vadd.f32 %v3837_v24, %v9516_v61  ;;  %v3989_v24 = vrot.slane %v3988_v30, 4  ;;  %v4008_v39 = vshll.u32 %v9541_v40, 16  ;;  %v7629_v59 = vor.u32 %v8273_v23, %v7628_v18 }
 0x3a9   : > { %v9699_v25 = vadd.f32 %v3742_v20, %v9519_v4  ;;  %4371 = vmatmul.bf16.gmra.mxu0 %v4165_v8  ;;  %4420 = vmatmul.bf16.gmra.mxu1 %v4166_v31  ;;  %v4003_v50 = vsel %vm9625_vm14, %v3994_v44, %v4002_v12  ;;  %v4019_v12 = vshrl.u32 %v9706_v45, 16  ;;  %v10522_v44 = vld [vmem:[#allocation27_spill] sm:$0xff] }
 0x3aa   : > { %4469 = vmatmul.bf16.gmra.mxu2 %v4165_v8  ;;  %4518 = vmatmul.bf16.gmra.mxu3 %v4166_v31  ;;  %v7564_v8 = vld [vmem:[#allocation9 + $0x630] sm:$0xf]  ;;  %v8257_v31 = vld [vmem:[#allocation9 + $0x634] sm:$0xf0]  ;;  %v3993_v30 = vsel %vm9625_vm14, %v3989_v24, %v3992_v47  ;;  %v4143_v38 = vunpack.c.l.b16 %v4003_v50  ;;  %v4010_v40 = vrot.slane %v4008_v39, 7 }
 0x3ab   : > { %5023 = vmatpush.bf16.msrb.mxu2 %v7569_v51  ;;  %5072 = vmatpush.bf16.msrb.mxu3 %v7633_v43  ;;  %v4144_v51 = vunpack.c.h.b16 %v4003_v50  ;;  %v4022_v43 = vshll.u32 %v9706_v45, 16 }
 0x3ac   : > { %4974 = vmatpush.bf16.msrb.mxu1 %v7629_v59  ;;  %v8254_v59 = vld [vmem:[#allocation9 + $0x624] sm:$0xf] }
 0x3ad   : > { %v3790_v61 = vpop.f32.mrf.mxu2  ;;  %v3839_v49 = vpop.f32.mrf.mxu3  ;;  %v4024_v36 = vrot.slane %v4022_v43, 7 }
 0x3ae   : > { %v3840_v9 = vadd.f32 %v3839_v49, %v3790_v61  ;;  %v3694_v22 = vpop.f32.mrf.mxu0  ;;  %v3743_v4 = vpop.f32.mrf.mxu1  ;;  %v4141_v49 = vunpack.c.l.b16 %v3993_v30 }
 0x3af   : > { %v3744_v20 = vadd.f32 %v3743_v4, %v3694_v22  ;;  %v4007_v22 = vrot.slane %v4005_v0, 6 }
 0x3b0   : > { %v9702_v6 = vadd.f32 %v3840_v9, %v9526_v1  ;;  %v7565_v1 = vor.u32 %v8257_v31, %v7564_v8  ;;  %v4142_v9 = vunpack.c.h.b16 %v3993_v30  ;;  %v10523_v8 = vld [vmem:[#allocation26_spill] sm:$0xff]  ;;  %v4167_v18 = vpack.c.b16 %v4143_v38, %v4141_v49 }
 0x3b1   : > { %v9710_v60 = vadd.f32 %v3744_v20, %v9531_v63  ;;  %v4013_v20 = vrot.slane %v10522_v44, 6  ;;  %v4014_v50 = vrot.slane %v10523_v8, 7  ;;  %v4011_v0 = vor.u32 %v4010_v40, %v4007_v22  ;;  %v7622_v38 = vld [vmem:[#allocation9 + $0x6a8] sm:$0xf0] }
 0x3b2   : > { %4925 = vmatpush.bf16.msrb.mxu0 %v7565_v1  ;;  %v4168_v23 = vpack.c.b16 %v4144_v51, %v4142_v9  ;;  %v4021_v1 = vrot.slane %v4019_v12, 6 }
 0x3b3   : > { %v4015_v39 = vor.u32 %v4014_v50, %v4013_v20  ;;  %v9730_v20 = vld [vmem:[#allocation2 + $0x88] sm:$0x77] }
 0x3b4   : > { %v4025_v51 = vor.u32 %v4024_v36, %v4021_v1  ;;  %v4028_v36 = vshrl.u32 %v9561_v11, 16  ;;  %v7620_v1 = vld [vmem:[#allocation9 + $0x6a0] sm:$0xf] }
 0x3b5   : > { %v3792_v63 = vpop.f32.mrf.mxu2  ;;  %v3841_v61 = vpop.f32.mrf.mxu3 }
 0x3b6   : > { %v3842_v4 = vadd.f32 %v3841_v61, %v3792_v63  ;;  %v3697_v47 = vpop.f32.mrf.mxu0  ;;  %v3746_v24 = vpop.f32.mrf.mxu1  ;;  %v7558_v63 = vld [vmem:[#allocation9 + $0x628] sm:$0xf0]  ;;  %v8270_v61 = vld [vmem:[#allocation9 + $0x6a4] sm:$0xf] }
 0x3b7   : > { %v3747_v31 = vadd.f32 %v3746_v24, %v3697_v47  ;;  %v7561_v47 = vor.u32 %v8254_v59, %v7558_v63  ;;  %v7625_v49 = vor.u32 %v8270_v61, %v7622_v38  ;;  %v4017_v24 = vrot.slane %v4015_v39, 4  ;;  %v8271_v63 = vld [vmem:[#allocation9 + $0x6a4] sm:$0xf0] }
 0x3b8   : > { %v9720_v56 = vadd.f32 %v3842_v4, %v9536_v37  ;;  %v4012_v4 = vrot.slane %v4011_v0, 4  ;;  %v4031_v59 = vshll.u32 %v9561_v11, 16  ;;  %v7621_v38 = vor.u32 %v8271_v63, %v7620_v1 }
 0x3b9   : > { %v9723_v30 = vadd.f32 %v3747_v31, %v9539_v29  ;;  %4376 = vmatmul.bf16.gmra.mxu0 %v4167_v18  ;;  %4425 = vmatmul.bf16.gmra.mxu1 %v4168_v23  ;;  %v4026_v40 = vsel %vm9625_vm14, %v4017_v24, %v4025_v51  ;;  %v4042_v51 = vshrl.u32 %v9730_v20, 16  ;;  %v10524_v24 = vld [vmem:[#allocation29_spill] sm:$0xff] }
 0x3ba   : > { %4474 = vmatmul.bf16.gmra.mxu2 %v4167_v18  ;;  %4523 = vmatmul.bf16.gmra.mxu3 %v4168_v23  ;;  %v7556_v18 = vld [vmem:[#allocation9 + $0x620] sm:$0xf]  ;;  %v8255_v23 = vld [vmem:[#allocation9 + $0x624] sm:$0xf0]  ;;  %v4016_v0 = vsel %vm9625_vm14, %v4012_v4, %v4015_v39  ;;  %v4147_v61 = vunpack.c.l.b16 %v4026_v40  ;;  %v4033_v11 = vrot.slane %v4031_v59, 7 }
 0x3bb   : > { %5024 = vmatpush.bf16.msrb.mxu2 %v7561_v47  ;;  %5073 = vmatpush.bf16.msrb.mxu3 %v7625_v49  ;;  %v4148_v47 = vunpack.c.h.b16 %v4026_v40  ;;  %v4045_v49 = vshll.u32 %v9730_v20, 16 }
 0x3bc   : > { %4975 = vmatpush.bf16.msrb.mxu1 %v7621_v38  ;;  %v8252_v38 = vld [vmem:[#allocation9 + $0x614] sm:$0xf] }
 0x3bd   : > { %v3795_v37 = vpop.f32.mrf.mxu2  ;;  %v3844_v9 = vpop.f32.mrf.mxu3  ;;  %v4047_v44 = vrot.slane %v4045_v49, 7 }
 0x3be   : > { %v3845_v12 = vadd.f32 %v3844_v9, %v3795_v37  ;;  %v3699_v43 = vpop.f32.mrf.mxu0  ;;  %v3748_v29 = vpop.f32.mrf.mxu1  ;;  %v4145_v9 = vunpack.c.l.b16 %v4016_v0 }
 0x3bf   : > { %v3749_v31 = vadd.f32 %v3748_v29, %v3699_v43  ;;  %v4030_v43 = vrot.slane %v4028_v36, 6 }
 0x3c0   : > { %v9726_v22 = vadd.f32 %v3845_v12, %v9546_v33  ;;  %v7557_v33 = vor.u32 %v8255_v23, %v7556_v18  ;;  %v4146_v12 = vunpack.c.h.b16 %v4016_v0  ;;  %v10525_v18 = vld [vmem:[#allocation28_spill] sm:$0xff]  ;;  %v4169_v1 = vpack.c.b16 %v4147_v61, %v4145_v9 }
 0x3c1   : > { %v9734_v50 = vadd.f32 %v3749_v31, %v9551_v32  ;;  %v4036_v31 = vrot.slane %v10524_v24, 6  ;;  %v4037_v40 = vrot.slane %v10525_v18, 7  ;;  %v4034_v36 = vor.u32 %v4033_v11, %v4030_v43  ;;  %v7614_v61 = vld [vmem:[#allocation9 + $0x698] sm:$0xf0] }
 0x3c2   : > { %4926 = vmatpush.bf16.msrb.mxu0 %v7557_v33  ;;  %v4170_v63 = vpack.c.b16 %v4148_v47, %v4146_v12  ;;  %v4044_v33 = vrot.slane %v4042_v51, 6 }
 0x3c3   : > { %v4038_v59 = vor.u32 %v4037_v40, %v4036_v31  ;;  %v9754_v31 = vld [vmem:[#allocation2 + $0xa0] sm:$0x77] }
 0x3c4   : > { %v4048_v47 = vor.u32 %v4047_v44, %v4044_v33  ;;  %v4051_v44 = vshrl.u32 %v9581_v52, 16  ;;  %v7612_v33 = vld [vmem:[#allocation9 + $0x690] sm:$0xf] }
 0x3c5   : > { %v3797_v32 = vpop.f32.mrf.mxu2  ;;  %v3846_v37 = vpop.f32.mrf.mxu3 }
 0x3c6   : > { %v3847_v29 = vadd.f32 %v3846_v37, %v3797_v32  ;;  %v3702_v39 = vpop.f32.mrf.mxu0  ;;  %v3751_v4 = vpop.f32.mrf.mxu1  ;;  %v7550_v32 = vld [vmem:[#allocation9 + $0x618] sm:$0xf0]  ;;  %v8268_v37 = vld [vmem:[#allocation9 + $0x694] sm:$0xf] }
 0x3c7   : > { %v3752_v23 = vadd.f32 %v3751_v4, %v3702_v39  ;;  %v7553_v39 = vor.u32 %v8252_v38, %v7550_v32  ;;  %v7617_v9 = vor.u32 %v8268_v37, %v7614_v61  ;;  %v4040_v4 = vrot.slane %v4038_v59, 4  ;;  %v8269_v32 = vld [vmem:[#allocation9 + $0x694] sm:$0xf0] }
 0x3c8   : > { %v9744_v8 = vadd.f32 %v3847_v29, %v9556_v16  ;;  %v4035_v29 = vrot.slane %v4034_v36, 4  ;;  %v4054_v38 = vshll.u32 %v9581_v52, 16  ;;  %v7613_v61 = vor.u32 %v8269_v32, %v7612_v33 }
 0x3c9   : > { %v9747_v0 = vadd.f32 %v3752_v23, %v9559_v13  ;;  %4381 = vmatmul.bf16.gmra.mxu0 %v4169_v1  ;;  %4430 = vmatmul.bf16.gmra.mxu1 %v4170_v63  ;;  %v4049_v11 = vsel %vm9625_vm14, %v4040_v4, %v4048_v47  ;;  %v4065_v47 = vshrl.u32 %v9754_v31, 16  ;;  %v10526_v4 = vld [vmem:[#allocation31_spill] sm:$0xff] }
 0x3ca   : > { %4479 = vmatmul.bf16.gmra.mxu2 %v4169_v1  ;;  %4528 = vmatmul.bf16.gmra.mxu3 %v4170_v63  ;;  %v7548_v1 = vld [vmem:[#allocation9 + $0x610] sm:$0xf]  ;;  %v8253_v63 = vld [vmem:[#allocation9 + $0x614] sm:$0xf0]  ;;  %v4039_v36 = vsel %vm9625_vm14, %v4035_v29, %v4038_v59  ;;  %v4151_v37 = vunpack.c.l.b16 %v4049_v11  ;;  %v4056_v52 = vrot.slane %v4054_v38, 7 }
 0x3cb   : > { %5025 = vmatpush.bf16.msrb.mxu2 %v7553_v39  ;;  %5074 = vmatpush.bf16.msrb.mxu3 %v7617_v9  ;;  %v4152_v39 = vunpack.c.h.b16 %v4049_v11  ;;  %v4068_v9 = vshll.u32 %v9754_v31, 16 }
 0x3cc   : > { %4976 = vmatpush.bf16.msrb.mxu1 %v7613_v61  ;;  %v8250_v61 = vld [vmem:[#allocation9 + $0x604] sm:$0xf] }
 0x3cd   : > { %v3800_v16 = vpop.f32.mrf.mxu2  ;;  %v3849_v12 = vpop.f32.mrf.mxu3  ;;  %v4070_v24 = vrot.slane %v4068_v9, 7 }
 0x3ce   : > { %v3850_v51 = vadd.f32 %v3849_v12, %v3800_v16  ;;  %v3704_v49 = vpop.f32.mrf.mxu0  ;;  %v3753_v13 = vpop.f32.mrf.mxu1  ;;  %v4149_v12 = vunpack.c.l.b16 %v4039_v36 }
 0x3cf   : > { %v3754_v23 = vadd.f32 %v3753_v13, %v3704_v49  ;;  %v4053_v49 = vrot.slane %v4051_v44, 6 }
 0x3d0   : > { %v9750_v43 = vadd.f32 %v3850_v51, %v9566_v7  ;;  %v7549_v7 = vor.u32 %v8253_v63, %v7548_v1  ;;  %v4150_v51 = vunpack.c.h.b16 %v4039_v36  ;;  %v10527_v1 = vld [vmem:[#allocation30_spill] sm:$0xff]  ;;  %v4171_v33 = vpack.c.b16 %v4151_v37, %v4149_v12 }
 0x3d1   : > { %v9758_v40 = vadd.f32 %v3754_v23, %v9571_v58  ;;  %v4059_v23 = vrot.slane %v10526_v4, 6  ;;  %v4060_v11 = vrot.slane %v10527_v1, 7  ;;  %v4057_v44 = vor.u32 %v4056_v52, %v4053_v49  ;;  %v7606_v37 = vld [vmem:[#allocation9 + $0x688] sm:$0xf0]  ;;  %v10529_v4 = vld [vmem:[#allocation35_spill] sm:$0xff] }
 0x3d2   : > { %4927 = vmatpush.bf16.msrb.mxu0 %v7549_v7  ;;  %v4172_v32 = vpack.c.b16 %v4152_v39, %v4150_v51  ;;  %v4067_v7 = vrot.slane %v4065_v47, 6 }
 0x3d3   : > { %v4061_v38 = vor.u32 %v4060_v11, %v4059_v23  ;;  %v9778_v23 = vld [vmem:[#allocation2 + $0xb8] sm:$0x77] }
 0x3d4   : > { %v4071_v39 = vor.u32 %v4070_v24, %v4067_v7  ;;  %v4074_v24 = vshrl.u32 %v9601_v57, 16  ;;  %v7604_v7 = vld [vmem:[#allocation9 + $0x680] sm:$0xf] }
 0x3d5   : > { %v3802_v58 = vpop.f32.mrf.mxu2  ;;  %v3851_v16 = vpop.f32.mrf.mxu3 }
 0x3d6   : > { %v3852_v13 = vadd.f32 %v3851_v16, %v3802_v58  ;;  %v3707_v59 = vpop.f32.mrf.mxu0  ;;  %v3756_v29 = vpop.f32.mrf.mxu1  ;;  %v7542_v58 = vld [vmem:[#allocation9 + $0x608] sm:$0xf0]  ;;  %v8266_v16 = vld [vmem:[#allocation9 + $0x684] sm:$0xf] }
 0x3d7   : > { %v3757_v63 = vadd.f32 %v3756_v29, %v3707_v59  ;;  %v7545_v59 = vor.u32 %v8250_v61, %v7542_v58  ;;  %v7609_v12 = vor.u32 %v8266_v16, %v7606_v37  ;;  %v4063_v29 = vrot.slane %v4061_v38, 4  ;;  %v8267_v58 = vld [vmem:[#allocation9 + $0x684] sm:$0xf0] }
 0x3d8   : > { %v9768_v18 = vadd.f32 %v3852_v13, %v9576_v42  ;;  %v4058_v13 = vrot.slane %v4057_v44, 4  ;;  %v4077_v61 = vshll.u32 %v9601_v57, 16  ;;  %v7605_v37 = vor.u32 %v8267_v58, %v7604_v7 }
 0x3d9   : > { %v9771_v36 = vadd.f32 %v3757_v63, %v9579_v2  ;;  %4386 = vmatmul.bf16.gmra.mxu0 %v4171_v33  ;;  %4435 = vmatmul.bf16.gmra.mxu1 %v4172_v32  ;;  %v4072_v52 = vsel %vm9625_vm14, %v4063_v29, %v4071_v39  ;;  %v4088_v39 = vshrl.u32 %v9778_v23, 16  ;;  %v4082_v29 = vrot.slane %v10502_v35, 6 }
 0x3da   : > { %4484 = vmatmul.bf16.gmra.mxu2 %v4171_v33  ;;  %4533 = vmatmul.bf16.gmra.mxu3 %v4172_v32  ;;  %v7540_v33 = vld [vmem:[#allocation9 + $0x600] sm:$0xf]  ;;  %v8251_v32 = vld [vmem:[#allocation9 + $0x604] sm:$0xf0]  ;;  %v4062_v44 = vsel %vm9625_vm14, %v4058_v13, %v4061_v38  ;;  %v4155_v16 = vunpack.c.l.b16 %v4072_v52  ;;  %v4079_v57 = vrot.slane %v4077_v61, 7 }
 0x3db   : > { %5026 = vmatpush.bf16.msrb.mxu2 %v7545_v59  ;;  %5075 = vmatpush.bf16.msrb.mxu3 %v7609_v12  ;;  %v4156_v59 = vunpack.c.h.b16 %v4072_v52  ;;  %v4091_v12 = vshll.u32 %v9778_v23, 16 }
 0x3dc   : > { %4977 = vmatpush.bf16.msrb.mxu1 %v7605_v37  ;;  %v8304_v37 = vld [vmem:[#allocation9 + $0x774] sm:$0xf] }
 0x3dd   : > { %v3805_v42 = vpop.f32.mrf.mxu2  ;;  %v3854_v51 = vpop.f32.mrf.mxu3  ;;  %v4093_v1 = vrot.slane %v4091_v12, 7 }
 0x3de   : > { %v3855_v47 = vadd.f32 %v3854_v51, %v3805_v42  ;;  %v3709_v9 = vpop.f32.mrf.mxu0  ;;  %v3758_v2 = vpop.f32.mrf.mxu1  ;;  %v4153_v51 = vunpack.c.l.b16 %v4062_v44 }
 0x3df   : > { %v3759_v63 = vadd.f32 %v3758_v2, %v3709_v9  ;;  %v4076_v9 = vrot.slane %v4074_v24, 6 }
 0x3e0   : > { %v9774_v49 = vadd.f32 %v3855_v47, %v9586_v19  ;;  %v7541_v19 = vor.u32 %v8251_v32, %v7540_v33  ;;  %v4154_v47 = vunpack.c.h.b16 %v4062_v44  ;;  %v4173_v32 = vpack.c.b16 %v4155_v16, %v4153_v51  ;;  %v7798_v16 = vld [vmem:[#allocation9 + $0x7f8] sm:$0xf0] }
 0x3e1   : > { %v9782_v11 = vadd.f32 %v3759_v63, %v9591_v41  ;;  %v10528_v63 = vld [vmem:[#allocation32_spill] sm:$0xff]  ;;  %v4080_v24 = vor.u32 %v4079_v57, %v4076_v9 }
 0x3e2   : > { %4928 = vmatpush.bf16.msrb.mxu0 %v7541_v19  ;;  %v4083_v52 = vrot.slane %v10528_v63, 7  ;;  %v4174_v7 = vpack.c.b16 %v4156_v59, %v4154_v47  ;;  %v4090_v19 = vrot.slane %v4088_v39, 6 }
 0x3e4   : > { %v4084_v61 = vor.u32 %v4083_v52, %v4082_v29  ;;  %v4094_v59 = vor.u32 %v4093_v1, %v4090_v19  ;;  %v10531_v29 = vld [vmem:[#allocation37_spill] sm:$0xff]  ;;  %v7732_v1 = vld [vmem:[#allocation9 + $0x770] sm:$0xf] }
 0x3e5   : > { %v3807_v41 = vpop.f32.mrf.mxu2  ;;  %v3856_v42 = vpop.f32.mrf.mxu3  ;;  %v7796_v19 = vld [vmem:[#allocation9 + $0x7f0] sm:$0xf] }
 0x3e6   : > { %v3857_v2 = vadd.f32 %v3856_v42, %v3807_v41  ;;  %v3712_v38 = vpop.f32.mrf.mxu0  ;;  %v3761_v13 = vpop.f32.mrf.mxu1  ;;  %v7734_v41 = vld [vmem:[#allocation9 + $0x778] sm:$0xf0]  ;;  %v8320_v42 = vld [vmem:[#allocation9 + $0x7f4] sm:$0xf] }
 0x3e7   : > { %v3762_v33 = vadd.f32 %v3761_v13, %v3712_v38  ;;  %v7737_v38 = vor.u32 %v8304_v37, %v7734_v41  ;;  %v7801_v51 = vor.u32 %v8320_v42, %v7798_v16  ;;  %v4086_v13 = vrot.slane %v4084_v61, 4 }
 0x3e8   : > { %v9792_v58 = vadd.f32 %v3857_v2, %v9596_v62  ;;  %v4081_v2 = vrot.slane %v4080_v24, 4  ;;  %v8321_v24 = vld [vmem:[#allocation9 + $0x7f4] sm:$0xf0] }
 0x3e9   : > { %v9795_v44 = vadd.f32 %v3762_v33, %v10529_v4  ;;  %4391 = vmatmul.bf16.gmra.mxu0 %v4173_v32  ;;  %4440 = vmatmul.bf16.gmra.mxu1 %v4174_v7  ;;  %v4095_v57 = vsel %vm9625_vm14, %v4086_v13, %v4094_v59  ;;  %v7797_v16 = vor.u32 %v8321_v24, %v7796_v19  ;;  %v9813_v19 = vld [vmem:[#allocation2] sm:$0x88] }
 0x3ea   : > { %4489 = vmatmul.bf16.gmra.mxu2 %v4173_v32  ;;  %4538 = vmatmul.bf16.gmra.mxu3 %v4174_v7  ;;  %v10530_v32 = vld [vmem:[#allocation36_spill] sm:$0xff]  ;;  %v4085_v37 = vsel %vm9625_vm14, %v4081_v2, %v4084_v61  ;;  %v4159_v42 = vunpack.c.l.b16 %v4095_v57  ;;  %v8475_v2 = vld [vmem:[#allocation2 + $0x8] sm:$0xff] }
 0x3eb   : > { %5651 = vmatpush.bf16.msra.mxu2 %v7737_v38  ;;  %5700 = vmatpush.bf16.msra.mxu3 %v7801_v51  ;;  %v8305_v7 = vld [vmem:[#allocation9 + $0x774] sm:$0xf0]  ;;  %v4160_v38 = vunpack.c.h.b16 %v4095_v57  ;;  %v4610_v57 = vrot.slane %v8475_v2, 7  ;;  %v8303_v2 = vld [vmem:[#allocation9 + $0x764] sm:$0xf0] }
 0x3ec   : > { %v7733_v41 = vor.u32 %v8305_v7, %v7732_v1  ;;  %5602 = vmatpush.bf16.msra.mxu1 %v7797_v16  ;;  %v7726_v1 = vld [vmem:[#allocation9 + $0x768] sm:$0xf0]  ;;  %v8318_v7 = vld [vmem:[#allocation9 + $0x7e4] sm:$0xf] }
 0x3ed   : > { %v3810_v62 = vpop.f32.mrf.mxu2  ;;  %v3859_v47 = vpop.f32.mrf.mxu3 }
 0x3ee   : > { %v3860_v39 = vadd.f32 %v3859_v47, %v3810_v62  ;;  %v3714_v12 = vpop.f32.mrf.mxu0  ;;  %v3763_v4 = vpop.f32.mrf.mxu1  ;;  %5553 = vmatpush.bf16.msra.mxu0 %v7733_v41  ;;  %v4157_v47 = vunpack.c.l.b16 %v4085_v37  ;;  %v7790_v41 = vld [vmem:[#allocation9 + $0x7e8] sm:$0xf0] }
 0x3ef   : > { %v3764_v33 = vadd.f32 %v3763_v4, %v3714_v12 }
 0x3f0   : > { %v9798_v9 = vadd.f32 %v3860_v39, %v10530_v32  ;;  %v4158_v39 = vunpack.c.h.b16 %v4085_v37 }
 0x3f1   : > { %v9803_v52 = vadd.f32 %v3764_v33, %v10531_v29  ;;  %v4175_v33 = vpack.c.b16 %v4159_v42, %v4157_v47  ;;  %v8302_v29 = vld [vmem:[#allocation9 + $0x764] sm:$0xf]  ;;  %v7793_v42 = vor.u32 %v8318_v7, %v7790_v41  ;;  %v7530_v47 = vrot.slane %v9813_v19, 11 }
 0x3f2   : > { %v4176_v32 = vpack.c.b16 %v4160_v38, %v4158_v39  ;;  %v7729_v37 = vor.u32 %v8302_v29, %v7726_v1  ;;  %v4612_v39 = vrot.slane %v4610_v57, 4  ;;  %v7788_v29 = vld [vmem:[#allocation9 + $0x7e0] sm:$0xf] }
 0x3f3   : > { %5701 = vmatpush.bf16.msra.mxu3 %v7793_v42  ;;  %v4611_v1 = vsel %vm9817_vm1, %v7530_v47, %v4610_v57  ;;  %v8477_v47 = vld [vmem:[#allocation2 + $0x20] sm:$0xff] }
 0x3f4   : > { %5652 = vmatpush.bf16.msra.mxu2 %v7729_v37  ;;  %v8319_v37 = vld [vmem:[#allocation9 + $0x7e4] sm:$0xf0] }
 0x3f5   : > { %v3812_v51 = vpop.f32.mrf.mxu2  ;;  %v3861_v62 = vpop.f32.mrf.mxu3  ;;  %v7789_v42 = vor.u32 %v8319_v37, %v7788_v29  ;;  %v8316_v29 = vld [vmem:[#allocation9 + $0x7d4] sm:$0xf]  ;;  %v7782_v37 = vld [vmem:[#allocation9 + $0x7d8] sm:$0xf0] }
 0x3f6   : > { %v3862_v59 = vadd.f32 %v3861_v62, %v3812_v51  ;;  %v3717_v12 = vpop.f32.mrf.mxu0  ;;  %v3766_v4 = vpop.f32.mrf.mxu1 }
 0x3f7   : > { %v3767_v13 = vadd.f32 %v3766_v4, %v3717_v12  ;;  %5603 = vmatpush.bf16.msra.mxu1 %v7789_v42 }
 0x3f8   : > { %v9808_v5 = vadd.f32 %v3862_v59, %v9620_v28  ;;  %v8476_v28 = vld [vmem:[#allocation2 + $0x10] sm:$0x77] }
 0x3f9   : > { %v9811_v61 = vadd.f32 %v3767_v13, %v9623_v27  ;;  %4396 = vmatmul.bf16.gmra.mxu0 %v4175_v33  ;;  %4445 = vmatmul.bf16.gmra.mxu1 %v4176_v32  ;;  %v4613_v24 = vrot.slane %v8476_v28, 7 }
 0x3fa   : > { %4494 = vmatmul.bf16.gmra.mxu2 %v4175_v33  ;;  %4543 = vmatmul.bf16.gmra.mxu3 %v4176_v32  ;;  %v7724_v32 = vld [vmem:[#allocation9 + $0x760] sm:$0xf] }
 0x3fb   : > { %v4614_v13 = vsel %vm9817_vm1, %v4612_v39, %v4613_v24  ;;  %v7725_v7 = vor.u32 %v8303_v2, %v7724_v32  ;;  %v8300_v32 = vld [vmem:[#allocation9 + $0x754] sm:$0xf]  ;;  %v7718_v2 = vld [vmem:[#allocation9 + $0x758] sm:$0xf0] }
 0x3fc   : > { %v4699_v41 = vunpack.c.l.b16 %v4614_v13  ;;  %v4700_v28 = vunpack.c.h.b16 %v4614_v13  ;;  %v4617_v13 = vrot.slane %v8477_v47, 7  ;;  %v8301_v47 = vld [vmem:[#allocation9 + $0x754] sm:$0xf0] }
 0x3fd   : > { %v3815_v27 = vpop.f32.mrf.mxu2  ;;  %v3864_v38 = vpop.f32.mrf.mxu3  ;;  %5554 = vmatpush.bf16.msra.mxu0 %v7725_v7  ;;  %v7721_v7 = vor.u32 %v8300_v32, %v7718_v2  ;;  %v7780_v32 = vld [vmem:[#allocation9 + $0x7d0] sm:$0xf] }
 0x3fe   : > { %v3865_v16 = vadd.f32 %v3864_v38, %v3815_v27  ;;  %v3719_v51 = vpop.f32.mrf.mxu0  ;;  %v3768_v62 = vpop.f32.mrf.mxu1  ;;  %v4697_v38 = vunpack.c.l.b16 %v4611_v1 }
 0x3ff   : > { %v3769_v59 = vadd.f32 %v3768_v62, %v3719_v51  ;;  %5653 = vmatpush.bf16.msra.mxu2 %v7721_v7  ;;  %v8317_v7 = vld [vmem:[#allocation9 + $0x7d4] sm:$0xf0] }
 0x400   : > { %v9822_v4 = vadd.f32 %v3865_v16, %v9630_v26  ;;  %v4698_v16 = vunpack.c.h.b16 %v4611_v1  ;;  %v4729_v39 = vpack.c.b16 %v4699_v41, %v4697_v38  ;;  %v9837_v1 = vld [vmem:[#allocation2 + $0x18] sm:$0x88]  ;;  %v10534_v41 = vld [vmem:[#allocation38_spill] sm:$0xff] }
 0x401   : > { %v9827_v33 = vadd.f32 %v3769_v59, %v9637_v55 }
 0x402   : > { %v4730_v59 = vpack.c.b16 %v4700_v28, %v4698_v16  ;;  %v4620_v28 = vrot.slane %v10534_v41, 7  ;;  %v7531_v16 = vrot.slane %v9837_v1, 11 }
 0x404   : > { %v4618_v2 = vsel %vm9817_vm1, %v7531_v16, %v4617_v13  ;;  %v8478_v16 = vld [vmem:[#allocation2 + $0x38] sm:$0xff] }
 0x405   : > { %v3817_v26 = vpop.f32.mrf.mxu2  ;;  %v3866_v27 = vpop.f32.mrf.mxu3 }
 0x406   : > { %v3867_v24 = vadd.f32 %v3866_v27, %v3817_v26  ;;  %v4362_v55 = vpop.f32.mrf.mxu0  ;;  %v4411_v51 = vpop.f32.mrf.mxu1 }
 0x407   : > { %v4412_v62 = vadd.f32 %v4411_v51, %v4362_v55 }
 0x408   : > { %v9832_v63 = vadd.f32 %v3867_v24, %v9648_v34  ;;  %v7785_v34 = vor.u32 %v8316_v29, %v7782_v37  ;;  %v4619_v24 = vrot.slane %v4617_v13, 4 }
 0x409   : > { %v9835_v57 = vadd.f32 %v4412_v62, %v9651_v54  ;;  %4929 = vmatmul.bf16.vlgmr.msrb.gmra.mxu0 %v4729_v39  ;;  %4978 = vmatmul.bf16.vlgmr.msrb.gmra.mxu1 %v4730_v59 }
 0x40a   : > { %5027 = vmatmul.bf16.vlgmr.msrb.gmra.mxu2 %v4729_v39  ;;  %5076 = vmatmul.bf16.vlgmr.msrb.gmra.mxu3 %v4730_v59  ;;  %v4621_v62 = vsel %vm9817_vm1, %v4619_v24, %v4620_v28  ;;  %v7716_v59 = vld [vmem:[#allocation9 + $0x750] sm:$0xf] }
 0x40b   : > { %5702 = vmatpush.bf16.msra.mxu3 %v7785_v34  ;;  %v7717_v29 = vor.u32 %v8301_v47, %v7716_v59  ;;  %v4703_v37 = vunpack.c.l.b16 %v4621_v62  ;;  %v4704_v41 = vunpack.c.h.b16 %v4621_v62  ;;  %v7781_v34 = vor.u32 %v8317_v7, %v7780_v32  ;;  %v8298_v59 = vld [vmem:[#allocation9 + $0x744] sm:$0xf]  ;;  %v7710_v47 = vld [vmem:[#allocation9 + $0x748] sm:$0xf0] }
 0x40c   : > { %v4624_v62 = vrot.slane %v8478_v16, 7  ;;  %v8314_v32 = vld [vmem:[#allocation9 + $0x7c4] sm:$0xf]  ;;  %v7774_v7 = vld [vmem:[#allocation9 + $0x7c8] sm:$0xf0] }
 0x40d   : > { %v4460_v42 = vpop.f32.mrf.mxu2  ;;  %v4509_v26 = vpop.f32.mrf.mxu3  ;;  %5555 = vmatpush.bf16.msra.mxu0 %v7717_v29  ;;  %5604 = vmatpush.bf16.msra.mxu1 %v7781_v34  ;;  %v7713_v29 = vor.u32 %v8298_v59, %v7710_v47  ;;  %v8315_v47 = vld [vmem:[#allocation9 + $0x7c4] sm:$0xf0] }
 0x40e   : > { %v4510_v54 = vadd.f32 %v4509_v26, %v4460_v42  ;;  %v4364_v27 = vpop.f32.mrf.mxu0  ;;  %v4413_v38 = vpop.f32.mrf.mxu1  ;;  %v4701_v26 = vunpack.c.l.b16 %v4618_v2 }
 0x40f   : > { %v4414_v55 = vadd.f32 %v4413_v38, %v4364_v27  ;;  %5654 = vmatpush.bf16.msra.mxu2 %v7713_v29 }
 0x410   : > { %v9842_v51 = vadd.f32 %v4510_v54, %v9654_v46  ;;  %v4702_v54 = vunpack.c.h.b16 %v4618_v2  ;;  %v4731_v24 = vpack.c.b16 %v4703_v37, %v4701_v26  ;;  %v9857_v2 = vld [vmem:[#allocation2 + $0x30] sm:$0x88]  ;;  %v4627_v37 = vrot.slane %v9658_v48, 7 }
 0x411   : > { %v9847_v39 = vadd.f32 %v4414_v55, %v9662_v17  ;;  %v7532_v26 = vrot.slane %v9857_v2, 11 }
 0x412   : > { %v4732_v55 = vpack.c.b16 %v4704_v41, %v4702_v54  ;;  %v4626_v54 = vrot.slane %v4624_v62, 4 }
 0x413   : > { %v4625_v16 = vsel %vm9817_vm1, %v7532_v26, %v4624_v62  ;;  %v8479_v26 = vld [vmem:[#allocation2 + $0x50] sm:$0xff] }
 0x415   : > { %v4462_v46 = vpop.f32.mrf.mxu2  ;;  %v4511_v42 = vpop.f32.mrf.mxu3 }
 0x416   : > { %v4512_v28 = vadd.f32 %v4511_v42, %v4462_v46  ;;  %v4367_v17 = vpop.f32.mrf.mxu0  ;;  %v4416_v27 = vpop.f32.mrf.mxu1 }
 0x417   : > { %v4417_v38 = vadd.f32 %v4416_v27, %v4367_v17  ;;  %v4628_v27 = vsel %vm9817_vm1, %v4626_v54, %v4627_v37 }
 0x418   : > { %v9852_v35 = vadd.f32 %v4512_v28, %v9672_v21  ;;  %v7777_v21 = vor.u32 %v8314_v32, %v7774_v7  ;;  %v4707_v32 = vunpack.c.l.b16 %v4628_v27  ;;  %v4708_v29 = vunpack.c.h.b16 %v4628_v27 }
 0x419   : > { %v9855_v13 = vadd.f32 %v4417_v38, %v9675_v10  ;;  %4934 = vmatmul.bf16.gmra.mxu0 %v4731_v24  ;;  %4983 = vmatmul.bf16.gmra.mxu1 %v4732_v55  ;;  %v7708_v38 = vld [vmem:[#allocation9 + $0x740] sm:$0xf]  ;;  %v4631_v27 = vrot.slane %v8479_v26, 7 }
 0x41a   : > { %5032 = vmatmul.bf16.gmra.mxu2 %v4731_v24  ;;  %5081 = vmatmul.bf16.gmra.mxu3 %v4732_v55  ;;  %v8299_v24 = vld [vmem:[#allocation9 + $0x744] sm:$0xf0]  ;;  %v7772_v55 = vld [vmem:[#allocation9 + $0x7c0] sm:$0xf] }
 0x41b   : > { %5703 = vmatpush.bf16.msra.mxu3 %v7777_v21  ;;  %v7709_v59 = vor.u32 %v8299_v24, %v7708_v38  ;;  %v7773_v7 = vor.u32 %v8315_v47, %v7772_v55  ;;  %v8296_v38 = vld [vmem:[#allocation9 + $0x734] sm:$0xf]  ;;  %v7702_v24 = vld [vmem:[#allocation9 + $0x738] sm:$0xf0] }
 0x41c   : > { %v8312_v55 = vld [vmem:[#allocation9 + $0x7b4] sm:$0xf]  ;;  %v7766_v47 = vld [vmem:[#allocation9 + $0x7b8] sm:$0xf0] }
 0x41d   : > { %v4465_v41 = vpop.f32.mrf.mxu2  ;;  %v4514_v34 = vpop.f32.mrf.mxu3  ;;  %5556 = vmatpush.bf16.msra.mxu0 %v7709_v59  ;;  %5605 = vmatpush.bf16.msra.mxu1 %v7773_v7  ;;  %v7705_v59 = vor.u32 %v8296_v38, %v7702_v24  ;;  %v8313_v24 = vld [vmem:[#allocation9 + $0x7b4] sm:$0xf0] }
 0x41e   : > { %v4515_v10 = vadd.f32 %v4514_v34, %v4465_v41  ;;  %v4369_v46 = vpop.f32.mrf.mxu0  ;;  %v4418_v42 = vpop.f32.mrf.mxu1  ;;  %v4705_v41 = vunpack.c.l.b16 %v4625_v16  ;;  %v4706_v34 = vunpack.c.h.b16 %v4625_v16  ;;  %v9877_v16 = vld [vmem:[#allocation2 + $0x48] sm:$0x88] }
 0x41f   : > { %v4419_v28 = vadd.f32 %v4418_v42, %v4369_v46  ;;  %5655 = vmatpush.bf16.msra.mxu2 %v7705_v59 }
 0x420   : > { %v9862_v17 = vadd.f32 %v4515_v10, %v9678_v53  ;;  %v4733_v42 = vpack.c.b16 %v4707_v32, %v4705_v41  ;;  %v4734_v54 = vpack.c.b16 %v4708_v29, %v4706_v34  ;;  %v4634_v32 = vrot.slane %v9682_v3, 7 }
 0x421   : > { %v9867_v48 = vadd.f32 %v4419_v28, %v9686_v14  ;;  %v7533_v41 = vrot.slane %v9877_v16, 11  ;;  %v4633_v34 = vrot.slane %v4631_v27, 4 }
 0x423   : > { %v4632_v26 = vsel %vm9817_vm1, %v7533_v41, %v4631_v27  ;;  %v8480_v41 = vld [vmem:[#allocation2 + $0x68] sm:$0xff] }
 0x425   : > { %v4467_v53 = vpop.f32.mrf.mxu2  ;;  %v4516_v21 = vpop.f32.mrf.mxu3 }
 0x426   : > { %v4517_v37 = vadd.f32 %v4516_v21, %v4467_v53  ;;  %v4372_v14 = vpop.f32.mrf.mxu0  ;;  %v4421_v10 = vpop.f32.mrf.mxu1 }
 0x427   : > { %v4422_v46 = vadd.f32 %v4421_v10, %v4372_v14  ;;  %v4635_v10 = vsel %vm9817_vm1, %v4633_v34, %v4634_v32 }
 0x428   : > { %v9872_v28 = vadd.f32 %v4517_v37, %v9696_v15  ;;  %v7769_v15 = vor.u32 %v8312_v55, %v7766_v47  ;;  %v4711_v55 = vunpack.c.l.b16 %v4635_v10  ;;  %v4712_v59 = vunpack.c.h.b16 %v4635_v10 }
 0x429   : > { %v9875_v62 = vadd.f32 %v4422_v46, %v9699_v25  ;;  %4939 = vmatmul.bf16.gmra.mxu0 %v4733_v42  ;;  %4988 = vmatmul.bf16.gmra.mxu1 %v4734_v54  ;;  %v7700_v46 = vld [vmem:[#allocation9 + $0x730] sm:$0xf]  ;;  %v4638_v10 = vrot.slane %v8480_v41, 7 }
 0x42a   : > { %5037 = vmatmul.bf16.gmra.mxu2 %v4733_v42  ;;  %5086 = vmatmul.bf16.gmra.mxu3 %v4734_v54  ;;  %v8297_v42 = vld [vmem:[#allocation9 + $0x734] sm:$0xf0]  ;;  %v7764_v54 = vld [vmem:[#allocation9 + $0x7b0] sm:$0xf] }
 0x42b   : > { %5704 = vmatpush.bf16.msra.mxu3 %v7769_v15  ;;  %v7701_v38 = vor.u32 %v8297_v42, %v7700_v46  ;;  %v7765_v47 = vor.u32 %v8313_v24, %v7764_v54  ;;  %v8294_v46 = vld [vmem:[#allocation9 + $0x724] sm:$0xf]  ;;  %v7694_v42 = vld [vmem:[#allocation9 + $0x728] sm:$0xf0] }
 0x42c   : > { %v8310_v54 = vld [vmem:[#allocation9 + $0x7a4] sm:$0xf]  ;;  %v7758_v24 = vld [vmem:[#allocation9 + $0x7a8] sm:$0xf0] }
 0x42d   : > { %v4470_v29 = vpop.f32.mrf.mxu2  ;;  %v4519_v7 = vpop.f32.mrf.mxu3  ;;  %5557 = vmatpush.bf16.msra.mxu0 %v7701_v38  ;;  %5606 = vmatpush.bf16.msra.mxu1 %v7765_v47  ;;  %v7697_v38 = vor.u32 %v8294_v46, %v7694_v42  ;;  %v8311_v42 = vld [vmem:[#allocation9 + $0x7a4] sm:$0xf0] }
 0x42e   : > { %v4520_v25 = vadd.f32 %v4519_v7, %v4470_v29  ;;  %v4374_v53 = vpop.f32.mrf.mxu0  ;;  %v4423_v21 = vpop.f32.mrf.mxu1  ;;  %v4709_v29 = vunpack.c.l.b16 %v4632_v26  ;;  %v4710_v7 = vunpack.c.h.b16 %v4632_v26  ;;  %v9897_v26 = vld [vmem:[#allocation2 + $0x60] sm:$0x88] }
 0x42f   : > { %v4424_v37 = vadd.f32 %v4423_v21, %v4374_v53  ;;  %5656 = vmatpush.bf16.msra.mxu2 %v7697_v38 }
 0x430   : > { %v9882_v14 = vadd.f32 %v4520_v25, %v9702_v6  ;;  %v4735_v21 = vpack.c.b16 %v4711_v55, %v4709_v29  ;;  %v4736_v34 = vpack.c.b16 %v4712_v59, %v4710_v7  ;;  %v4641_v55 = vrot.slane %v9706_v45, 7 }
 0x431   : > { %v9887_v3 = vadd.f32 %v4424_v37, %v9710_v60  ;;  %v7534_v29 = vrot.slane %v9897_v26, 11  ;;  %v4640_v7 = vrot.slane %v4638_v10, 4 }
 0x433   : > { %v4639_v41 = vsel %vm9817_vm1, %v7534_v29, %v4638_v10  ;;  %v8481_v29 = vld [vmem:[#allocation2 + $0x80] sm:$0xff] }
 0x435   : > { %v4472_v6 = vpop.f32.mrf.mxu2  ;;  %v4521_v15 = vpop.f32.mrf.mxu3 }
 0x436   : > { %v4522_v32 = vadd.f32 %v4521_v15, %v4472_v6  ;;  %v4377_v60 = vpop.f32.mrf.mxu0  ;;  %v4426_v25 = vpop.f32.mrf.mxu1 }
 0x437   : > { %v4427_v53 = vadd.f32 %v4426_v25, %v4377_v60  ;;  %v4642_v25 = vsel %vm9817_vm1, %v4640_v7, %v4641_v55 }
 0x438   : > { %v9892_v37 = vadd.f32 %v4522_v32, %v9720_v56  ;;  %v7761_v56 = vor.u32 %v8310_v54, %v7758_v24  ;;  %v4715_v54 = vunpack.c.l.b16 %v4642_v25  ;;  %v4716_v38 = vunpack.c.h.b16 %v4642_v25 }
 0x439   : > { %v9895_v27 = vadd.f32 %v4427_v53, %v9723_v30  ;;  %4944 = vmatmul.bf16.gmra.mxu0 %v4735_v21  ;;  %4993 = vmatmul.bf16.gmra.mxu1 %v4736_v34  ;;  %v7692_v53 = vld [vmem:[#allocation9 + $0x720] sm:$0xf]  ;;  %v4645_v25 = vrot.slane %v8481_v29, 7 }
 0x43a   : > { %5042 = vmatmul.bf16.gmra.mxu2 %v4735_v21  ;;  %5091 = vmatmul.bf16.gmra.mxu3 %v4736_v34  ;;  %v8295_v21 = vld [vmem:[#allocation9 + $0x724] sm:$0xf0]  ;;  %v7756_v34 = vld [vmem:[#allocation9 + $0x7a0] sm:$0xf] }
 0x43b   : > { %5705 = vmatpush.bf16.msra.mxu3 %v7761_v56  ;;  %v7693_v46 = vor.u32 %v8295_v21, %v7692_v53  ;;  %v7757_v24 = vor.u32 %v8311_v42, %v7756_v34  ;;  %v8292_v53 = vld [vmem:[#allocation9 + $0x714] sm:$0xf]  ;;  %v7686_v21 = vld [vmem:[#allocation9 + $0x718] sm:$0xf0] }
 0x43c   : > { %v8308_v34 = vld [vmem:[#allocation9 + $0x794] sm:$0xf]  ;;  %v7750_v42 = vld [vmem:[#allocation9 + $0x798] sm:$0xf0] }
 0x43d   : > { %v4475_v59 = vpop.f32.mrf.mxu2  ;;  %v4524_v47 = vpop.f32.mrf.mxu3  ;;  %5558 = vmatpush.bf16.msra.mxu0 %v7693_v46  ;;  %5607 = vmatpush.bf16.msra.mxu1 %v7757_v24  ;;  %v7689_v46 = vor.u32 %v8292_v53, %v7686_v21  ;;  %v8309_v21 = vld [vmem:[#allocation9 + $0x794] sm:$0xf0] }
 0x43e   : > { %v4525_v30 = vadd.f32 %v4524_v47, %v4475_v59  ;;  %v4379_v6 = vpop.f32.mrf.mxu0  ;;  %v4428_v15 = vpop.f32.mrf.mxu1  ;;  %v4713_v59 = vunpack.c.l.b16 %v4639_v41  ;;  %v4714_v47 = vunpack.c.h.b16 %v4639_v41  ;;  %v9917_v41 = vld [vmem:[#allocation2 + $0x78] sm:$0x88] }
 0x43f   : > { %v4429_v32 = vadd.f32 %v4428_v15, %v4379_v6  ;;  %5657 = vmatpush.bf16.msra.mxu2 %v7689_v46 }
 0x440   : > { %v9902_v60 = vadd.f32 %v4525_v30, %v9726_v22  ;;  %v4737_v15 = vpack.c.b16 %v4715_v54, %v4713_v59  ;;  %v4738_v7 = vpack.c.b16 %v4716_v38, %v4714_v47  ;;  %v4648_v54 = vrot.slane %v9730_v20, 7 }
 0x441   : > { %v9907_v45 = vadd.f32 %v4429_v32, %v9734_v50  ;;  %v7535_v59 = vrot.slane %v9917_v41, 11  ;;  %v4647_v47 = vrot.slane %v4645_v25, 4 }
 0x443   : > { %v4646_v29 = vsel %vm9817_vm1, %v7535_v59, %v4645_v25  ;;  %v8482_v59 = vld [vmem:[#allocation2 + $0x98] sm:$0xff] }
 0x445   : > { %v4477_v22 = vpop.f32.mrf.mxu2  ;;  %v4526_v56 = vpop.f32.mrf.mxu3 }
 0x446   : > { %v4527_v55 = vadd.f32 %v4526_v56, %v4477_v22  ;;  %v4382_v50 = vpop.f32.mrf.mxu0  ;;  %v4431_v30 = vpop.f32.mrf.mxu1 }
 0x447   : > { %v4432_v6 = vadd.f32 %v4431_v30, %v4382_v50  ;;  %v4649_v30 = vsel %vm9817_vm1, %v4647_v47, %v4648_v54 }
 0x448   : > { %v9912_v32 = vadd.f32 %v4527_v55, %v9744_v8  ;;  %v7753_v8 = vor.u32 %v8308_v34, %v7750_v42  ;;  %v4719_v34 = vunpack.c.l.b16 %v4649_v30  ;;  %v4720_v46 = vunpack.c.h.b16 %v4649_v30 }
 0x449   : > { %v9915_v10 = vadd.f32 %v4432_v6, %v9747_v0  ;;  %4949 = vmatmul.bf16.gmra.mxu0 %v4737_v15  ;;  %4998 = vmatmul.bf16.gmra.mxu1 %v4738_v7  ;;  %v7684_v6 = vld [vmem:[#allocation9 + $0x710] sm:$0xf]  ;;  %v4652_v30 = vrot.slane %v8482_v59, 7 }
 0x44a   : > { %5047 = vmatmul.bf16.gmra.mxu2 %v4737_v15  ;;  %5096 = vmatmul.bf16.gmra.mxu3 %v4738_v7  ;;  %v8293_v15 = vld [vmem:[#allocation9 + $0x714] sm:$0xf0]  ;;  %v7748_v7 = vld [vmem:[#allocation9 + $0x790] sm:$0xf] }
 0x44b   : > { %5706 = vmatpush.bf16.msra.mxu3 %v7753_v8  ;;  %v7685_v53 = vor.u32 %v8293_v15, %v7684_v6  ;;  %v7749_v42 = vor.u32 %v8309_v21, %v7748_v7  ;;  %v8290_v6 = vld [vmem:[#allocation9 + $0x704] sm:$0xf]  ;;  %v7678_v15 = vld [vmem:[#allocation9 + $0x708] sm:$0xf0] }
 0x44c   : > { %v8306_v7 = vld [vmem:[#allocation9 + $0x784] sm:$0xf]  ;;  %v7742_v21 = vld [vmem:[#allocation9 + $0x788] sm:$0xf0] }
 0x44d   : > { %v4480_v38 = vpop.f32.mrf.mxu2  ;;  %v4529_v24 = vpop.f32.mrf.mxu3  ;;  %5559 = vmatpush.bf16.msra.mxu0 %v7685_v53  ;;  %5608 = vmatpush.bf16.msra.mxu1 %v7749_v42  ;;  %v7681_v53 = vor.u32 %v8290_v6, %v7678_v15  ;;  %v8307_v15 = vld [vmem:[#allocation9 + $0x784] sm:$0xf0] }
 0x44e   : > { %v4530_v0 = vadd.f32 %v4529_v24, %v4480_v38  ;;  %v4384_v22 = vpop.f32.mrf.mxu0  ;;  %v4433_v56 = vpop.f32.mrf.mxu1  ;;  %v4717_v38 = vunpack.c.l.b16 %v4646_v29  ;;  %v4718_v24 = vunpack.c.h.b16 %v4646_v29  ;;  %v9937_v29 = vld [vmem:[#allocation2 + $0x90] sm:$0x88] }
 0x44f   : > { %v4434_v55 = vadd.f32 %v4433_v56, %v4384_v22  ;;  %5658 = vmatpush.bf16.msra.mxu2 %v7681_v53 }
 0x450   : > { %v9922_v50 = vadd.f32 %v4530_v0, %v9750_v43  ;;  %v4739_v56 = vpack.c.b16 %v4719_v34, %v4717_v38  ;;  %v4740_v47 = vpack.c.b16 %v4720_v46, %v4718_v24  ;;  %v4655_v34 = vrot.slane %v9754_v31, 7 }
 0x451   : > { %v9927_v20 = vadd.f32 %v4434_v55, %v9758_v40  ;;  %v7536_v38 = vrot.slane %v9937_v29, 11  ;;  %v4654_v24 = vrot.slane %v4652_v30, 4 }
 0x453   : > { %v4653_v59 = vsel %vm9817_vm1, %v7536_v38, %v4652_v30  ;;  %v8483_v38 = vld [vmem:[#allocation2 + $0xb0] sm:$0xff] }
 0x455   : > { %v4482_v43 = vpop.f32.mrf.mxu2  ;;  %v4531_v8 = vpop.f32.mrf.mxu3 }
 0x456   : > { %v4532_v54 = vadd.f32 %v4531_v8, %v4482_v43  ;;  %v4387_v40 = vpop.f32.mrf.mxu0  ;;  %v4436_v0 = vpop.f32.mrf.mxu1 }
 0x457   : > { %v4437_v22 = vadd.f32 %v4436_v0, %v4387_v40  ;;  %v4656_v0 = vsel %vm9817_vm1, %v4654_v24, %v4655_v34 }
 0x458   : > { %v9932_v55 = vadd.f32 %v4532_v54, %v9768_v18  ;;  %v7745_v18 = vor.u32 %v8306_v7, %v7742_v21  ;;  %v4723_v7 = vunpack.c.l.b16 %v4656_v0  ;;  %v4724_v53 = vunpack.c.h.b16 %v4656_v0 }
 0x459   : > { %v9935_v25 = vadd.f32 %v4437_v22, %v9771_v36  ;;  %4954 = vmatmul.bf16.gmra.mxu0 %v4739_v56  ;;  %5003 = vmatmul.bf16.gmra.mxu1 %v4740_v47  ;;  %v7676_v22 = vld [vmem:[#allocation9 + $0x700] sm:$0xf]  ;;  %v4659_v0 = vrot.slane %v8483_v38, 7  ;;  %v7988_v38 = vld [vmem:[#allocation9 + $0x8f0] sm:$0xf] }
 0x45a   : > { %5052 = vmatmul.bf16.gmra.mxu2 %v4739_v56  ;;  %5101 = vmatmul.bf16.gmra.mxu3 %v4740_v47  ;;  %v8291_v56 = vld [vmem:[#allocation9 + $0x704] sm:$0xf0]  ;;  %v7740_v47 = vld [vmem:[#allocation9 + $0x780] sm:$0xf] }
 0x45b   : > { %5707 = vmatpush.bf16.msra.mxu3 %v7745_v18  ;;  %v7677_v6 = vor.u32 %v8291_v56, %v7676_v22  ;;  %v7741_v21 = vor.u32 %v8307_v15, %v7740_v47  ;;  %v8336_v22 = vld [vmem:[#allocation9 + $0x874] sm:$0xf]  ;;  %v7926_v56 = vld [vmem:[#allocation9 + $0x878] sm:$0xf0] }
 0x45c   : > { %v8352_v47 = vld [vmem:[#allocation9 + $0x8f4] sm:$0xf]  ;;  %v7990_v15 = vld [vmem:[#allocation9 + $0x8f8] sm:$0xf0] }
 0x45d   : > { %v4485_v46 = vpop.f32.mrf.mxu2  ;;  %v4534_v42 = vpop.f32.mrf.mxu3  ;;  %5560 = vmatpush.bf16.msra.mxu0 %v7677_v6  ;;  %5609 = vmatpush.bf16.msra.mxu1 %v7741_v21  ;;  %v7929_v6 = vor.u32 %v8336_v22, %v7926_v56 }
 0x45e   : > { %v4535_v36 = vadd.f32 %v4534_v42, %v4485_v46  ;;  %v4389_v43 = vpop.f32.mrf.mxu0  ;;  %v4438_v8 = vpop.f32.mrf.mxu1  ;;  %v4721_v46 = vunpack.c.l.b16 %v4653_v59  ;;  %v4722_v42 = vunpack.c.h.b16 %v4653_v59  ;;  %v9957_v59 = vld [vmem:[#allocation2 + $0xa8] sm:$0x88] }
 0x45f   : > { %v4439_v54 = vadd.f32 %v4438_v8, %v4389_v43  ;;  %6144 = vmatpush.bf16.msrb.mxu2 %v7929_v6 }
 0x460   : > { %v9942_v40 = vadd.f32 %v4535_v36, %v9774_v49  ;;  %v4741_v8 = vpack.c.b16 %v4723_v7, %v4721_v46  ;;  %v4742_v24 = vpack.c.b16 %v4724_v53, %v4722_v42  ;;  %v4662_v7 = vrot.slane %v9778_v23, 7 }
 0x461   : > { %v9947_v31 = vadd.f32 %v4439_v54, %v9782_v11  ;;  %v7537_v46 = vrot.slane %v9957_v59, 11  ;;  %v4661_v42 = vrot.slane %v4659_v0, 4 }
 0x463   : > { %v4660_v22 = vsel %vm9817_vm1, %v7537_v46, %v4659_v0 }
 0x465   : > { %v4487_v49 = vpop.f32.mrf.mxu2  ;;  %v4536_v18 = vpop.f32.mrf.mxu3 }
 0x466   : > { %v4537_v34 = vadd.f32 %v4536_v18, %v4487_v49  ;;  %v4392_v11 = vpop.f32.mrf.mxu0  ;;  %v4441_v36 = vpop.f32.mrf.mxu1 }
 0x467   : > { %v4442_v43 = vadd.f32 %v4441_v36, %v4392_v11  ;;  %v4663_v36 = vsel %vm9817_vm1, %v4661_v42, %v4662_v7  ;;  %v4725_v7 = vunpack.c.l.b16 %v4660_v22 }
 0x468   : > { %v9952_v54 = vadd.f32 %v4537_v34, %v9792_v58  ;;  %v7993_v58 = vor.u32 %v8352_v47, %v7990_v15  ;;  %v8353_v47 = vld [vmem:[#allocation9 + $0x8f4] sm:$0xf0]  ;;  %v4727_v6 = vunpack.c.l.b16 %v4663_v36  ;;  %v4728_v15 = vunpack.c.h.b16 %v4663_v36 }
 0x469   : > { %v9955_v30 = vadd.f32 %v4442_v43, %v9795_v44  ;;  %4959 = vmatmul.bf16.gmra.mxu0 %v4741_v8  ;;  %5008 = vmatmul.bf16.gmra.mxu1 %v4742_v24  ;;  %v5149_v43 = vld [vmem:[#allocation2 + $0x10] sm:$0xff] }
 0x46a   : > { %5057 = vmatmul.bf16.gmra.mxu2 %v4741_v8  ;;  %5106 = vmatmul.bf16.gmra.mxu3 %v4742_v24  ;;  %v7924_v8 = vld [vmem:[#allocation9 + $0x870] sm:$0xf]  ;;  %v8337_v24 = vld [vmem:[#allocation9 + $0x874] sm:$0xf0] }
 0x46b   : > { %6193 = vmatpush.bf16.msrb.mxu3 %v7993_v58  ;;  %v7925_v56 = vor.u32 %v8337_v24, %v7924_v8  ;;  %v7989_v58 = vor.u32 %v8353_v47, %v7988_v38  ;;  %v10536_v36 = vld [vmem:[#allocation19_spill] sm:$0xff]  ;;  %v5173_v24 = vshll.u32 %v5149_v43, 16  ;;  %v8334_v38 = vld [vmem:[#allocation9 + $0x864] sm:$0xf] }
 0x46c   : > { %v5165_v8 = vrot.slane %v10536_v36, 7  ;;  %v7916_v36 = vld [vmem:[#allocation9 + $0x860] sm:$0xf] }
 0x46d   : > { %v4490_v53 = vpop.f32.mrf.mxu2  ;;  %v4539_v21 = vpop.f32.mrf.mxu3  ;;  %6046 = vmatpush.bf16.msrb.mxu0 %v7925_v56  ;;  %6095 = vmatpush.bf16.msrb.mxu1 %v7989_v58  ;;  %v8350_v56 = vld [vmem:[#allocation9 + $0x8e4] sm:$0xf] }
 0x46e   : > { %v4540_v44 = vadd.f32 %v4539_v21, %v4490_v53  ;;  %v4394_v49 = vpop.f32.mrf.mxu0  ;;  %v4443_v18 = vpop.f32.mrf.mxu1 }
 0x46f   : > { %v4444_v34 = vadd.f32 %v4443_v18, %v4394_v49 }
 0x470   : > { %v9962_v11 = vadd.f32 %v4540_v44, %v9798_v9  ;;  %v5170_v9 = vshrl.u32 %v5149_v43, 16  ;;  %v4726_v44 = vunpack.c.h.b16 %v4660_v22  ;;  %v7918_v22 = vld [vmem:[#allocation9 + $0x868] sm:$0xf0] }
 0x471   : > { %v9967_v23 = vadd.f32 %v4444_v34, %v9803_v52  ;;  %v4743_v34 = vpack.c.b16 %v4727_v6, %v4725_v7  ;;  %v7921_v47 = vor.u32 %v8334_v38, %v7918_v22  ;;  %v7982_v6 = vld [vmem:[#allocation9 + $0x8e8] sm:$0xf0] }
 0x472   : > { %v5172_v0 = vrot.slane %v5170_v9, 7  ;;  %v7985_v58 = vor.u32 %v8350_v56, %v7982_v6  ;;  %v10537_v43 = vld [vmem:[#allocation18_spill] sm:$0xff] }
 0x473   : > { %10535 = vst [vmem:[#allocation39_spill] sm:$0xff] %v9967_v23  ;;  %v4744_v23 = vpack.c.b16 %v4728_v15, %v4726_v44  ;;  %6145 = vmatpush.bf16.msrb.mxu2 %v7921_v47  ;;  %v5166_v44 = vor.u32 %v5165_v8, %v10537_v43  ;;  %v8351_v56 = vld [vmem:[#allocation9 + $0x8e4] sm:$0xf0] }
 0x474   : > { %v5175_v15 = vor.u32 %v5173_v24, %v5172_v0  ;;  %6194 = vmatpush.bf16.msrb.mxu3 %v7985_v58  ;;  %v7980_v24 = vld [vmem:[#allocation9 + $0x8e0] sm:$0xf] }
 0x475   : > { %v4492_v53 = vpop.f32.mrf.mxu2  ;;  %v4541_v21 = vpop.f32.mrf.mxu3 }
 0x476   : > { %v4542_v52 = vadd.f32 %v4541_v21, %v4492_v53  ;;  %v4397_v49 = vpop.f32.mrf.mxu0  ;;  %v4446_v18 = vpop.f32.mrf.mxu1 }
 0x477   : > { %v4447_v42 = vadd.f32 %v4446_v18, %v4397_v49 }
 0x478   : > { %v9972_v12 = vadd.f32 %v4542_v52, %v9808_v5  ;;  %v5161_v5 = vshrl.u32 %v9813_v19, 16 }
 0x479   : > { %v9975_v46 = vadd.f32 %v4447_v42, %v9811_v61  ;;  %4964 = vmatmul.bf16.gmra.mxu0 %v4743_v34  ;;  %5013 = vmatmul.bf16.gmra.mxu1 %v4744_v23 }
 0x47a   : > { %5062 = vmatmul.bf16.gmra.mxu2 %v4743_v34  ;;  %5111 = vmatmul.bf16.gmra.mxu3 %v4744_v23  ;;  %v5168_v23 = vrot.slane %v5165_v8, 4  ;;  %v7666_v18 = vrot.slane %v5161_v5, 11  ;;  %v5150_v34 = vld [vmem:[#allocation2 + $0x28] sm:$0xff] }
 0x47b   : > { %v8335_v8 = vld [vmem:[#allocation9 + $0x864] sm:$0xf0]  ;;  %v5187_v58 = vshrl.u32 %v5150_v34, 16 }
 0x47c   : > { %v5176_v42 = vsel %vm9981_vm4, %v5168_v23, %v5175_v15  ;;  %v5167_v38 = vsel %vm9981_vm4, %v7666_v18, %v5166_v44  ;;  %v7917_v22 = vor.u32 %v8335_v8, %v7916_v36  ;;  %v5190_v8 = vshll.u32 %v5150_v34, 16 }
 0x47d   : > { %v4495_v61 = vpop.f32.mrf.mxu2  ;;  %v4544_v9 = vpop.f32.mrf.mxu3  ;;  %v5331_v47 = vunpack.c.l.b16 %v5176_v42  ;;  %v5332_v6 = vunpack.c.h.b16 %v5176_v42  ;;  %v5329_v15 = vunpack.c.l.b16 %v5167_v38  ;;  %v10540_v42 = vld [vmem:[#allocation21_spill] sm:$0xff] }
 0x47e   : > { %v4545_v53 = vadd.f32 %v4544_v9, %v4495_v61  ;;  %v4399_v21 = vpop.f32.mrf.mxu0  ;;  %v4448_v7 = vpop.f32.mrf.mxu1  ;;  %6047 = vmatpush.bf16.msrb.mxu0 %v7917_v22  ;;  %v5330_v9 = vunpack.c.h.b16 %v5167_v38  ;;  %v5182_v36 = vrot.slane %v10540_v42, 7  ;;  %v7910_v38 = vld [vmem:[#allocation9 + $0x858] sm:$0xf0]  ;;  %v8348_v22 = vld [vmem:[#allocation9 + $0x8d4] sm:$0xf] }
 0x47f   : > { %v4449_v52 = vadd.f32 %v4448_v7, %v4399_v21  ;;  %v5361_v43 = vpack.c.b16 %v5331_v47, %v5329_v15  ;;  %v7974_v47 = vld [vmem:[#allocation9 + $0x8d8] sm:$0xf0]  ;;  %v8333_v42 = vld [vmem:[#allocation9 + $0x854] sm:$0xf0] }
 0x480   : > { %v9986_v19 = vadd.f32 %v4545_v53, %v9822_v4  ;;  %v7981_v4 = vor.u32 %v8351_v56, %v7980_v24  ;;  %v5362_v23 = vpack.c.b16 %v5332_v6, %v5330_v9  ;;  %v8332_v24 = vld [vmem:[#allocation9 + $0x854] sm:$0xf]  ;;  %v5178_v6 = vshrl.u32 %v9837_v1, 16  ;;  %v10541_v9 = vld [vmem:[#allocation20_spill] sm:$0xff] }
 0x481   : > { %v9991_v0 = vadd.f32 %v4449_v52, %v9827_v33  ;;  %v5189_v52 = vrot.slane %v5187_v58, 7  ;;  %v7913_v56 = vor.u32 %v8332_v24, %v7910_v38  ;;  %v5185_v34 = vrot.slane %v5182_v36, 4  ;;  %v8349_v38 = vld [vmem:[#allocation9 + $0x8d4] sm:$0xf0] }
 0x482   : > { %6096 = vmatpush.bf16.msrb.mxu1 %v7981_v4  ;;  %v7977_v4 = vor.u32 %v8348_v22, %v7974_v47 }
 0x483   : > { %6146 = vmatpush.bf16.msrb.mxu2 %v7913_v56 }
 0x484   : > { %6195 = vmatpush.bf16.msrb.mxu3 %v7977_v4 }
 0x485   : > { %v4497_v5 = vpop.f32.mrf.mxu2  ;;  %v4546_v61 = vpop.f32.mrf.mxu3 }
 0x486   : > { %v4547_v33 = vadd.f32 %v4546_v61, %v4497_v5  ;;  %v4930_v53 = vpop.f32.mrf.mxu0  ;;  %v4979_v21 = vpop.f32.mrf.mxu1 }
 0x487   : > { %v4980_v7 = vadd.f32 %v4979_v21, %v4930_v53 }
 0x488   : > { %v9996_v44 = vadd.f32 %v4547_v33, %v9832_v63  ;;  %v5192_v63 = vor.u32 %v5190_v8, %v5189_v52  ;;  %v5183_v33 = vor.u32 %v5182_v36, %v10541_v9  ;;  %v7908_v52 = vld [vmem:[#allocation9 + $0x850] sm:$0xf] }
 0x489   : > { %v9999_v18 = vadd.f32 %v4980_v7, %v9835_v57  ;;  %5561 = vmatmul.bf16.vlgmr.msra.gmra.mxu0 %v5361_v43  ;;  %5610 = vmatmul.bf16.vlgmr.msra.gmra.mxu1 %v5362_v23  ;;  %v7667_v7 = vrot.slane %v5178_v6, 11  ;;  %v7972_v8 = vld [vmem:[#allocation9 + $0x8d0] sm:$0xf]  ;;  %v7909_v36 = vor.u32 %v8333_v42, %v7908_v52  ;;  %v8330_v42 = vld [vmem:[#allocation9 + $0x844] sm:$0xf] }
 0x48a   : > { %5659 = vmatmul.bf16.vlgmr.msra.gmra.mxu2 %v5361_v43  ;;  %5708 = vmatmul.bf16.vlgmr.msra.gmra.mxu3 %v5362_v23  ;;  %v5193_v1 = vsel %vm9981_vm4, %v5185_v34, %v5192_v63  ;;  %v5151_v43 = vld [vmem:[#allocation2 + $0x40] sm:$0xff] }
 0x48b   : > { %v5184_v24 = vsel %vm9981_vm4, %v7667_v7, %v5183_v33  ;;  %v5335_v22 = vunpack.c.l.b16 %v5193_v1  ;;  %v5336_v56 = vunpack.c.h.b16 %v5193_v1  ;;  %v5204_v47 = vshrl.u32 %v5151_v43, 16  ;;  %6048 = vmatpush.bf16.msrb.mxu0 %v7909_v36  ;;  %v10542_v7 = vld [vmem:[#allocation23_spill] sm:$0xff] }
 0x48c   : > { %v5333_v63 = vunpack.c.l.b16 %v5184_v24  ;;  %v5199_v1 = vrot.slane %v10542_v7, 7  ;;  %v5207_v52 = vshll.u32 %v5151_v43, 16  ;;  %v7964_v7 = vld [vmem:[#allocation9 + $0x8c0] sm:$0xf] }
 0x48d   : > { %v5028_v58 = vpop.f32.mrf.mxu2  ;;  %v5077_v5 = vpop.f32.mrf.mxu3  ;;  %v5206_v34 = vrot.slane %v5204_v47, 7 }
 0x48e   : > { %v5078_v57 = vadd.f32 %v5077_v5, %v5028_v58  ;;  %v4932_v61 = vpop.f32.mrf.mxu0  ;;  %v4981_v15 = vpop.f32.mrf.mxu1  ;;  %v5334_v58 = vunpack.c.h.b16 %v5184_v24  ;;  %v8346_v24 = vld [vmem:[#allocation9 + $0x8c4] sm:$0xf]  ;;  %v5202_v43 = vrot.slane %v5199_v1, 4 }
 0x48f   : > { %v4982_v53 = vadd.f32 %v4981_v15, %v4932_v61  ;;  %v5363_v15 = vpack.c.b16 %v5335_v22, %v5333_v63  ;;  %v5195_v22 = vshrl.u32 %v9857_v2, 16  ;;  %v10543_v63 = vld [vmem:[#allocation22_spill] sm:$0xff] }
 0x490   : > { %v10005_v21 = vadd.f32 %v5078_v57, %v9842_v51  ;;  %v7973_v51 = vor.u32 %v8349_v38, %v7972_v8  ;;  %v5364_v9 = vpack.c.b16 %v5336_v56, %v5334_v58  ;;  %v7902_v8 = vld [vmem:[#allocation9 + $0x848] sm:$0xf0]  ;;  %v5200_v58 = vor.u32 %v5199_v1, %v10543_v63 }
 0x491   : > { %v10010_v23 = vadd.f32 %v4982_v53, %v9847_v39  ;;  %v7905_v36 = vor.u32 %v8330_v42, %v7902_v8  ;;  %v7966_v38 = vld [vmem:[#allocation9 + $0x8c8] sm:$0xf0]  ;;  %v8347_v42 = vld [vmem:[#allocation9 + $0x8c4] sm:$0xf0] }
 0x492   : > { %6097 = vmatpush.bf16.msrb.mxu1 %v7973_v51  ;;  %v7969_v56 = vor.u32 %v8346_v24, %v7966_v38 }
 0x493   : > { %6147 = vmatpush.bf16.msrb.mxu2 %v7905_v36 }
 0x494   : > { %6196 = vmatpush.bf16.msrb.mxu3 %v7969_v56 }
 0x495   : > { %v5030_v6 = vpop.f32.mrf.mxu2  ;;  %v5079_v4 = vpop.f32.mrf.mxu3 }
 0x496   : > { %v5080_v39 = vadd.f32 %v5079_v4, %v5030_v6  ;;  %v4935_v5 = vpop.f32.mrf.mxu0  ;;  %v4984_v57 = vpop.f32.mrf.mxu1 }
 0x497   : > { %v4985_v61 = vadd.f32 %v4984_v57, %v4935_v5  ;;  %v7668_v57 = vrot.slane %v5195_v22, 11 }
 0x498   : > { %v10015_v33 = vadd.f32 %v5080_v39, %v9852_v35  ;;  %v5209_v35 = vor.u32 %v5207_v52, %v5206_v34  ;;  %v8331_v34 = vld [vmem:[#allocation9 + $0x844] sm:$0xf0] }
 0x499   : > { %v10018_v53 = vadd.f32 %v4985_v61, %v9855_v13  ;;  %5566 = vmatmul.bf16.gmra.mxu0 %v5363_v15  ;;  %5615 = vmatmul.bf16.gmra.mxu1 %v5364_v9  ;;  %v5152_v61 = vld [vmem:[#allocation2 + $0x58] sm:$0xff]  ;;  %v5201_v52 = vsel %vm9981_vm4, %v7668_v57, %v5200_v58 }
 0x49a   : > { %5664 = vmatmul.bf16.gmra.mxu2 %v5363_v15  ;;  %5713 = vmatmul.bf16.gmra.mxu3 %v5364_v9  ;;  %v5210_v2 = vsel %vm9981_vm4, %v5202_v43, %v5209_v35  ;;  %v7900_v9 = vld [vmem:[#allocation9 + $0x840] sm:$0xf]  ;;  %v5221_v36 = vshrl.u32 %v5152_v61, 16  ;;  %v5337_v35 = vunpack.c.l.b16 %v5201_v52  ;;  %v5338_v56 = vunpack.c.h.b16 %v5201_v52 }
 0x49b   : > { %v7901_v1 = vor.u32 %v8331_v34, %v7900_v9  ;;  %v5339_v8 = vunpack.c.l.b16 %v5210_v2  ;;  %v5340_v24 = vunpack.c.h.b16 %v5210_v2  ;;  %v5224_v2 = vshll.u32 %v5152_v61, 16  ;;  %v8328_v9 = vld [vmem:[#allocation9 + $0x834] sm:$0xf]  ;;  %v7894_v34 = vld [vmem:[#allocation9 + $0x838] sm:$0xf0] }
 0x49c   : > { %v5223_v58 = vrot.slane %v5221_v36, 7  ;;  %v7897_v52 = vor.u32 %v8328_v9, %v7894_v34 }
 0x49d   : > { %v5033_v51 = vpop.f32.mrf.mxu2  ;;  %v5082_v47 = vpop.f32.mrf.mxu3  ;;  %6049 = vmatpush.bf16.msrb.mxu0 %v7901_v1  ;;  %v7958_v1 = vld [vmem:[#allocation9 + $0x8b8] sm:$0xf0] }
 0x49e   : > { %v5083_v13 = vadd.f32 %v5082_v47, %v5033_v51  ;;  %v4937_v6 = vpop.f32.mrf.mxu0  ;;  %v4986_v4 = vpop.f32.mrf.mxu1  ;;  %6148 = vmatpush.bf16.msrb.mxu2 %v7897_v52 }
 0x49f   : > { %v4987_v39 = vadd.f32 %v4986_v4, %v4937_v6  ;;  %v5365_v6 = vpack.c.b16 %v5339_v8, %v5337_v35  ;;  %v5366_v4 = vpack.c.b16 %v5340_v24, %v5338_v56 }
 0x4a0   : > { %v10024_v5 = vadd.f32 %v5083_v13, %v9862_v17  ;;  %v7965_v17 = vor.u32 %v8347_v42, %v7964_v7  ;;  %v8344_v7 = vld [vmem:[#allocation9 + $0x8b4] sm:$0xf]  ;;  %v5212_v42 = vshrl.u32 %v9877_v16, 16 }
 0x4a1   : > { %v10029_v15 = vadd.f32 %v4987_v39, %v9867_v48  ;;  %v10544_v39 = vld [vmem:[#allocation25_spill] sm:$0xff]  ;;  %v7961_v8 = vor.u32 %v8344_v7, %v7958_v1 }
 0x4a2   : > { %6098 = vmatpush.bf16.msrb.mxu1 %v7965_v17  ;;  %v5216_v57 = vrot.slane %v10544_v39, 7 }
 0x4a3   : > { %6197 = vmatpush.bf16.msrb.mxu3 %v7961_v8 }
 0x4a4   : > { %v5219_v61 = vrot.slane %v5216_v57, 4 }
 0x4a5   : > { %v5035_v38 = vpop.f32.mrf.mxu2  ;;  %v5084_v22 = vpop.f32.mrf.mxu3 }
 0x4a6   : > { %v5085_v48 = vadd.f32 %v5084_v22, %v5035_v38  ;;  %v4940_v51 = vpop.f32.mrf.mxu0  ;;  %v4989_v47 = vpop.f32.mrf.mxu1  ;;  %v10545_v22 = vld [vmem:[#allocation24_spill] sm:$0xff] }
 0x4a7   : > { %v4990_v13 = vadd.f32 %v4989_v47, %v4940_v51  ;;  %v5217_v35 = vor.u32 %v5216_v57, %v10545_v22  ;;  %v7669_v51 = vrot.slane %v5212_v42, 11  ;;  %v5153_v47 = vld [vmem:[#allocation2 + $0x70] sm:$0xff] }
 0x4a8   : > { %v10034_v63 = vadd.f32 %v5085_v48, %v9872_v28  ;;  %v5226_v28 = vor.u32 %v5224_v2, %v5223_v58  ;;  %v7956_v58 = vld [vmem:[#allocation9 + $0x8b0] sm:$0xf]  ;;  %v8345_v2 = vld [vmem:[#allocation9 + $0x8b4] sm:$0xf0]  ;;  %v5238_v7 = vshrl.u32 %v5153_v47, 16 }
 0x4a9   : > { %v10037_v43 = vadd.f32 %v4990_v13, %v9875_v62  ;;  %5571 = vmatmul.bf16.gmra.mxu0 %v5365_v6  ;;  %5620 = vmatmul.bf16.gmra.mxu1 %v5366_v4  ;;  %v5218_v39 = vsel %vm9981_vm4, %v7669_v51, %v5217_v35  ;;  %v5241_v51 = vshll.u32 %v5153_v47, 16 }
 0x4aa   : > { %5669 = vmatmul.bf16.gmra.mxu2 %v5365_v6  ;;  %5718 = vmatmul.bf16.gmra.mxu3 %v5366_v4  ;;  %v5227_v16 = vsel %vm9981_vm4, %v5219_v61, %v5226_v28  ;;  %v7892_v6 = vld [vmem:[#allocation9 + $0x830] sm:$0xf]  ;;  %v8329_v4 = vld [vmem:[#allocation9 + $0x834] sm:$0xf0]  ;;  %v5341_v42 = vunpack.c.l.b16 %v5218_v39  ;;  %v5342_v28 = vunpack.c.h.b16 %v5218_v39  ;;  %v5240_v22 = vrot.slane %v5238_v7, 7 }
 0x4ab   : > { %v7893_v57 = vor.u32 %v8329_v4, %v7892_v6  ;;  %v5343_v9 = vunpack.c.l.b16 %v5227_v16  ;;  %v5344_v34 = vunpack.c.h.b16 %v5227_v16  ;;  %v10546_v61 = vld [vmem:[#allocation27_spill] sm:$0xff]  ;;  %v8326_v16 = vld [vmem:[#allocation9 + $0x824] sm:$0xf]  ;;  %v7886_v6 = vld [vmem:[#allocation9 + $0x828] sm:$0xf0] }
 0x4ac   : > { %v8342_v4 = vld [vmem:[#allocation9 + $0x8a4] sm:$0xf]  ;;  %v7950_v39 = vld [vmem:[#allocation9 + $0x8a8] sm:$0xf0] }
 0x4ad   : > { %v5038_v24 = vpop.f32.mrf.mxu2  ;;  %v5087_v17 = vpop.f32.mrf.mxu3  ;;  %6050 = vmatpush.bf16.msrb.mxu0 %v7893_v57  ;;  %v5229_v57 = vshrl.u32 %v9897_v26, 16 }
 0x4ae   : > { %v5088_v62 = vadd.f32 %v5087_v17, %v5038_v24  ;;  %v4942_v36 = vpop.f32.mrf.mxu0  ;;  %v4991_v38 = vpop.f32.mrf.mxu1 }
 0x4af   : > { %v4992_v56 = vadd.f32 %v4991_v38, %v4942_v36  ;;  %v5368_v36 = vpack.c.b16 %v5344_v34, %v5342_v28 }
 0x4b0   : > { %v10043_v48 = vadd.f32 %v5088_v62, %v9882_v14  ;;  %v7957_v14 = vor.u32 %v8345_v2, %v7956_v58  ;;  %v5367_v62 = vpack.c.b16 %v5343_v9, %v5341_v42  ;;  %v7889_v58 = vor.u32 %v8326_v16, %v7886_v6 }
 0x4b1   : > { %v10048_v13 = vadd.f32 %v4992_v56, %v9887_v3  ;;  %v5233_v56 = vrot.slane %v10546_v61, 7  ;;  %v7953_v2 = vor.u32 %v8342_v4, %v7950_v39 }
 0x4b2   : > { %6099 = vmatpush.bf16.msrb.mxu1 %v7957_v14  ;;  %6149 = vmatpush.bf16.msrb.mxu2 %v7889_v58 }
 0x4b3   : > { %v5236_v47 = vrot.slane %v5233_v56, 4  ;;  %6198 = vmatpush.bf16.msrb.mxu3 %v7953_v2 }
 0x4b5   : > { %v5040_v52 = vpop.f32.mrf.mxu2  ;;  %v5089_v1 = vpop.f32.mrf.mxu3 }
 0x4b6   : > { %v5090_v3 = vadd.f32 %v5089_v1, %v5040_v52  ;;  %v4945_v8 = vpop.f32.mrf.mxu0  ;;  %v4994_v24 = vpop.f32.mrf.mxu1  ;;  %v10547_v52 = vld [vmem:[#allocation26_spill] sm:$0xff] }
 0x4b7   : > { %v4995_v17 = vadd.f32 %v4994_v24, %v4945_v8  ;;  %v5234_v1 = vor.u32 %v5233_v56, %v10547_v52  ;;  %v5154_v8 = vld [vmem:[#allocation2 + $0x88] sm:$0xff] }
 0x4b8   : > { %v10053_v38 = vadd.f32 %v5090_v3, %v9892_v37  ;;  %v5243_v37 = vor.u32 %v5241_v51, %v5240_v22  ;;  %v7670_v3 = vrot.slane %v5229_v57, 11  ;;  %v8343_v56 = vld [vmem:[#allocation9 + $0x8a4] sm:$0xf0]  ;;  %v5255_v6 = vshrl.u32 %v5154_v8, 16 }
 0x4b9   : > { %v10056_v35 = vadd.f32 %v4995_v17, %v9895_v27  ;;  %5576 = vmatmul.bf16.gmra.mxu0 %v5367_v62  ;;  %5625 = vmatmul.bf16.gmra.mxu1 %v5368_v36  ;;  %v7884_v17 = vld [vmem:[#allocation9 + $0x820] sm:$0xf] }
 0x4ba   : > { %5674 = vmatmul.bf16.gmra.mxu2 %v5367_v62  ;;  %5723 = vmatmul.bf16.gmra.mxu3 %v5368_v36  ;;  %v5244_v26 = vsel %vm9981_vm4, %v5236_v47, %v5243_v37  ;;  %v8327_v62 = vld [vmem:[#allocation9 + $0x824] sm:$0xf0]  ;;  %v7948_v36 = vld [vmem:[#allocation9 + $0x8a0] sm:$0xf]  ;;  %v5235_v22 = vsel %vm9981_vm4, %v7670_v3, %v5234_v1  ;;  %v8324_v3 = vld [vmem:[#allocation9 + $0x814] sm:$0xf] }
 0x4bb   : > { %v7885_v61 = vor.u32 %v8327_v62, %v7884_v17  ;;  %v5347_v51 = vunpack.c.l.b16 %v5244_v26  ;;  %v5348_v16 = vunpack.c.h.b16 %v5244_v26  ;;  %v5345_v39 = vunpack.c.l.b16 %v5235_v22  ;;  %v10548_v1 = vld [vmem:[#allocation29_spill] sm:$0xff]  ;;  %v7878_v26 = vld [vmem:[#allocation9 + $0x818] sm:$0xf0]  ;;  %v8340_v17 = vld [vmem:[#allocation9 + $0x894] sm:$0xf] }
 0x4bc   : > { %v5346_v57 = vunpack.c.h.b16 %v5235_v22  ;;  %v5250_v47 = vrot.slane %v10548_v1, 7  ;;  %v7881_v62 = vor.u32 %v8324_v3, %v7878_v26  ;;  %v5246_v22 = vshrl.u32 %v9917_v41, 16  ;;  %v8341_v1 = vld [vmem:[#allocation9 + $0x894] sm:$0xf0] }
 0x4bd   : > { %v5043_v9 = vpop.f32.mrf.mxu2  ;;  %v5092_v34 = vpop.f32.mrf.mxu3  ;;  %6051 = vmatpush.bf16.msrb.mxu0 %v7885_v61 }
 0x4be   : > { %v5093_v27 = vadd.f32 %v5092_v34, %v5043_v9  ;;  %v4947_v14 = vpop.f32.mrf.mxu0  ;;  %v4996_v7 = vpop.f32.mrf.mxu1  ;;  %v5369_v34 = vpack.c.b16 %v5347_v51, %v5345_v39  ;;  %6150 = vmatpush.bf16.msrb.mxu2 %v7881_v62 }
 0x4bf   : > { %v4997_v42 = vadd.f32 %v4996_v7, %v4947_v14  ;;  %v5257_v7 = vrot.slane %v5255_v6, 7  ;;  %v10549_v6 = vld [vmem:[#allocation28_spill] sm:$0xff] }
 0x4c0   : > { %v10062_v28 = vadd.f32 %v5093_v27, %v9902_v60  ;;  %v7949_v60 = vor.u32 %v8343_v56, %v7948_v36  ;;  %v5370_v27 = vpack.c.b16 %v5348_v16, %v5346_v57  ;;  %v7942_v36 = vld [vmem:[#allocation9 + $0x898] sm:$0xf0]  ;;  %v7671_v57 = vrot.slane %v5246_v22, 11 }
 0x4c1   : > { %v10067_v24 = vadd.f32 %v4997_v42, %v9907_v45  ;;  %v5258_v42 = vshll.u32 %v5154_v8, 16  ;;  %v7945_v61 = vor.u32 %v8340_v17, %v7942_v36  ;;  %v5253_v8 = vrot.slane %v5250_v47, 4 }
 0x4c2   : > { %6100 = vmatpush.bf16.msrb.mxu1 %v7949_v60 }
 0x4c3   : > { %6199 = vmatpush.bf16.msrb.mxu3 %v7945_v61 }
 0x4c5   : > { %v5045_v4 = vpop.f32.mrf.mxu2  ;;  %v5094_v58 = vpop.f32.mrf.mxu3 }
 0x4c6   : > { %v5095_v45 = vadd.f32 %v5094_v58, %v5045_v4  ;;  %v4950_v37 = vpop.f32.mrf.mxu0  ;;  %v4999_v2 = vpop.f32.mrf.mxu1  ;;  %v5251_v4 = vor.u32 %v5250_v47, %v10549_v6  ;;  %v10550_v6 = vld [vmem:[#allocation31_spill] sm:$0xff] }
 0x4c7   : > { %v5000_v9 = vadd.f32 %v4999_v2, %v4950_v37  ;;  %v7876_v2 = vld [vmem:[#allocation9 + $0x810] sm:$0xf] }
 0x4c8   : > { %v10072_v14 = vadd.f32 %v5095_v45, %v9912_v32  ;;  %v5260_v32 = vor.u32 %v5258_v42, %v5257_v7  ;;  %v5155_v45 = vld [vmem:[#allocation2 + $0xa0] sm:$0xff] }
 0x4c9   : > { %v10075_v52 = vadd.f32 %v5000_v9, %v9915_v10  ;;  %5581 = vmatmul.bf16.gmra.mxu0 %v5369_v34  ;;  %5630 = vmatmul.bf16.gmra.mxu1 %v5370_v27  ;;  %v8325_v9 = vld [vmem:[#allocation9 + $0x814] sm:$0xf0]  ;;  %v5272_v3 = vshrl.u32 %v5155_v45, 16 }
 0x4ca   : > { %5679 = vmatmul.bf16.gmra.mxu2 %v5369_v34  ;;  %5728 = vmatmul.bf16.gmra.mxu3 %v5370_v27  ;;  %v5261_v41 = vsel %vm9981_vm4, %v5253_v8, %v5260_v32  ;;  %v7940_v34 = vld [vmem:[#allocation9 + $0x890] sm:$0xf]  ;;  %v5252_v27 = vsel %vm9981_vm4, %v7671_v57, %v5251_v4  ;;  %v7877_v7 = vor.u32 %v8325_v9, %v7876_v2  ;;  %v5267_v4 = vrot.slane %v10550_v6, 7  ;;  %v7870_v57 = vld [vmem:[#allocation9 + $0x808] sm:$0xf0] }
 0x4cb   : > { %v5351_v47 = vunpack.c.l.b16 %v5261_v41  ;;  %v5352_v42 = vunpack.c.h.b16 %v5261_v41  ;;  %v5349_v62 = vunpack.c.l.b16 %v5252_v27  ;;  %v5350_v36 = vunpack.c.h.b16 %v5252_v27  ;;  %v8338_v41 = vld [vmem:[#allocation9 + $0x884] sm:$0xf]  ;;  %v7934_v9 = vld [vmem:[#allocation9 + $0x888] sm:$0xf0] }
 0x4cc   : > { %6052 = vmatpush.bf16.msrb.mxu0 %v7877_v7  ;;  %v5275_v8 = vshll.u32 %v5155_v45, 16  ;;  %v7937_v27 = vor.u32 %v8338_v41, %v7934_v9  ;;  %v5270_v45 = vrot.slane %v5267_v4, 4 }
 0x4cd   : > { %v5048_v56 = vpop.f32.mrf.mxu2  ;;  %v5097_v51 = vpop.f32.mrf.mxu3 }
 0x4ce   : > { %v5098_v10 = vadd.f32 %v5097_v51, %v5048_v56  ;;  %v4952_v16 = vpop.f32.mrf.mxu0  ;;  %v5001_v60 = vpop.f32.mrf.mxu1  ;;  %v5371_v56 = vpack.c.b16 %v5351_v47, %v5349_v62  ;;  %v5372_v51 = vpack.c.b16 %v5352_v42, %v5350_v36  ;;  %6200 = vmatpush.bf16.msrb.mxu3 %v7937_v27  ;;  %v5156_v36 = vld [vmem:[#allocation2 + $0xb8] sm:$0xff] }
 0x4cf   : > { %v5002_v58 = vadd.f32 %v5001_v60, %v4952_v16  ;;  %v5274_v16 = vrot.slane %v5272_v3, 7 }
 0x4d0   : > { %v10081_v39 = vadd.f32 %v5098_v10, %v9922_v50  ;;  %v7941_v50 = vor.u32 %v8341_v1, %v7940_v34  ;;  %v5263_v34 = vshrl.u32 %v9937_v29, 16 }
 0x4d1   : > { %v10086_v37 = vadd.f32 %v5002_v58, %v9927_v20  ;;  %v8322_v58 = vld [vmem:[#allocation9 + $0x804] sm:$0xf] }
 0x4d2   : > { %6101 = vmatpush.bf16.msrb.mxu1 %v7941_v50  ;;  %v7873_v2 = vor.u32 %v8322_v58, %v7870_v57  ;;  %v10551_v50 = vld [vmem:[#allocation30_spill] sm:$0xff]  ;;  %v7672_v62 = vrot.slane %v5263_v34, 11 }
 0x4d3   : > { %v5268_v3 = vor.u32 %v5267_v4, %v10551_v50 }
 0x4d4   : > { %6151 = vmatpush.bf16.msrb.mxu2 %v7873_v2 }
 0x4d5   : > { %v5050_v26 = vpop.f32.mrf.mxu2  ;;  %v5099_v17 = vpop.f32.mrf.mxu3 }
 0x4d6   : > { %v5100_v20 = vadd.f32 %v5099_v17, %v5050_v26  ;;  %v4955_v22 = vpop.f32.mrf.mxu0  ;;  %v5004_v32 = vpop.f32.mrf.mxu1 }
 0x4d7   : > { %v5005_v61 = vadd.f32 %v5004_v32, %v4955_v22  ;;  %v7868_v22 = vld [vmem:[#allocation9 + $0x800] sm:$0xf]  ;;  %v8323_v32 = vld [vmem:[#allocation9 + $0x804] sm:$0xf0] }
 0x4d8   : > { %v10091_v10 = vadd.f32 %v5100_v20, %v9932_v55  ;;  %v5277_v55 = vor.u32 %v5275_v8, %v5274_v16  ;;  %v8339_v16 = vld [vmem:[#allocation9 + $0x884] sm:$0xf0]  ;;  %v5289_v8 = vshrl.u32 %v5156_v36, 16 }
 0x4d9   : > { %v10094_v60 = vadd.f32 %v5005_v61, %v9935_v25  ;;  %5586 = vmatmul.bf16.gmra.mxu0 %v5371_v56  ;;  %5635 = vmatmul.bf16.gmra.mxu1 %v5372_v51  ;;  %v7932_v61 = vld [vmem:[#allocation9 + $0x880] sm:$0xf] }
 0x4da   : > { %5684 = vmatmul.bf16.gmra.mxu2 %v5371_v56  ;;  %5733 = vmatmul.bf16.gmra.mxu3 %v5372_v51  ;;  %v5278_v29 = vsel %vm9981_vm4, %v5270_v45, %v5277_v55  ;;  %v5269_v56 = vsel %vm9981_vm4, %v7672_v62, %v5268_v3  ;;  %v7869_v51 = vor.u32 %v8323_v32, %v7868_v22  ;;  %v5292_v3 = vshll.u32 %v5156_v36, 16  ;;  %v10554_v36 = vld [vmem:[#allocation39_spill] sm:$0xff] }
 0x4db   : > { %v5355_v6 = vunpack.c.l.b16 %v5278_v29  ;;  %v5356_v4 = vunpack.c.h.b16 %v5278_v29  ;;  %v5353_v41 = vunpack.c.l.b16 %v5269_v56  ;;  %v5354_v2 = vunpack.c.h.b16 %v5269_v56 }
 0x4dc   : > { %6053 = vmatpush.bf16.msrb.mxu0 %v7869_v51  ;;  %v5280_v45 = vshrl.u32 %v9957_v59, 16 }
 0x4dd   : > { %v5053_v7 = vpop.f32.mrf.mxu2  ;;  %v5102_v1 = vpop.f32.mrf.mxu3  ;;  %v5373_v27 = vpack.c.b16 %v5355_v6, %v5353_v41 }
 0x4de   : > { %v5103_v25 = vadd.f32 %v5102_v1, %v5053_v7  ;;  %v4957_v47 = vpop.f32.mrf.mxu0  ;;  %v5006_v42 = vpop.f32.mrf.mxu1  ;;  %v5374_v7 = vpack.c.b16 %v5356_v4, %v5354_v2  ;;  %v7673_v6 = vrot.slane %v5280_v45, 11 }
 0x4df   : > { %v5007_v26 = vadd.f32 %v5006_v42, %v4957_v47  ;;  %v10552_v42 = vld [vmem:[#allocation33_spill] sm:$0xff] }
 0x4e0   : > { %v10100_v17 = vadd.f32 %v5103_v25, %v9942_v40  ;;  %v7933_v40 = vor.u32 %v8339_v16, %v7932_v61  ;;  %v5291_v25 = vrot.slane %v5289_v8, 7  ;;  %v5284_v50 = vrot.slane %v10552_v42, 7  ;;  %v10553_v61 = vld [vmem:[#allocation32_spill] sm:$0xff] }
 0x4e1   : > { %v10105_v20 = vadd.f32 %v5007_v26, %v9947_v31 }
 0x4e2   : > { %6102 = vmatpush.bf16.msrb.mxu1 %v7933_v40  ;;  %v5294_v26 = vor.u32 %v5292_v3, %v5291_v25  ;;  %v5285_v56 = vor.u32 %v5284_v50, %v10553_v61  ;;  %v5287_v51 = vrot.slane %v5284_v50, 4 }
 0x4e4   : > { %v5295_v4 = vsel %vm9981_vm4, %v5287_v51, %v5294_v26  ;;  %v5286_v59 = vsel %vm9981_vm4, %v7673_v6, %v5285_v56 }
 0x4e5   : > { %v5055_v58 = vpop.f32.mrf.mxu2  ;;  %v5104_v57 = vpop.f32.mrf.mxu3  ;;  %v5359_v8 = vunpack.c.l.b16 %v5295_v4  ;;  %v5357_v2 = vunpack.c.l.b16 %v5286_v59 }
 0x4e6   : > { %v5105_v31 = vadd.f32 %v5104_v57, %v5055_v58  ;;  %v4960_v9 = vpop.f32.mrf.mxu0  ;;  %v5009_v34 = vpop.f32.mrf.mxu1  ;;  %v5360_v58 = vunpack.c.h.b16 %v5295_v4 }
 0x4e7   : > { %v5010_v55 = vadd.f32 %v5009_v34, %v4960_v9 }
 0x4e8   : > { %v10110_v1 = vadd.f32 %v5105_v31, %v9952_v54  ;;  %v5358_v31 = vunpack.c.h.b16 %v5286_v59 }
 0x4e9   : > { %v10113_v47 = vadd.f32 %v5010_v55, %v9955_v30  ;;  %5591 = vmatmul.bf16.gmra.mxu0 %v5373_v27  ;;  %5640 = vmatmul.bf16.gmra.mxu1 %v5374_v7 }
 0x4ea   : > { %5689 = vmatmul.bf16.gmra.mxu2 %v5373_v27  ;;  %5738 = vmatmul.bf16.gmra.mxu3 %v5374_v7  ;;  %v5375_v27 = vpack.c.b16 %v5359_v8, %v5357_v2  ;;  %v5376_v7 = vpack.c.b16 %v5360_v58, %v5358_v31 }
 0x4ed   : > { %v5058_v62 = vpop.f32.mrf.mxu2  ;;  %v5107_v29 = vpop.f32.mrf.mxu3 }
 0x4ee   : > { %v5108_v22 = vadd.f32 %v5107_v29, %v5058_v62  ;;  %v4962_v32 = vpop.f32.mrf.mxu0  ;;  %v5011_v54 = vpop.f32.mrf.mxu1 }
 0x4ef   : > { %v5012_v30 = vadd.f32 %v5011_v54, %v4962_v32  ;;  %v8282_v32 = vld [vmem:[#allocation2 + $0xc] sm:$0xf0]  ;;  %v7806_v54 = vld [vmem:[#allocation2 + $0x10] sm:$0xf0] }
 0x4f0   : > { %v10119_v16 = vadd.f32 %v5108_v22, %v9962_v11 }
 0x4f1   : > { %v10124_v40 = vadd.f32 %v5012_v30, %v10554_v36 }
 0x4f5   : > { %v5060_v57 = vpop.f32.mrf.mxu2  ;;  %v5109_v41 = vpop.f32.mrf.mxu3 }
 0x4f6   : > { %v5110_v9 = vadd.f32 %v5109_v41, %v5060_v57  ;;  %v4965_v34 = vpop.f32.mrf.mxu0  ;;  %v5014_v11 = vpop.f32.mrf.mxu1 }
 0x4f7   : > { %v5015_v55 = vadd.f32 %v5014_v11, %v4965_v34  ;;  %v8283_v11 = vld [vmem:[#allocation2 + $0x24] sm:$0xf0] }
 0x4f8   : > { %v10129_v25 = vadd.f32 %v5110_v9, %v9972_v12  ;;  %v7804_v12 = vld [vmem:[#allocation2 + $0x8] sm:$0xf] }
 0x4f9   : > { %v10132_v42 = vadd.f32 %v5015_v55, %v9975_v46  ;;  %5596 = vmatmul.bf16.gmra.mxu0 %v5375_v27  ;;  %5645 = vmatmul.bf16.gmra.mxu1 %v5376_v7  ;;  %v8082_v46 = vld [vmem:[#allocation2 + $0xc] sm:$0xf]  ;;  %v7805_v36 = vor.u32 %v8282_v32, %v7804_v12 }
 0x4fa   : > { %5694 = vmatmul.bf16.gmra.mxu2 %v5375_v27  ;;  %5743 = vmatmul.bf16.gmra.mxu3 %v5376_v7  ;;  %v7809_v59 = vor.u32 %v8082_v46, %v7806_v54  ;;  %v7814_v55 = vld [vmem:[#allocation2 + $0x28] sm:$0xf0] }
 0x4fd   : > { %v5063_v49 = vpop.f32.mrf.mxu2  ;;  %v5112_v50 = vpop.f32.mrf.mxu3 }
 0x4fe   : > { %v5113_v3 = vadd.f32 %v5112_v50, %v5063_v49  ;;  %v4967_v45 = vpop.f32.mrf.mxu0  ;;  %v5016_v26 = vpop.f32.mrf.mxu1 }
 0x4ff   : > { %v5017_v62 = vadd.f32 %v5016_v26, %v4967_v45 }
 0x500   : > { %v10135_v29 = vadd.f32 %v5113_v3, %v9986_v19 }
 0x501   : > { %v10138_v22 = vadd.f32 %v5017_v62, %v9991_v0 }
 0x505   : > { %v5065_v61 = vpop.f32.mrf.mxu2  ;;  %v5114_v56 = vpop.f32.mrf.mxu3 }
 0x506   : > { %v5115_v51 = vadd.f32 %v5114_v56, %v5065_v61  ;;  %v5562_v30 = vpop.f32.mrf.mxu0  ;;  %v5611_v6 = vpop.f32.mrf.mxu1 }
 0x507   : > { %v5612_v4 = vadd.f32 %v5611_v6, %v5562_v30  ;;  %v8284_v6 = vld [vmem:[#allocation2 + $0x3c] sm:$0xf0] }
 0x508   : > { %v10141_v8 = vadd.f32 %v5115_v51, %v9996_v44  ;;  %v7812_v44 = vld [vmem:[#allocation2 + $0x20] sm:$0xf] }
 0x509   : > { %v10144_v19 = vadd.f32 %v5612_v4, %v9999_v18  ;;  %6054 = vmatmul.bf16.vlgmr.msrb.gmra.mxu0 %v7805_v36  ;;  %6103 = vmatmul.bf16.vlgmr.msrb.gmra.mxu1 %v7809_v59  ;;  %v8083_v18 = vld [vmem:[#allocation2 + $0x24] sm:$0xf]  ;;  %v7813_v26 = vor.u32 %v8283_v11, %v7812_v44 }
 0x50a   : > { %6152 = vmatmul.bf16.vlgmr.msrb.gmra.mxu2 %v7805_v36  ;;  %6201 = vmatmul.bf16.vlgmr.msrb.gmra.mxu3 %v7809_v59  ;;  %v7817_v62 = vor.u32 %v8083_v18, %v7814_v55  ;;  %v7822_v4 = vld [vmem:[#allocation2 + $0x40] sm:$0xf0] }
 0x50d   : > { %v5660_v0 = vpop.f32.mrf.mxu2  ;;  %v5709_v58 = vpop.f32.mrf.mxu3 }
 0x50e   : > { %v5710_v57 = vadd.f32 %v5709_v58, %v5660_v0  ;;  %v5564_v41 = vpop.f32.mrf.mxu0  ;;  %v5613_v2 = vpop.f32.mrf.mxu1 }
 0x50f   : > { %v5614_v31 = vadd.f32 %v5613_v2, %v5564_v41 }
 0x510   : > { %v10147_v9 = vadd.f32 %v5710_v57, %v10005_v21 }
 0x511   : > { %v10150_v34 = vadd.f32 %v5614_v31, %v10010_v23 }
 0x515   : > { %v5662_v27 = vpop.f32.mrf.mxu2  ;;  %v5711_v7 = vpop.f32.mrf.mxu3 }
 0x516   : > { %v5712_v49 = vadd.f32 %v5711_v7, %v5662_v27  ;;  %v5567_v50 = vpop.f32.mrf.mxu0  ;;  %v5616_v3 = vpop.f32.mrf.mxu1 }
 0x517   : > { %v5617_v45 = vadd.f32 %v5616_v3, %v5567_v50  ;;  %v8285_v3 = vld [vmem:[#allocation2 + $0x54] sm:$0xf0] }
 0x518   : > { %v10153_v12 = vadd.f32 %v5712_v49, %v10015_v33  ;;  %v7820_v33 = vld [vmem:[#allocation2 + $0x38] sm:$0xf] }
 0x519   : > { %v10156_v21 = vadd.f32 %v5617_v45, %v10018_v53  ;;  %6059 = vmatmul.bf16.gmra.mxu0 %v7813_v26  ;;  %6108 = vmatmul.bf16.gmra.mxu1 %v7817_v62  ;;  %v8084_v53 = vld [vmem:[#allocation2 + $0x3c] sm:$0xf]  ;;  %v7821_v2 = vor.u32 %v8284_v6, %v7820_v33 }
 0x51a   : > { %6157 = vmatmul.bf16.gmra.mxu2 %v7813_v26  ;;  %6206 = vmatmul.bf16.gmra.mxu3 %v7817_v62  ;;  %v7825_v31 = vor.u32 %v8084_v53, %v7822_v4  ;;  %v7830_v45 = vld [vmem:[#allocation2 + $0x58] sm:$0xf0] }
 0x51d   : > { %v5665_v23 = vpop.f32.mrf.mxu2  ;;  %v5714_v32 = vpop.f32.mrf.mxu3 }
 0x51e   : > { %v5715_v46 = vadd.f32 %v5714_v32, %v5665_v23  ;;  %v5569_v54 = vpop.f32.mrf.mxu0  ;;  %v5618_v61 = vpop.f32.mrf.mxu1 }
 0x51f   : > { %v5619_v56 = vadd.f32 %v5618_v61, %v5569_v54 }
 0x520   : > { %v10159_v51 = vadd.f32 %v5715_v46, %v10024_v5 }
 0x521   : > { %v10162_v30 = vadd.f32 %v5619_v56, %v10029_v15 }
 0x525   : > { %v5667_v36 = vpop.f32.mrf.mxu2  ;;  %v5716_v59 = vpop.f32.mrf.mxu3 }
 0x526   : > { %v5717_v0 = vadd.f32 %v5716_v59, %v5667_v36  ;;  %v5572_v58 = vpop.f32.mrf.mxu0  ;;  %v5621_v57 = vpop.f32.mrf.mxu1 }
 0x527   : > { %v5622_v41 = vadd.f32 %v5621_v57, %v5572_v58  ;;  %v8286_v57 = vld [vmem:[#allocation2 + $0x6c] sm:$0xf0] }
 0x528   : > { %v10165_v44 = vadd.f32 %v5717_v0, %v10034_v63  ;;  %v7828_v63 = vld [vmem:[#allocation2 + $0x50] sm:$0xf] }
 0x529   : > { %v10168_v5 = vadd.f32 %v5622_v41, %v10037_v43  ;;  %6064 = vmatmul.bf16.gmra.mxu0 %v7821_v2  ;;  %6113 = vmatmul.bf16.gmra.mxu1 %v7825_v31  ;;  %v8085_v43 = vld [vmem:[#allocation2 + $0x54] sm:$0xf]  ;;  %v7829_v61 = vor.u32 %v8285_v3, %v7828_v63 }
 0x52a   : > { %6162 = vmatmul.bf16.gmra.mxu2 %v7821_v2  ;;  %6211 = vmatmul.bf16.gmra.mxu3 %v7825_v31  ;;  %v7833_v56 = vor.u32 %v8085_v43, %v7830_v45  ;;  %v7838_v41 = vld [vmem:[#allocation2 + $0x70] sm:$0xf0] }
 0x52d   : > { %v5670_v15 = vpop.f32.mrf.mxu2  ;;  %v5719_v11 = vpop.f32.mrf.mxu3 }
 0x52e   : > { %v5720_v18 = vadd.f32 %v5719_v11, %v5670_v15  ;;  %v5574_v55 = vpop.f32.mrf.mxu0  ;;  %v5623_v27 = vpop.f32.mrf.mxu1 }
 0x52f   : > { %v5624_v7 = vadd.f32 %v5623_v27, %v5574_v55 }
 0x530   : > { %v10171_v49 = vadd.f32 %v5720_v18, %v10043_v48 }
 0x531   : > { %v10174_v50 = vadd.f32 %v5624_v7, %v10048_v13 }
 0x535   : > { %v5672_v26 = vpop.f32.mrf.mxu2  ;;  %v5721_v62 = vpop.f32.mrf.mxu3 }
 0x536   : > { %v5722_v23 = vadd.f32 %v5721_v62, %v5672_v26  ;;  %v5577_v32 = vpop.f32.mrf.mxu0  ;;  %v5626_v46 = vpop.f32.mrf.mxu1 }
 0x537   : > { %v5627_v54 = vadd.f32 %v5626_v46, %v5577_v32  ;;  %v8287_v46 = vld [vmem:[#allocation2 + $0x84] sm:$0xf0] }
 0x538   : > { %v10177_v33 = vadd.f32 %v5722_v23, %v10053_v38  ;;  %v7836_v38 = vld [vmem:[#allocation2 + $0x68] sm:$0xf] }
 0x539   : > { %v10180_v48 = vadd.f32 %v5627_v54, %v10056_v35  ;;  %6069 = vmatmul.bf16.gmra.mxu0 %v7829_v61  ;;  %6118 = vmatmul.bf16.gmra.mxu1 %v7833_v56  ;;  %v8086_v35 = vld [vmem:[#allocation2 + $0x6c] sm:$0xf]  ;;  %v7837_v27 = vor.u32 %v8286_v57, %v7836_v38 }
 0x53a   : > { %6167 = vmatmul.bf16.gmra.mxu2 %v7829_v61  ;;  %6216 = vmatmul.bf16.gmra.mxu3 %v7833_v56  ;;  %v7841_v7 = vor.u32 %v8086_v35, %v7838_v41  ;;  %v7846_v54 = vld [vmem:[#allocation2 + $0x88] sm:$0xf0] }
 0x53d   : > { %v5675_v13 = vpop.f32.mrf.mxu2  ;;  %v5724_v6 = vpop.f32.mrf.mxu3 }
 0x53e   : > { %v5725_v53 = vadd.f32 %v5724_v6, %v5675_v13  ;;  %v5579_v4 = vpop.f32.mrf.mxu0  ;;  %v5628_v36 = vpop.f32.mrf.mxu1 }
 0x53f   : > { %v5629_v59 = vadd.f32 %v5628_v36, %v5579_v4 }
 0x540   : > { %v10183_v0 = vadd.f32 %v5725_v53, %v10062_v28 }
 0x541   : > { %v10186_v58 = vadd.f32 %v5629_v59, %v10067_v24 }
 0x545   : > { %v5677_v2 = vpop.f32.mrf.mxu2  ;;  %v5726_v31 = vpop.f32.mrf.mxu3 }
 0x546   : > { %v5727_v15 = vadd.f32 %v5726_v31, %v5677_v2  ;;  %v5582_v11 = vpop.f32.mrf.mxu0  ;;  %v5631_v18 = vpop.f32.mrf.mxu1 }
 0x547   : > { %v5632_v55 = vadd.f32 %v5631_v18, %v5582_v11  ;;  %v8288_v18 = vld [vmem:[#allocation2 + $0x9c] sm:$0xf0] }
 0x548   : > { %v10189_v63 = vadd.f32 %v5727_v15, %v10072_v14  ;;  %v7844_v14 = vld [vmem:[#allocation2 + $0x80] sm:$0xf] }
 0x549   : > { %v10192_v28 = vadd.f32 %v5632_v55, %v10075_v52  ;;  %6074 = vmatmul.bf16.gmra.mxu0 %v7837_v27  ;;  %6123 = vmatmul.bf16.gmra.mxu1 %v7841_v7  ;;  %v8087_v52 = vld [vmem:[#allocation2 + $0x84] sm:$0xf]  ;;  %v7845_v36 = vor.u32 %v8287_v46, %v7844_v14 }
 0x54a   : > { %6172 = vmatmul.bf16.gmra.mxu2 %v7837_v27  ;;  %6221 = vmatmul.bf16.gmra.mxu3 %v7841_v7  ;;  %v7849_v59 = vor.u32 %v8087_v52, %v7846_v54  ;;  %v7854_v55 = vld [vmem:[#allocation2 + $0xa0] sm:$0xf0] }
 0x54d   : > { %v5680_v24 = vpop.f32.mrf.mxu2  ;;  %v5729_v3 = vpop.f32.mrf.mxu3 }
 0x54e   : > { %v5730_v43 = vadd.f32 %v5729_v3, %v5680_v24  ;;  %v5584_v45 = vpop.f32.mrf.mxu0  ;;  %v5633_v26 = vpop.f32.mrf.mxu1 }
 0x54f   : > { %v5634_v62 = vadd.f32 %v5633_v26, %v5584_v45 }
 0x550   : > { %v10195_v23 = vadd.f32 %v5730_v43, %v10081_v39 }
 0x551   : > { %v10198_v32 = vadd.f32 %v5634_v62, %v10086_v37 }
 0x555   : > { %v5682_v61 = vpop.f32.mrf.mxu2  ;;  %v5731_v56 = vpop.f32.mrf.mxu3 }
 0x556   : > { %v5732_v13 = vadd.f32 %v5731_v56, %v5682_v61  ;;  %v5587_v6 = vpop.f32.mrf.mxu0  ;;  %v5636_v53 = vpop.f32.mrf.mxu1 }
 0x557   : > { %v5637_v4 = vadd.f32 %v5636_v53, %v5587_v6  ;;  %v8289_v53 = vld [vmem:[#allocation2 + $0xb4] sm:$0xf0] }
 0x558   : > { %v10201_v38 = vadd.f32 %v5732_v13, %v10091_v10  ;;  %v7852_v10 = vld [vmem:[#allocation2 + $0x98] sm:$0xf] }
 0x559   : > { %v10204_v39 = vadd.f32 %v5637_v4, %v10094_v60  ;;  %6079 = vmatmul.bf16.gmra.mxu0 %v7845_v36  ;;  %6128 = vmatmul.bf16.gmra.mxu1 %v7849_v59  ;;  %v8088_v60 = vld [vmem:[#allocation2 + $0x9c] sm:$0xf]  ;;  %v7853_v26 = vor.u32 %v8288_v18, %v7852_v10 }
 0x55a   : > { %6177 = vmatmul.bf16.gmra.mxu2 %v7845_v36  ;;  %6226 = vmatmul.bf16.gmra.mxu3 %v7849_v59  ;;  %v7857_v62 = vor.u32 %v8088_v60, %v7854_v55  ;;  %v7862_v4 = vld [vmem:[#allocation2 + $0xb8] sm:$0xf0] }
 0x55d   : > { %v5685_v37 = vpop.f32.mrf.mxu2  ;;  %v5734_v57 = vpop.f32.mrf.mxu3 }
 0x55e   : > { %v5735_v35 = vadd.f32 %v5734_v57, %v5685_v37  ;;  %v5589_v41 = vpop.f32.mrf.mxu0  ;;  %v5638_v2 = vpop.f32.mrf.mxu1 }
 0x55f   : > { %v5639_v31 = vadd.f32 %v5638_v2, %v5589_v41 }
 0x560   : > { %v10207_v15 = vadd.f32 %v5735_v35, %v10100_v17 }
 0x561   : > { %v10210_v11 = vadd.f32 %v5639_v31, %v10105_v20 }
 0x565   : > { %v5687_v27 = vpop.f32.mrf.mxu2  ;;  %v5736_v7 = vpop.f32.mrf.mxu3 }
 0x566   : > { %v5737_v24 = vadd.f32 %v5736_v7, %v5687_v27  ;;  %v5592_v3 = vpop.f32.mrf.mxu0  ;;  %v5641_v43 = vpop.f32.mrf.mxu1 }
 0x567   : > { %v5642_v45 = vadd.f32 %v5641_v43, %v5592_v3  ;;  %v6274_v3 = vld [vmem:[#allocation11] sm:$0x3] }
 0x568   : > { %v10213_v14 = vadd.f32 %v5737_v24, %v10110_v1  ;;  %v7860_v1 = vld [vmem:[#allocation2 + $0xb0] sm:$0xf] }
 0x569   : > { %v10216_v17 = vadd.f32 %v5642_v45, %v10113_v47  ;;  %6084 = vmatmul.bf16.gmra.mxu0 %v7853_v26  ;;  %6133 = vmatmul.bf16.gmra.mxu1 %v7857_v62  ;;  %v8089_v47 = vld [vmem:[#allocation2 + $0xb4] sm:$0xf]  ;;  %v7861_v2 = vor.u32 %v8289_v53, %v7860_v1 }
 0x56a   : > { %6182 = vmatmul.bf16.gmra.mxu2 %v7853_v26  ;;  %6231 = vmatmul.bf16.gmra.mxu3 %v7857_v62  ;;  %v7865_v31 = vor.u32 %v8089_v47, %v7862_v4  ;;  %v10244_v47 = vperm.slane %v6274_v3, 1 }
 0x56d   : > { %v5690_v20 = vpop.f32.mrf.mxu2  ;;  %v5739_v46 = vpop.f32.mrf.mxu3 }
 0x56e   : > { %v5740_v52 = vadd.f32 %v5739_v46, %v5690_v20  ;;  %v5594_v54 = vpop.f32.mrf.mxu0  ;;  %v5643_v61 = vpop.f32.mrf.mxu1  ;;  %v10236_v46 = vperm.slane %v6274_v3, 0 }
 0x56f   : > { %v5644_v56 = vadd.f32 %v5643_v61, %v5594_v54  ;;  %v6312_v54 = vld [vmem:[%s8871_s11] sm:$0xff] }
 0x570   : > { %v10219_v13 = vadd.f32 %v5740_v52, %v10119_v16 }
 0x571   : > { %v10222_v6 = vadd.f32 %v5644_v56, %v10124_v40 }
 0x575   : > { %v5692_v36 = vpop.f32.mrf.mxu2  ;;  %v5741_v59 = vpop.f32.mrf.mxu3 }
 0x576   : > { %v5742_v37 = vadd.f32 %v5741_v59, %v5692_v36  ;;  %v5597_v57 = vpop.f32.mrf.mxu0  ;;  %v5646_v35 = vpop.f32.mrf.mxu1  ;;  %v6313_v59 = vld [vmem:[%s8871_s11 + $0x8] sm:$0xff] }
 0x577   : > { %v5647_v41 = vadd.f32 %v5646_v35, %v5597_v57  ;;  %v6314_v35 = vld [vmem:[%s8871_s11 + $0x10] sm:$0xff] }
 0x578   : > { %v10225_v10 = vadd.f32 %v5742_v37, %v10129_v25 }
 0x579   : > { %v10228_v16 = vadd.f32 %v5647_v41, %v10132_v42  ;;  %6089 = vmatmul.bf16.gmra.mxu0 %v7861_v2  ;;  %6138 = vmatmul.bf16.gmra.mxu1 %v7865_v31 }
 0x57a   : > { %6187 = vmatmul.bf16.gmra.mxu2 %v7861_v2  ;;  %6236 = vmatmul.bf16.gmra.mxu3 %v7865_v31 }
 0x57d   : > { %v5695_v40 = vpop.f32.mrf.mxu2  ;;  %v5744_v18 = vpop.f32.mrf.mxu3 }
 0x57e   : > { %v5745_v60 = vadd.f32 %v5744_v18, %v5695_v40  ;;  %v5599_v55 = vpop.f32.mrf.mxu0  ;;  %v5648_v27 = vpop.f32.mrf.mxu1 }
 0x57f   : > { %v5649_v7 = vadd.f32 %v5648_v27, %v5599_v55 }
 0x580   : > { %v10231_v24 = vadd.f32 %v5745_v60, %v10135_v29 }
 0x581   : > { %v10234_v25 = vadd.f32 %v5649_v7, %v10138_v22  ;;  %v6315_v7 = vld [vmem:[%s8871_s11 + $0x18] sm:$0xff] }
 0x585   : > { %v5697_v42 = vpop.f32.mrf.mxu2  ;;  %v5746_v43 = vpop.f32.mrf.mxu3 }
 0x586   : > { %v5747_v45 = vadd.f32 %v5746_v43, %v5697_v42  ;;  %v6055_v26 = vpop.f32.mrf.mxu0  ;;  %v6104_v62 = vpop.f32.mrf.mxu1  ;;  %v6316_v43 = vld [vmem:[%s8871_s11 + $0x20] sm:$0xff] }
 0x587   : > { %v6105_v20 = vadd.f32 %v6104_v62, %v6055_v26 }
 0x588   : > { %v10239_v52 = vadd.f32 %v5747_v45, %v10141_v8 }
 0x589   : > { %v6242_v29 = vadd.f32 %v6105_v20, %v10144_v19 }
 0x58b   : > { %v6280_v22 = vadd.f32 %v10236_v46, %v6242_v29 }
 0x58d   : > { %v6344_v61 = vadd.f32 %v6312_v54, %v6280_v22  ;;  %v6153_v56 = vpop.f32.mrf.mxu2  ;;  %v6202_v1 = vpop.f32.mrf.mxu3 }
 0x58e   : > { %v6203_v53 = vadd.f32 %v6202_v1, %v6153_v56  ;;  %v6057_v4 = vpop.f32.mrf.mxu0  ;;  %v6106_v36 = vpop.f32.mrf.mxu1  ;;  %v6317_v56 = vld [vmem:[%s8871_s11 + $0x28] sm:$0xff] }
 0x58f   : > { %6376 = vst [vmem:[%s10248_s24] sm:$0xff] %v6344_v61  ;;  %v6107_v8 = vadd.f32 %v6106_v36, %v6057_v4  ;;  %v6318_v4 = vld [vmem:[%s8871_s11 + $0x30] sm:$0xff] }
 0x590   : > { %v6243_v19 = vadd.f32 %v6203_v53, %v10147_v9 }
 0x591   : > { %v6244_v37 = vadd.f32 %v6107_v8, %v10150_v34 }
 0x592   : > { %v6281_v57 = vadd.f32 %v10244_v47, %v6243_v19 }
 0x593   : > { %v6282_v41 = vadd.f32 %v10236_v46, %v6244_v37 }
 0x594   : > { %v6345_v2 = vadd.f32 %v6313_v59, %v6281_v57 }
 0x595   : > { %v6346_v31 = vadd.f32 %v6314_v35, %v6282_v41  ;;  %v6155_v40 = vpop.f32.mrf.mxu2  ;;  %v6204_v18 = vpop.f32.mrf.mxu3 }
 0x596   : > { %6377 = vst [vmem:[%s10248_s24 + $0x8] sm:$0xff] %v6345_v2  ;;  %v6205_v60 = vadd.f32 %v6204_v18, %v6155_v40  ;;  %v6060_v55 = vpop.f32.mrf.mxu0  ;;  %v6109_v27 = vpop.f32.mrf.mxu1  ;;  %v6319_v2 = vld [vmem:[%s8871_s11 + $0x38] sm:$0xff]  ;;  %v6320_v18 = vld [vmem:[%s8871_s11 + $0x40] sm:$0xff] }
 0x597   : > { %6378 = vst [vmem:[%s10248_s24 + $0x10] sm:$0xff] %v6346_v31  ;;  %v6110_v9 = vadd.f32 %v6109_v27, %v6060_v55 }
 0x598   : > { %v6245_v34 = vadd.f32 %v6205_v60, %v10153_v12 }
 0x599   : > { %v6246_v3 = vadd.f32 %v6110_v9, %v10156_v21 }
 0x59a   : > { %v6283_v42 = vadd.f32 %v10244_v47, %v6245_v34 }
 0x59b   : > { %v6284_v45 = vadd.f32 %v10236_v46, %v6246_v3 }
 0x59c   : > { %v6347_v26 = vadd.f32 %v6315_v7, %v6283_v42 }
 0x59d   : > { %v6348_v62 = vadd.f32 %v6316_v43, %v6284_v45  ;;  %v6158_v20 = vpop.f32.mrf.mxu2  ;;  %v6207_v29 = vpop.f32.mrf.mxu3  ;;  %v6321_v43 = vld [vmem:[%s8871_s11 + $0x48] sm:$0xff] }
 0x59e   : > { %6379 = vst [vmem:[%s10248_s24 + $0x18] sm:$0xff] %v6347_v26  ;;  %v6208_v54 = vadd.f32 %v6207_v29, %v6158_v20  ;;  %v6062_v22 = vpop.f32.mrf.mxu0  ;;  %v6111_v61 = vpop.f32.mrf.mxu1 }
 0x59f   : > { %6380 = vst [vmem:[%s10248_s24 + $0x20] sm:$0xff] %v6348_v62  ;;  %v6112_v12 = vadd.f32 %v6111_v61, %v6062_v22  ;;  %v6322_v62 = vld [vmem:[%s8871_s11 + $0x50] sm:$0xff] }
 0x5a0   : > { %v6247_v21 = vadd.f32 %v6208_v54, %v10159_v51 }
 0x5a1   : > { %v6248_v1 = vadd.f32 %v6112_v12, %v10162_v30 }
 0x5a2   : > { %v6285_v53 = vadd.f32 %v10244_v47, %v6247_v21 }
 0x5a3   : > { %v6286_v36 = vadd.f32 %v10236_v46, %v6248_v1  ;;  %v6323_v1 = vld [vmem:[%s8871_s11 + $0x58] sm:$0xff] }
 0x5a4   : > { %v6349_v8 = vadd.f32 %v6317_v56, %v6285_v53 }
 0x5a5   : > { %v6350_v19 = vadd.f32 %v6318_v4, %v6286_v36  ;;  %v6160_v59 = vpop.f32.mrf.mxu2  ;;  %v6209_v37 = vpop.f32.mrf.mxu3  ;;  %v6324_v36 = vld [vmem:[%s8871_s11 + $0x60] sm:$0xff] }
 0x5a6   : > { %6381 = vst [vmem:[%s10248_s24 + $0x28] sm:$0xff] %v6349_v8  ;;  %v6210_v57 = vadd.f32 %v6209_v37, %v6160_v59  ;;  %v6065_v35 = vpop.f32.mrf.mxu0  ;;  %v6114_v41 = vpop.f32.mrf.mxu1 }
 0x5a7   : > { %6382 = vst [vmem:[%s10248_s24 + $0x30] sm:$0xff] %v6350_v19  ;;  %v6115_v51 = vadd.f32 %v6114_v41, %v6065_v35 }
 0x5a8   : > { %v6249_v30 = vadd.f32 %v6210_v57, %v10165_v44 }
 0x5a9   : > { %v6250_v31 = vadd.f32 %v6115_v51, %v10168_v5 }
 0x5aa   : > { %v6287_v40 = vadd.f32 %v10244_v47, %v6249_v30  ;;  %v6325_v30 = vld [vmem:[%s8871_s11 + $0x68] sm:$0xff] }
 0x5ab   : > { %v6288_v60 = vadd.f32 %v10236_v46, %v6250_v31 }
 0x5ac   : > { %v6351_v55 = vadd.f32 %v6319_v2, %v6287_v40  ;;  %v6326_v40 = vld [vmem:[%s8871_s11 + $0x70] sm:$0xff] }
 0x5ad   : > { %v6352_v27 = vadd.f32 %v6320_v18, %v6288_v60  ;;  %v6163_v9 = vpop.f32.mrf.mxu2  ;;  %v6212_v34 = vpop.f32.mrf.mxu3 }
 0x5ae   : > { %6383 = vst [vmem:[%s10248_s24 + $0x38] sm:$0xff] %v6351_v55  ;;  %v6213_v7 = vadd.f32 %v6212_v34, %v6163_v9  ;;  %v6067_v3 = vpop.f32.mrf.mxu0  ;;  %v6116_v42 = vpop.f32.mrf.mxu1 }
 0x5af   : > { %6384 = vst [vmem:[%s10248_s24 + $0x40] sm:$0xff] %v6352_v27  ;;  %v6117_v44 = vadd.f32 %v6116_v42, %v6067_v3  ;;  %v6327_v42 = vld [vmem:[%s8871_s11 + $0x78] sm:$0xff] }
 0x5b0   : > { %v6251_v5 = vadd.f32 %v6213_v7, %v10171_v49 }
 0x5b1   : > { %v6252_v45 = vadd.f32 %v6117_v44, %v10174_v50 }
 0x5b2   : > { %v6289_v26 = vadd.f32 %v10244_v47, %v6251_v5 }
 0x5b3   : > { %v6290_v20 = vadd.f32 %v10236_v46, %v6252_v45 }
 0x5b4   : > { %v6353_v29 = vadd.f32 %v6321_v43, %v6289_v26  ;;  %v6328_v43 = vld [vmem:[%s8871_s11 + $0x80] sm:$0xff] }
 0x5b5   : > { %v6354_v54 = vadd.f32 %v6322_v62, %v6290_v20  ;;  %v6165_v22 = vpop.f32.mrf.mxu2  ;;  %v6214_v61 = vpop.f32.mrf.mxu3 }
 0x5b6   : > { %6385 = vst [vmem:[%s10248_s24 + $0x48] sm:$0xff] %v6353_v29  ;;  %v6215_v12 = vadd.f32 %v6214_v61, %v6165_v22  ;;  %v6070_v21 = vpop.f32.mrf.mxu0  ;;  %v6119_v56 = vpop.f32.mrf.mxu1 }
 0x5b7   : > { %6386 = vst [vmem:[%s10248_s24 + $0x50] sm:$0xff] %v6354_v54  ;;  %v6120_v49 = vadd.f32 %v6119_v56, %v6070_v21 }
 0x5b8   : > { %v6253_v50 = vadd.f32 %v6215_v12, %v10177_v33  ;;  %v6329_v12 = vld [vmem:[%s8871_s11 + $0x88] sm:$0xff] }
 0x5b9   : > { %v6254_v53 = vadd.f32 %v6120_v49, %v10180_v48  ;;  %v6330_v49 = vld [vmem:[%s8871_s11 + $0x90] sm:$0xff] }
 0x5ba   : > { %v6291_v4 = vadd.f32 %v10244_v47, %v6253_v50 }
 0x5bb   : > { %v6292_v8 = vadd.f32 %v10236_v46, %v6254_v53 }
 0x5bc   : > { %v6355_v19 = vadd.f32 %v6323_v1, %v6291_v4 }
 0x5bd   : > { %v6356_v59 = vadd.f32 %v6324_v36, %v6292_v8  ;;  %v6168_v37 = vpop.f32.mrf.mxu2  ;;  %v6217_v57 = vpop.f32.mrf.mxu3 }
 0x5be   : > { %6387 = vst [vmem:[%s10248_s24 + $0x58] sm:$0xff] %v6355_v19  ;;  %v6218_v35 = vadd.f32 %v6217_v57, %v6168_v37  ;;  %v6072_v41 = vpop.f32.mrf.mxu0  ;;  %v6121_v51 = vpop.f32.mrf.mxu1  ;;  %v6331_v37 = vld [vmem:[%s8871_s11 + $0x98] sm:$0xff] }
 0x5bf   : > { %6388 = vst [vmem:[%s10248_s24 + $0x60] sm:$0xff] %v6356_v59  ;;  %v6122_v33 = vadd.f32 %v6121_v51, %v6072_v41  ;;  %v6332_v41 = vld [vmem:[%s8871_s11 + $0xa0] sm:$0xff] }
 0x5c0   : > { %v6255_v48 = vadd.f32 %v6218_v35, %v10183_v0 }
 0x5c1   : > { %v6256_v2 = vadd.f32 %v6122_v33, %v10186_v58 }
 0x5c2   : > { %v6293_v31 = vadd.f32 %v10244_v47, %v6255_v48 }
 0x5c3   : > { %v6294_v18 = vadd.f32 %v10236_v46, %v6256_v2 }
 0x5c4   : > { %v6357_v60 = vadd.f32 %v6325_v30, %v6293_v31 }
 0x5c5   : > { %v6358_v55 = vadd.f32 %v6326_v40, %v6294_v18  ;;  %v6170_v27 = vpop.f32.mrf.mxu2  ;;  %v6219_v9 = vpop.f32.mrf.mxu3 }
 0x5c6   : > { %6389 = vst [vmem:[%s10248_s24 + $0x68] sm:$0xff] %v6357_v60  ;;  %v6220_v34 = vadd.f32 %v6219_v9, %v6170_v27  ;;  %v6075_v7 = vpop.f32.mrf.mxu0  ;;  %v6124_v3 = vpop.f32.mrf.mxu1  ;;  %v6333_v60 = vld [vmem:[%s8871_s11 + $0xa8] sm:$0xff]  ;;  %v6334_v9 = vld [vmem:[%s8871_s11 + $0xb0] sm:$0xff] }
 0x5c7   : > { %6390 = vst [vmem:[%s10248_s24 + $0x70] sm:$0xff] %v6358_v55  ;;  %v6125_v0 = vadd.f32 %v6124_v3, %v6075_v7 }
 0x5c8   : > { %v6257_v58 = vadd.f32 %v6220_v34, %v10189_v63 }
 0x5c9   : > { %v6258_v44 = vadd.f32 %v6125_v0, %v10192_v28 }
 0x5ca   : > { %v6295_v5 = vadd.f32 %v10244_v47, %v6257_v58 }
 0x5cb   : > { %v6296_v45 = vadd.f32 %v10236_v46, %v6258_v44 }
 0x5cc   : > { %v6359_v26 = vadd.f32 %v6327_v42, %v6295_v5 }
 0x5cd   : > { %v6360_v62 = vadd.f32 %v6328_v43, %v6296_v45  ;;  %v6173_v20 = vpop.f32.mrf.mxu2  ;;  %v6222_v29 = vpop.f32.mrf.mxu3  ;;  %v6335_v43 = vld [vmem:[%s8871_s11 + $0xb8] sm:$0xff] }
 0x5ce   : > { %6391 = vst [vmem:[%s10248_s24 + $0x78] sm:$0xff] %v6359_v26  ;;  %v6223_v54 = vadd.f32 %v6222_v29, %v6173_v20  ;;  %v6077_v22 = vpop.f32.mrf.mxu0  ;;  %v6126_v61 = vpop.f32.mrf.mxu1 }
 0x5cf   : > { %6392 = vst [vmem:[%s10248_s24 + $0x80] sm:$0xff] %v6360_v62  ;;  %v6127_v63 = vadd.f32 %v6126_v61, %v6077_v22  ;;  %v6336_v62 = vld [vmem:[%s8871_s11 + $0xc0] sm:$0xff] }
 0x5d0   : > { %v6259_v28 = vadd.f32 %v6223_v54, %v10195_v23 }
 0x5d1   : > { %v6260_v21 = vadd.f32 %v6127_v63, %v10198_v32 }
 0x5d2   : > { %v6297_v56 = vadd.f32 %v10244_v47, %v6259_v28 }
 0x5d3   : > { %v6298_v50 = vadd.f32 %v10236_v46, %v6260_v21  ;;  %v6337_v21 = vld [vmem:[%s8871_s11 + $0xc8] sm:$0xff] }
 0x5d4   : > { %v6361_v1 = vadd.f32 %v6329_v12, %v6297_v56 }
 0x5d5   : > { %v6362_v53 = vadd.f32 %v6330_v49, %v6298_v50  ;;  %v6175_v4 = vpop.f32.mrf.mxu2  ;;  %v6224_v36 = vpop.f32.mrf.mxu3  ;;  %v6338_v50 = vld [vmem:[%s8871_s11 + $0xd0] sm:$0xff] }
 0x5d6   : > { %6393 = vst [vmem:[%s10248_s24 + $0x88] sm:$0xff] %v6361_v1  ;;  %v6225_v8 = vadd.f32 %v6224_v36, %v6175_v4  ;;  %v6080_v19 = vpop.f32.mrf.mxu0  ;;  %v6129_v59 = vpop.f32.mrf.mxu1 }
 0x5d7   : > { %6394 = vst [vmem:[%s10248_s24 + $0x90] sm:$0xff] %v6362_v53  ;;  %v6130_v23 = vadd.f32 %v6129_v59, %v6080_v19 }
 0x5d8   : > { %v6261_v32 = vadd.f32 %v6225_v8, %v10201_v38 }
 0x5d9   : > { %v6262_v57 = vadd.f32 %v6130_v23, %v10204_v39 }
 0x5da   : > { %v6299_v35 = vadd.f32 %v10244_v47, %v6261_v32  ;;  %v6339_v32 = vld [vmem:[%s8871_s11 + $0xd8] sm:$0xff] }
 0x5db   : > { %v6300_v51 = vadd.f32 %v10236_v46, %v6262_v57 }
 0x5dc   : > { %v6363_v33 = vadd.f32 %v6331_v37, %v6299_v35  ;;  %v6340_v35 = vld [vmem:[%s8871_s11 + $0xe0] sm:$0xff] }
 0x5dd   : > { %v6364_v48 = vadd.f32 %v6332_v41, %v6300_v51  ;;  %v6178_v30 = vpop.f32.mrf.mxu2  ;;  %v6227_v2 = vpop.f32.mrf.mxu3 }
 0x5de   : > { %6395 = vst [vmem:[%s10248_s24 + $0x98] sm:$0xff] %v6363_v33  ;;  %v6228_v31 = vadd.f32 %v6227_v2, %v6178_v30  ;;  %v6082_v40 = vpop.f32.mrf.mxu0  ;;  %v6131_v18 = vpop.f32.mrf.mxu1 }
 0x5df   : > { %6396 = vst [vmem:[%s10248_s24 + $0xa0] sm:$0xff] %v6364_v48  ;;  %v6132_v38 = vadd.f32 %v6131_v18, %v6082_v40  ;;  %v6341_v18 = vld [vmem:[%s8871_s11 + $0xe8] sm:$0xff] }
 0x5e0   : > { %v6263_v39 = vadd.f32 %v6228_v31, %v10207_v15 }
 0x5e1   : > { %v6264_v55 = vadd.f32 %v6132_v38, %v10210_v11 }
 0x5e2   : > { %v6301_v27 = vadd.f32 %v10244_v47, %v6263_v39 }
 0x5e3   : > { %v6302_v34 = vadd.f32 %v10236_v46, %v6264_v55 }
 0x5e4   : > { %v6365_v7 = vadd.f32 %v6333_v60, %v6301_v27  ;;  %v6342_v60 = vld [vmem:[%s8871_s11 + $0xf0] sm:$0xff] }
 0x5e5   : > { %v6366_v3 = vadd.f32 %v6334_v9, %v6302_v34  ;;  %v6180_v0 = vpop.f32.mrf.mxu2  ;;  %v6229_v58 = vpop.f32.mrf.mxu3 }
 0x5e6   : > { %6397 = vst [vmem:[%s10248_s24 + $0xa8] sm:$0xff] %v6365_v7  ;;  %v6230_v42 = vadd.f32 %v6229_v58, %v6180_v0  ;;  %v6085_v44 = vpop.f32.mrf.mxu0  ;;  %v6134_v5 = vpop.f32.mrf.mxu1 }
 0x5e7   : > { %6398 = vst [vmem:[%s10248_s24 + $0xb0] sm:$0xff] %v6366_v3  ;;  %v6135_v15 = vadd.f32 %v6134_v5, %v6085_v44  ;;  %v6343_v3 = vld [vmem:[%s8871_s11 + $0xf8] sm:$0xff] }
 0x5e8   : > { %v6265_v11 = vadd.f32 %v6230_v42, %v10213_v14 }
 0x5e9   : > { %v6266_v45 = vadd.f32 %v6135_v15, %v10216_v17 }
 0x5ea   : > { %v6303_v26 = vadd.f32 %v10244_v47, %v6265_v11 }
 0x5eb   : > { %v6304_v20 = vadd.f32 %v10236_v46, %v6266_v45 }
 0x5ec   : > { %v6367_v29 = vadd.f32 %v6335_v43, %v6303_v26 }
 0x5ed   : > { %v6368_v54 = vadd.f32 %v6336_v62, %v6304_v20  ;;  %v6183_v22 = vpop.f32.mrf.mxu2  ;;  %v6232_v61 = vpop.f32.mrf.mxu3 }
 0x5ee   : > { %6399 = vst [vmem:[%s10248_s24 + $0xb8] sm:$0xff] %v6367_v29  ;;  %v6233_v63 = vadd.f32 %v6232_v61, %v6183_v22  ;;  %v6087_v28 = vpop.f32.mrf.mxu0  ;;  %v6136_v12 = vpop.f32.mrf.mxu1 }
 0x5ef   : > { %6400 = vst [vmem:[%s10248_s24 + $0xc0] sm:$0xff] %v6368_v54  ;;  %v6137_v14 = vadd.f32 %v6136_v12, %v6087_v28 }
 0x5f0   : > { %v6267_v17 = vadd.f32 %v6233_v63, %v10219_v13 }
 0x5f1   : > { %v6268_v56 = vadd.f32 %v6137_v14, %v10222_v6 }
 0x5f2   : > { %v6305_v49 = vadd.f32 %v10244_v47, %v6267_v17 }
 0x5f3   : > { %v6306_v1 = vadd.f32 %v10236_v46, %v6268_v56 }
 0x5f4   : > { %v6369_v53 = vadd.f32 %v6337_v21, %v6305_v49 }
 0x5f5   : > { %v6370_v4 = vadd.f32 %v6338_v50, %v6306_v1  ;;  %v6185_v36 = vpop.f32.mrf.mxu2  ;;  %v6234_v8 = vpop.f32.mrf.mxu3 }
 0x5f6   : > { %6401 = vst [vmem:[%s10248_s24 + $0xc8] sm:$0xff] %v6369_v53  ;;  %v6235_v19 = vadd.f32 %v6234_v8, %v6185_v36  ;;  %v6090_v59 = vpop.f32.mrf.mxu0  ;;  %v6139_v23 = vpop.f32.mrf.mxu1 }
 0x5f7   : > { %6402 = vst [vmem:[%s10248_s24 + $0xd0] sm:$0xff] %v6370_v4  ;;  %v6140_v13 = vadd.f32 %v6139_v23, %v6090_v59 }
 0x5f8   : > { %v6269_v6 = vadd.f32 %v6235_v19, %v10225_v10 }
 0x5f9   : > { %v6270_v37 = vadd.f32 %v6140_v13, %v10228_v16 }
 0x5fa   : > { %v6307_v57 = vadd.f32 %v10244_v47, %v6269_v6 }
 0x5fb   : > { %v6308_v41 = vadd.f32 %v10236_v46, %v6270_v37 }
 0x5fc   : > { %v6371_v51 = vadd.f32 %v6339_v32, %v6307_v57 }
 0x5fd   : > { %v6372_v33 = vadd.f32 %v6340_v35, %v6308_v41  ;;  %v6188_v48 = vpop.f32.mrf.mxu2  ;;  %v6237_v30 = vpop.f32.mrf.mxu3 }
 0x5fe   : > { %6403 = vst [vmem:[%s10248_s24 + $0xd8] sm:$0xff] %v6371_v51  ;;  %v6238_v2 = vadd.f32 %v6237_v30, %v6188_v48  ;;  %v6092_v31 = vpop.f32.mrf.mxu0  ;;  %v6141_v10 = vpop.f32.mrf.mxu1 }
 0x5ff   : > { %6404 = vst [vmem:[%s10248_s24 + $0xe0] sm:$0xff] %v6372_v33  ;;  %v6142_v40 = vadd.f32 %v6141_v10, %v6092_v31 }
 0x600   : > { %v6271_v16 = vadd.f32 %v6238_v2, %v10231_v24 }
 0x601   : > { %v6272_v38 = vadd.f32 %v6142_v40, %v10234_v25 }
 0x602   : > { %v6309_v39 = vadd.f32 %v10244_v47, %v6271_v16 }
 0x603   : > { %v6310_v55 = vadd.f32 %v10236_v46, %v6272_v38 }
 0x604   : > { %v6373_v27 = vadd.f32 %v6341_v18, %v6309_v39 }
 0x605   : > { %v6374_v9 = vadd.f32 %v6342_v60, %v6310_v55  ;;  %v6190_v34 = vpop.f32.mrf.mxu2  ;;  %v6239_v7 = vpop.f32.mrf.mxu3 }
 0x606   : > { %6405 = vst [vmem:[%s10248_s24 + $0xe8] sm:$0xff] %v6373_v27  ;;  %v6240_v24 = vadd.f32 %v6239_v7, %v6190_v34 }
 0x607   : > { %6406 = vst [vmem:[%s10248_s24 + $0xf0] sm:$0xff] %v6374_v9 }
 0x608   : > { %v6273_v25 = vadd.f32 %v6240_v24, %v10239_v52 }
 0x60a   : > { %v6311_v46 = vadd.f32 %v10244_v47, %v6273_v25 }
 0x60c   : > { %v6375_v0 = vadd.f32 %v6343_v3, %v6311_v46 }
 0x60e   : > { %6407 = vst [vmem:[%s10248_s24 + $0xf8] sm:$0xff] %v6375_v0 }
 0x60f   : > { %8661 = shalt.err (!%p8658_p10)
}
 0x610   : > { %s8719_s26 = smov 256   ;;  %s8720_s11 = smov 16  }
 0x611   : > { %8374 = dma.vmem_to_hbm [thread:$0]  (%p8835_p3), %s6423_s6, 4096, %s6425_s22, %s6409_s7, %s8719_s26, %s8719_s26, %s8720_s11  }
 0x612 PF: > { %s6439_s24 = sand.u32 1, %s8696_s18   ;;  %p10555_p12 = scmp.ge.s32.totalorder %s8708_s21, 2 }
 0x613   : > { %s6440_s29 = scalar_lea.sflag [#allocation5], %s6439_s24 }
 0x614   : > { %p8394_p13 = pnand %p10555_p12, %p8786_p6 }
 0x616   : > { %p8395_p0 = pneg %p8394_p13 }
 0x618   : > { %8691 = dma.done.wait (%p8395_p0), %s6440_s29, 4096  }
 0x619   : > { %8693 = vsyncadd (%p8395_p0), %s6440_s29, 4294963200  ;;  %p20_p5 = scmp.ge.s32.totalorder %s8825_s9, 4   ;;  %s10556_s18 = smov %s8700_s19 }
 0x61a   : > { %s10557_s19 = smov %s8704_s20  ;;  %s10558_s20 = smov %s8841_s13 }
 0x61b   : > { %s10559_s21 = smov %s8825_s9  ;;  %22 = sbr.rel (!%p20_p5) target bundleno = 7 (0x7), region = 109 }
 0x620   :  { %6446 = vsyncpa [#allocation4], 1 }
 0x621   :  { %6448 = vsyncpa [#allocation4 + $0x1], 1 }
 0x622   :  { %6449 = vsyncpa [#allocation7], 1 }
 0x623   :  { %6450 = vsyncpa [#allocation10], 1 }
 0x624   :  { %6451 = vsyncpa [#allocation5], 1 }
 0x625   :  { %6453 = vsyncpa [#allocation5 + $0x1], 1 }

</bundles_post_ra>
